<compile_context>
chip_gen: v7x
topology: tpu7x:2x2x1
jax: 0.10.0
libtpu: 0.0.40
codegen_flags: <defaults>
</compile_context>

<pallas_src>
import math

import jax
import jax.numpy as jnp
from jax import lax
from jax.experimental import pallas as pl
from jax.experimental.pallas import tpu as pltpu


# -----------------------------------------------------------------------------
# Conv 3x3 (stride 1, padding 1) + bias + ReLU.  NHWC activations, weights
# flattened to im2col layout (9*Cin, Cout).  One grid step = one batch element
# x one block of TH output rows.
# -----------------------------------------------------------------------------
def _conv3x3_relu_kernel(x0_ref, x1_ref, x2_ref, w_ref, b_ref, o_ref):
    # x{ky}_ref: (1, TH, W+2, Cin)  input rows shifted by ky (halo via views)
    # w_ref:     (9*Cin, Cout)      weights, row order (ky, kx, cin)
    # b_ref:     (1, Cout)
    # o_ref:     (1, TH, W, Cout)
    TH = o_ref.shape[1]
    W = o_ref.shape[2]
    Cout = o_ref.shape[3]
    Cin = x0_ref.shape[3]

    taps = []
    for x_ref in (x0_ref, x1_ref, x2_ref):            # ky = 0, 1, 2
        xk = x_ref[0]                                  # (TH, W+2, Cin)
        for kx in range(3):
            taps.append(xk[:, kx:kx + W, :].reshape(TH * W, Cin))
    # im2col: one deep-K MXU matmul instead of 9 shallow (K=Cin) matmuls.
    patches = jnp.concatenate(taps, axis=-1)           # (TH*W, 9*Cin)
    acc = jnp.dot(patches, w_ref[...], preferred_element_type=jnp.float32)
    acc = jnp.maximum(acc + b_ref[0], 0.0)
    o_ref[0] = acc.reshape(TH, W, Cout).astype(o_ref.dtype)


def _pick_row_tile(H, th_max=16):
    """Largest row tile TH (multiple of 8, divisor of H) not above th_max,
    preferring >= 2 tiles so the pipeline has something to overlap."""
    if H <= 8:
        return H
    target = min(th_max, max(8, H // 2))
    for th in range(target, 7, -1):
        if H % th == 0 and th % 8 == 0:
            return th
    return H


def conv3x3_relu(x_nhwc, w_hwio, b, *, th_max=16):
    N, H, W, Cin = x_nhwc.shape
    Cout = w_hwio.shape[-1]
    TH = _pick_row_tile(H, th_max)

    # TODO(synk): fold the zero-pad + row-shifted views into the kernel
    # (element-offset halo with boundary masking) to drop this extra HBM pass
    # over the activation (~2% of total traffic next to fc1's weight stream).
    xp = jnp.pad(x_nhwc, ((0, 0), (1, 1), (1, 1), (0, 0)))
    x_views = [xp[:, ky:ky + H] for ky in range(3)]    # each (N, H, W+2, Cin)
    w2d = w_hwio.reshape(9 * Cin, Cout)                # rows = (ky, kx, cin)

    view_spec = pl.BlockSpec((1, TH, W + 2, Cin), lambda n, i: (n, i, 0, 0))
    return pl.pallas_call(
        _conv3x3_relu_kernel,
        out_shape=jax.ShapeDtypeStruct((N, H, W, Cout), jnp.float32),
        grid_spec=pltpu.PrefetchScalarGridSpec(
            num_scalar_prefetch=0,
            grid=(N, H // TH),
            in_specs=[view_spec, view_spec, view_spec,
                      pl.BlockSpec((9 * Cin, Cout), lambda n, i: (0, 0)),
                      pl.BlockSpec((1, Cout), lambda n, i: (0, 0))],
            out_specs=pl.BlockSpec((1, TH, W, Cout), lambda n, i: (n, i, 0, 0)),
        ),
        compiler_params=pltpu.CompilerParams(
            dimension_semantics=("parallel", "parallel"),
            vmem_limit_bytes=48 * 1024 * 1024),
    )(x_views[0], x_views[1], x_views[2], w2d, b.reshape(1, Cout))


# -----------------------------------------------------------------------------
# Fused MLP head: out = relu(x @ W1 + b1) @ W2 + b2.
# W1 is pre-split into J=2 column halves (leading *parallel* grid axis ->
# megacore sharding on v7x); the huge fc1 contraction K is the trailing
# "arbitrary" axis, accumulated in VMEM scratch; fc2 is fused into the last
# K step and the two fc2 partial sums are combined (40 elements) in the wrapper.
# -----------------------------------------------------------------------------
def _mlp_head_kernel(x_ref, w1_ref, b1_ref, w2_ref, o_ref, acc_ref):
    k = pl.program_id(1)

    @pl.when(k == 0)
    def _():
        acc_ref[...] = jnp.zeros_like(acc_ref)

    acc_ref[...] += jnp.dot(x_ref[...], w1_ref[...],
                            preferred_element_type=jnp.float32)

    @pl.when(k == pl.num_programs(1) - 1)
    def _():
        h = jnp.maximum(acc_ref[...] + b1_ref[...], 0.0)          # fc1 + ReLU
        o_ref[...] = jnp.dot(h, w2_ref[...],                      # fc2 partial
                             preferred_element_type=jnp.float32
                             ).astype(o_ref.dtype)


def mlp_head(x_flat, w1_split, b1, w2, b2, *, tk_max=32768):
    N, K = x_flat.shape
    J, K2, Hh = w1_split.shape                 # (2, K, 64)
    assert K2 == K
    H2 = w2.shape[1]

    # Large K tile: fewer grid steps over the HBM-bound fc1 weight stream
    # (8 MiB/block double-buffered at tk=32768 -> per-step overhead <~6%).
    tk = math.gcd(K, tk_max)
    if tk % 128 != 0:                          # keep the x block lane-legal
        tk = K
    # TODO(synk): stream w_fc1 (and x) as bf16 with f32 accumulation to halve
    # the HBM-bound fc1 time (biggest relative win, but changes numerics vs.
    # the f32 PyTorch module, so it is left off by default).

    b1s = b1.reshape(J, 1, Hh)
    partials = pl.pallas_call(
        _mlp_head_kernel,
        out_shape=jax.ShapeDtypeStruct((J, N, H2), jnp.float32),
        grid_spec=pltpu.PrefetchScalarGridSpec(
            num_scalar_prefetch=0,
            grid=(J, K // tk),
            in_specs=[
                pl.BlockSpec((N, tk), lambda j, k: (0, k)),
                pl.BlockSpec((None, tk, Hh), lambda j, k: (j, k, 0)),
                pl.BlockSpec((None, 1, Hh), lambda j, k: (j, 0, 0)),
                pl.BlockSpec((Hh, H2), lambda j, k: (j, 0)),
            ],
            out_specs=pl.BlockSpec((None, N, H2), lambda j, k: (j, 0, 0)),
            scratch_shapes=[pltpu.VMEM((N, Hh), jnp.float32)],
        ),
        compiler_params=pltpu.CompilerParams(
            dimension_semantics=("parallel", "arbitrary"),
            vmem_limit_bytes=48 * 1024 * 1024),
    )(x_flat, w1_split, b1s, w2)
    return partials.sum(axis=0) + b2           # tiny (J, N, 10) combine


# -----------------------------------------------------------------------------
# Full model
# -----------------------------------------------------------------------------
def cnn_forward(x_nchw, params):
    # NCHW (PyTorch) -> NHWC (kernel layout); 3 channels, negligible.
    x = jnp.transpose(x_nchw, (0, 2, 3, 1))
    x = conv3x3_relu(x, params["w_conv1"], params["b_conv1"])     # (N, H, W, 32)
    x = conv3x3_relu(x, params["w_conv2"], params["b_conv2"])     # (N, H, W, 64)
    # NHWC flatten -- w_fc1 rows were permuted to this order at prep time, so
    # no NCHW transpose / HBM shuffle is needed before fc1.
    x = x.reshape(x.shape[0], -1)
    return mlp_head(x, params["w_fc1"], params["b_fc1"],
                    params["w_fc2"], params["b_fc2"])


# -----------------------------------------------------------------------------
# Parameters: generated in PyTorch layout, converted once to kernel layout.
# -----------------------------------------------------------------------------
def init_torch_params(key, H, W):
    ks = jax.random.split(key, 8)
    C1, C2, H1, H2 = 32, 64, 128, 10
    K = C2 * H * W
    return {
        "w_conv1": jax.random.normal(ks[0], (C1, 3, 3, 3), jnp.float32) * 0.1,
        "b_conv1": jax.random.normal(ks[1], (C1,), jnp.float32) * 0.1,
        "w_conv2": jax.random.normal(ks[2], (C2, C1, 3, 3), jnp.float32) * 0.05,
        "b_conv2": jax.random.normal(ks[3], (C2,), jnp.float32) * 0.05,
        "w_fc1": jax.random.normal(ks[4], (H1, K), jnp.float32) * 0.01,
        "b_fc1": jax.random.normal(ks[5], (H1,), jnp.float32) * 0.01,
        "w_fc2": jax.random.normal(ks[6], (H2, H1), jnp.float32) * 0.05,
        "b_fc2": jax.random.normal(ks[7], (H2,), jnp.float32) * 0.05,
    }


def prepare_params(tp, H, W):
    H1 = tp["w_fc1"].shape[0]
    C2 = tp["w_conv2"].shape[0]
    K = C2 * H * W
    # torch flatten order is (c, h, w); permute fc1's input dim to NHWC order
    # (h, w, c) so the conv output feeds fc1 directly, then split the 128
    # hidden columns in two halves for the megacore-parallel head.
    w_fc1_nhwc = (tp["w_fc1"].reshape(H1, C2, H, W)
                  .transpose(2, 3, 1, 0).reshape(K, H1))
    return {
        "w_conv1": jnp.transpose(tp["w_conv1"], (2, 3, 1, 0)),   # OIHW -> HWIO
        "b_conv1": tp["b_conv1"],
        "w_conv2": jnp.transpose(tp["w_conv2"], (2, 3, 1, 0)),
        "b_conv2": tp["b_conv2"],
        "w_fc1": w_fc1_nhwc.reshape(K, 2, H1 // 2).transpose(1, 0, 2),  # (2,K,64)
        "b_fc1": tp["b_fc1"],
        "w_fc2": tp["w_fc2"].T,                                  # (128, 10)
        "b_fc2": tp["b_fc2"],
    }


def cnn_reference(x_nchw, tp):
    """Pure-JAX mirror of the PyTorch module (for a numerical sanity check)."""
    dn = ("NCHW", "OIHW", "NCHW")
    prec = lax.Precision.HIGHEST
    y = lax.conv_general_dilated(x_nchw, tp["w_conv1"], (1, 1), ((1, 1), (1, 1)),
                                 dimension_numbers=dn, precision=prec)
    y = jnp.maximum(y + tp["b_conv1"][None, :, None, None], 0.0)
    y = lax.conv_general_dilated(y, tp["w_conv2"], (1, 1), ((1, 1), (1, 1)),
                                 dimension_numbers=dn, precision=prec)
    y = jnp.maximum(y + tp["b_conv2"][None, :, None, None], 0.0)
    y = y.reshape(y.shape[0], -1)
    y = jnp.maximum(jnp.dot(y, tp["w_fc1"].T, precision=prec) + tp["b_fc1"], 0.0)
    return jnp.dot(y, tp["w_fc2"].T, precision=prec) + tp["b_fc2"]


if __name__ == "__main__":
    N, C, H, W = 2, 3, 16, 16
    key = jax.random.PRNGKey(0)
    kx_, kp = jax.random.split(key)
    x = jax.random.normal(kx_, (N, C, H, W), jnp.float32)

    torch_params = init_torch_params(kp, H, W)
    params = prepare_params(torch_params, H, W)

    out = jax.jit(cnn_forward)(x, params)
    out = jax.block_until_ready(out)
    assert out.shape == (N, 10) and out.dtype == jnp.float32

    ref = cnn_reference(x, torch_params)
    assert bool(jnp.allclose(out, ref, atol=2e-2, rtol=2e-2)), \
        float(jnp.max(jnp.abs(out - ref)))
    print("KERNEL_OK")
</pallas_src>

<mosaic_0001>
module attributes {stable_mosaic.version = 11 : i64} {
  func.func @_conv3x3_relu_kernel(%arg0: i32, %arg1: i32, %arg2: memref<1x8x18x32xf32, #tpu.memory_space<vmem>>, %arg3: memref<1x8x18x32xf32, #tpu.memory_space<vmem>>, %arg4: memref<1x8x18x32xf32, #tpu.memory_space<vmem>>, %arg5: memref<288x64xf32, #tpu.memory_space<vmem>>, %arg6: memref<1x64xf32, #tpu.memory_space<vmem>>, %arg7: memref<1x8x16x64xf32, #tpu.memory_space<vmem>>) attributes {dimension_semantics = [#tpu.dimension_semantics<parallel>, #tpu.dimension_semantics<parallel>], iteration_bounds = array<i64: 2, 2>, scalar_prefetch = 0 : i64, scratch_operands = 0 : i64, tpu.core_type = #tpu.core_type<tc>, window_params = [{transform_indices = @transform_0, window_bounds = array<i64: 1, 8, 18, 32>}, {transform_indices = @transform_1, window_bounds = array<i64: 1, 8, 18, 32>}, {transform_indices = @transform_2, window_bounds = array<i64: 1, 8, 18, 32>}, {pipeline_mode = #tpu.pipeline_mode<synchronous>, transform_indices = @transform_3, window_bounds = array<i64: 288, 64>}, {pipeline_mode = #tpu.pipeline_mode<synchronous>, transform_indices = @transform_4, window_bounds = array<i64: 1, 64>}, {transform_indices = @transform_5, window_bounds = array<i64: 1, 8, 16, 64>}]} {
    %c0 = arith.constant 0 : index
    %c0_0 = arith.constant 0 : index
    %c0_1 = arith.constant 0 : index
    %c0_2 = arith.constant 0 : index
    %0 = vector.load %arg2[%c0, %c0_0, %c0_1, %c0_2] : memref<1x8x18x32xf32, #tpu.memory_space<vmem>>, vector<1x8x18x32xf32>
    %1 = vector.shape_cast %0 : vector<1x8x18x32xf32> to vector<8x18x32xf32>
    %2 = vector.extract_strided_slice %1 {offsets = [0, 0, 0], sizes = [8, 16, 32], strides = [1, 1, 1]} : vector<8x18x32xf32> to vector<8x16x32xf32>
    %3 = vector.shape_cast %2 : vector<8x16x32xf32> to vector<128x32xf32>
    %4 = vector.extract_strided_slice %1 {offsets = [0, 1, 0], sizes = [8, 16, 32], strides = [1, 1, 1]} : vector<8x18x32xf32> to vector<8x16x32xf32>
    %5 = vector.shape_cast %4 : vector<8x16x32xf32> to vector<128x32xf32>
    %6 = vector.extract_strided_slice %1 {offsets = [0, 2, 0], sizes = [8, 16, 32], strides = [1, 1, 1]} : vector<8x18x32xf32> to vector<8x16x32xf32>
    %7 = vector.shape_cast %6 : vector<8x16x32xf32> to vector<128x32xf32>
    %c0_3 = arith.constant 0 : index
    %c0_4 = arith.constant 0 : index
    %c0_5 = arith.constant 0 : index
    %c0_6 = arith.constant 0 : index
    %8 = vector.load %arg3[%c0_3, %c0_4, %c0_5, %c0_6] : memref<1x8x18x32xf32, #tpu.memory_space<vmem>>, vector<1x8x18x32xf32>
    %9 = vector.shape_cast %8 : vector<1x8x18x32xf32> to vector<8x18x32xf32>
    %10 = vector.extract_strided_slice %9 {offsets = [0, 0, 0], sizes = [8, 16, 32], strides = [1, 1, 1]} : vector<8x18x32xf32> to vector<8x16x32xf32>
    %11 = vector.shape_cast %10 : vector<8x16x32xf32> to vector<128x32xf32>
    %12 = vector.extract_strided_slice %9 {offsets = [0, 1, 0], sizes = [8, 16, 32], strides = [1, 1, 1]} : vector<8x18x32xf32> to vector<8x16x32xf32>
    %13 = vector.shape_cast %12 : vector<8x16x32xf32> to vector<128x32xf32>
    %14 = vector.extract_strided_slice %9 {offsets = [0, 2, 0], sizes = [8, 16, 32], strides = [1, 1, 1]} : vector<8x18x32xf32> to vector<8x16x32xf32>
    %15 = vector.shape_cast %14 : vector<8x16x32xf32> to vector<128x32xf32>
    %c0_7 = arith.constant 0 : index
    %c0_8 = arith.constant 0 : index
    %c0_9 = arith.constant 0 : index
    %c0_10 = arith.constant 0 : index
    %16 = vector.load %arg4[%c0_7, %c0_8, %c0_9, %c0_10] : memref<1x8x18x32xf32, #tpu.memory_space<vmem>>, vector<1x8x18x32xf32>
    %17 = vector.shape_cast %16 : vector<1x8x18x32xf32> to vector<8x18x32xf32>
    %18 = vector.extract_strided_slice %17 {offsets = [0, 0, 0], sizes = [8, 16, 32], strides = [1, 1, 1]} : vector<8x18x32xf32> to vector<8x16x32xf32>
    %19 = vector.shape_cast %18 : vector<8x16x32xf32> to vector<128x32xf32>
    %20 = vector.extract_strided_slice %17 {offsets = [0, 1, 0], sizes = [8, 16, 32], strides = [1, 1, 1]} : vector<8x18x32xf32> to vector<8x16x32xf32>
    %21 = vector.shape_cast %20 : vector<8x16x32xf32> to vector<128x32xf32>
    %22 = vector.extract_strided_slice %17 {offsets = [0, 2, 0], sizes = [8, 16, 32], strides = [1, 1, 1]} : vector<8x18x32xf32> to vector<8x16x32xf32>
    %23 = vector.shape_cast %22 : vector<8x16x32xf32> to vector<128x32xf32>
    %24 = tpu.concatenate %3, %5, %7, %11, %13, %15, %19, %21, %23 in 1 : vector<128x32xf32>, vector<128x32xf32>, vector<128x32xf32>, vector<128x32xf32>, vector<128x32xf32>, vector<128x32xf32>, vector<128x32xf32>, vector<128x32xf32>, vector<128x32xf32> -> vector<128x288xf32>
    %c0_11 = arith.constant 0 : index
    %c0_12 = arith.constant 0 : index
    %25 = vector.load %arg5[%c0_11, %c0_12] : memref<288x64xf32, #tpu.memory_space<vmem>>, vector<288x64xf32>
    %cst = arith.constant dense<0.000000e+00> : vector<128x64xf32>
    %26 = tpu.matmul %24, %25, %cst {dimension_numbers = #tpu.dot_dimension_numbers<[1], [0], [0], [1], [0, 0, 1, 1], [], []>} : vector<128x288xf32>, vector<288x64xf32>, vector<128x64xf32> -> vector<128x64xf32>
    %c0_13 = arith.constant 0 : index
    %c0_14 = arith.constant 0 : index
    %27 = vector.load %arg6[%c0_13, %c0_14] : memref<1x64xf32, #tpu.memory_space<vmem>>, vector<1x64xf32>
    %28 = vector.shape_cast %27 : vector<1x64xf32> to vector<64xf32>
    %29 = vector.shape_cast %28 : vector<64xf32> to vector<1x64xf32>
    %30 = vector.broadcast %29 : vector<1x64xf32> to vector<128x64xf32>
    %31 = arith.addf %26, %30 : vector<128x64xf32>
    %cst_15 = arith.constant 0.000000e+00 : f32
    %32 = vector.broadcast %cst_15 : f32 to vector<128x64xf32>
    %33 = arith.maximumf %31, %32 : vector<128x64xf32>
    %34 = vector.shape_cast %33 : vector<128x64xf32> to vector<8x16x64xf32>
    %c0_16 = arith.constant 0 : index
    %c0_17 = arith.constant 0 : index
    %c0_18 = arith.constant 0 : index
    %c0_19 = arith.constant 0 : index
    %35 = vector.load %arg7[%c0_16, %c0_17, %c0_18, %c0_19] : memref<1x8x16x64xf32, #tpu.memory_space<vmem>>, vector<1x8x16x64xf32>
    %36 = vector.shape_cast %35 : vector<1x8x16x64xf32> to vector<8x16x64xf32>
    %37 = vector.shape_cast %34 : vector<8x16x64xf32> to vector<1x8x16x64xf32>
    tpu.vector_store %arg7[%c0_16, %c0_17, %c0_18, %c0_19], %37 {strides = array<i32>} : memref<1x8x16x64xf32, #tpu.memory_space<vmem>>, vector<1x8x16x64xf32>,
    return
  }
  func.func @transform_0(%arg0: i32, %arg1: i32) -> (i32, i32, i32, i32) {
    %c0_i32 = arith.constant 0 : i32
    %c0_i32_0 = arith.constant 0 : i32
    %c0_i32_1 = arith.constant 0 : i32
    return %arg0, %arg1, %c0_i32, %c0_i32_0 : i32, i32, i32, i32
  }
  func.func @transform_1(%arg0: i32, %arg1: i32) -> (i32, i32, i32, i32) {
    %c0_i32 = arith.constant 0 : i32
    %c0_i32_0 = arith.constant 0 : i32
    %c0_i32_1 = arith.constant 0 : i32
    return %arg0, %arg1, %c0_i32, %c0_i32_0 : i32, i32, i32, i32
  }
  func.func @transform_2(%arg0: i32, %arg1: i32) -> (i32, i32, i32, i32) {
    %c0_i32 = arith.constant 0 : i32
    %c0_i32_0 = arith.constant 0 : i32
    %c0_i32_1 = arith.constant 0 : i32
    return %arg0, %arg1, %c0_i32, %c0_i32_0 : i32, i32, i32, i32
  }
  func.func @transform_3(%arg0: i32, %arg1: i32) -> (i32, i32) {
    %c0_i32 = arith.constant 0 : i32
    %c0_i32_0 = arith.constant 0 : i32
    %c0_i32_1 = arith.constant 0 : i32
    return %c0_i32, %c0_i32_0 : i32, i32
  }
  func.func @transform_4(%arg0: i32, %arg1: i32) -> (i32, i32) {
    %c0_i32 = arith.constant 0 : i32
    %c0_i32_0 = arith.constant 0 : i32
    %c0_i32_1 = arith.constant 0 : i32
    return %c0_i32, %c0_i32_0 : i32, i32
  }
  func.func @transform_5(%arg0: i32, %arg1: i32) -> (i32, i32, i32, i32) {
    %c0_i32 = arith.constant 0 : i32
    %c0_i32_0 = arith.constant 0 : i32
    %c0_i32_1 = arith.constant 0 : i32
    return %arg0, %arg1, %c0_i32, %c0_i32_0 : i32, i32, i32, i32
  }
}

module attributes {stable_mosaic.version = 11 : i64} {
  func.func @_conv3x3_relu_kernel(%arg0: i32, %arg1: i32, %arg2: memref<1x8x18x3xf32, #tpu.memory_space<vmem>>, %arg3: memref<1x8x18x3xf32, #tpu.memory_space<vmem>>, %arg4: memref<1x8x18x3xf32, #tpu.memory_space<vmem>>, %arg5: memref<27x32xf32, #tpu.memory_space<vmem>>, %arg6: memref<1x32xf32, #tpu.memory_space<vmem>>, %arg7: memref<1x8x16x32xf32, #tpu.memory_space<vmem>>) attributes {dimension_semantics = [#tpu.dimension_semantics<parallel>, #tpu.dimension_semantics<parallel>], iteration_bounds = array<i64: 2, 2>, scalar_prefetch = 0 : i64, scratch_operands = 0 : i64, tpu.core_type = #tpu.core_type<tc>, window_params = [{transform_indices = @transform_0, window_bounds = array<i64: 1, 8, 18, 3>}, {transform_indices = @transform_1, window_bounds = array<i64: 1, 8, 18, 3>}, {transform_indices = @transform_2, window_bounds = array<i64: 1, 8, 18, 3>}, {pipeline_mode = #tpu.pipeline_mode<synchronous>, transform_indices = @transform_3, window_bounds = array<i64: 27, 32>}, {pipeline_mode = #tpu.pipeline_mode<synchronous>, transform_indices = @transform_4, window_bounds = array<i64: 1, 32>}, {transform_indices = @transform_5, window_bounds = array<i64: 1, 8, 16, 32>}]} {
    %c0 = arith.constant 0 : index
    %c0_0 = arith.constant 0 : index
    %c0_1 = arith.constant 0 : index
    %c0_2 = arith.constant 0 : index
    %0 = vector.load %arg2[%c0, %c0_0, %c0_1, %c0_2] : memref<1x8x18x3xf32, #tpu.memory_space<vmem>>, vector<1x8x18x3xf32>
    %1 = vector.shape_cast %0 : vector<1x8x18x3xf32> to vector<8x18x3xf32>
    %2 = vector.extract_strided_slice %1 {offsets = [0, 0, 0], sizes = [8, 16, 3], strides = [1, 1, 1]} : vector<8x18x3xf32> to vector<8x16x3xf32>
    %3 = vector.shape_cast %2 : vector<8x16x3xf32> to vector<128x3xf32>
    %4 = vector.extract_strided_slice %1 {offsets = [0, 1, 0], sizes = [8, 16, 3], strides = [1, 1, 1]} : vector<8x18x3xf32> to vector<8x16x3xf32>
    %5 = vector.shape_cast %4 : vector<8x16x3xf32> to vector<128x3xf32>
    %6 = vector.extract_strided_slice %1 {offsets = [0, 2, 0], sizes = [8, 16, 3], strides = [1, 1, 1]} : vector<8x18x3xf32> to vector<8x16x3xf32>
    %7 = vector.shape_cast %6 : vector<8x16x3xf32> to vector<128x3xf32>
    %c0_3 = arith.constant 0 : index
    %c0_4 = arith.constant 0 : index
    %c0_5 = arith.constant 0 : index
    %c0_6 = arith.constant 0 : index
    %8 = vector.load %arg3[%c0_3, %c0_4, %c0_5, %c0_6] : memref<1x8x18x3xf32, #tpu.memory_space<vmem>>, vector<1x8x18x3xf32>
    %9 = vector.shape_cast %8 : vector<1x8x18x3xf32> to vector<8x18x3xf32>
    %10 = vector.extract_strided_slice %9 {offsets = [0, 0, 0], sizes = [8, 16, 3], strides = [1, 1, 1]} : vector<8x18x3xf32> to vector<8x16x3xf32>
    %11 = vector.shape_cast %10 : vector<8x16x3xf32> to vector<128x3xf32>
    %12 = vector.extract_strided_slice %9 {offsets = [0, 1, 0], sizes = [8, 16, 3], strides = [1, 1, 1]} : vector<8x18x3xf32> to vector<8x16x3xf32>
    %13 = vector.shape_cast %12 : vector<8x16x3xf32> to vector<128x3xf32>
    %14 = vector.extract_strided_slice %9 {offsets = [0, 2, 0], sizes = [8, 16, 3], strides = [1, 1, 1]} : vector<8x18x3xf32> to vector<8x16x3xf32>
    %15 = vector.shape_cast %14 : vector<8x16x3xf32> to vector<128x3xf32>
    %c0_7 = arith.constant 0 : index
    %c0_8 = arith.constant 0 : index
    %c0_9 = arith.constant 0 : index
    %c0_10 = arith.constant 0 : index
    %16 = vector.load %arg4[%c0_7, %c0_8, %c0_9, %c0_10] : memref<1x8x18x3xf32, #tpu.memory_space<vmem>>, vector<1x8x18x3xf32>
    %17 = vector.shape_cast %16 : vector<1x8x18x3xf32> to vector<8x18x3xf32>
    %18 = vector.extract_strided_slice %17 {offsets = [0, 0, 0], sizes = [8, 16, 3], strides = [1, 1, 1]} : vector<8x18x3xf32> to vector<8x16x3xf32>
    %19 = vector.shape_cast %18 : vector<8x16x3xf32> to vector<128x3xf32>
    %20 = vector.extract_strided_slice %17 {offsets = [0, 1, 0], sizes = [8, 16, 3], strides = [1, 1, 1]} : vector<8x18x3xf32> to vector<8x16x3xf32>
    %21 = vector.shape_cast %20 : vector<8x16x3xf32> to vector<128x3xf32>
    %22 = vector.extract_strided_slice %17 {offsets = [0, 2, 0], sizes = [8, 16, 3], strides = [1, 1, 1]} : vector<8x18x3xf32> to vector<8x16x3xf32>
    %23 = vector.shape_cast %22 : vector<8x16x3xf32> to vector<128x3xf32>
    %24 = tpu.concatenate %3, %5, %7, %11, %13, %15, %19, %21, %23 in 1 : vector<128x3xf32>, vector<128x3xf32>, vector<128x3xf32>, vector<128x3xf32>, vector<128x3xf32>, vector<128x3xf32>, vector<128x3xf32>, vector<128x3xf32>, vector<128x3xf32> -> vector<128x27xf32>
    %c0_11 = arith.constant 0 : index
    %c0_12 = arith.constant 0 : index
    %25 = vector.load %arg5[%c0_11, %c0_12] : memref<27x32xf32, #tpu.memory_space<vmem>>, vector<27x32xf32>
    %cst = arith.constant dense<0.000000e+00> : vector<128x32xf32>
    %26 = tpu.matmul %24, %25, %cst {dimension_numbers = #tpu.dot_dimension_numbers<[1], [0], [0], [1], [0, 0, 1, 1], [], []>} : vector<128x27xf32>, vector<27x32xf32>, vector<128x32xf32> -> vector<128x32xf32>
    %c0_13 = arith.constant 0 : index
    %c0_14 = arith.constant 0 : index
    %27 = vector.load %arg6[%c0_13, %c0_14] : memref<1x32xf32, #tpu.memory_space<vmem>>, vector<1x32xf32>
    %28 = vector.shape_cast %27 : vector<1x32xf32> to vector<32xf32>
    %29 = vector.shape_cast %28 : vector<32xf32> to vector<1x32xf32>
    %30 = vector.broadcast %29 : vector<1x32xf32> to vector<128x32xf32>
    %31 = arith.addf %26, %30 : vector<128x32xf32>
    %cst_15 = arith.constant 0.000000e+00 : f32
    %32 = vector.broadcast %cst_15 : f32 to vector<128x32xf32>
    %33 = arith.maximumf %31, %32 : vector<128x32xf32>
    %34 = vector.shape_cast %33 : vector<128x32xf32> to vector<8x16x32xf32>
    %c0_16 = arith.constant 0 : index
    %c0_17 = arith.constant 0 : index
    %c0_18 = arith.constant 0 : index
    %c0_19 = arith.constant 0 : index
    %35 = vector.load %arg7[%c0_16, %c0_17, %c0_18, %c0_19] : memref<1x8x16x32xf32, #tpu.memory_space<vmem>>, vector<1x8x16x32xf32>
    %36 = vector.shape_cast %35 : vector<1x8x16x32xf32> to vector<8x16x32xf32>
    %37 = vector.shape_cast %34 : vector<8x16x32xf32> to vector<1x8x16x32xf32>
    tpu.vector_store %arg7[%c0_16, %c0_17, %c0_18, %c0_19], %37 {strides = array<i32>} : memref<1x8x16x32xf32, #tpu.memory_space<vmem>>, vector<1x8x16x32xf32>,
    return
  }
  func.func @transform_0(%arg0: i32, %arg1: i32) -> (i32, i32, i32, i32) {
    %c0_i32 = arith.constant 0 : i32
    %c0_i32_0 = arith.constant 0 : i32
    %c0_i32_1 = arith.constant 0 : i32
    return %arg0, %arg1, %c0_i32, %c0_i32_0 : i32, i32, i32, i32
  }
  func.func @transform_1(%arg0: i32, %arg1: i32) -> (i32, i32, i32, i32) {
    %c0_i32 = arith.constant 0 : i32
    %c0_i32_0 = arith.constant 0 : i32
    %c0_i32_1 = arith.constant 0 : i32
    return %arg0, %arg1, %c0_i32, %c0_i32_0 : i32, i32, i32, i32
  }
  func.func @transform_2(%arg0: i32, %arg1: i32) -> (i32, i32, i32, i32) {
    %c0_i32 = arith.constant 0 : i32
    %c0_i32_0 = arith.constant 0 : i32
    %c0_i32_1 = arith.constant 0 : i32
    return %arg0, %arg1, %c0_i32, %c0_i32_0 : i32, i32, i32, i32
  }
  func.func @transform_3(%arg0: i32, %arg1: i32) -> (i32, i32) {
    %c0_i32 = arith.constant 0 : i32
    %c0_i32_0 = arith.constant 0 : i32
    %c0_i32_1 = arith.constant 0 : i32
    return %c0_i32, %c0_i32_0 : i32, i32
  }
  func.func @transform_4(%arg0: i32, %arg1: i32) -> (i32, i32) {
    %c0_i32 = arith.constant 0 : i32
    %c0_i32_0 = arith.constant 0 : i32
    %c0_i32_1 = arith.constant 0 : i32
    return %c0_i32, %c0_i32_0 : i32, i32
  }
  func.func @transform_5(%arg0: i32, %arg1: i32) -> (i32, i32, i32, i32) {
    %c0_i32 = arith.constant 0 : i32
    %c0_i32_0 = arith.constant 0 : i32
    %c0_i32_1 = arith.constant 0 : i32
    return %arg0, %arg1, %c0_i32, %c0_i32_0 : i32, i32, i32, i32
  }
}

module attributes {stable_mosaic.version = 11 : i64} {
  func.func @_mlp_head_kernel(%arg0: i32, %arg1: i32, %arg2: memref<2x16384xf32, #tpu.memory_space<vmem>>, %arg3: memref<1x16384x64xf32, #tpu.memory_space<vmem>>, %arg4: memref<1x1x64xf32, #tpu.memory_space<vmem>>, %arg5: memref<64x10xf32, #tpu.memory_space<vmem>>, %arg6: memref<1x2x10xf32, #tpu.memory_space<vmem>>, %arg7: memref<2x64xf32, #tpu.memory_space<vmem>>) attributes {dimension_semantics = [#tpu.dimension_semantics<parallel>, #tpu.dimension_semantics<arbitrary>], iteration_bounds = array<i64: 2, 1>, scalar_prefetch = 0 : i64, scratch_operands = 1 : i64, tpu.core_type = #tpu.core_type<tc>, window_params = [{transform_indices = @transform_0, window_bounds = array<i64: 2, 16384>}, {transform_indices = @transform_1, window_bounds = array<i64: 1, 16384, 64>}, {transform_indices = @transform_2, window_bounds = array<i64: 1, 1, 64>}, {transform_indices = @transform_3, window_bounds = array<i64: 64, 10>}, {transform_indices = @transform_4, window_bounds = array<i64: 1, 2, 10>}]} {
    %c0_i32 = arith.constant 0 : i32
    %0 = arith.cmpi eq, %arg1, %c0_i32 : i32
    %1 = arith.extui %0 : i1 to i32
    %c0_i32_0 = arith.constant 0 : i32
    %2 = arith.cmpi ne, %1, %c0_i32_0 : i32
    scf.if %2 {
      %cst_11 = arith.constant 0.000000e+00 : f32
      %13 = vector.broadcast %cst_11 : f32 to vector<2x64xf32>
      %c0_12 = arith.constant 0 : index
      %c0_13 = arith.constant 0 : index
      %14 = vector.load %arg7[%c0_12, %c0_13] : memref<2x64xf32, #tpu.memory_space<vmem>>, vector<2x64xf32>
      tpu.vector_store %arg7[%c0_12, %c0_13], %13 {strides = array<i32>} : memref<2x64xf32, #tpu.memory_space<vmem>>, vector<2x64xf32>,
    } else {
    }
    %c0 = arith.constant 0 : index
    %c0_1 = arith.constant 0 : index
    %3 = vector.load %arg7[%c0, %c0_1] : memref<2x64xf32, #tpu.memory_space<vmem>>, vector<2x64xf32>
    %c0_2 = arith.constant 0 : index
    %c0_3 = arith.constant 0 : index
    %4 = vector.load %arg2[%c0_2, %c0_3] : memref<2x16384xf32, #tpu.memory_space<vmem>>, vector<2x16384xf32>
    %c0_4 = arith.constant 0 : index
    %c0_5 = arith.constant 0 : index
    %c0_6 = arith.constant 0 : index
    %5 = vector.load %arg3[%c0_4, %c0_5, %c0_6] : memref<1x16384x64xf32, #tpu.memory_space<vmem>>, vector<1x16384x64xf32>
    %6 = vector.shape_cast %5 : vector<1x16384x64xf32> to vector<16384x64xf32>
    %cst = arith.constant dense<0.000000e+00> : vector<2x64xf32>
    %7 = tpu.matmul %4, %6, %cst {dimension_numbers = #tpu.dot_dimension_numbers<[1], [0], [0], [1], [0, 0, 1, 1], [], []>} : vector<2x16384xf32>, vector<16384x64xf32>, vector<2x64xf32> -> vector<2x64xf32>
    %8 = arith.addf %3, %7 : vector<2x64xf32>
    %c0_7 = arith.constant 0 : index
    %c0_8 = arith.constant 0 : index
    %9 = vector.load %arg7[%c0_7, %c0_8] : memref<2x64xf32, #tpu.memory_space<vmem>>, vector<2x64xf32>
    tpu.vector_store %arg7[%c0_7, %c0_8], %8 {strides = array<i32>} : memref<2x64xf32, #tpu.memory_space<vmem>>, vector<2x64xf32>,
    %c0_i32_9 = arith.constant 0 : i32
    %10 = arith.cmpi eq, %arg1, %c0_i32_9 : i32
    %11 = arith.extui %10 : i1 to i32
    %c0_i32_10 = arith.constant 0 : i32
    %12 = arith.cmpi ne, %11, %c0_i32_10 : i32
    scf.if %12 {
      %c0_11 = arith.constant 0 : index
      %c0_12 = arith.constant 0 : index
      %13 = vector.load %arg7[%c0_11, %c0_12] : memref<2x64xf32, #tpu.memory_space<vmem>>, vector<2x64xf32>
      %c0_13 = arith.constant 0 : index
      %c0_14 = arith.constant 0 : index
      %c0_15 = arith.constant 0 : index
      %14 = vector.load %arg4[%c0_13, %c0_14, %c0_15] : memref<1x1x64xf32, #tpu.memory_space<vmem>>, vector<1x1x64xf32>
      %15 = vector.shape_cast %14 : vector<1x1x64xf32> to vector<1x64xf32>
      %16 = vector.broadcast %15 : vector<1x64xf32> to vector<2x64xf32>
      %17 = arith.addf %13, %16 : vector<2x64xf32>
      %cst_16 = arith.constant 0.000000e+00 : f32
      %18 = vector.broadcast %cst_16 : f32 to vector<2x64xf32>
      %19 = arith.maximumf %17, %18 : vector<2x64xf32>
      %c0_17 = arith.constant 0 : index
      %c0_18 = arith.constant 0 : index
      %20 = vector.load %arg5[%c0_17, %c0_18] : memref<64x10xf32, #tpu.memory_space<vmem>>, vector<64x10xf32>
      %cst_19 = arith.constant dense<0.000000e+00> : vector<2x10xf32>
      %21 = tpu.matmul %19, %20, %cst_19 {dimension_numbers = #tpu.dot_dimension_numbers<[1], [0], [0], [1], [0, 0, 1, 1], [], []>} : vector<2x64xf32>, vector<64x10xf32>, vector<2x10xf32> -> vector<2x10xf32>
      %c0_20 = arith.constant 0 : index
      %c0_21 = arith.constant 0 : index
      %c0_22 = arith.constant 0 : index
      %22 = vector.load %arg6[%c0_20, %c0_21, %c0_22] : memref<1x2x10xf32, #tpu.memory_space<vmem>>, vector<1x2x10xf32>
      %23 = vector.shape_cast %22 : vector<1x2x10xf32> to vector<2x10xf32>
      %24 = vector.shape_cast %21 : vector<2x10xf32> to vector<1x2x10xf32>
      tpu.vector_store %arg6[%c0_20, %c0_21, %c0_22], %24 {strides = array<i32>} : memref<1x2x10xf32, #tpu.memory_space<vmem>>, vector<1x2x10xf32>,
    } else {
    }
    return
  }
  func.func @transform_0(%arg0: i32, %arg1: i32) -> (i32, i32) {
    %c0_i32 = arith.constant 0 : i32
    %c0_i32_0 = arith.constant 0 : i32
    return %c0_i32, %arg1 : i32, i32
  }
  func.func @transform_1(%arg0: i32, %arg1: i32) -> (i32, i32, i32) {
    %c0_i32 = arith.constant 0 : i32
    %c0_i32_0 = arith.constant 0 : i32
    return %arg0, %arg1, %c0_i32 : i32, i32, i32
  }
  func.func @transform_2(%arg0: i32, %arg1: i32) -> (i32, i32, i32) {
    %c0_i32 = arith.constant 0 : i32
    %c0_i32_0 = arith.constant 0 : i32
    %c0_i32_1 = arith.constant 0 : i32
    return %arg0, %c0_i32, %c0_i32_0 : i32, i32, i32
  }
  func.func @transform_3(%arg0: i32, %arg1: i32) -> (i32, i32) {
    %c0_i32 = arith.constant 0 : i32
    %c0_i32_0 = arith.constant 0 : i32
    return %arg0, %c0_i32 : i32, i32
  }
  func.func @transform_4(%arg0: i32, %arg1: i32) -> (i32, i32, i32) {
    %c0_i32 = arith.constant 0 : i32
    %c0_i32_0 = arith.constant 0 : i32
    %c0_i32_1 = arith.constant 0 : i32
    return %arg0, %c0_i32, %c0_i32_0 : i32, i32, i32
  }
}

</mosaic_0001>

<bundles_post_ra>
// kernel: cnn_forward.3
= control target key start
LH: loop header
LB: loop body
LE: loop exit
PB: predicated region body
PF: predicated region fallthrough
CT: control target
= control target key end

     0   :  { %10 = vsyncpa [#allocation3], 0  ;;  %s1938_s18 = smov 0   ;;  %s1940_s19 = smov 0   ;;  %s2970_s0 = inlined_call_operand.vmem [shape: f32[2,16,18,3], index: 0, kind: input, shape index: {}]   ;;  %s2971_s1 = inlined_call_operand.vmem [shape: f32[2,16,18,3], index: 1, kind: input, shape index: {}]   ;;  %s2972_s2 = inlined_call_operand.vmem [shape: f32[2,16,18,3], index: 2, kind: input, shape index: {}]   ;;  %s2973_s3 = inlined_call_operand.vmem [shape: f32[27,32], index: 3, kind: input, shape index: {}]   ;;  %s2974_s4 = inlined_call_operand.hbm [shape: f32[1,32], index: 4, kind: input, shape index: {}]   ;;  %s2975_s5 = inlined_call_operand.vmem [shape: f32[2,16,16,32], index: 5, kind: output, shape index: {}]  }
   0x1   :  { %s1942_s20 = smov 0   ;;  %s1944_s21 = smov 0  }
   0x2   :  { %s1946_s22 = smov 0  }
   0x3 LB: > { %s1661_s23 = sadd.s32 4294967295, %s1896_s22   ;;  %s25_s24 = sadd.s32 1, %s1888_s20  ;;  %s1896_s22 = sphi %s1946_s22, %s16_s22   ;;  %s1892_s21 = sphi %s1944_s21, %s3002_s21   ;;  %s1888_s20 = sphi %s1942_s20, %s3001_s20   ;;  %s1884_s19 = sphi %s1940_s19, %s3000_s19   ;;  %s1880_s18 = sphi %s1938_s18, %s2999_s18  }
   0x4   : > { %p26_p0 = scmp.ge.s32.totalorder %s25_s24, 2  ;;  %s28_s25 = sadd.s32 1, %s1892_s21 }
   0x5   : > { %p1663_p1 = scmp.ge.s32.totalorder %s1896_s22, 1  ;;  %p187_p2 = scmp.lt.s32.totalorder %s1896_s22, 5 }
   0x6   : > { %s3004_s24 = smov (%p26_p0, %s25_s24), 0  ;;  %s3006_s25 = smov (!%p26_p0, %s28_s25), %s1892_s21 }
   0x7   : > { %p1971_p3 = pnand %p1663_p1, %p187_p2  ;;  %p30_p4 = scmp.ge.s32.totalorder %s3006_s25, 2 }
   0x8   : > { %p1975_p5 = scmp.eq.s32.totalorder %s1661_s23, 0  ;;  %s1898_s28 = smov [#allocation2]  }
   0x9   : > { %s2984_s26 = scalar_select %p1971_p3, 1, 0 }
   0xa   : > { %s2985_s27 = scalar_select %p1975_p5, 1, 0 }
   0xb   : > { %p1770_p6 = pneg %p1971_p3  ;;  %s3008_s25 = smov (%p30_p4, %s3006_s25), 0 }
   0xc   : > { %s203_s29 = sshll.u32 %s1898_s28, 4  ;;  %s1826_s8 = scalar_lea.hbm %s2974_s4, 16  ;;  %s204_s29 = int_to_ptr.vmem [resolvable:$true] %s203_s29 }
   0xd   : > { %p1985_p7 = pnand %p1975_p5, %p1770_p6  ;;  %p1827_p8 = scmp.ne.s32.totalorder %s2974_s4, %s1826_s8 }
   0xe   : > { %p1833_p12 = scmp.lt.u32.totalorder %s1826_s8, %s2974_s4 }
   0xf   : > { %p1828_p9 = pneg %p1985_p7 }
  0x11   : > { %p1829_p10 = pnand %p1828_p9, %p1827_p8 }
  0x13   : > { %p1830_p11 = pneg %p1829_p10 }
  0x15   : > { %p1835_p13 = pnand %p1833_p12, %p1830_p11 }
  0x17   : > { %1838 = shalt.err (!%p1835_p13)
}
  0x18   : > { %s1839_s13 = scalar_lea.vmem %s204_s29, 16  ;;  %s1846_s14 = scalar_lea.vmem %s204_s29, 32 }
  0x19   : > { %p1840_p0 = scmp.ne.s32.totalorder %s204_s29, %s1839_s13  ;;  %p1847_p4 = scmp.lt.s32.totalorder %s204_s29, %s204_s29 }
  0x1a   : > { %p1848_p6 = scmp.lt.s32.totalorder %s1846_s14, %s1839_s13 }
  0x1b   : > { %p1842_p1 = pnand %p1840_p0, %p1828_p9 }
  0x1c   : > { %p1849_p5 = por %p1848_p6, %p1847_p4 }
  0x1d   : > { %p1843_p2 = pneg %p1842_p1 }
  0x1f   : > { %p1850_p3 = pnand %p1849_p5, %p1843_p2 }
  0x21   : > { %1853 = shalt.err (!%p1850_p3)
}
  0x22   : > { %1773 = dma.hbm_to_vmem [thread:$0]  (!%p1985_p7), %s2974_s4, 16, %s204_s29, [#allocation3]  }
  0x23   : > { %p2987_p8 = scmp.ne.s32.totalorder %s2984_s26, 0 }
  0x25   : > { %258 = sbr.rel (%p2987_p8) target bundleno = 647 (0x287), region = 40 }
  0x2c   : > { %p2988_p10 = scmp.ne.s32.totalorder %s2985_s27, 0 }
  0x2e   : > { %1875 = dma.done.wait (%p2988_p10), [#allocation3], 16  }
  0x2f   : > { %1877 = vsyncadd (%p2988_p10), [#allocation3], 4294967280  ;;  %s1668_s17 = sshll.u32 %s1880_s18, 3  ;;  %p317_p3 = scmp.lt.s32.totalorder %s1884_s19, 1  ;;  %vm408_vm0 = vcmask 1046528   ;;  %vm449_vm1 = vcmask 1045504  }
  0x30   : > { %p319_p5 = scmp.lt.s32.totalorder %s1668_s17, 15  ;;  %s1899_s18 = smov 3   ;;  %vm1326_vm2 = vcmask 1042432   ;;  %vm1907_vm3 = vmmov 1   ;;  %vm1130_vm5 = vcmask 23552   ;;  %vm1147_vm6 = vcmask 48128  }
  0x31   : > { %s3010_s19 = smov (!%p317_p3, %s1884_s19), 1  ;;  %s1900_s7 = smov 6   ;;  %vm1755_vm4 = vmpackc.low %vm1326_vm2, %vm1907_vm3  ;;  %vm1164_vm7 = vcmask 72704   ;;  %vm1181_vm8 = vcmask 97280   ;;  %vm1198_vm9 = vcmask 121856   ;;  %vm1215_vm10 = vcmask 146432  }
  0x32   : > { %s3012_s17 = smov (!%p319_p5, %s1668_s17), 15  ;;  %s1765_s23 = smul.u32 48, %s3010_s19  ;;  %vm1232_vm11 = vcmask 171008   ;;  %vm1249_vm12 = vcmask 195584   ;;  %vm1277_vm13 = vcmask 220160   ;;  %vm1491_vm14 = vcmask 261120  }
  0x33   : > { %s1764_s26 = smul.u32 3, %s3012_s17  ;;  %s1901_s11 = smov 9  }
  0x34   : > { %s1902_s12 = smov 12   ;;  %s1903_s13 = smov 15  }
  0x35   : > { %s323_s28 = sadd.s32 %s1765_s23, %s1764_s26  ;;  %s1904_s23 = smov 18  }
  0x36   : > { %s2020_s29 = sshll.u32 %s323_s28, 3  ;;  %s1905_s26 = smov 21  }
  0x37   : > { %s2026_s6 = scalar_lea.vmem %s2970_s0, %s2020_s29  ;;  %s2068_s10 = scalar_lea.vmem %s2971_s1, %s2020_s29 }
  0x38   : > { %v2029_v0 = vld [vmem:[%s2026_s6 + $0x8] sm:$0xff]  ;;  %v362_v1 = vld [vmem:[%s2026_s6 + $0x10] sm:$0x3]  ;;  %v2033_v2 = vld [vmem:[%s2026_s6] sm:$0xff]  ;;  %s2144_s16 = scalar_lea.vmem %s2972_s2, %s2020_s29  ;;  %s1906_s28 = smov 24  }
  0x39   : > { %v410_v3 = vrot.slane %v2029_v0, 1  ;;  %v412_v4 = vrot.slane %v362_v1, 1  ;;  %v409_v5 = vrot.slane %v2033_v2, 1  ;;  %v2038_v6 = vld [vmem:[%s2026_s6 + $0x68] sm:$0xff]  ;;  %v374_v7 = vld [vmem:[%s2026_s6 + $0x70] sm:$0x3] }
  0x3a   : > { %v430_v8 = vrot.slane %v2038_v6, 1  ;;  %v432_v9 = vrot.slane %v374_v7, 1  ;;  %v2043_v10 = vld [vmem:[%s2026_s6 + $0x60] sm:$0xff]  ;;  %v471_v14 = vrot.slane %v2038_v6, 2  ;;  %v450_v15 = vrot.slane %v2033_v2, 2  ;;  %v2075_v28 = vld [vmem:[%s2068_s10 + $0x68] sm:$0xff] }
  0x3b   : > { %v413_v11 = vsel %vm408_vm0, %v410_v3, %v412_v4  ;;  %v411_v12 = vsel %vm408_vm0, %v409_v5, %v410_v3  ;;  %v429_v13 = vrot.slane %v2043_v10, 1  ;;  %v470_v18 = vrot.slane %v2043_v10, 2  ;;  %v502_v26 = vld [vmem:[%s2068_s10 + $0x60] sm:$0xff]  ;;  %v2078_v29 = vld [vmem:[%s2068_s10 + $0x8] sm:$0xff]  ;;  %v2085_v34 = vld [vmem:[%s2026_s6 + $0x78] sm:$0xff] }
  0x3c   : > { %748 = vrot.lane.b32.xlu1 %v413_v11, %s1899_s18  ;;  %746 = vrot.lane.b32.xlu0 %v411_v12, %s1899_s18  ;;  %v433_v16 = vsel %vm408_vm0, %v430_v8, %v432_v9  ;;  %v451_v19 = vrot.slane %v2029_v0, 2  ;;  %v473_v22 = vrot.slane %v374_v7, 2  ;;  %v453_v23 = vrot.slane %v362_v1, 2  ;;  %v490_v27 = vld [vmem:[%s2068_s10] sm:$0xff]  ;;  %v2091_v36 = vld [vmem:[%s2026_s6 + $0x18] sm:$0xff] }
  0x3d   : > { %v431_v17 = vsel %vm408_vm0, %v429_v13, %v430_v8  ;;  %v472_v20 = vsel %vm449_vm1, %v470_v18, %v471_v14  ;;  %v558_v30 = vrot.slane %v502_v26, 1  ;;  %v538_v31 = vrot.slane %v490_v27, 1  ;;  %v2088_v35 = vld [vmem:[%s2026_s6 + $0x80] sm:$0xff]  ;;  %v504_v44 = vld [vmem:[%s2068_s10 + $0x70] sm:$0x3] }
  0x3e   : > { %v452_v21 = vsel %vm449_vm1, %v450_v15, %v451_v19  ;;  %v474_v24 = vsel %vm449_vm1, %v471_v14, %v473_v22  ;;  %v454_v25 = vsel %vm449_vm1, %v451_v19, %v453_v23  ;;  %v559_v32 = vrot.slane %v2075_v28, 1  ;;  %v2094_v37 = vld [vmem:[%s2026_s6 + $0x20] sm:$0xff]  ;;  %v492_v45 = vld [vmem:[%s2068_s10 + $0x10] sm:$0x3]  ;;  %v377_v56 = vld [vmem:[%s2026_s6 + $0x88] sm:$0x3] }
  0x3f   : > { %v539_v33 = vrot.slane %v2078_v29, 1  ;;  %v434_v38 = vrot.slane %v2085_v34, 1  ;;  %v435_v39 = vrot.slane %v2088_v35, 1  ;;  %v414_v42 = vrot.slane %v2091_v36, 1  ;;  %v365_v57 = vld [vmem:[%s2026_s6 + $0x28] sm:$0x3] }
  0x40   : > { %764 = vrot.lane.b32.xlu1 %v433_v16, %s1899_s18  ;;  %762 = vrot.lane.b32.xlu0 %v431_v17, %s1899_s18  ;;  %v560_v40 = vsel %vm408_vm0, %v558_v30, %v559_v32  ;;  %v415_v43 = vrot.slane %v2094_v37, 1  ;;  %v561_v48 = vrot.slane %v504_v44, 1  ;;  %v541_v49 = vrot.slane %v492_v45, 1  ;;  %v630_v14 = vld [vmem:[%s2144_s16 + $0x60] sm:$0xff]  ;;  %v2163_v22 = vld [vmem:[%s2144_s16 + $0x68] sm:$0xff] }
  0x41   : > { %v540_v41 = vsel %vm408_vm0, %v538_v31, %v539_v33  ;;  %v436_v46 = vsel %vm408_vm0, %v434_v38, %v435_v39  ;;  %v598_v50 = vrot.slane %v502_v26, 2  ;;  %v578_v51 = vrot.slane %v490_v27, 2  ;;  %v618_v15 = vld [vmem:[%s2144_s16] sm:$0xff]  ;;  %v2166_v23 = vld [vmem:[%s2144_s16 + $0x8] sm:$0xff] }
  0x42   : > { %v416_v47 = vsel %vm408_vm0, %v414_v42, %v415_v43  ;;  %v599_v52 = vrot.slane %v2075_v28, 2  ;;  %v579_v53 = vrot.slane %v2078_v29, 2  ;;  %v562_v54 = vsel %vm408_vm0, %v559_v32, %v561_v48  ;;  %v2181_v30 = vld [vmem:[%s2068_s10 + $0x80] sm:$0xff] }
  0x43   : > { %v542_v55 = vsel %vm408_vm0, %v539_v33, %v541_v49  ;;  %v437_v60 = vrot.slane %v377_v56, 1  ;;  %v417_v61 = vrot.slane %v365_v57, 1  ;;  %v475_v62 = vrot.slane %v2085_v34, 2  ;;  %v2184_v31 = vld [vmem:[%s2068_s10 + $0x20] sm:$0xff] }
  0x44   : > { %810 = vrot.lane.b32.xlu1 %v472_v20, %s1900_s7  ;;  %794 = vrot.lane.b32.xlu0 %v452_v21, %s1900_s7  ;;  %v600_v58 = vsel %vm449_vm1, %v598_v50, %v599_v52  ;;  %v580_v59 = vsel %vm449_vm1, %v578_v51, %v579_v53  ;;  %v476_v63 = vrot.slane %v2088_v35, 2  ;;  %v455_v4 = vrot.slane %v2091_v36, 2  ;;  %v2157_v20 = vld [vmem:[%s2068_s10 + $0x78] sm:$0xff] }
  0x45   : > { %v438_v1 = vsel %vm408_vm0, %v435_v39, %v437_v60  ;;  %v418_v3 = vsel %vm408_vm0, %v415_v43, %v417_v61  ;;  %v456_v5 = vrot.slane %v2094_v37, 2  ;;  %v601_v9 = vrot.slane %v504_v44, 2  ;;  %v2160_v21 = vld [vmem:[%s2068_s10 + $0x18] sm:$0xff] }
  0x46   : > { %v477_v7 = vsel %vm449_vm1, %v475_v62, %v476_v63  ;;  %v581_v11 = vrot.slane %v492_v45, 2  ;;  %v478_v16 = vrot.slane %v377_v56, 2  ;;  %v458_v17 = vrot.slane %v365_v57, 2  ;;  %v1266_v56 = vld [vmem:[%s2973_s3] sm:$0xff]  ;;  %v1267_v57 = vld [vmem:[%s2973_s3 + $0x8] sm:$0xff] }
  0x47   : > { %v457_v8 = vsel %vm449_vm1, %v455_v4, %v456_v5  ;;  %v602_v12 = vsel %vm449_vm1, %v599_v52, %v601_v9  ;;  %v563_v32 = vrot.slane %v2157_v20, 1  ;;  %v543_v33 = vrot.slane %v2160_v21, 1  ;;  %v2217_v52 = vld [vmem:[%s2026_s6 + $0x90] sm:$0xff]  ;;  %v495_v4 = vld [vmem:[%s2068_s10 + $0x28] sm:$0x3] }
  0x48   : > { %812 = vrot.lane.b32.xlu1 %v474_v24, %s1900_s7  ;;  %796 = vrot.lane.b32.xlu0 %v454_v25, %s1900_s7  ;;  %v582_v13 = vsel %vm449_vm1, %v579_v53, %v581_v11  ;;  %v479_v18 = vsel %vm449_vm1, %v476_v63, %v478_v16  ;;  %v459_v19 = vsel %vm449_vm1, %v456_v5, %v458_v17  ;;  %v686_v24 = vrot.slane %v630_v14, 1  ;;  %v2220_v53 = vld [vmem:[%s2026_s6 + $0x98] sm:$0xff]  ;;  %v1268_v5 = vld [vmem:[%s2973_s3 + $0x10] sm:$0xff] }
  0x49   : > { %v666_v25 = vrot.slane %v618_v15, 1  ;;  %v564_v38 = vrot.slane %v2181_v30, 1  ;;  %v544_v39 = vrot.slane %v2184_v31, 1  ;;  %v727_v48 = vrot.slane %v2163_v22, 2 }
  0x4a   : > { %v707_v49 = vrot.slane %v2166_v23, 2  ;;  %v439_v61 = vrot.slane %v2217_v52, 1  ;;  %v440_v62 = vrot.slane %v2220_v53, 1  ;;  %v604_v16 = vrot.slane %v2181_v30, 2 }
  0x4b   : > { %v565_v42 = vsel %vm408_vm0, %v563_v32, %v564_v38  ;;  %v545_v43 = vsel %vm408_vm0, %v543_v33, %v544_v39  ;;  %v584_v17 = vrot.slane %v2184_v31, 2  ;;  %v480_v32 = vrot.slane %v2217_v52, 2 }
  0x4c   : > { %858 = vrot.lane.b32.xlu1 %v502_v26, %s1901_s11  ;;  %842 = vrot.lane.b32.xlu0 %v490_v27, %s1901_s11  ;;  %v687_v26 = vrot.slane %v2163_v22, 1  ;;  %v667_v27 = vrot.slane %v2166_v23, 1  ;;  %v441_v9 = vsel %vm408_vm0, %v439_v61, %v440_v62  ;;  %v481_v33 = vrot.slane %v2220_v53, 2  ;;  %v2334_v61 = vld [vmem:[%s2068_s10 + $0x30] sm:$0xff] }
  0x50   : > { %860 = vrot.lane.b32.xlu1 %v2075_v28, %s1901_s11  ;;  %844 = vrot.lane.b32.xlu0 %v2078_v29, %s1901_s11  ;;  %v688_v28 = vsel %vm408_vm0, %v686_v24, %v687_v26  ;;  %v668_v29 = vsel %vm408_vm0, %v666_v25, %v667_v27 }
  0x54   : > { %906 = vrot.lane.b32.xlu1 %v560_v40, %s1902_s12  ;;  %890 = vrot.lane.b32.xlu0 %v540_v41, %s1902_s12  ;;  %v2193_v40 = vld [vmem:[%s2144_s16 + $0x70] sm:$0x3] }
  0x55   : > { %v2196_v41 = vld [vmem:[%s2144_s16 + $0x10] sm:$0x3]  ;;  %v689_v44 = vrot.slane %v2193_v40, 1  ;;  %v729_v24 = vrot.slane %v2193_v40, 2  ;;  %v482_v40 = vsel %vm449_vm1, %v480_v32, %v481_v33 }
  0x56   : > { %v669_v45 = vrot.slane %v2196_v41, 1  ;;  %v709_v25 = vrot.slane %v2196_v41, 2 }
  0x57   : > { %v690_v50 = vsel %vm408_vm0, %v687_v26, %v689_v44  ;;  %v380_v26 = vld [vmem:[%s2026_s6 + $0xa0] sm:$0x3] }
  0x58   : > { %766 = vrot.lane.b32.xlu1 %v436_v46, %s1899_s18  ;;  %750 = vrot.lane.b32.xlu0 %v416_v47, %s1899_s18  ;;  %v726_v46 = vrot.slane %v630_v14, 2  ;;  %v706_v47 = vrot.slane %v618_v15, 2  ;;  %v670_v51 = vsel %vm408_vm0, %v667_v27, %v669_v45  ;;  %v368_v27 = vld [vmem:[%s2026_s6 + $0x40] sm:$0x3] }
  0x5a   : > { %v708_v60 = vsel %vm449_vm1, %v706_v47, %v707_v49  ;;  %v2312_v47 = vld [vmem:[%s2144_s16 + $0x18] sm:$0xff] }
  0x5c   : > { %908 = vrot.lane.b32.xlu1 %v562_v54, %s1902_s12  ;;  %892 = vrot.lane.b32.xlu0 %v542_v55, %s1902_s12  ;;  %v2223_v54 = vld [vmem:[%s2026_s6 + $0x30] sm:$0xff]  ;;  %v2226_v55 = vld [vmem:[%s2026_s6 + $0x38] sm:$0xff] }
  0x5d   : > { %2989 = vst [vmem:[#allocation5_spill] sm:$0xff] %v2226_v55  ;;  %v419_v63 = vrot.slane %v2223_v54, 1 }
  0x60   : > { %954 = vrot.lane.b32.xlu1 %v600_v58, %s1903_s13  ;;  %938 = vrot.lane.b32.xlu0 %v580_v59, %s1903_s13  ;;  %v1750_v58 = vpack.c.bf16 %v1267_v57, %v1266_v56  ;;  %v728_v59 = vsel %vm449_vm1, %v726_v46, %v727_v48  ;;  %v2309_v46 = vld [vmem:[%s2144_s16 + $0x78] sm:$0xff] }
  0x62   : > { %1751 = vmatprep.subr.bf16.mxu0 %v1750_v58  ;;  %1760 = vmatprep.subr.bf16.mxu1 %v1750_v58 }
  0x63   : > { %1753 = vmatpush3.bf16.msra.mxu0 %v1750_v58  ;;  %1762 = vmatpush3.bf16.msra.mxu1 %v1750_v58 }
  0x64   : > { %768 = vrot.lane.b32.xlu1 %v438_v1, %s1899_s18  ;;  %752 = vrot.lane.b32.xlu0 %v418_v3, %s1899_s18  ;;  %v420_v1 = vrot.slane %v2226_v55, 1  ;;  %v2247_v3 = vld [vmem:[%s2068_s10 + $0x88] sm:$0x3] }
  0x66   : > { %v421_v11 = vsel %vm408_vm0, %v419_v63, %v420_v1 }
  0x68   : > { %814 = vrot.lane.b32.xlu1 %v477_v7, %s1900_s7  ;;  %798 = vrot.lane.b32.xlu0 %v457_v8, %s1900_s7  ;;  %v1269_v7 = vld [vmem:[%s2973_s3 + $0x18] sm:$0x7] }
  0x69   : > { %v1754_v8 = vpack.c.bf16 %v1269_v7, %v1268_v5  ;;  %v671_v5 = vrot.slane %v2312_v47, 1 }
  0x6b   : > { %1756 = vmatprep.subr.msk.bf16.mxu0 %vm1755_vm4, %v1754_v8  ;;  %1761 = vmatprep.subr.msk.bf16.mxu1 %vm1755_vm4, %v1754_v8 }
  0x6c   : > { %956 = vrot.lane.b32.xlu1 %v602_v12, %s1903_s13  ;;  %940 = vrot.lane.b32.xlu0 %v582_v13, %s1903_s13  ;;  %v566_v12 = vrot.slane %v2247_v3, 1  ;;  %v546_v13 = vrot.slane %v495_v4, 1 }
  0x6d   : > { %1759 = vmatpush3.bf16.msk.msra.mxu0 %vm1755_vm4, %v1754_v8  ;;  %1763 = vmatpush3.bf16.msk.msra.mxu1 %vm1755_vm4, %v1754_v8 }
  0x70   : > { %1002 = vrot.lane.b32.xlu1 %v630_v14, %s1904_s23  ;;  %986 = vrot.lane.b32.xlu0 %v618_v15, %s1904_s23  ;;  %v603_v14 = vrot.slane %v2157_v20, 2  ;;  %v583_v15 = vrot.slane %v2160_v21, 2 }
  0x74   : > { %816 = vrot.lane.b32.xlu1 %v479_v18, %s1900_s7  ;;  %800 = vrot.lane.b32.xlu0 %v459_v19, %s1900_s7  ;;  %v567_v18 = vsel %vm408_vm0, %v564_v38, %v566_v12  ;;  %v547_v19 = vsel %vm408_vm0, %v544_v39, %v546_v13  ;;  %v461_v39 = vrot.slane %v2226_v55, 2 }
  0x78   : > { %862 = vrot.lane.b32.xlu1 %v2157_v20, %s1901_s11  ;;  %846 = vrot.lane.b32.xlu0 %v2160_v21, %s1901_s11  ;;  %v605_v20 = vsel %vm449_vm1, %v603_v14, %v604_v16  ;;  %v585_v21 = vsel %vm449_vm1, %v583_v15, %v584_v17 }
  0x7c   : > { %1004 = vrot.lane.b32.xlu1 %v2163_v22, %s1904_s23  ;;  %988 = vrot.lane.b32.xlu0 %v2166_v23, %s1904_s23  ;;  %v460_v23 = vrot.slane %v2223_v54, 2 }
  0x7e   : > { %v462_v41 = vsel %vm449_vm1, %v460_v23, %v461_v39 }
  0x80   : > { %1050 = vrot.lane.b32.xlu1 %v688_v28, %s1905_s26  ;;  %1034 = vrot.lane.b32.xlu0 %v668_v29, %s1905_s26  ;;  %v730_v28 = vsel %vm449_vm1, %v727_v48, %v729_v24  ;;  %v710_v29 = vsel %vm449_vm1, %v707_v49, %v709_v25  ;;  %v483_v48 = vrot.slane %v380_v26, 2  ;;  %v463_v49 = vrot.slane %v368_v27, 2 }
  0x82   : > { %v484_v56 = vsel %vm449_vm1, %v481_v33, %v483_v48  ;;  %v464_v57 = vsel %vm449_vm1, %v461_v39, %v463_v49 }
  0x84   : > { %864 = vrot.lane.b32.xlu1 %v2181_v30, %s1901_s11  ;;  %848 = vrot.lane.b32.xlu0 %v2184_v31, %s1901_s11  ;;  %v442_v30 = vrot.slane %v380_v26, 1  ;;  %v422_v31 = vrot.slane %v368_v27, 1  ;;  %v2385_v26 = vld [vmem:[%s2144_s16 + $0x88] sm:$0x3] }
  0x85   : > { %v2388_v27 = vld [vmem:[%s2144_s16 + $0x28] sm:$0x3] }
  0x86   : > { %v443_v38 = vsel %vm408_vm0, %v440_v62, %v442_v30  ;;  %v423_v22 = vsel %vm408_vm0, %v420_v1, %v422_v31  ;;  %v2341_v1 = vld [vmem:[%s2144_s16 + $0x80] sm:$0xff]  ;;  %v694_v30 = vrot.slane %v2385_v26, 1  ;;  %v674_v31 = vrot.slane %v2388_v27, 1 }
  0x87   : > { %v692_v7 = vrot.slane %v2341_v1, 1  ;;  %v732_v23 = vrot.slane %v2341_v1, 2 }
  0x88   : > { %910 = vrot.lane.b32.xlu1 %v565_v42, %s1902_s12  ;;  %894 = vrot.lane.b32.xlu0 %v545_v43, %s1902_s12  ;;  %v606_v42 = vrot.slane %v2247_v3, 2  ;;  %v586_v43 = vrot.slane %v495_v4, 2  ;;  %v2344_v3 = vld [vmem:[%s2144_s16 + $0x20] sm:$0xff]  ;;  %v691_v4 = vrot.slane %v2309_v46, 1 }
  0x89   : > { %v672_v8 = vrot.slane %v2344_v3, 1  ;;  %v712_v39 = vrot.slane %v2344_v3, 2 }
  0x8a   : > { %v607_v44 = vsel %vm449_vm1, %v604_v16, %v606_v42  ;;  %v587_v45 = vsel %vm449_vm1, %v584_v17, %v586_v43  ;;  %v693_v12 = vsel %vm408_vm0, %v691_v4, %v692_v7  ;;  %v2369_v16 = vld [vmem:[%s2068_s10 + $0x98] sm:$0xff]  ;;  %v2411_v42 = vld [vmem:[%s2026_s6 + $0xa8] sm:$0xff] }
  0x8b   : > { %v673_v13 = vsel %vm408_vm0, %v671_v5, %v672_v8  ;;  %v2372_v17 = vld [vmem:[%s2068_s10 + $0x38] sm:$0xff]  ;;  %2990 = vst [vmem:[#allocation6_spill] sm:$0xff] %v2411_v42 }
  0x8c   : > { %1052 = vrot.lane.b32.xlu1 %v690_v50, %s1905_s26  ;;  %1036 = vrot.lane.b32.xlu0 %v670_v51, %s1905_s26 }
  0x90   : > { %1098 = vrot.lane.b32.xlu1 %v728_v59, %s1906_s28  ;;  %1082 = vrot.lane.b32.xlu0 %v708_v60, %s1906_s28  ;;  %v2331_v60 = vld [vmem:[%s2068_s10 + $0x90] sm:$0xff] }
  0x94   : > { %770 = vrot.lane.b32.xlu1 %v441_v9, %s1899_s18  ;;  %754 = vrot.lane.b32.xlu0 %v421_v11, %s1899_s18 }
  0x98   : > { %912 = vrot.lane.b32.xlu1 %v567_v18, %s1902_s12  ;;  %896 = vrot.lane.b32.xlu0 %v547_v19, %s1902_s12  ;;  %v568_v18 = vrot.slane %v2331_v60, 1  ;;  %v548_v19 = vrot.slane %v2334_v61, 1 }
  0x9c   : > { %958 = vrot.lane.b32.xlu1 %v605_v20, %s1903_s13  ;;  %942 = vrot.lane.b32.xlu0 %v585_v21, %s1903_s13  ;;  %v569_v20 = vrot.slane %v2369_v16, 1  ;;  %v549_v21 = vrot.slane %v2372_v17, 1 }
  0xa0   : > { %1100 = vrot.lane.b32.xlu1 %v730_v28, %s1906_s28  ;;  %1084 = vrot.lane.b32.xlu0 %v710_v29, %s1906_s28  ;;  %v570_v28 = vsel %vm408_vm0, %v568_v18, %v569_v20  ;;  %v550_v29 = vsel %vm408_vm0, %v548_v19, %v549_v21 }
  0xa4   : > { %772 = vrot.lane.b32.xlu1 %v443_v38, %s1899_s18  ;;  %756 = vrot.lane.b32.xlu0 %v423_v22, %s1899_s18  ;;  %v731_v38 = vrot.slane %v2309_v46, 2  ;;  %v711_v22 = vrot.slane %v2312_v47, 2 }
  0xa6   : > { %v733_v48 = vsel %vm449_vm1, %v731_v38, %v732_v23  ;;  %v713_v49 = vsel %vm449_vm1, %v711_v22, %v712_v39  ;;  %v609_v38 = vrot.slane %v2369_v16, 2  ;;  %v589_v22 = vrot.slane %v2372_v17, 2 }
  0xa8   : > { %818 = vrot.lane.b32.xlu1 %v482_v40, %s1900_s7  ;;  %802 = vrot.lane.b32.xlu0 %v462_v41, %s1900_s7  ;;  %v695_v40 = vsel %vm408_vm0, %v692_v7, %v694_v30  ;;  %v675_v41 = vsel %vm408_vm0, %v672_v8, %v674_v31  ;;  %v510_v7 = vld [vmem:[%s2068_s10 + $0xa0] sm:$0x3]  ;;  %v608_v30 = vrot.slane %v2331_v60, 2  ;;  %v588_v31 = vrot.slane %v2334_v61, 2 }
  0xa9   : > { %v498_v8 = vld [vmem:[%s2068_s10 + $0x40] sm:$0x3]  ;;  %v571_v18 = vrot.slane %v510_v7, 1 }
  0xaa   : > { %v551_v19 = vrot.slane %v498_v8, 1 }
  0xac   : > { %960 = vrot.lane.b32.xlu1 %v607_v44, %s1903_s13  ;;  %944 = vrot.lane.b32.xlu0 %v587_v45, %s1903_s13  ;;  %v2418_v45 = vld [vmem:[%s2026_s6 + $0xb0] sm:$0xff] }
  0xad   : > { %2991 = vst [vmem:[#allocation7_spill] sm:$0xff] %v2418_v45 }
  0xae   : > { %v2314_v50 = vpop.permute.xlu1 %748  ;;  %v2316_v51 = vpop.permute.xlu0 %746 }
  0xb0   : > { %1006 = vrot.lane.b32.xlu1 %v2309_v46, %s1904_s23  ;;  %990 = vrot.lane.b32.xlu0 %v2312_v47, %s1904_s23  ;;  %v2421_v46 = vld [vmem:[%s2026_s6 + $0x48] sm:$0xff]  ;;  %v2424_v47 = vld [vmem:[%s2026_s6 + $0x50] sm:$0xff] }
  0xb1   : > { %2992 = vst [vmem:[#allocation8_spill] sm:$0xff] %v2421_v46  ;;  %2993 = vst [vmem:[#allocation9_spill] sm:$0xff] %v2424_v47 }
  0xb2   : > { %v2324_v58 = vpop.permute.xlu1 %764  ;;  %v2326_v59 = vpop.permute.xlu0 %762 }
  0xb4   : > { %820 = vrot.lane.b32.xlu1 %v484_v56, %s1900_s7  ;;  %804 = vrot.lane.b32.xlu0 %v464_v57, %s1900_s7  ;;  %v444_v56 = vrot.slane %v2411_v42, 1  ;;  %v445_v57 = vrot.slane %v2418_v45, 1 }
  0xb6   : > { %v2336_v62 = vpop.permute.xlu1 %810  ;;  %v2338_v63 = vpop.permute.xlu0 %794 }
  0xb8   : > { %866 = vrot.lane.b32.xlu1 %v2331_v60, %s1901_s11  ;;  %850 = vrot.lane.b32.xlu0 %v2334_v61, %s1901_s11  ;;  %v610_v60 = vsel %vm449_vm1, %v608_v30, %v609_v38  ;;  %v590_v61 = vsel %vm449_vm1, %v588_v31, %v589_v22 }
  0xba   : > { %v2354_v9 = vpop.permute.xlu1 %812  ;;  %v2356_v11 = vpop.permute.xlu0 %796 }
  0xbc   : > { %1008 = vrot.lane.b32.xlu1 %v2341_v1, %s1904_s23  ;;  %992 = vrot.lane.b32.xlu0 %v2344_v3, %s1904_s23  ;;  %v424_v1 = vrot.slane %v2421_v46, 1  ;;  %v425_v3 = vrot.slane %v2424_v47, 1 }
  0xbe   : > { %v2364_v14 = vpop.permute.xlu1 %858  ;;  %v2366_v15 = vpop.permute.xlu0 %842 }
  0xc0   : > { %1054 = vrot.lane.b32.xlu1 %v693_v12, %s1905_s26  ;;  %1038 = vrot.lane.b32.xlu0 %v673_v13, %s1905_s26  ;;  %v446_v12 = vsel %vm408_vm0, %v444_v56, %v445_v57  ;;  %v426_v13 = vsel %vm408_vm0, %v424_v1, %v425_v3  ;;  %v383_v56 = vld [vmem:[%s2026_s6 + $0xb8] sm:$0x3] }
  0xc2   : > { %v2380_v24 = vpop.permute.xlu1 %860  ;;  %v2382_v25 = vpop.permute.xlu0 %844 }
  0xc4   : > { %868 = vrot.lane.b32.xlu1 %v2369_v16, %s1901_s11  ;;  %852 = vrot.lane.b32.xlu0 %v2372_v17, %s1901_s11  ;;  %v734_v16 = vrot.slane %v2385_v26, 2  ;;  %v714_v17 = vrot.slane %v2388_v27, 2 }
  0xc6   : > { %v2398_v32 = vpop.permute.xlu1 %906  ;;  %v2400_v33 = vpop.permute.xlu0 %890 }
  0xc8   : > { %914 = vrot.lane.b32.xlu1 %v570_v28, %s1902_s12  ;;  %898 = vrot.lane.b32.xlu0 %v550_v29, %s1902_s12 }
  0xca   : > { %v2413_v43 = vpop.permute.xlu1 %766  ;;  %v2415_v44 = vpop.permute.xlu0 %750 }
  0xcc   : > { %1056 = vrot.lane.b32.xlu1 %v695_v40, %s1905_s26  ;;  %1040 = vrot.lane.b32.xlu0 %v675_v41, %s1905_s26  ;;  %v572_v40 = vsel %vm408_vm0, %v569_v20, %v571_v18  ;;  %v552_v41 = vsel %vm408_vm0, %v549_v21, %v551_v19  ;;  %v371_v20 = vld [vmem:[%s2026_s6 + $0x58] sm:$0x3]  ;;  %v735_v18 = vsel %vm449_vm1, %v732_v23, %v734_v16  ;;  %v465_v23 = vrot.slane %v2421_v46, 2  ;;  %s1675_s6 = sshll.u32 %s3012_s17, 1 }
  0xcd   : > { %v715_v19 = vsel %vm449_vm1, %v712_v39, %v714_v17  ;;  %v466_v39 = vrot.slane %v2424_v47, 2  ;;  %v611_v16 = vrot.slane %v510_v7, 2  ;;  %v591_v17 = vrot.slane %v498_v8, 2  ;;  %v2507_v7 = vld [vmem:[%s2144_s16 + $0x90] sm:$0xff]  ;;  %v2535_v47 = vld [vmem:[%s2144_s16 + $0x98] sm:$0xff] }
  0xce   : > { %v2434_v4 = vpop.permute.xlu1 %908  ;;  %v2436_v5 = vpop.permute.xlu0 %892  ;;  %v2510_v8 = vld [vmem:[%s2144_s16 + $0x30] sm:$0xff] }
  0xd0   : > { %1102 = vrot.lane.b32.xlu1 %v733_v48, %s1906_s28  ;;  %1086 = vrot.lane.b32.xlu0 %v713_v49, %s1906_s28 }
  0xd2   : > { %v2444_v28 = vpop.permute.xlu1 %954  ;;  %v2446_v29 = vpop.permute.xlu0 %938 }
  0xd4   : > { %774 = vrot.lane.b32.xlu1 %v446_v12, %s1899_s18  ;;  %758 = vrot.lane.b32.xlu0 %v426_v13, %s1899_s18  ;;  %v447_v12 = vrot.slane %v383_v56, 1  ;;  %v427_v13 = vrot.slane %v371_v20, 1 }
  0xd6   : > { %v2456_v48 = vpop.permute.xlu1 %768  ;;  %v2458_v49 = vpop.permute.xlu0 %752  ;;  %v448_v27 = vsel %vm408_vm0, %v445_v57, %v447_v12  ;;  %v428_v31 = vsel %vm408_vm0, %v425_v3, %v427_v13  ;;  %v467_v3 = vsel %vm449_vm1, %v465_v23, %v466_v39  ;;  %v468_v23 = vrot.slane %v371_v20, 2  ;;  %v2528_v20 = vld [vmem:[%s2068_s10 + $0x48] sm:$0xff] }
  0xd8   : > { %916 = vrot.lane.b32.xlu1 %v572_v40, %s1902_s12  ;;  %900 = vrot.lane.b32.xlu0 %v552_v41, %s1902_s12  ;;  %v485_v40 = vrot.slane %v2411_v42, 2  ;;  %v486_v41 = vrot.slane %v2418_v45, 2  ;;  %v2538_v45 = vld [vmem:[%s2144_s16 + $0x38] sm:$0xff] }
  0xda   : > { %v2468_v1 = vpop.permute.xlu1 %814  ;;  %v2470_v21 = vpop.permute.xlu0 %798  ;;  %v487_v57 = vsel %vm449_vm1, %v485_v40, %v486_v41  ;;  %v488_v40 = vrot.slane %v383_v56, 2  ;;  %v2525_v56 = vld [vmem:[%s2068_s10 + $0xa8] sm:$0xff] }
  0xdc   : > { %962 = vrot.lane.b32.xlu1 %v610_v60, %s1903_s13  ;;  %946 = vrot.lane.b32.xlu0 %v590_v61, %s1903_s13 }
  0xde   : > { %v2476_v30 = vpop.permute.xlu1 %956  ;;  %v2478_v26 = vpop.permute.xlu0 %940 }
  0xe0   : > { %1104 = vrot.lane.b32.xlu1 %v735_v18, %s1906_s28  ;;  %1088 = vrot.lane.b32.xlu0 %v715_v19, %s1906_s28  ;;  %v612_v18 = vsel %vm449_vm1, %v609_v38, %v611_v16  ;;  %v592_v19 = vsel %vm449_vm1, %v589_v22, %v591_v17  ;;  %v489_v22 = vsel %vm449_vm1, %v486_v41, %v488_v40  ;;  %v696_v40 = vrot.slane %v2507_v7, 1 }
  0xe1   : > { %v1141_v41 = vsel %vm1130_vm5, %v2085_v34, %v2413_v43  ;;  %v697_v43 = vrot.slane %v2535_v47, 1 }
  0xe2   : > { %v2488_v60 = vpop.permute.xlu1 %1002  ;;  %v2490_v61 = vpop.permute.xlu0 %986 }
  0xe4   : > { %776 = vrot.lane.b32.xlu1 %v448_v27, %s1899_s18  ;;  %760 = vrot.lane.b32.xlu0 %v428_v31, %s1899_s18  ;;  %s1676_s18 = sshll.u32 %s3010_s19, 5 }
  0xe6   : > { %v2496_v12 = vpop.permute.xlu1 %816  ;;  %v2498_v13 = vpop.permute.xlu0 %800 }
  0xe8   : > { %822 = vrot.lane.b32.xlu1 %v487_v57, %s1900_s7  ;;  %806 = vrot.lane.b32.xlu0 %v467_v3, %s1900_s7  ;;  %v469_v3 = vsel %vm449_vm1, %v466_v39, %v468_v23  ;;  %v1133_v39 = vsel %vm1130_vm5, %v2091_v36, %v2415_v44  ;;  %v676_v23 = vrot.slane %v2510_v8, 1  ;;  %v677_v36 = vrot.slane %v2538_v45, 1 }
  0xe9   : > { %v1150_v34 = vsel %vm1147_vm6, %v1133_v39, %v2470_v21  ;;  %v1131_v21 = vsel %vm1130_vm5, %v2033_v2, %v2316_v51  ;;  %v698_v2 = vsel %vm408_vm0, %v696_v40, %v697_v43  ;;  %v2602_v40 = vld [vmem:[%s2068_s10 + $0x50] sm:$0xff] }
  0xea   : > { %v863_v27 = vpop.permute.xlu1 %862  ;;  %v847_v31 = vpop.permute.xlu0 %846 }
  0xec   : > { %964 = vrot.lane.b32.xlu1 %v612_v18, %s1903_s13  ;;  %948 = vrot.lane.b32.xlu0 %v592_v19, %s1903_s13 }
  0xee   : > { %v2512_v57 = vpop.permute.xlu1 %1004  ;;  %v2514_v38 = vpop.permute.xlu0 %988 }
  0xf0   : > { %1010 = vrot.lane.b32.xlu1 %v2507_v7, %s1904_s23  ;;  %994 = vrot.lane.b32.xlu0 %v2510_v8, %s1904_s23 }
  0xf2   : > { %v1051_v16 = vpop.permute.xlu1 %1050  ;;  %v1035_v17 = vpop.permute.xlu0 %1034 }
  0xf4   : > { %824 = vrot.lane.b32.xlu1 %v489_v22, %s1900_s7  ;;  %808 = vrot.lane.b32.xlu0 %v469_v3, %s1900_s7  ;;  %v1158_v22 = vsel %vm1147_vm6, %v1141_v41, %v2468_v1  ;;  %v1167_v3 = vsel %vm1164_vm7, %v1150_v34, %v847_v31  ;;  %v1139_v41 = vsel %vm1130_vm5, %v2043_v10, %v2326_v59  ;;  %v553_v34 = vrot.slane %v2528_v20, 1  ;;  %s356_s7 = sadd.s32 %s1676_s18, %s1675_s6 }
  0xf5   : > { %v1175_v44 = vsel %vm1164_vm7, %v1158_v22, %v863_v27  ;;  %v678_v10 = vsel %vm408_vm0, %v676_v23, %v677_v36  ;;  %v573_v23 = vrot.slane %v2525_v56, 1 }
  0xf6   : > { %v2530_v18 = vpop.permute.xlu1 %864  ;;  %v2532_v19 = vpop.permute.xlu0 %848 }
  0xf8   : > { %870 = vrot.lane.b32.xlu1 %v2525_v56, %s1901_s11  ;;  %854 = vrot.lane.b32.xlu0 %v2528_v20, %s1901_s11 }
  0xfa   : > { %v911_v46 = vpop.permute.xlu1 %910  ;;  %v895_v42 = vpop.permute.xlu0 %894 }
  0xfb   : > { %v2561_v55 = vsel %vm1181_vm8, %v1175_v44, %v911_v46  ;;  %v2564_v1 = vsel %vm1181_vm8, %v1167_v3, %v895_v42  ;;  %v1156_v42 = vsel %vm1147_vm6, %v1139_v41, %v2336_v62  ;;  %v1148_v46 = vsel %vm1147_vm6, %v1131_v21, %v2338_v63  ;;  %v2595_v63 = vld [vmem:[%s2068_s10 + $0xb0] sm:$0xff]  ;;  %v2621_v41 = vld [vmem:[%s2144_s16 + $0xa0] sm:$0x3] }
  0xfc   : > { %1012 = vrot.lane.b32.xlu1 %v2535_v47, %s1904_s23  ;;  %996 = vrot.lane.b32.xlu0 %v2538_v45, %s1904_s23  ;;  %v1173_v51 = vsel %vm1164_vm7, %v1156_v42, %v2364_v14  ;;  %v1165_v59 = vsel %vm1164_vm7, %v1148_v46, %v2366_v15  ;;  %v554_v21 = vrot.slane %v2602_v40, 1 }
  0xfd   : > { %v1190_v31 = vsel %vm1181_vm8, %v1173_v51, %v2398_v32  ;;  %v1182_v39 = vsel %vm1181_vm8, %v1165_v59, %v2400_v33  ;;  %v1142_v59 = vsel %vm1130_vm5, %v2088_v35, %v2456_v48  ;;  %v737_v35 = vrot.slane %v2535_v47, 2 }
  0xfe   : > { %v2590_v27 = vpop.permute.xlu1 %1052  ;;  %v2592_v62 = vpop.permute.xlu0 %1036  ;;  %v1207_v14 = vsel %vm1198_vm9, %v1190_v31, %v2444_v28  ;;  %v1199_v15 = vsel %vm1198_vm9, %v1182_v39, %v2446_v29  ;;  %v574_v28 = vrot.slane %v2595_v63, 1  ;;  %v1134_v31 = vsel %vm1130_vm5, %v2094_v37, %v2458_v49 }
  0xff   : > { %v1224_v32 = vsel %vm1215_vm10, %v1207_v14, %v2488_v60  ;;  %v1216_v33 = vsel %vm1215_vm10, %v1199_v15, %v2490_v61  ;;  %v2626_v61 = vld [vmem:[%s2144_s16 + $0x40] sm:$0x3]  ;;  %v736_v39 = vrot.slane %v2507_v7, 2  ;;  %v716_v14 = vrot.slane %v2510_v8, 2 }
 0x100   : > { %1058 = vrot.lane.b32.xlu1 %v698_v2, %s1905_s26  ;;  %1042 = vrot.lane.b32.xlu0 %v678_v10, %s1905_s26  ;;  %v1241_v22 = vsel %vm1232_vm11, %v1224_v32, %v1051_v16  ;;  %v1233_v29 = vsel %vm1232_vm11, %v1216_v33, %v1035_v17  ;;  %v575_v16 = vsel %vm408_vm0, %v573_v23, %v574_v28  ;;  %v699_v17 = vrot.slane %v2621_v41, 1  ;;  %v2673_v32 = vld [vmem:[%s2068_s10 + $0xb8] sm:$0x3] }
 0x101   : > { %v555_v10 = vsel %vm408_vm0, %v553_v34, %v554_v21  ;;  %v679_v51 = vrot.slane %v2626_v61, 1  ;;  %v1159_v15 = vsel %vm1147_vm6, %v1142_v59, %v2496_v12  ;;  %v1151_v23 = vsel %vm1147_vm6, %v1134_v31, %v2498_v13 }
 0x102   : > { %v1099_v44 = vpop.permute.xlu1 %1098  ;;  %v1083_v3 = vpop.permute.xlu0 %1082  ;;  %v700_v37 = vsel %vm408_vm0, %v697_v43, %v699_v17  ;;  %v1176_v48 = vsel %vm1164_vm7, %v1159_v15, %v2530_v18  ;;  %v1168_v49 = vsel %vm1164_vm7, %v1151_v23, %v2532_v19  ;;  %v717_v7 = vrot.slane %v2538_v45, 2  ;;  %v2682_v18 = vld [vmem:[%s2068_s10 + $0x58] sm:$0x3]  ;;  %s1677_s10 = sshll.u32 %s356_s7, 3 }
 0x103   : > { %v1258_v60 = vsel %vm1249_vm12, %v1241_v22, %v1099_v44  ;;  %v1250_v42 = vsel %vm1249_vm12, %v1233_v29, %v1083_v3  ;;  %v680_v13 = vsel %vm408_vm0, %v677_v36, %v679_v51  ;;  %v1132_v19 = vsel %vm1130_vm5, %v2029_v0, %v2314_v50 }
 0x104   : > { %872 = vrot.lane.b32.xlu1 %v2595_v63, %s1901_s11  ;;  %1738 = vmatprep.mubr.msk.f32.mxu1 %vm1277_vm13, %v1258_v60  ;;  %v1140_v45 = vsel %vm1130_vm5, %v2038_v6, %v2324_v58  ;;  %v1149_v33 = vsel %vm1147_vm6, %v1132_v19, %v2356_v11  ;;  %v738_v22 = vsel %vm449_vm1, %v736_v39, %v737_v35  ;;  %v576_v29 = vrot.slane %v2673_v32, 1  ;;  %v2994_v19 = vld [vmem:[#allocation5_spill] sm:$0xff] }
 0x105   : > { %856 = vrot.lane.b32.xlu0 %v2602_v40, %s1901_s11  ;;  %1726 = vmatprep.mubr.msk.f32.mxu0 %vm1277_vm13, %v1250_v42  ;;  %v1157_v36 = vsel %vm1147_vm6, %v1140_v45, %v2354_v9  ;;  %v1166_v6 = vsel %vm1164_vm7, %v1149_v33, %v2382_v25  ;;  %v718_v9 = vsel %vm449_vm1, %v716_v14, %v717_v7  ;;  %v556_v11 = vrot.slane %v2682_v18, 1 }
 0x106   : > { %v2638_v46 = vpop.permute.xlu1 %770  ;;  %v2640_v2 = vpop.permute.xlu0 %754  ;;  %v1174_v0 = vsel %vm1164_vm7, %v1157_v36, %v2380_v24  ;;  %v1183_v44 = vsel %vm1181_vm8, %v1166_v6, %v2436_v5  ;;  %v613_v3 = vrot.slane %v2525_v56, 2  ;;  %v593_v60 = vrot.slane %v2528_v20, 2 }
 0x107   : > { %v1191_v34 = vsel %vm1181_vm8, %v1174_v0, %v2434_v4  ;;  %v1200_v25 = vsel %vm1198_vm9, %v1183_v44, %v2478_v26  ;;  %v614_v5 = vrot.slane %v2595_v63, 2  ;;  %v594_v20 = vrot.slane %v2602_v40, 2  ;;  %v641_v0 = vld [vmem:[%s2144_s16 + $0xb8] sm:$0x3] }
 0x108   : > { %918 = vrot.lane.b32.xlu1 %v575_v16, %s1902_s12  ;;  %v1208_v24 = vsel %vm1198_vm9, %v1191_v34, %v2476_v30  ;;  %v1217_v4 = vsel %vm1215_vm10, %v1200_v25, %v2514_v38  ;;  %v577_v30 = vsel %vm408_vm0, %v574_v28, %v576_v29  ;;  %v557_v38 = vsel %vm408_vm0, %v554_v21, %v556_v11  ;;  %v629_v11 = vld [vmem:[%s2144_s16 + $0x58] sm:$0x3] }
 0x109   : > { %902 = vrot.lane.b32.xlu0 %v555_v10, %s1902_s12  ;;  %v1225_v42 = vsel %vm1215_vm10, %v1208_v24, %v2512_v57  ;;  %v1234_v56 = vsel %vm1232_vm11, %v1217_v4, %v2592_v62  ;;  %v739_v62 = vrot.slane %v2621_v41, 2  ;;  %v595_v21 = vsel %vm449_vm1, %v593_v60, %v594_v20 }
 0x10a   : > { %v913_v12 = vpop.permute.xlu1 %912  ;;  %v897_v8 = vpop.permute.xlu0 %896  ;;  %v1242_v26 = vsel %vm1232_vm11, %v1225_v42, %v2590_v27  ;;  %v615_v27 = vsel %vm449_vm1, %v613_v3, %v614_v5  ;;  %v719_v10 = vrot.slane %v2626_v61, 2  ;;  %v616_v59 = vrot.slane %v2673_v32, 2 }
 0x10b   : > { %v2676_v47 = vsel %vm1181_vm8, %v1176_v48, %v913_v12  ;;  %v2679_v43 = vsel %vm1181_vm8, %v1168_v49, %v897_v8  ;;  %v740_v51 = vsel %vm449_vm1, %v737_v35, %v739_v62  ;;  %v1143_v31 = vsel %vm1130_vm5, %v2217_v52, %v2638_v46  ;;  %v640_v12 = vld [vmem:[%s2144_s16 + $0xb0] sm:$0xff] }
 0x10c   : > { %1060 = vrot.lane.b32.xlu1 %v700_v37, %s1905_s26  ;;  %v1135_v41 = vsel %vm1130_vm5, %v2223_v54, %v2640_v2  ;;  %v720_v61 = vsel %vm449_vm1, %v717_v7, %v719_v10  ;;  %v596_v15 = vrot.slane %v2682_v18, 2  ;;  %v617_v52 = vsel %vm449_vm1, %v614_v5, %v616_v59  ;;  %v639_v37 = vld [vmem:[%s2144_s16 + $0xa8] sm:$0xff]  ;;  %v628_v8 = vld [vmem:[%s2144_s16 + $0x50] sm:$0xff] }
 0x10d   : > { %1044 = vrot.lane.b32.xlu0 %v680_v13, %s1905_s26  ;;  %v627_v7 = vld [vmem:[%s2144_s16 + $0x48] sm:$0xff]  ;;  %v701_v13 = vrot.slane %v639_v37, 1  ;;  %v702_v32 = vrot.slane %v640_v12, 1  ;;  %v682_v29 = vrot.slane %v628_v8, 1  ;;  %v684_v3 = vrot.slane %v629_v11, 1 }
 0x10e   : > { %v2702_v50 = vpop.permute.xlu1 %958  ;;  %v2704_v58 = vpop.permute.xlu0 %942  ;;  %v597_v2 = vsel %vm449_vm1, %v594_v20, %v596_v15  ;;  %v681_v36 = vrot.slane %v627_v7, 1  ;;  %v741_v4 = vrot.slane %v639_v37, 2  ;;  %v742_v5 = vrot.slane %v640_v12, 2 }
 0x10f   : > { %v703_v34 = vsel %vm408_vm0, %v701_v13, %v702_v32 }
 0x110   : > { %1106 = vrot.lane.b32.xlu1 %v738_v22, %s1906_s28  ;;  %v683_v25 = vsel %vm408_vm0, %v681_v36, %v682_v29 }
 0x111   : > { %1090 = vrot.lane.b32.xlu0 %v718_v9, %s1906_s28 }
 0x112   : > { %v1101_v57 = vpop.permute.xlu1 %1100  ;;  %v1085_v16 = vpop.permute.xlu0 %1084 }
 0x113   : > { %v1259_v17 = vsel %vm1249_vm12, %v1242_v26, %v1101_v57  ;;  %v1251_v63 = vsel %vm1249_vm12, %v1234_v56, %v1085_v16  ;;  %v721_v26 = vrot.slane %v627_v7, 2  ;;  %v722_v56 = vrot.slane %v628_v8, 2 }
 0x114   : > { %920 = vrot.lane.b32.xlu1 %v577_v30, %s1902_s12  ;;  %1739 = vmatmul.mubr.msk.f32.vlgmr.msra.gmra.mrb[0].mxu1 %vm1277_vm13, %v1259_v17  ;;  %v685_v16 = vsel %vm408_vm0, %v682_v29, %v684_v3  ;;  %v744_v17 = vrot.slane %v641_v0, 2 }
 0x115   : > { %904 = vrot.lane.b32.xlu0 %v557_v38, %s1902_s12  ;;  %1727 = vmatmul.mubr.msk.f32.vlgmr.msra.gmra.mrb[0].mxu0 %vm1277_vm13, %v1251_v63  ;;  %v743_v38 = vsel %vm449_vm1, %v741_v4, %v742_v5  ;;  %v723_v62 = vsel %vm449_vm1, %v721_v26, %v722_v56 }
 0x116   : > { %v773_v28 = vpop.permute.xlu1 %772  ;;  %v757_v40 = vpop.permute.xlu0 %756 }
 0x117   : > { %v1144_v18 = vsel %vm1130_vm5, %v2220_v53, %v773_v28  ;;  %v1136_v45 = vsel %vm1130_vm5, %v2994_v19, %v757_v40  ;;  %v704_v53 = vrot.slane %v641_v0, 1  ;;  %v724_v28 = vrot.slane %v629_v11, 2 }
 0x118   : > { %966 = vrot.lane.b32.xlu1 %v615_v27, %s1903_s13  ;;  %v745_v40 = vsel %vm449_vm1, %v742_v5, %v744_v17 }
 0x119   : > { %950 = vrot.lane.b32.xlu0 %v595_v21, %s1903_s13  ;;  %v705_v30 = vsel %vm408_vm0, %v702_v32, %v704_v53 }
 0x11a   : > { %v819_v39 = vpop.permute.xlu1 %818  ;;  %v803_v14 = vpop.permute.xlu0 %802 }
 0x11b   : > { %v1160_v23 = vsel %vm1147_vm6, %v1143_v31, %v819_v39  ;;  %v1152_v35 = vsel %vm1147_vm6, %v1135_v41, %v803_v14 }
 0x11c   : > { %1108 = vrot.lane.b32.xlu1 %v740_v51, %s1906_s28  ;;  %v725_v51 = vsel %vm449_vm1, %v722_v56, %v724_v28 }
 0x11d   : > { %1092 = vrot.lane.b32.xlu0 %v720_v61, %s1906_s28 }
 0x11e   : > { %v2763_v54 = vpop.permute.xlu1 %960  ;;  %v2765_v46 = vpop.permute.xlu0 %944 }
 0x11f   : > { %v1210_v36 = vsel %vm1198_vm9, %v2676_v47, %v2763_v54  ;;  %v2995_v54 = vld [vmem:[#allocation6_spill] sm:$0xff] }
 0x120   : > { %968 = vrot.lane.b32.xlu1 %v617_v52, %s1903_s13  ;;  %v1201_v52 = vsel %vm1198_vm9, %v2564_v1, %v2704_v58 }
 0x121   : > { %952 = vrot.lane.b32.xlu0 %v597_v2, %s1903_s13  ;;  %s2921_s13 = scalar_lea.vmem %s2975_s5, %s1677_s10 }
 0x122   : > { %v2771_v48 = vpop.permute.xlu1 %1006  ;;  %v2773_v49 = vpop.permute.xlu0 %990 }
 0x124   : > { %1014 = vrot.lane.b32.xlu1 %v639_v37, %s1904_s23  ;;  %v1218_v37 = vsel %vm1215_vm10, %v1201_v52, %v2773_v49 }
 0x125   : > { %998 = vrot.lane.b32.xlu0 %v627_v7, %s1904_s23 }
 0x126   : > { %v821_v33 = vpop.permute.xlu1 %820  ;;  %v805_v22 = vpop.permute.xlu0 %804 }
 0x127   : > { %v1161_v6 = vsel %vm1147_vm6, %v1144_v18, %v821_v33  ;;  %v1153_v9 = vsel %vm1147_vm6, %v1136_v45, %v805_v22  ;;  %v1202_v33 = vsel %vm1198_vm9, %v2679_v43, %v2765_v46 }
 0x128   : > { %1016 = vrot.lane.b32.xlu1 %v640_v12, %s1904_s23 }
 0x129   : > { %1000 = vrot.lane.b32.xlu0 %v628_v8, %s1904_s23 }
 0x12a   : > { %v867_v44 = vpop.permute.xlu1 %866  ;;  %v851_v24 = vpop.permute.xlu0 %850 }
 0x12b   : > { %v1177_v60 = vsel %vm1164_vm7, %v1160_v23, %v867_v44  ;;  %v1169_v42 = vsel %vm1164_vm7, %v1152_v35, %v851_v24  ;;  %v1209_v35 = vsel %vm1198_vm9, %v2561_v55, %v2702_v50  ;;  %v2996_v44 = vld [vmem:[#allocation8_spill] sm:$0xff] }
 0x12c   : > { %1062 = vrot.lane.b32.xlu1 %v703_v34, %s1905_s26  ;;  %v1226_v2 = vsel %vm1215_vm10, %v1209_v35, %v2771_v48 }
 0x12d   : > { %1046 = vrot.lane.b32.xlu0 %v683_v25, %s1905_s26 }
 0x12e   : > { %v1009_v20 = vpop.permute.xlu1 %1008  ;;  %v993_v57 = vpop.permute.xlu0 %992 }
 0x12f   : > { %v1227_v22 = vsel %vm1215_vm10, %v1210_v36, %v1009_v20  ;;  %v1219_v29 = vsel %vm1215_vm10, %v1202_v33, %v993_v57 }
 0x130   : > { %1064 = vrot.lane.b32.xlu1 %v705_v30, %s1905_s26 }
 0x131   : > { %1048 = vrot.lane.b32.xlu0 %v685_v16, %s1905_s26 }
 0x132   : > { %v1055_v63 = vpop.permute.xlu1 %1054  ;;  %v1039_v27 = vpop.permute.xlu0 %1038 }
 0x133   : > { %v1243_v7 = vsel %vm1232_vm11, %v1226_v2, %v1055_v63  ;;  %v1235_v12 = vsel %vm1232_vm11, %v1218_v37, %v1039_v27 }
 0x134   : > { %1110 = vrot.lane.b32.xlu1 %v743_v38, %s1906_s28 }
 0x135   : > { %1094 = vrot.lane.b32.xlu0 %v723_v62, %s1906_s28 }
 0x136   : > { %v869_v21 = vpop.permute.xlu1 %868  ;;  %v853_v10 = vpop.permute.xlu0 %852 }
 0x137   : > { %v1178_v59 = vsel %vm1164_vm7, %v1161_v6, %v869_v21  ;;  %v1170_v31 = vsel %vm1164_vm7, %v1153_v9, %v853_v10 }
 0x138   : > { %1112 = vrot.lane.b32.xlu1 %v745_v40, %s1906_s28 }
 0x139   : > { %1096 = vrot.lane.b32.xlu0 %v725_v51, %s1906_s28 }
 0x13a   : > { %v915_v41 = vpop.permute.xlu1 %914  ;;  %v899_v39 = vpop.permute.xlu0 %898 }
 0x13b   : > { %v2811_v14 = vsel %vm1181_vm8, %v1177_v60, %v915_v41  ;;  %v2814_v61 = vsel %vm1181_vm8, %v1169_v42, %v899_v39 }
 0x13e   : > { %v1057_v15 = vpop.permute.xlu1 %1056  ;;  %v1041_v23 = vpop.permute.xlu0 %1040 }
 0x13f   : > { %v1244_v0 = vsel %vm1232_vm11, %v1227_v22, %v1057_v15  ;;  %v1236_v6 = vsel %vm1232_vm11, %v1219_v29, %v1041_v23 }
 0x142   : > { %v1103_v8 = vpop.permute.xlu1 %1102  ;;  %v1087_v13 = vpop.permute.xlu0 %1086 }
 0x143   : > { %v1260_v32 = vsel %vm1249_vm12, %v1243_v7, %v1103_v8  ;;  %v1252_v55 = vsel %vm1249_vm12, %v1235_v12, %v1087_v13 }
 0x144   : > { %1729 = vmatprep.mubr.msk.f32.mxu0 %vm1277_vm13, %v1252_v55  ;;  %1741 = vmatprep.mubr.msk.f32.mxu1 %vm1277_vm13, %v1260_v32 }
 0x146   : > { %v775_v1 = vpop.permute.xlu1 %774  ;;  %v759_v50 = vpop.permute.xlu0 %758 }
 0x147   : > { %v1145_v46 = vsel %vm1130_vm5, %v2995_v54, %v775_v1  ;;  %v1137_v24 = vsel %vm1130_vm5, %v2996_v44, %v759_v50 }
 0x14a   : > { %v917_v58 = vpop.permute.xlu1 %916  ;;  %v901_v48 = vpop.permute.xlu0 %900 }
 0x14b   : > { %v1195_v49 = vsel %vm1181_vm8, %v1178_v59, %v917_v58  ;;  %v1187_v18 = vsel %vm1181_vm8, %v1170_v31, %v901_v48 }
 0x14e   : > { %v963_v19 = vpop.permute.xlu1 %962  ;;  %v947_v45 = vpop.permute.xlu0 %946 }
 0x14f   : > { %v1211_v59 = vsel %vm1198_vm9, %v2811_v14, %v963_v19  ;;  %v1203_v31 = vsel %vm1198_vm9, %v2814_v61, %v947_v45 }
 0x152   : > { %v1105_v9 = vpop.permute.xlu1 %1104  ;;  %v1089_v11 = vpop.permute.xlu0 %1088 }
 0x153   : > { %v1261_v34 = vsel %vm1249_vm12, %v1244_v0, %v1105_v9  ;;  %v1253_v53 = vsel %vm1249_vm12, %v1236_v6, %v1089_v11 }
 0x154   : > { %1730 = vmatmul.mubr.msk.f32.gmra.mrb[2].mxu0 %vm1277_vm13, %v1253_v53  ;;  %1742 = vmatmul.mubr.msk.f32.gmra.mrb[2].mxu1 %vm1277_vm13, %v1261_v34 }
 0x156   : > { %v2848_v47 = vpop.permute.xlu1 %776  ;;  %v2850_v43 = vpop.permute.xlu0 %760 }
 0x15a   : > { %v823_v25 = vpop.permute.xlu1 %822  ;;  %v807_v3 = vpop.permute.xlu0 %806 }
 0x15b   : > { %v1162_v60 = vsel %vm1147_vm6, %v1145_v46, %v823_v25  ;;  %v1154_v42 = vsel %vm1147_vm6, %v1137_v24, %v807_v3  ;;  %v2997_v46 = vld [vmem:[#allocation7_spill] sm:$0xff]  ;;  %v2998_v3 = vld [vmem:[#allocation9_spill] sm:$0xff] }
 0x15c   : > { %v1146_v44 = vsel %vm1130_vm5, %v2997_v46, %v2848_v47 }
 0x15e   : > { %v965_v4 = vpop.permute.xlu1 %964  ;;  %v949_v5 = vpop.permute.xlu0 %948 }
 0x15f   : > { %v1212_v8 = vsel %vm1198_vm9, %v1195_v49, %v965_v4  ;;  %v1204_v13 = vsel %vm1198_vm9, %v1187_v18, %v949_v5  ;;  %v1138_v4 = vsel %vm1130_vm5, %v2998_v3, %v2850_v43 }
 0x162   : > { %v1011_v30 = vpop.permute.xlu1 %1010  ;;  %v995_v26 = vpop.permute.xlu0 %994 }
 0x163   : > { %v1228_v41 = vsel %vm1215_vm10, %v1211_v59, %v1011_v30  ;;  %v1220_v39 = vsel %vm1215_vm10, %v1203_v31, %v995_v26 }
 0x166   : > { %v825_v56 = vpop.permute.xlu1 %824  ;;  %v809_v20 = vpop.permute.xlu0 %808 }
 0x167   : > { %v1155_v30 = vsel %vm1147_vm6, %v1138_v4, %v809_v20 }
 0x16a   : > { %v871_v57 = vpop.permute.xlu1 %870  ;;  %v855_v16 = vpop.permute.xlu0 %854 }
 0x16b   : > { %v1179_v9 = vsel %vm1164_vm7, %v1162_v60, %v871_v57  ;;  %v1171_v34 = vsel %vm1164_vm7, %v1154_v42, %v855_v16  ;;  %v1163_v60 = vsel %vm1147_vm6, %v1146_v44, %v825_v56 }
 0x16e   : > { %v1013_v38 = vpop.permute.xlu1 %1012  ;;  %v997_v17 = vpop.permute.xlu0 %996 }
 0x16f   : > { %v1229_v32 = vsel %vm1215_vm10, %v1212_v8, %v1013_v38  ;;  %v1221_v55 = vsel %vm1215_vm10, %v1204_v13, %v997_v17 }
 0x172   : > { %v1059_v63 = vpop.permute.xlu1 %1058  ;;  %v1043_v27 = vpop.permute.xlu0 %1042 }
 0x173   : > { %v1245_v15 = vsel %vm1232_vm11, %v1228_v41, %v1059_v63  ;;  %v1237_v35 = vsel %vm1232_vm11, %v1220_v39, %v1043_v27 }
 0x176   : > { %v873_v62 = vpop.permute.xlu1 %872 }
 0x177   : > { %v857_v28 = vpop.permute.xlu0 %856  ;;  %v1180_v26 = vsel %vm1164_vm7, %v1163_v60, %v873_v62 }
 0x178   : > { %v1172_v38 = vsel %vm1164_vm7, %v1155_v30, %v857_v28 }
 0x17a   : > { %v919_v40 = vpop.permute.xlu1 %918 }
 0x17b   : > { %v903_v21 = vpop.permute.xlu0 %902  ;;  %v1196_v53 = vsel %vm1181_vm8, %v1179_v9, %v919_v40 }
 0x17c   : > { %v1188_v24 = vsel %vm1181_vm8, %v1171_v34, %v903_v21 }
 0x17e   : > { %v1061_v10 = vpop.permute.xlu1 %1060 }
 0x17f   : > { %v1045_v51 = vpop.permute.xlu0 %1044  ;;  %v1246_v1 = vsel %vm1232_vm11, %v1229_v32, %v1061_v10 }
 0x180   : > { %v1238_v58 = vsel %vm1232_vm11, %v1221_v55, %v1045_v51 }
 0x182   : > { %v1107_v23 = vpop.permute.xlu1 %1106 }
 0x183   : > { %v1262_v52 = vsel %vm1249_vm12, %v1245_v15, %v1107_v23  ;;  %v1091_v2 = vpop.permute.xlu0 %1090  ;;  %v1678_v15 = vld [vmem:[#allocation2] ss:$0 sm:$0xff] }
 0x184   : > { %v1254_v37 = vsel %vm1249_vm12, %v1237_v35, %v1091_v2  ;;  %1744 = vmatprep.mubr.msk.f32.mxu1 %vm1277_vm13, %v1262_v52 }
 0x185   : > { %1732 = vmatprep.mubr.msk.f32.mxu0 %vm1277_vm13, %v1254_v37 }
 0x186   : > { %v921_v14 = vpop.permute.xlu1 %920 }
 0x187   : > { %v905_v61 = vpop.permute.xlu0 %904  ;;  %v1197_v17 = vsel %vm1181_vm8, %v1180_v26, %v921_v14 }
 0x188   : > { %v1189_v27 = vsel %vm1181_vm8, %v1172_v38, %v905_v61 }
 0x18a   : > { %v967_v7 = vpop.permute.xlu1 %966 }
 0x18b   : > { %v951_v12 = vpop.permute.xlu0 %950  ;;  %v1213_v25 = vsel %vm1198_vm9, %v1196_v53, %v967_v7 }
 0x18c   : > { %v1205_v5 = vsel %vm1198_vm9, %v1188_v24, %v951_v12 }
 0x18e   : > { %v1109_v50 = vpop.permute.xlu1 %1108 }
 0x18f   : > { %v1263_v48 = vsel %vm1249_vm12, %v1246_v1, %v1109_v50  ;;  %v1093_v19 = vpop.permute.xlu0 %1092 }
 0x190   : > { %v1255_v45 = vsel %vm1249_vm12, %v1238_v58, %v1093_v19  ;;  %1745 = vmatmul.mubr.msk.f32.gmra.mrb[4].mxu1 %vm1277_vm13, %v1263_v48 }
 0x191   : > { %1733 = vmatmul.mubr.msk.f32.gmra.mrb[4].mxu0 %vm1277_vm13, %v1255_v45 }
 0x192   : > { %v969_v49 = vpop.permute.xlu1 %968 }
 0x193   : > { %v953_v18 = vpop.permute.xlu0 %952  ;;  %v1214_v20 = vsel %vm1198_vm9, %v1197_v17, %v969_v49 }
 0x194   : > { %v1206_v40 = vsel %vm1198_vm9, %v1189_v27, %v953_v18 }
 0x196   : > { %v1015_v36 = vpop.permute.xlu1 %1014 }
 0x197   : > { %v999_v33 = vpop.permute.xlu0 %998  ;;  %v1230_v42 = vsel %vm1215_vm10, %v1213_v25, %v1015_v36 }
 0x198   : > { %v1222_v47 = vsel %vm1215_vm10, %v1205_v5, %v999_v33 }
 0x19a   : > { %v1017_v22 = vpop.permute.xlu1 %1016 }
 0x19b   : > { %v1001_v29 = vpop.permute.xlu0 %1000  ;;  %v1231_v28 = vsel %vm1215_vm10, %v1214_v20, %v1017_v22 }
 0x19c   : > { %v1223_v21 = vsel %vm1215_vm10, %v1206_v40, %v1001_v29 }
 0x19e   : > { %v1063_v0 = vpop.permute.xlu1 %1062 }
 0x19f   : > { %v1047_v6 = vpop.permute.xlu0 %1046  ;;  %v1247_v57 = vsel %vm1232_vm11, %v1230_v42, %v1063_v0 }
 0x1a0   : > { %v1239_v43 = vsel %vm1232_vm11, %v1222_v47, %v1047_v6 }
 0x1a2   : > { %v1065_v11 = vpop.permute.xlu1 %1064 }
 0x1a3   : > { %v1049_v54 = vpop.permute.xlu0 %1048  ;;  %v1248_v10 = vsel %vm1232_vm11, %v1231_v28, %v1065_v11 }
 0x1a4   : > { %v1240_v59 = vsel %vm1232_vm11, %v1223_v21, %v1049_v54 }
 0x1a6   : > { %v1111_v16 = vpop.permute.xlu1 %1110 }
 0x1a7   : > { %v1264_v56 = vsel %vm1249_vm12, %v1247_v57, %v1111_v16  ;;  %v1095_v63 = vpop.permute.xlu0 %1094 }
 0x1a8   : > { %v1256_v62 = vsel %vm1249_vm12, %v1239_v43, %v1095_v63  ;;  %1747 = vmatprep.mubr.msk.f32.mxu1 %vm1277_vm13, %v1264_v56 }
 0x1a9   : > { %1735 = vmatprep.mubr.msk.f32.mxu0 %vm1277_vm13, %v1256_v62 }
 0x1aa   : > { %v1113_v51 = vpop.permute.xlu1 %1112 }
 0x1ab   : > { %v1265_v31 = vsel %vm1249_vm12, %v1248_v10, %v1113_v51  ;;  %v1097_v41 = vpop.permute.xlu0 %1096 }
 0x1ac   : > { %v1257_v39 = vsel %vm1249_vm12, %v1240_v59, %v1097_v41  ;;  %1748 = vmatmul.mubr.msk.f32.gmra.mrb[6].mxu1 %vm1277_vm13, %v1265_v31 }
 0x1ad   : > { %1736 = vmatmul.mubr.msk.f32.gmra.mrb[6].mxu0 %vm1277_vm13, %v1257_v39 }
 0x1e7   : > { %v1740_v23 = vpop.f32.mrb[0].mxu1 }
 0x1e8   : > { %v1728_v35 = vpop.f32.mrb[0].mxu0  ;;  %v1442_v52 = vadd.f32 %v1740_v23, %v1678_v15  ;;  %v1436_v2 = vpop.f32.mrb[1].mxu1 }
 0x1e9   : > { %v1402_v37 = vadd.f32 %v1728_v35, %v1678_v15  ;;  %v1396_v14 = vpop.f32.mrb[1].mxu0  ;;  %v1437_v61 = vadd.f32 %v1678_v15, %v1436_v2 }
 0x1ea   : > { %v1484_v7 = vmax.f32 %v1442_v52, 0.0  ;;  %v1397_v12 = vadd.f32 %v1678_v15, %v1396_v14 }
 0x1eb   : > { %v1476_v8 = vmax.f32 %v1402_v37, 0.0  ;;  %v1483_v13 = vmax.f32 %v1437_v61, 0.0 }
 0x1ec   : > { %1501 = vst.msk [vmem:[%s2921_s13 + $0x48] sm:$0xff] %vm1491_vm14, %v1484_v7  ;;  %v1475_v32 = vmax.f32 %v1397_v12, 0.0 }
 0x1ed   : > { %1493 = vst.msk [vmem:[%s2921_s13 + $0x8] sm:$0xff] %vm1491_vm14, %v1476_v8  ;;  %1500 = vst.msk [vmem:[%s2921_s13 + $0x40] sm:$0xff] %vm1491_vm14, %v1483_v13 }
 0x1ee   : > { %1492 = vst.msk [vmem:[%s2921_s13] sm:$0xff] %vm1491_vm14, %v1475_v32 }
 0x227   : > { %v1731_v55 = vpop.f32.mrb[2].mxu0  ;;  %v1743_v1 = vpop.f32.mrb[2].mxu1 }
 0x228   : > { %v1412_v50 = vadd.f32 %v1731_v55, %v1678_v15  ;;  %v1452_v58 = vadd.f32 %v1743_v1, %v1678_v15  ;;  %v1406_v48 = vpop.f32.mrb[3].mxu0  ;;  %v1446_v19 = vpop.f32.mrb[3].mxu1 }
 0x229   : > { %v1407_v45 = vadd.f32 %v1678_v15, %v1406_v48  ;;  %v1447_v49 = vadd.f32 %v1678_v15, %v1446_v19 }
 0x22a   : > { %v1478_v18 = vmax.f32 %v1412_v50, 0.0  ;;  %v1486_v36 = vmax.f32 %v1452_v58, 0.0 }
 0x22b   : > { %v1477_v33 = vmax.f32 %v1407_v45, 0.0  ;;  %v1485_v22 = vmax.f32 %v1447_v49, 0.0 }
 0x22c   : > { %1495 = vst.msk [vmem:[%s2921_s13 + $0x18] sm:$0xff] %vm1491_vm14, %v1478_v18  ;;  %1503 = vst.msk [vmem:[%s2921_s13 + $0x58] sm:$0xff] %vm1491_vm14, %v1486_v36 }
 0x22d   : > { %1494 = vst.msk [vmem:[%s2921_s13 + $0x10] sm:$0xff] %vm1491_vm14, %v1477_v33  ;;  %1502 = vst.msk [vmem:[%s2921_s13 + $0x50] sm:$0xff] %vm1491_vm14, %v1485_v22 }
 0x263   : > { %v1746_v29 = vpop.f32.mrb[4].mxu1 }
 0x264   : > { %v1734_v0 = vpop.f32.mrb[4].mxu0  ;;  %v1462_v6 = vadd.f32 %v1746_v29, %v1678_v15  ;;  %v1456_v9 = vpop.f32.mrb[5].mxu1 }
 0x265   : > { %v1422_v11 = vadd.f32 %v1734_v0, %v1678_v15  ;;  %v1416_v34 = vpop.f32.mrb[5].mxu0  ;;  %v1457_v53 = vadd.f32 %v1678_v15, %v1456_v9 }
 0x266   : > { %v1488_v54 = vmax.f32 %v1462_v6, 0.0  ;;  %v1417_v46 = vadd.f32 %v1678_v15, %v1416_v34 }
 0x267   : > { %v1480_v44 = vmax.f32 %v1422_v11, 0.0  ;;  %v1487_v24 = vmax.f32 %v1457_v53, 0.0 }
 0x268   : > { %1505 = vst.msk [vmem:[%s2921_s13 + $0x68] sm:$0xff] %vm1491_vm14, %v1488_v54  ;;  %v1479_v25 = vmax.f32 %v1417_v46, 0.0 }
 0x269   : > { %1497 = vst.msk [vmem:[%s2921_s13 + $0x28] sm:$0xff] %vm1491_vm14, %v1480_v44  ;;  %1504 = vst.msk [vmem:[%s2921_s13 + $0x60] sm:$0xff] %vm1491_vm14, %v1487_v24 }
 0x26a   : > { %1496 = vst.msk [vmem:[%s2921_s13 + $0x20] sm:$0xff] %vm1491_vm14, %v1479_v25 }
 0x27f   : > { %v1749_v3 = vpop.f32.mrb[6].mxu1 }
 0x280   : > { %v1737_v4 = vpop.f32.mrb[6].mxu0  ;;  %v1472_v60 = vadd.f32 %v1749_v3, %v1678_v15  ;;  %v1466_v5 = vpop.f32.mrb[7].mxu1 }
 0x281   : > { %v1432_v42 = vadd.f32 %v1737_v4, %v1678_v15  ;;  %v1426_v30 = vpop.f32.mrb[7].mxu0  ;;  %v1467_v26 = vadd.f32 %v1678_v15, %v1466_v5 }
 0x282   : > { %v1490_v47 = vmax.f32 %v1472_v60, 0.0  ;;  %v1427_v57 = vadd.f32 %v1678_v15, %v1426_v30 }
 0x283   : > { %v1482_v16 = vmax.f32 %v1432_v42, 0.0  ;;  %v1489_v38 = vmax.f32 %v1467_v26, 0.0 }
 0x284   : > { %1507 = vst.msk [vmem:[%s2921_s13 + $0x78] sm:$0xff] %vm1491_vm14, %v1490_v47  ;;  %v1481_v17 = vmax.f32 %v1427_v57, 0.0 }
 0x285   : > { %1499 = vst.msk [vmem:[%s2921_s13 + $0x38] sm:$0xff] %vm1491_vm14, %v1482_v16  ;;  %1506 = vst.msk [vmem:[%s2921_s13 + $0x70] sm:$0xff] %vm1491_vm14, %v1489_v38 }
 0x286   : > { %1498 = vst.msk [vmem:[%s2921_s13 + $0x30] sm:$0xff] %vm1491_vm14, %v1481_v17 }
 0x287 PF: > { %s16_s22 = sadd.s32 1, %s1896_s22   ;;  %s2999_s18 = smov %s1888_s20 }
 0x288   : > { %p13_p7 = scmp.ge.s32.totalorder %s16_s22, 6   ;;  %s3000_s19 = smov %s1892_s21 }
 0x289   : > { %s3001_s20 = smov %s3004_s24  ;;  %s3002_s21 = smov %s3008_s25 }
 0x28a   :  { %15 = sbr.rel (!%p13_p7) target bundleno = 3 (0x3), region = 81 }
 0x291   :  { %1540 = vsyncpa [#allocation3], 1 }
 0x292   :  { %1542 = vsyncpa [#allocation3 + $0x1], 1 }

// kernel: cnn_forward.4
= control target key start
LH: loop header
LB: loop body
LE: loop exit
PB: predicated region body
PF: predicated region fallthrough
CT: control target
= control target key end

     0   :  { %10 = vsyncpa [#allocation3], 0  ;;  %s3603_s0 = inlined_call_operand.vmem [shape: f32[2,16,18,32], index: 0, kind: input, shape index: {}]   ;;  %s3604_s1 = inlined_call_operand.vmem [shape: f32[2,16,18,32], index: 1, kind: input, shape index: {}]   ;;  %s3605_s2 = inlined_call_operand.vmem [shape: f32[2,16,18,32], index: 2, kind: input, shape index: {}]   ;;  %s3606_s3 = inlined_call_operand.hbm [shape: f32[288,64], index: 3, kind: input, shape index: {}]   ;;  %s3607_s4 = inlined_call_operand.hbm [shape: f32[1,64], index: 4, kind: input, shape index: {}]   ;;  %s3608_s5 = inlined_call_operand.vmem [shape: f32[2,16,16,64], index: 5, kind: output, shape index: {}]  }
   0x1   :  { %11 = vsyncpa [#allocation5], 0  ;;  %s2408_s18 = smov 0   ;;  %s2410_s19 = smov 0  }
   0x2   :  { %s2412_s20 = smov 0   ;;  %s2414_s21 = smov 0  }
   0x3   :  { %s2416_s22 = smov 0  }
   0x4 LB: > { %s1724_s23 = sadd.s32 4294967295, %s2369_s22   ;;  %s26_s24 = sadd.s32 1, %s2361_s20  ;;  %s2369_s22 = sphi %s2416_s22, %s17_s22   ;;  %s2365_s21 = sphi %s2414_s21, %s3798_s21   ;;  %s2361_s20 = sphi %s2412_s20, %s3797_s20   ;;  %s2357_s19 = sphi %s2410_s19, %s3796_s19   ;;  %s2353_s18 = sphi %s2408_s18, %s3795_s18  }
   0x5   : > { %p27_p0 = scmp.ge.s32.totalorder %s26_s24, 2  ;;  %s29_s25 = sadd.s32 1, %s2365_s21 }
   0x6   : > { %p1726_p1 = scmp.ge.s32.totalorder %s2369_s22, 1  ;;  %p188_p2 = scmp.lt.s32.totalorder %s2369_s22, 5 }
   0x7   : > { %s3800_s24 = smov (%p27_p0, %s26_s24), 0  ;;  %s3802_s25 = smov (!%p27_p0, %s29_s25), %s2365_s21 }
   0x8   : > { %p2441_p3 = pnand %p1726_p1, %p188_p2  ;;  %p31_p4 = scmp.ge.s32.totalorder %s3802_s25, 2 }
   0x9   : > { %p2445_p5 = scmp.eq.s32.totalorder %s1724_s23, 0  ;;  %s2371_s28 = smov [#allocation2]  }
   0xa   : > { %s3662_s26 = scalar_select %p2441_p3, 1, 0 }
   0xb   : > { %s3663_s27 = scalar_select %p2445_p5, 1, 0 }
   0xc   : > { %p1960_p6 = pneg %p2441_p3  ;;  %s3804_s25 = smov (%p31_p4, %s3802_s25), 0 }
   0xd   : > { %s200_s29 = sshll.u32 %s2371_s28, 4  ;;  %s2267_s8 = scalar_lea.hbm %s3606_s3, 4608  ;;  %s201_s29 = int_to_ptr.vmem [resolvable:$true] %s200_s29 }
   0xe   : > { %p2455_p7 = pnand %p2445_p5, %p1960_p6  ;;  %p2268_p8 = scmp.ne.s32.totalorder %s3606_s3, %s2267_s8 }
   0xf   : > { %p2274_p12 = scmp.lt.u32.totalorder %s2267_s8, %s3606_s3 }
  0x10   : > { %p2269_p9 = pneg %p2455_p7 }
  0x12   : > { %p2270_p10 = pnand %p2269_p9, %p2268_p8 }
  0x14   : > { %p2271_p11 = pneg %p2270_p10 }
  0x16   : > { %p2276_p13 = pnand %p2274_p12, %p2271_p11 }
  0x18   : > { %2279 = shalt.err (!%p2276_p13)
}
  0x19   : > { %s2280_s13 = scalar_lea.vmem %s201_s29, 4608  ;;  %p2288_p4 = scmp.lt.s32.totalorder %s201_s29, %s201_s29 }
  0x1a   : > { %p2281_p0 = scmp.ne.s32.totalorder %s201_s29, %s2280_s13  ;;  %p2289_p6 = scmp.lt.s32.totalorder %s2280_s13, %s2280_s13 }
  0x1c   : > { %p2283_p1 = pnand %p2281_p0, %p2269_p9  ;;  %p2290_p5 = por %p2289_p6, %p2288_p4 }
  0x1e   : > { %p2284_p2 = pneg %p2283_p1 }
  0x20   : > { %p2291_p3 = pnand %p2290_p5, %p2284_p2 }
  0x22   : > { %2294 = shalt.err (!%p2291_p3)
}
  0x23   : > { %s2372_s14 = smov 128   ;;  %s2373_s15 = smov 8  }
  0x24   : > { %1963 = dma.hbm_to_vmem [thread:$0]  (!%p2455_p7), %s3606_s3, 4608, %s201_s29, [#allocation3], %s2372_s14, %s2372_s14, %s2373_s15  }
  0x25   : > { %s2374_s23 = smov [#allocation4]   ;;  %s2295_s8 = scalar_lea.hbm %s3607_s4, 16 }
  0x26   : > { %s214_s28 = sshll.u32 %s2374_s23, 4  ;;  %p2296_p3 = scmp.ne.s32.totalorder %s3607_s4, %s2295_s8  ;;  %s215_s28 = int_to_ptr.vmem [resolvable:$true] %s214_s28 }
  0x27   : > { %p2302_p10 = scmp.lt.u32.totalorder %s2295_s8, %s3607_s4 }
  0x28   : > { %p2298_p5 = pnand %p2296_p3, %p2269_p9 }
  0x2a   : > { %p2299_p8 = pneg %p2298_p5 }
  0x2c   : > { %p2304_p11 = pnand %p2302_p10, %p2299_p8 }
  0x2e   : > { %2307 = shalt.err (!%p2304_p11)
}
  0x2f   : > { %s2308_s29 = scalar_lea.vmem %s215_s28, 16  ;;  %s2315_s13 = scalar_lea.vmem %s215_s28, 32 }
  0x30   : > { %p2309_p12 = scmp.ne.s32.totalorder %s215_s28, %s2308_s29  ;;  %p2316_p1 = scmp.lt.s32.totalorder %s215_s28, %s215_s28 }
  0x31   : > { %p2317_p2 = scmp.lt.s32.totalorder %s2315_s13, %s2308_s29 }
  0x32   : > { %p2311_p13 = pnand %p2309_p12, %p2269_p9 }
  0x33   : > { %p2318_p4 = por %p2317_p2, %p2316_p1 }
  0x34   : > { %p2312_p0 = pneg %p2311_p13 }
  0x36   : > { %p2319_p6 = pnand %p2318_p4, %p2312_p0 }
  0x38   : > { %2322 = shalt.err (!%p2319_p6)
}
  0x39   : > { %1966 = dma.hbm_to_vmem [thread:$0]  (!%p2455_p7), %s3607_s4, 16, %s215_s28, [#allocation5]  }
  0x3a   : > { %p3665_p3 = scmp.ne.s32.totalorder %s3662_s26, 0 }
  0x3c   : > { %269 = sbr.rel (%p3665_p3) target bundleno = 523 (0x20b), region = 40 }
  0x43   : > { %p3666_p5 = scmp.ne.s32.totalorder %s3663_s27, 0 }
  0x45   : > { %2344 = dma.done.wait (%p3666_p5), [#allocation3], 4608  }
  0x46   : > { %2346 = vsyncadd (%p3666_p5), [#allocation3], 4294962688 }
  0x47   : > { %2348 = dma.done.wait (%p3666_p5), [#allocation5], 16  }
  0x48   : > { %2350 = vsyncadd (%p3666_p5), [#allocation5], 4294967280  ;;  %s1733_s30 = sshll.u32 %s2353_s18, 3  ;;  %p332_p7 = scmp.lt.s32.totalorder %s2357_s19, 1  ;;  %v1180_v0 = vld [vmem:[#allocation2 + $0x80] sm:$0xff]  ;;  %v1181_v1 = vld [vmem:[#allocation2 + $0x88] sm:$0xff] }
  0x49   : > { %p334_p9 = scmp.lt.s32.totalorder %s1733_s30, 15  ;;  %v1164_v2 = vld [vmem:[#allocation2] sm:$0xff]  ;;  %v1894_v3 = vpack.c.bf16 %v1181_v1, %v1180_v0  ;;  %v1165_v4 = vld [vmem:[#allocation2 + $0x8] sm:$0xff]  ;;  %v1182_v5 = vld [vmem:[#allocation2 + $0x90] sm:$0xff]  ;;  %vm423_vm0 = vcmask 1046528   ;;  %vm464_vm1 = vcmask 1045504  }
  0x4a   : > { %s3806_s19 = smov (!%p332_p7, %s2357_s19), 1  ;;  %v1183_v6 = vld [vmem:[#allocation2 + $0x98] sm:$0xff]  ;;  %v1896_v7 = vpack.c.bf16 %v1165_v4, %v1164_v2  ;;  %v1166_v9 = vld [vmem:[#allocation2 + $0x10] sm:$0xff]  ;;  %s2375_s12 = smov 64   ;;  %vm1065_vm2 = vcmask 261120   ;;  %vm1082_vm3 = vcmask 523264  }
  0x4b   : > { %s3808_s30 = smov (!%p334_p9, %s1733_s30), 15  ;;  %s1951_s26 = smul.u32 48, %s3806_s19  ;;  %v1898_v8 = vpack.c.bf16 %v1183_v6, %v1182_v5  ;;  %v1167_v10 = vld [vmem:[#allocation2 + $0x18] sm:$0xff]  ;;  %1895 = vmatprep.subr.bf16.mxu0 %v1894_v3  ;;  %1934 = vmatprep.subr.bf16.mxu1 %v1894_v3  ;;  %vm1099_vm4 = vcmask 785408  }
  0x4c   : > { %s1950_s16 = smul.u32 3, %s3808_s30  ;;  %1897 = vmatpush3.bf16.msra.mxu0 %v1896_v7  ;;  %v1900_v20 = vpack.c.bf16 %v1167_v10, %v1166_v9  ;;  %1942 = vmatpush3.bf16.msra.mxu1 %v1896_v7  ;;  %s2376_s29 = smov 32  }
  0x4d   : > { %1899 = vmatprep.subr.bf16.mxu0 %v1898_v8  ;;  %1935 = vmatprep.subr.bf16.mxu1 %v1898_v8  ;;  %s2377_s13 = smov 96   ;;  %s1740_s14 = sshll.u32 %s3808_s30, 1 }
  0x4e   : > { %s338_s17 = sadd.s32 %s1951_s26, %s1950_s16  ;;  %s1741_s15 = sshll.u32 %s3806_s19, 5 }
  0x4f   : > { %s1734_s27 = sshll.u32 %s338_s17, 3  ;;  %s371_s26 = sadd.s32 %s1741_s15, %s1740_s14 }
  0x50   : > { %s2523_s28 = scalar_lea.vmem %s3603_s0, %s1734_s27  ;;  %s2528_s8 = scalar_lea.vmem %s3604_s1, %s1734_s27  ;;  %1901 = vmatpush3.bf16.msra.mxu0 %v1900_v20  ;;  %1943 = vmatpush3.bf16.msra.mxu1 %v1900_v20 }
  0x51   : > { %s2533_s11 = scalar_lea.vmem %s3605_s2, %s1734_s27  ;;  %v2536_v11 = vld [vmem:[%s2523_s28] sm:$0xff]  ;;  %v2539_v12 = vld [vmem:[%s2523_s28 + $0x8] sm:$0xff]  ;;  %v2563_v24 = vld [vmem:[%s2528_s8 + $0x10] sm:$0x3]  ;;  %s1742_s16 = sshll.u32 %s371_s26, 3 }
  0x52   : > { %3667 = vst [vmem:[#allocation8_spill] sm:$0xff] %v2536_v11  ;;  %v2542_v13 = vld [vmem:[%s2528_s8] sm:$0xff]  ;;  %v2545_v14 = vld [vmem:[%s2533_s11 + $0x8] sm:$0xff]  ;;  %v2548_v15 = vld [vmem:[%s2533_s11 + $0x90] sm:$0xff]  ;;  %v424_v16 = vrot.slane %v2536_v11, 1  ;;  %v425_v17 = vrot.slane %v2539_v12, 1  ;;  %s3536_s17 = scalar_lea.vmem %s3608_s5, %s1742_s16 }
  0x53   : > { %v2553_v18 = vld [vmem:[%s2528_s8 + $0x8] sm:$0xff]  ;;  %v609_v19 = vrot.slane %v2542_v13, 2  ;;  %v2018_v21 = vpack.i.bf16 %v2548_v15, %v2545_v14  ;;  %v698_v22 = vrot.slane %v2545_v14, 1  ;;  %v2560_v23 = vld [vmem:[%s2533_s11] sm:$0xff]  ;;  %v727_v25 = vrot.slane %v2548_v15, 1  ;;  %v2570_v29 = vld [vmem:[%s2528_s8 + $0x90] sm:$0xff] }
  0x54   : > { %v426_v26 = vsel %vm423_vm0, %v424_v16, %v425_v17  ;;  %v610_v27 = vrot.slane %v2553_v18, 2  ;;  %v697_v28 = vrot.slane %v2560_v23, 1  ;;  %v2573_v30 = vld [vmem:[%s2528_s8 + $0x98] sm:$0xff]  ;;  %v465_v31 = vrot.slane %v2536_v11, 2  ;;  %v377_v34 = vld [vmem:[%s2523_s28 + $0x10] sm:$0x3] }
  0x55   : > { %2019 = vrot.lane.b32.xlu1 %v2018_v21, %s2375_s12  ;;  %v466_v32 = vrot.slane %v2539_v12, 2  ;;  %v612_v33 = vrot.slane %v2563_v24, 2  ;;  %v2581_v35 = vld [vmem:[%s2523_s28 + $0x90] sm:$0xff]  ;;  %v639_v38 = vrot.slane %v2570_v29, 2  ;;  %v640_v39 = vrot.slane %v2573_v30, 2  ;;  %v2588_v40 = vld [vmem:[%s2523_s28 + $0x98] sm:$0xff] }
  0x56   : > { %3668 = vst [vmem:[#allocation9_spill] sm:$0xff] %v2581_v35  ;;  %v611_v36 = vsel %vm464_vm1, %v609_v19, %v610_v27  ;;  %v699_v37 = vsel %vm423_vm0, %v697_v28, %v698_v22  ;;  %v2591_v41 = vld [vmem:[%s2533_s11 + $0x10] sm:$0x3]  ;;  %v2594_v42 = vld [vmem:[%s2533_s11 + $0x98] sm:$0xff]  ;;  %v427_v49 = vrot.slane %v377_v34, 1  ;;  %v454_v50 = vrot.slane %v2581_v35, 1 }
  0x57   : > { %v2023_v43 = vpack.i.bf16 %v426_v26, %v611_v36  ;;  %v2033_v44 = vpack.i.bf16 %v2542_v13, %v699_v37  ;;  %v467_v45 = vsel %vm464_vm1, %v465_v31, %v466_v32  ;;  %v613_v46 = vsel %vm464_vm1, %v610_v27, %v612_v33  ;;  %v2610_v58 = vld [vmem:[%s2528_s8 + $0x18] sm:$0xff]  ;;  %v2613_v59 = vld [vmem:[%s2528_s8 + $0x20] sm:$0xff]  ;;  %v2657_v33 = vld [vmem:[%s2528_s8 + $0x28] sm:$0x3] }
  0x58   : > { %v2028_v47 = vpack.i.bf16 %v467_v45, %v2560_v23  ;;  %v641_v48 = vsel %vm464_vm1, %v639_v38, %v640_v39  ;;  %v455_v52 = vrot.slane %v2588_v40, 1  ;;  %v700_v53 = vrot.slane %v2591_v41, 1  ;;  %v2616_v60 = vld [vmem:[%s2528_s8 + $0xa0] sm:$0x3]  ;;  %v2624_v4 = vld [vmem:[%s2523_s28 + $0x18] sm:$0xff]  ;;  %v2663_v36 = vld [vmem:[%s2533_s11 + $0xa8] sm:$0xff] }
  0x59   : > { %2024 = vrot.lane.b32.xlu0 %v2023_v43, %s2376_s29  ;;  %2034 = vrot.lane.b32.xlu1 %v2033_v44, %s2377_s13  ;;  %v2038_v51 = vpack.i.bf16 %v641_v48, %v613_v46  ;;  %v728_v54 = vrot.slane %v2594_v42, 1  ;;  %v428_v55 = vsel %vm423_vm0, %v425_v17, %v427_v49  ;;  %v468_v56 = vrot.slane %v377_v34, 2  ;;  %3669 = vst [vmem:[#allocation10_spill] sm:$0xff] %v2624_v4  ;;  %v2627_v5 = vld [vmem:[%s2523_s28 + $0x20] sm:$0xff]  ;;  %v2639_v12 = vld [vmem:[%s2533_s11 + $0x18] sm:$0xff] }
  0x5a   : > { %v495_v57 = vrot.slane %v2581_v35, 2  ;;  %v456_v61 = vsel %vm423_vm0, %v454_v50, %v455_v52  ;;  %v701_v62 = vsel %vm423_vm0, %v698_v22, %v700_v53  ;;  %v496_v0 = vrot.slane %v2588_v40, 2  ;;  %v395_v10 = vld [vmem:[%s2523_s28 + $0xa0] sm:$0x3]  ;;  %v2660_v34 = vld [vmem:[%s2528_s8 + $0xb0] sm:$0xff]  ;;  %3671 = vst [vmem:[#allocation12_spill] sm:$0xff] %v2663_v36 }
  0x5b   : > { %v729_v63 = vsel %vm423_vm0, %v727_v25, %v728_v54  ;;  %v2043_v1 = vpack.i.bf16 %v456_v61, %v428_v55  ;;  %v469_v3 = vsel %vm464_vm1, %v466_v32, %v468_v56  ;;  %v614_v7 = vrot.slane %v2610_v58, 2  ;;  %v2642_v15 = vld [vmem:[%s2533_s11 + $0x20] sm:$0xff]  ;;  %v2654_v32 = vld [vmem:[%s2528_s8 + $0xa8] sm:$0xff]  ;;  %v2676_v46 = vld [vmem:[%s2523_s28 + $0xb0] sm:$0xff] }
  0x5c   : > { %v2058_v2 = vpack.i.bf16 %v729_v63, %v701_v62  ;;  %v497_v6 = vsel %vm464_vm1, %v495_v57, %v496_v0  ;;  %v615_v8 = vrot.slane %v2613_v59, 2  ;;  %v642_v9 = vrot.slane %v2616_v60, 2  ;;  %3670 = vst [vmem:[#allocation11_spill] sm:$0xff] %v2642_v15  ;;  %v669_v16 = vld [vmem:[%s2533_s11 + $0xa0] sm:$0x3]  ;;  %v2673_v45 = vld [vmem:[%s2523_s28 + $0xa8] sm:$0xff] }
  0x5d   : > { %2029 = vrot.lane.b32.xlu0 %v2028_v47, %s2375_s12  ;;  %2039 = vrot.lane.b32.xlu1 %v2038_v51, %s2376_s29  ;;  %v429_v20 = vrot.slane %v2624_v4, 1  ;;  %v430_v21 = vrot.slane %v2627_v5, 1  ;;  %v2048_v22 = vpack.i.bf16 %v497_v6, %v469_v3  ;;  %v457_v25 = vrot.slane %v395_v10, 1  ;;  %v380_v44 = vld [vmem:[%s2523_s28 + $0x28] sm:$0x3]  ;;  %3672 = vst [vmem:[#allocation13_spill] sm:$0xff] %v2673_v45 }
  0x5e   : > { %v616_v17 = vsel %vm464_vm1, %v614_v7, %v615_v8  ;;  %v643_v19 = vsel %vm464_vm1, %v640_v39, %v642_v9  ;;  %v702_v27 = vrot.slane %v2639_v12, 1  ;;  %v703_v28 = vrot.slane %v2642_v15, 1  ;;  %v2682_v51 = vld [vmem:[%s2533_s11 + $0x28] sm:$0x3]  ;;  %v2685_v53 = vld [vmem:[%s2533_s11 + $0xb0] sm:$0xff] }
  0x5f   : > { %v2063_v26 = vpack.i.bf16 %v643_v19, %v616_v17  ;;  %v730_v31 = vrot.slane %v669_v16, 1  ;;  %v2053_v38 = vpack.i.bf16 %v2570_v29, %v2553_v18  ;;  %v2073_v39 = vpack.i.bf16 %v2594_v42, %v2639_v12  ;;  %3673 = vst [vmem:[#allocation14_spill] sm:$0xff] %v2682_v51  ;;  %3674 = vst [vmem:[#allocation15_spill] sm:$0xff] %v2685_v53 }
  0x60   : > { %v431_v43 = vsel %vm423_vm0, %v429_v20, %v430_v21  ;;  %v458_v47 = vsel %vm423_vm0, %v455_v52, %v457_v25  ;;  %v470_v48 = vrot.slane %v2624_v4, 2  ;;  %v471_v49 = vrot.slane %v2627_v5, 2  ;;  %v2710_v20 = vld [vmem:[%s2528_s8 + $0x30] sm:$0xff] }
  0x61   : > { %2044 = vrot.lane.b32.xlu0 %v2043_v1, %s2376_s29  ;;  %2059 = vrot.lane.b32.xlu1 %v2058_v2, %s2377_s13  ;;  %v498_v50 = vrot.slane %v395_v10, 2  ;;  %v704_v42 = vsel %vm423_vm0, %v702_v27, %v703_v28  ;;  %v731_v55 = vsel %vm423_vm0, %v728_v54, %v730_v31  ;;  %v617_v56 = vrot.slane %v2657_v33, 2  ;;  %v2799_v10 = vld [vmem:[%s2523_s28 + $0x50] sm:$0xff] }
  0x62   : > { %v644_v52 = vrot.slane %v2654_v32, 2  ;;  %v645_v57 = vrot.slane %v2660_v34, 2  ;;  %v432_v61 = vrot.slane %v380_v44, 1  ;;  %v459_v62 = vrot.slane %v2673_v45, 1 }
  0x63   : > { %v3614_v63 = vrot.slane %v2676_v46, 1  ;;  %v732_v2 = vrot.slane %v2663_v36, 1  ;;  %v705_v3 = vrot.slane %v2682_v51, 1  ;;  %v3613_v54 = vrot.slane %v2685_v53, 1 }
  0x64   : > { %v2068_v5 = vpack.i.bf16 %v458_v47, %v431_v43  ;;  %v473_v6 = vrot.slane %v380_v44, 2  ;;  %v500_v7 = vrot.slane %v2673_v45, 2  ;;  %v3612_v9 = vrot.slane %v2676_v46, 2  ;;  %v2749_v43 = vld [vmem:[%s2533_s11 + $0x30] sm:$0xff] }
  0x65   : > { %2049 = vrot.lane.b32.xlu0 %v2048_v22, %s2375_s12  ;;  %2064 = vrot.lane.b32.xlu1 %v2063_v26, %s2376_s29  ;;  %v2083_v16 = vpack.i.bf16 %v731_v55, %v704_v42  ;;  %v472_v17 = vsel %vm464_vm1, %v470_v48, %v471_v49  ;;  %v499_v19 = vsel %vm464_vm1, %v496_v0, %v498_v50  ;;  %v2713_v22 = vld [vmem:[%s2528_s8 + $0x38] sm:$0xff]  ;;  %v2752_v44 = vld [vmem:[%s2523_s28 + $0x30] sm:$0xff]  ;;  %v3683_v11 = vrot.slane %v2685_v53, 1 }
  0x66   : > { %v618_v25 = vsel %vm464_vm1, %v615_v8, %v617_v56  ;;  %v646_v26 = vsel %vm464_vm1, %v644_v52, %v645_v57  ;;  %v2720_v27 = vsel %vm423_vm0, %v430_v21, %v432_v61  ;;  %v2725_v40 = vsel %vm423_vm0, %v459_v62, %v3614_v63  ;;  %3675 = vst [vmem:[#allocation16_spill] sm:$0xff] %v2752_v44  ;;  %v2760_v42 = vld [vmem:[%s2523_s28 + $0x38] sm:$0xff] }
  0x67   : > { %v2728_v0 = vsel %vm423_vm0, %v703_v28, %v705_v3  ;;  %v2733_v8 = vsel %vm423_vm0, %v732_v2, %v3613_v54  ;;  %v2736_v31 = vsel %vm464_vm1, %v471_v49, %v473_v6  ;;  %v2741_v21 = vsel %vm464_vm1, %v500_v7, %v3612_v9  ;;  %3676 = vst [vmem:[#allocation17_spill] sm:$0xff] %v2760_v42  ;;  %v398_v55 = vld [vmem:[%s2523_s28 + $0xb8] sm:$0x3]  ;;  %v2811_v7 = vld [vmem:[%s2528_s8 + $0x50] sm:$0xff] }
  0x68   : > { %v620_v28 = vrot.slane %v2713_v22, 2  ;;  %v2078_v48 = vpack.i.bf16 %v499_v19, %v472_v17  ;;  %v2093_v49 = vpack.i.bf16 %v646_v26, %v618_v25  ;;  %v2088_v50 = vpack.i.bf16 %v2573_v30, %v2610_v58  ;;  %v2772_v2 = vld [vmem:[%s2533_s11 + $0x38] sm:$0xff]  ;;  %v383_v19 = vld [vmem:[%s2523_s28 + $0x40] sm:$0x3] }
  0x69   : > { %2054 = vrot.lane.b32.xlu0 %v2053_v38, %s2377_s13  ;;  %2074 = vrot.lane.b32.xlu1 %v2073_v39, %s2375_s12  ;;  %v2744_v38 = vld [vmem:[%s2528_s8 + $0xb8] sm:$0x3]  ;;  %v619_v39 = vrot.slane %v2710_v20, 2  ;;  %v2103_v56 = vpack.i.bf16 %v2663_v36, %v2642_v15  ;;  %v2098_v52 = vpack.i.bf16 %v2725_v40, %v2720_v27  ;;  %v2113_v61 = vpack.i.bf16 %v2733_v8, %v2728_v0  ;;  %v2788_v25 = vld [vmem:[%s2528_s8 + $0x40] sm:$0x3] }
  0x6a   : > { %v2775_v3 = vld [vmem:[%s2533_s11 + $0xb8] sm:$0x3]  ;;  %v647_v6 = vrot.slane %v2744_v38, 2  ;;  %v707_v17 = vrot.slane %v2749_v43, 1  ;;  %3679 = vst [vmem:[#allocation20_spill] sm:$0xff] %v2788_v25  ;;  %v434_v27 = vrot.slane %v2752_v44, 1 }
  0x6b   : > { %3677 = vst [vmem:[#allocation18_spill] sm:$0xff] %v2775_v3  ;;  %v2791_v26 = vsel %vm464_vm1, %v619_v39, %v620_v28  ;;  %v435_v40 = vrot.slane %v2760_v42, 1  ;;  %v462_v0 = vrot.slane %v398_v55, 1  ;;  %v2796_v8 = vld [vmem:[%s2533_s11 + $0x40] sm:$0x3]  ;;  %v708_v37 = vrot.slane %v2772_v2, 1 }
  0x6c   : > { %3680 = vst [vmem:[#allocation21_spill] sm:$0xff] %v2796_v8  ;;  %v735_v47 = vrot.slane %v2775_v3, 1  ;;  %v475_v39 = vrot.slane %v2752_v44, 2  ;;  %v476_v1 = vrot.slane %v2760_v42, 2  ;;  %v503_v62 = vrot.slane %v398_v55, 2  ;;  %v2848_v3 = vld [vmem:[%s2533_s11 + $0x50] sm:$0xff] }
  0x6d   : > { %2069 = vrot.lane.b32.xlu0 %v2068_v5, %s2376_s29  ;;  %2084 = vrot.lane.b32.xlu1 %v2083_v16, %s2377_s13  ;;  %v2778_v5 = vld [vmem:[%s2523_s28 + $0x48] sm:$0xff]  ;;  %v437_v9 = vrot.slane %v383_v19, 1  ;;  %v622_v54 = vrot.slane %v2788_v25, 2  ;;  %v710_v63 = vrot.slane %v2796_v8, 1  ;;  %v440_v42 = vrot.slane %v2799_v10, 1  ;;  %3684 = vst [vmem:[#allocation23_spill] sm:$0xff] %v2848_v3 }
  0x6e   : > { %3678 = vst [vmem:[#allocation19_spill] sm:$0xff] %v2778_v5  ;;  %v2808_v16 = vld [vmem:[%s2528_s8 + $0x48] sm:$0xff]  ;;  %v439_v44 = vrot.slane %v2778_v5, 1  ;;  %v2821_v45 = vsel %vm423_vm0, %v434_v27, %v435_v40  ;;  %v3682_v55 = vrot.slane %v2676_v46, 1  ;;  %v625_v35 = vrot.slane %v2811_v7, 2  ;;  %v2981_v25 = vld [vmem:[%s2533_s11 + $0x78] sm:$0xff] }
  0x6f   : > { %3681 = vst [vmem:[#allocation22_spill] sm:$0xff] %v2808_v16  ;;  %v2837_v27 = vsel %vm423_vm0, %v707_v17, %v708_v37  ;;  %v386_v36 = vld [vmem:[%s2523_s28 + $0x58] sm:$0x3]  ;;  %v2860_v17 = vsel %vm464_vm1, %v620_v28, %v622_v54  ;;  %3709 = vst [vmem:[#allocation42_spill] sm:$0xff] %v2981_v25 }
  0x70   : > { %v2826_v4 = vsel %vm423_vm0, %v3682_v55, %v462_v0  ;;  %v2842_v0 = vsel %vm423_vm0, %v3683_v11, %v735_v47  ;;  %v2845_v55 = vsel %vm464_vm1, %v475_v39, %v476_v1  ;;  %v2866_v47 = vsel %vm423_vm0, %v708_v37, %v710_v63  ;;  %v2879_v37 = vld [vmem:[%s2528_s8 + $0x58] sm:$0x3]  ;;  %v389_v63 = vld [vmem:[%s2523_s28 + $0x70] sm:$0x3] }
  0x71   : > { %2079 = vrot.lane.b32.xlu0 %v2078_v48, %s2375_s12  ;;  %2094 = vrot.lane.b32.xlu1 %v2093_v49, %s2376_s29  ;;  %v478_v48 = vrot.slane %v383_v19, 2  ;;  %v648_v49 = vsel %vm464_vm1, %v645_v57, %v647_v6  ;;  %v624_v19 = vrot.slane %v2808_v16, 2  ;;  %v2831_v57 = vld [vmem:[%s2533_s11 + $0x48] sm:$0xff]  ;;  %v3685_v6 = vrot.slane %v2676_v46, 2  ;;  %3688 = vst [vmem:[#allocation26_spill] sm:$0xff] %v2879_v37 }
  0x72   : > { %v2869_v39 = vsel %vm423_vm0, %v439_v44, %v440_v42  ;;  %v480_v46 = vrot.slane %v2778_v5, 2  ;;  %v712_v54 = vrot.slane %v2831_v57, 1  ;;  %v442_v28 = vrot.slane %v386_v36, 1  ;;  %v1173_v16 = vld [vmem:[#allocation2 + $0x48] sm:$0xff] }
  0x73   : > { %v2863_v11 = vsel %vm464_vm1, %v476_v1, %v478_v48  ;;  %3686 = vst [vmem:[#allocation24_spill] sm:$0xff] %v2869_v39  ;;  %v2890_v48 = vld [vmem:[%s2523_s28 + $0x68] sm:$0xff]  ;;  %v627_v44 = vrot.slane %v2879_v37, 2  ;;  %v2917_v1 = vld [vmem:[%s2528_s8 + $0x70] sm:$0x3]  ;;  %v3692_v5 = vrot.slane %v2848_v3, 1  ;;  %v3696_v39 = vpack.i.bf16 %v2741_v21, %v2736_v31 }
  0x74   : > { %v632_v8 = vrot.slane %v2917_v1, 2  ;;  %v488_v51 = vrot.slane %v389_v63, 2  ;;  %v2945_v31 = vld [vmem:[%s2533_s11 + $0x70] sm:$0x3]  ;;  %v3707_v15 = vrot.slane %v2890_v48, 2 }
  0x75   : > { %2089 = vrot.lane.b32.xlu0 %v2088_v50, %s2377_s13  ;;  %2104 = vrot.lane.b32.xlu1 %v2103_v56, %s2375_s12  ;;  %v2854_v50 = vsel %vm464_vm1, %v3685_v6, %v503_v62  ;;  %v2857_v56 = vsel %vm423_vm0, %v435_v40, %v437_v9  ;;  %v481_v62 = vrot.slane %v2799_v10, 2  ;;  %v2874_v9 = vsel %vm464_vm1, %v624_v19, %v625_v35  ;;  %v2903_v6 = vld [vmem:[%s2533_s11 + $0x68] sm:$0xff]  ;;  %v1186_v37 = vld [vmem:[#allocation2 + $0xb0] sm:$0xff] }
  0x76   : > { %3687 = vst [vmem:[#allocation25_spill] sm:$0xff] %v2874_v9  ;;  %v2123_v10 = vpack.i.bf16 %v648_v49, %v2791_v26  ;;  %v2900_v49 = vld [vmem:[%s2533_s11 + $0x60] sm:$0xff]  ;;  %3690 = vst [vmem:[#allocation28_spill] sm:$0xff] %v2903_v6  ;;  %v2925_v40 = vsel %vm423_vm0, %v712_v54, %v3692_v5  ;;  %v2928_v19 = vsel %vm423_vm0, %v440_v42, %v442_v28  ;;  %v2931_v9 = vld [vmem:[%s2533_s11 + $0x58] sm:$0x3]  ;;  %v718_v54 = vrot.slane %v2903_v6, 1 }
  0x77   : > { %3689 = vst [vmem:[#allocation27_spill] sm:$0xff] %v2900_v49  ;;  %v2920_v26 = vsel %vm464_vm1, %v480_v46, %v481_v62  ;;  %3693 = vst [vmem:[#allocation30_spill] sm:$0xff] %v2925_v40  ;;  %v717_v5 = vrot.slane %v2900_v49, 1  ;;  %v447_v42 = vrot.slane %v389_v63, 1  ;;  %v2948_v21 = vsel %vm464_vm1, %v625_v35, %v627_v44  ;;  %v2955_v46 = vld [vmem:[%s2528_s8 + $0x60] sm:$0xff] }
  0x78   : > { %3694 = vst [vmem:[#allocation31_spill] sm:$0xff] %v2928_v19  ;;  %3695 = vst [vmem:[#allocation32_spill] sm:$0xff] %v2931_v9  ;;  %v3702_v28 = vrot.slane %v2890_v48, 1  ;;  %v3715_v6 = vpack.i.bf16 %v2826_v4, %v2821_v45  ;;  %v1189_v19 = vld [vmem:[#allocation2 + $0xc8] sm:$0xff]  ;;  %v1172_v4 = vld [vmem:[#allocation2 + $0x40] sm:$0xff] }
  0x79   : > { %2099 = vrot.lane.b32.xlu0 %v2098_v52, %s2376_s29  ;;  %2114 = vrot.lane.b32.xlu1 %v2113_v61, %s2377_s13  ;;  %v2914_v61 = vld [vmem:[%s2528_s8 + $0x68] sm:$0xff]  ;;  %v483_v52 = vrot.slane %v386_v36, 2  ;;  %3697 = vst [vmem:[#allocation33_spill] sm:$0xff] %v2945_v31  ;;  %3698 = vst [vmem:[#allocation34_spill] sm:$0xff] %v2948_v21  ;;  %v2958_v36 = vsel %vm423_vm0, %v717_v5, %v718_v54  ;;  %v2978_v5 = vsel %vm464_vm1, %v3707_v15, %v488_v51  ;;  %v3012_v15 = vld [vmem:[%s2528_s8 + $0x80] sm:$0xff] }
  0x7a   : > { %3691 = vst [vmem:[#allocation29_spill] sm:$0xff] %v2914_v61  ;;  %3700 = vst [vmem:[#allocation36_spill] sm:$0xff] %v2955_v46  ;;  %v2963_v63 = vsel %vm423_vm0, %v3702_v28, %v447_v42  ;;  %v3705_v44 = vrot.slane %v2914_v61, 2  ;;  %v2984_v42 = vld [vmem:[%s2533_s11 + $0x80] sm:$0xff]  ;;  %v720_v28 = vrot.slane %v2945_v31, 1  ;;  %v1169_v31 = vld [vmem:[#allocation2 + $0x28] sm:$0xff] }
  0x7b   : > { %3701 = vst [vmem:[#allocation37_spill] sm:$0xff] %v2958_v36  ;;  %3703 = vst [vmem:[#allocation38_spill] sm:$0xff] %v2963_v63  ;;  %v2966_v49 = vsel %vm464_vm1, %v481_v62, %v483_v52  ;;  %v3710_v62 = vpack.i.bf16 %v2654_v32, %v2613_v59  ;;  %v723_v35 = vrot.slane %v2984_v42, 1  ;;  %v3022_v63 = vld [vmem:[%s2528_s8 + $0x88] sm:$0x3]  ;;  %v3714_v52 = vrot.slane %v2848_v3, 1 }
  0x7c   : > { %3704 = vst [vmem:[#allocation39_spill] sm:$0xff] %v2966_v49  ;;  %3708 = vst [vmem:[#allocation41_spill] sm:$0xff] %v2978_v5  ;;  %v3017_v5 = vsel %vm423_vm0, %v718_v54, %v720_v28  ;;  %v3033_v49 = vld [vmem:[%s2533_s11 + $0x88] sm:$0x3]  ;;  %v3046_v54 = vld [vmem:[%s2528_s8 + $0x78] sm:$0xff] }
  0x7d   : > { %2109 = vrot.lane.b32.xlu0 %v3696_v39, %s2375_s12  ;;  %2124 = vrot.lane.b32.xlu1 %v2123_v10, %s2376_s29  ;;  %v715_v39 = vrot.slane %v2931_v9, 1  ;;  %v2952_v10 = vld [vmem:[%s2523_s28 + $0x60] sm:$0xff]  ;;  %v2973_v9 = vsel %vm464_vm1, %v3705_v44, %v632_v8  ;;  %v3711_v8 = vpack.i.bf16 %v2685_v53, %v2749_v43  ;;  %3712 = vst [vmem:[#allocation43_spill] sm:$0xff] %v3017_v5  ;;  %3713 = vst [vmem:[#allocation44_spill] sm:$0xff] %v3022_v63  ;;  %v1185_v53 = vld [vmem:[#allocation2 + $0xa8] sm:$0xff] }
  0x7e   : > { %3699 = vst [vmem:[#allocation35_spill] sm:$0xff] %v2952_v10  ;;  %3706 = vst [vmem:[#allocation40_spill] sm:$0xff] %v2973_v9  ;;  %v3002_v44 = vld [vmem:[%s2523_s28 + $0x80] sm:$0xff]  ;;  %v444_v36 = vrot.slane %v2952_v10, 1  ;;  %v722_v9 = vrot.slane %v2981_v25, 1  ;;  %v485_v51 = vrot.slane %v2952_v10, 2 }
  0x7f   : > { %v3027_v40 = vsel %vm423_vm0, %v3714_v52, %v715_v39  ;;  %v1168_v25 = vld [vmem:[#allocation2 + $0x20] sm:$0xff]  ;;  %v3716_v39 = vpack.i.bf16 %v2842_v0, %v2837_v27  ;;  %3717 = vst [vmem:[#allocation45_spill] sm:$0xff] %v3046_v54  ;;  %v1187_v3 = vld [vmem:[#allocation2 + $0xb8] sm:$0xff]  ;;  %v3719_v27 = vrot.slane %v3002_v44, 1  ;;  %v1190_v54 = vld [vmem:[#allocation2 + $0xd0] sm:$0xff] }
  0x80   : > { %v3050_v61 = vsel %vm423_vm0, %v722_v9, %v723_v35  ;;  %v1171_v52 = vld [vmem:[#allocation2 + $0x38] sm:$0xff]  ;;  %v1188_v5 = vld [vmem:[#allocation2 + $0xc0] sm:$0xff]  ;;  %v725_v9 = vrot.slane %v3033_v49, 1  ;;  %v1904_v21 = vpack.c.bf16 %v1169_v31, %v1168_v25  ;;  %v2193_v45 = vpack.i.bf16 %v2811_v7, %v3027_v40  ;;  %v1174_v25 = vld [vmem:[#allocation2 + $0x50] sm:$0xff] }
  0x81   : > { %2119 = vrot.lane.b32.xlu0 %v3710_v62, %s2377_s13  ;;  %2134 = vrot.lane.b32.xlu1 %v3711_v8, %s2375_s12  ;;  %v392_v62 = vld [vmem:[%s2523_s28 + $0x88] sm:$0x3]  ;;  %v1184_v8 = vld [vmem:[#allocation2 + $0xa0] sm:$0xff]  ;;  %3718 = vst [vmem:[#allocation46_spill] sm:$0xff] %v3050_v61  ;;  %v3720_v61 = vrot.slane %v2890_v48, 1  ;;  %v3722_v31 = vpack.i.bf16 %v2854_v50, %v2845_v55  ;;  %v553_v50 = vrot.slane %v2542_v13, 1  ;;  %v1910_v13 = vpack.c.bf16 %v1189_v19, %v1188_v5 }
  0x82   : > { %v452_v28 = vrot.slane %v392_v62, 1  ;;  %v493_v10 = vrot.slane %v392_v62, 2  ;;  %v1902_v46 = vpack.c.bf16 %v1185_v53, %v1184_v8  ;;  %v1906_v62 = vpack.c.bf16 %v1187_v3, %v1186_v37  ;;  %v1191_v53 = vld [vmem:[#allocation2 + $0xd8] sm:$0xff]  ;;  %v1193_v55 = vld [vmem:[#allocation2 + $0xe8] sm:$0xff] }
  0x83   : > { %v3723_v8 = vpack.i.bf16 %v2857_v56, %v2860_v17  ;;  %v3090_v37 = vsel %vm423_vm0, %v723_v35, %v725_v9  ;;  %v554_v35 = vrot.slane %v2553_v18, 1  ;;  %v576_v9 = vrot.slane %v2917_v1, 1  ;;  %v1176_v17 = vld [vmem:[#allocation2 + $0x60] sm:$0xff] }
  0x84   : > { %v3058_v0 = vsel %vm423_vm0, %v3719_v27, %v452_v28  ;;  %v3067_v28 = vsel %vm423_vm0, %v444_v36, %v3720_v61  ;;  %v3721_v27 = vrot.slane %v3012_v15, 2  ;;  %v3724_v36 = vrot.slane %v3002_v44, 2  ;;  %1903 = vmatprep.subr.bf16.mxu0 %v1902_v46  ;;  %1936 = vmatprep.subr.bf16.mxu1 %v1902_v46  ;;  %v1177_v61 = vld [vmem:[#allocation2 + $0x68] sm:$0xff] }
  0x85   : > { %2129 = vrot.lane.b32.xlu0 %v3715_v6, %s2376_s29  ;;  %2144 = vrot.lane.b32.xlu1 %v3716_v39, %s2377_s13  ;;  %v637_v6 = vrot.slane %v3022_v63, 2  ;;  %v1170_v39 = vld [vmem:[#allocation2 + $0x30] sm:$0xff]  ;;  %v3726_v18 = vpack.i.bf16 %v2660_v34, %v2710_v20  ;;  %v3116_v19 = vsel %vm423_vm0, %v553_v50, %v554_v35  ;;  %v3728_v46 = vrot.slane %v2563_v24, 1 }
  0x86   : > { %v3087_v3 = vsel %vm464_vm1, %v3724_v36, %v493_v10  ;;  %1905 = vmatpush3.bf16.msra.mxu0 %v1904_v21  ;;  %v1912_v36 = vpack.c.bf16 %v1173_v16, %v1172_v4  ;;  %1944 = vmatpush3.bf16.msra.mxu1 %v1904_v21  ;;  %v583_v10 = vrot.slane %v2570_v29, 1  ;;  %v3727_v16 = vpack.i.bf16 %v2713_v22, %v2866_v47 }
  0x87   : > { %v3072_v63 = vsel %vm464_vm1, %v3721_v27, %v637_v6  ;;  %v1175_v6 = vld [vmem:[#allocation2 + $0x58] sm:$0xff]  ;;  %v1192_v27 = vld [vmem:[#allocation2 + $0xe0] sm:$0xff]  ;;  %1907 = vmatprep.subr.bf16.mxu0 %v1906_v62  ;;  %1937 = vmatprep.subr.bf16.mxu1 %v1906_v62  ;;  %v3121_v21 = vsel %vm423_vm0, %v554_v35, %v3728_v46  ;;  %v584_v29 = vrot.slane %v2573_v30, 1  ;;  %v558_v5 = vrot.slane %v2610_v58, 1 }
  0x88   : > { %v559_v4 = vrot.slane %v2613_v59, 1  ;;  %v589_v47 = vrot.slane %v2660_v34, 1  ;;  %v563_v62 = vrot.slane %v2710_v20, 1  ;;  %v3129_v24 = vpack.c.bf16 %v1177_v61, %v1176_v17  ;;  %v3737_v35 = vld [vmem:[#allocation20_spill] sm:$0xff] }
  0x89   : > { %2139 = vrot.lane.b32.xlu0 %v3722_v31, %s2375_s12  ;;  %2154 = vrot.lane.b32.xlu1 %v3723_v8, %s2376_s29  ;;  %v3725_v31 = vrot.slane %v2890_v48, 2  ;;  %v1908_v8 = vpack.c.bf16 %v1171_v52, %v1170_v39  ;;  %v1914_v48 = vpack.c.bf16 %v1191_v53, %v1190_v54  ;;  %v1194_v54 = vld [vmem:[#allocation2 + $0xf0] sm:$0xff]  ;;  %v1195_v52 = vld [vmem:[#allocation2 + $0xf8] sm:$0xff]  ;;  %v588_v39 = vrot.slane %v2654_v32, 1 }
  0x8a   : > { %v3132_v53 = vsel %vm423_vm0, %v583_v10, %v584_v29  ;;  %v3729_v30 = vrot.slane %v2616_v60, 1  ;;  %v564_v59 = vrot.slane %v2713_v22, 1  ;;  %v3141_v32 = vsel %vm423_vm0, %v558_v5, %v559_v4 }
  0x8b   : > { %v3096_v56 = vsel %vm464_vm1, %v485_v51, %v3725_v31  ;;  %v1916_v51 = vpack.c.bf16 %v1175_v6, %v1174_v25  ;;  %v3104_v31 = vpack.c.bf16 %v1193_v55, %v1192_v27  ;;  %1909 = vmatpush3.bf16.msra.mxu0 %v1908_v8  ;;  %1945 = vmatpush3.bf16.msra.mxu1 %v1908_v8  ;;  %v3730_v34 = vrot.slane %v2657_v33, 1 }
  0x8c   : > { %v3137_v58 = vsel %vm423_vm0, %v584_v29, %v3729_v30  ;;  %1911 = vmatprep.subr.bf16.mxu0 %v1910_v13  ;;  %1938 = vmatprep.subr.bf16.mxu1 %v1910_v13  ;;  %v3149_v25 = vsel %vm423_vm0, %v588_v39, %v589_v47  ;;  %v737_v60 = vrot.slane %v2560_v23, 2  ;;  %v3731_v61 = vpack.i.bf16 %v2863_v11, %v2772_v2  ;;  %v3739_v13 = vld [vmem:[#allocation11_spill] sm:$0xff]  ;;  %v3741_v29 = vld [vmem:[#allocation22_spill] sm:$0xff] }
  0x8d   : > { %2149 = vrot.lane.b32.xlu0 %v3726_v18, %s2377_s13  ;;  %2164 = vrot.lane.b32.xlu1 %v3727_v16, %s2377_s13  ;;  %v3146_v20 = vsel %vm423_vm0, %v559_v4, %v3730_v34  ;;  %v3732_v22 = vpack.i.bf16 %v2920_v26, %v2831_v57  ;;  %v1922_v6 = vpack.c.bf16 %v1195_v52, %v1194_v54  ;;  %v3733_v27 = vrot.slane %v2744_v38, 1  ;;  %v3742_v52 = vld [vmem:[#allocation21_spill] sm:$0xff]  ;;  %v3749_v34 = vld [vmem:[#allocation23_spill] sm:$0xff] }
  0x8e   : > { %v3161_v33 = vsel %vm423_vm0, %v563_v62, %v564_v59  ;;  %v742_v23 = vrot.slane %v2639_v12, 2  ;;  %v3734_v50 = vrot.slane %v2545_v14, 2  ;;  %v3735_v17 = vrot.slane %v2591_v41, 2  ;;  %v3740_v12 = vld [vmem:[#allocation14_spill] sm:$0xff] }
  0x8f   : > { %v3166_v55 = vsel %vm423_vm0, %v589_v47, %v3733_v27  ;;  %v3738_v8 = vrot.slane %v3737_v35, 1  ;;  %v743_v18 = vrot.slane %v3739_v13, 2  ;;  %1913 = vmatpush3.bf16.msra.mxu0 %v1912_v36  ;;  %1946 = vmatpush3.bf16.msra.mxu1 %v1912_v36  ;;  %v745_v16 = vrot.slane %v3740_v12, 2  ;;  %v3743_v36 = vld [vmem:[#allocation24_spill] sm:$0xff]  ;;  %v3744_v47 = vld [vmem:[#allocation25_spill] sm:$0xff] }
  0x90   : > { %v3172_v11 = vsel %vm464_vm1, %v737_v60, %v3734_v50  ;;  %v3736_v26 = vmov %v3734_v50  ;;  %v747_v46 = vrot.slane %v2749_v43, 2  ;;  %v748_v41 = vrot.slane %v2772_v2, 2  ;;  %1915 = vmatprep.subr.bf16.mxu0 %v1914_v48  ;;  %1939 = vmatprep.subr.bf16.mxu1 %v1914_v48  ;;  %v3746_v43 = vld [vmem:[#allocation31_spill] sm:$0xff]  ;;  %v3747_v2 = vld [vmem:[#allocation34_spill] sm:$0xff] }
  0x91   : > { %2159 = vrot.lane.b32.xlu0 %v3731_v61, %s2375_s12  ;;  %2174 = vrot.lane.b32.xlu1 %v3732_v22, %s2375_s12  ;;  %v3179_v10 = vsel %vm464_vm1, %v3736_v26, %v3735_v17  ;;  %v3184_v38 = vsel %vm423_vm0, %v564_v59, %v3738_v8  ;;  %v568_v14 = vrot.slane %v3741_v29, 1  ;;  %v3192_v5 = vsel %vm464_vm1, %v742_v23, %v743_v18  ;;  %v3750_v61 = vld [vmem:[#allocation32_spill] sm:$0xff]  ;;  %v3751_v23 = vld [vmem:[#allocation26_spill] sm:$0xff]  ;;  %v3753_v26 = vld [vmem:[#allocation27_spill] sm:$0xff] }
  0x92   : > { %v569_v54 = vrot.slane %v2811_v7, 1  ;;  %v750_v4 = vrot.slane %v3742_v52, 2  ;;  %v752_v39 = vrot.slane %v2831_v57, 2  ;;  %v3745_v62 = vpack.i.bf16 %v3743_v36, %v3744_v47  ;;  %v3758_v36 = vld [vmem:[#allocation29_spill] sm:$0xff] }
  0x93   : > { %v3748_v30 = vpack.i.bf16 %v3746_v43, %v3747_v2  ;;  %v3206_v48 = vsel %vm464_vm1, %v743_v18, %v745_v16  ;;  %v3209_v59 = vsel %vm464_vm1, %v747_v46, %v748_v41  ;;  %v753_v60 = vrot.slane %v3749_v34, 2  ;;  %1917 = vmatpush3.bf16.msra.mxu0 %v1916_v51  ;;  %1947 = vmatpush3.bf16.msra.mxu1 %v1916_v51  ;;  %v3754_v18 = vld [vmem:[#allocation28_spill] sm:$0xff]  ;;  %v3755_v16 = vld [vmem:[#allocation33_spill] sm:$0xff] }
  0x94   : > { %v755_v57 = vrot.slane %v3750_v61, 2  ;;  %v3214_v22 = vsel %vm423_vm0, %v568_v14, %v569_v54  ;;  %v3217_v27 = vsel %vm464_vm1, %v748_v41, %v750_v4  ;;  %v3752_v50 = vrot.slane %v3751_v23, 1  ;;  %1919 = vmatprep.subr.bf16.mxu0 %v3104_v31  ;;  %v1178_v41 = vld [vmem:[#allocation2 + $0x70] sm:$0xff]  ;;  %v1179_v14 = vld [vmem:[#allocation2 + $0x78] sm:$0xff]  ;;  %1940 = vmatprep.subr.bf16.mxu1 %v3104_v31  ;;  %v3757_v4 = vld [vmem:[#allocation36_spill] sm:$0xff] }
  0x95   : > { %2169 = vrot.lane.b32.xlu0 %v3745_v62, %s2376_s29  ;;  %2184 = vrot.lane.b32.xlu1 %v3748_v30, %s2376_s29  ;;  %v757_v35 = vrot.slane %v3753_v26, 2  ;;  %v3226_v8 = vsel %vm464_vm1, %v752_v39, %v753_v60  ;;  %v758_v12 = vrot.slane %v3754_v18, 2  ;;  %v760_v46 = vrot.slane %v3755_v16, 2  ;;  %v3759_v62 = vld [vmem:[#allocation30_spill] sm:$0xff]  ;;  %v1196_v2 = vld [vmem:[#allocation2 + $0x100] sm:$0xff]  ;;  %v1197_v30 = vld [vmem:[#allocation2 + $0x108] sm:$0xff] }
  0x96   : > { %v3222_v17 = vsel %vm423_vm0, %v569_v54, %v3752_v50  ;;  %v3229_v13 = vsel %vm464_vm1, %v753_v60, %v755_v57  ;;  %v3756_v54 = vld [vmem:[#allocation42_spill] sm:$0xff]  ;;  %v763_v51 = vrot.slane %v2984_v42, 2  ;;  %v573_v39 = vrot.slane %v3757_v4, 1 }
  0x97   : > { %v762_v52 = vrot.slane %v3756_v54, 2  ;;  %v574_v47 = vrot.slane %v3758_v36, 1  ;;  %v3760_v43 = vpack.i.bf16 %v3741_v29, %v3759_v62  ;;  %v2203_v31 = vpack.i.bf16 %v3096_v56, %v3753_v26  ;;  %v3273_v50 = vld [vmem:[%s2523_s28 + $0x78] sm:$0xff]  ;;  %1921 = vmatpush3.bf16.msra.mxu0 %v3129_v24  ;;  %1948 = vmatpush3.bf16.msra.mxu1 %v3129_v24  ;;  %v3765_v24 = vld [vmem:[#allocation12_spill] sm:$0xff] }
  0x98   : > { %v3250_v60 = vsel %vm464_vm1, %v757_v35, %v758_v12  ;;  %v3253_v61 = vsel %vm464_vm1, %v758_v12, %v760_v46  ;;  %v765_v57 = vrot.slane %v3033_v49, 2  ;;  %v3761_v29 = vrot.slane %v3758_v36, 2  ;;  %1923 = vmatprep.subr.bf16.mxu0 %v1922_v6  ;;  %1941 = vmatprep.subr.bf16.mxu1 %v1922_v6  ;;  %v3763_v12 = vld [vmem:[#allocation39_spill] sm:$0xff]  ;;  %v3767_v6 = vld [vmem:[#allocation45_spill] sm:$0xff] }
  0x99   : > { %2179 = vrot.lane.b32.xlu0 %v3760_v43, %s2377_s13  ;;  %2194 = vrot.lane.b32.xlu1 %v2193_v45, %s2377_s13  ;;  %v3762_v23 = vrot.slane %v3757_v4, 2  ;;  %v3262_v40 = vsel %vm464_vm1, %v762_v52, %v763_v51  ;;  %v3265_v45 = vsel %vm423_vm0, %v573_v39, %v574_v47  ;;  %v3270_v56 = vsel %vm423_vm0, %v574_v47, %v576_v9  ;;  %v3770_v47 = vld [vmem:[#allocation40_spill] sm:$0xff] }
  0x9a   : > { %v1924_v49 = vpack.c.bf16 %v1179_v14, %v1178_v41  ;;  %v3278_v26 = vsel %vm464_vm1, %v763_v51, %v765_v57  ;;  %v3280_v35 = vpack.c.bf16 %v1197_v30, %v1196_v2  ;;  %v3764_v1 = vpack.i.bf16 %v3763_v12, %v3749_v34  ;;  %v3766_v41 = vld [vmem:[#allocation15_spill] sm:$0xff]  ;;  %v3768_v34 = vld [vmem:[#allocation18_spill] sm:$0xff]  ;;  %v3774_v12 = vld [vmem:[#allocation37_spill] sm:$0xff] }
  0x9b   : > { %v631_v7 = vsel %vm464_vm1, %v3762_v23, %v3761_v29  ;;  %v490_v16 = vrot.slane %v3273_v50, 2  ;;  %v772_v46 = vrot.slane %v3765_v24, 2  ;;  %v773_v14 = vrot.slane %v3766_v41, 2  ;;  %v3773_v23 = vld [vmem:[#allocation44_spill] sm:$0xff] }
  0x9c   : > { %v2198_v9 = vpack.i.bf16 %v3067_v28, %v631_v7  ;;  %1925 = vmatpush3.bf16.msra.mxu0 %v1924_v49  ;;  %1949 = vmatpush3.bf16.msra.mxu1 %v1924_v49  ;;  %v578_v52 = vrot.slane %v3767_v6, 1  ;;  %v579_v51 = vrot.slane %v3012_v15, 1  ;;  %v775_v39 = vrot.slane %v3768_v34, 2  ;;  %v3769_v28 = vld [vmem:[#allocation38_spill] sm:$0xff] }
  0x9d   : > { %2189 = vrot.lane.b32.xlu0 %v3764_v1, %s2375_s12  ;;  %2204 = vrot.lane.b32.xlu1 %v2203_v31, %s2375_s12  ;;  %v3771_v62 = vpack.i.bf16 %v3769_v28, %v3770_v47  ;;  %v449_v43 = vrot.slane %v3273_v50, 1  ;;  %v3302_v31 = vsel %vm464_vm1, %v772_v46, %v773_v14  ;;  %v634_v30 = vrot.slane %v3767_v6, 2  ;;  %v3783_v28 = vld [vmem:[#allocation46_spill] sm:$0xff] }
  0x9e   : > { %1927 = vmatprep.subr.bf16.mxu1 %v3280_v35  ;;  %v3305_v2 = vsel %vm423_vm0, %v578_v52, %v579_v51  ;;  %v3772_v57 = vrot.slane %v3002_v44, 2  ;;  %v581_v7 = vrot.slane %v3773_v23, 1  ;;  %v3313_v49 = vsel %vm464_vm1, %v773_v14, %v775_v39 }
  0x9f   : > { %v3775_v1 = vpack.i.bf16 %v3757_v4, %v3774_v12  ;;  %v3778_v41 = vrot.slane %v3002_v44, 1  ;;  %v3779_v52 = vrot.slane %v3012_v15, 2  ;;  %v3780_v4 = vld [vmem:[#allocation41_spill] sm:$0xff]  ;;  %v3786_v47 = vpack.i.bf16 %v3087_v3, %v2984_v42  ;;  %v3787_v3 = vld [vmem:[#allocation8_spill] sm:$0xff] }
  0xa0   : > { %v492_v29 = vsel %vm464_vm1, %v490_v16, %v3772_v57  ;;  %v3331_v34 = vsel %vm423_vm0, %v579_v51, %v581_v7  ;;  %v3781_v39 = vpack.i.bf16 %v3780_v4, %v3754_v18  ;;  %v3784_v51 = vpack.i.bf16 %v3767_v6, %v3783_v28 }
  0xa1   : > { %2199 = vrot.lane.b32.xlu0 %v2198_v9, %s2376_s29  ;;  %2214 = vrot.lane.b32.xlu1 %v3771_v62, %s2376_s29  ;;  %v3776_v9 = vld [vmem:[#allocation43_spill] sm:$0xff]  ;;  %v2233_v46 = vpack.i.bf16 %v492_v29, %v3756_v54  ;;  %v451_v16 = vsel %vm423_vm0, %v449_v43, %v3778_v41  ;;  %v636_v14 = vsel %vm464_vm1, %v634_v30, %v3779_v52 }
  0xa2   : > { %v3777_v24 = vpack.i.bf16 %v3758_v36, %v3776_v9  ;;  %v2228_v36 = vpack.i.bf16 %v451_v16, %v636_v14  ;;  %v3782_v54 = vpack.i.bf16 %v3058_v0, %v3072_v63  ;;  %v3785_v18 = vpack.i.bf16 %v3012_v15, %v3090_v37 }
  0xa5   : > { %2209 = vrot.lane.b32.xlu0 %v3775_v1, %s2377_s13  ;;  %2224 = vrot.lane.b32.xlu1 %v3777_v24, %s2377_s13 }
  0xa9   : > { %2219 = vrot.lane.b32.xlu0 %v3781_v39, %s2375_s12  ;;  %2234 = vrot.lane.b32.xlu1 %v2233_v46, %s2375_s12 }
  0xad   : > { %2229 = vrot.lane.b32.xlu0 %v2228_v36, %s2376_s29  ;;  %2244 = vrot.lane.b32.xlu1 %v3782_v54, %s2376_s29 }
  0xb1   : > { %2239 = vrot.lane.b32.xlu0 %v3784_v51, %s2377_s13  ;;  %2254 = vrot.lane.b32.xlu1 %v3785_v18, %s2377_s13 }
  0xb5   : > { %2249 = vrot.lane.b32.xlu0 %v3786_v47, %s2375_s12 }
  0xc7   : > { %v2020_v62 = vpop.permute.xlu1 %2019 }
  0xc8   : > { %v2022_v16 = vunpack.i.h.bf16 %v2020_v62  ;;  %v2021_v52 = vunpack.i.l.bf16 %v2020_v62 }
  0xcb   : > { %v2025_v43 = vpop.permute.xlu0 %2024  ;;  %v2035_v30 = vpop.permute.xlu1 %2034 }
  0xcc   : > { %v2027_v63 = vunpack.i.h.bf16 %v2025_v43  ;;  %v2026_v0 = vunpack.i.l.bf16 %v2025_v43  ;;  %v2037_v57 = vunpack.i.h.bf16 %v2035_v30  ;;  %v2036_v29 = vunpack.i.l.bf16 %v2035_v30  ;;  %v1198_v30 = vld [vmem:[#allocation2 + $0x110] sm:$0xff] }
  0xce   : > { %v1116_v42 = vsel %vm1065_vm2, %v3116_v19, %v2026_v0  ;;  %v1066_v1 = vsel %vm1065_vm2, %v3787_v3, %v2027_v63  ;;  %v1199_v63 = vld [vmem:[#allocation2 + $0x118] sm:$0xff] }
  0xcf   : > { %v2030_v6 = vpop.permute.xlu0 %2029  ;;  %v2040_v23 = vpop.permute.xlu1 %2039 }
  0xd0   : > { %v2032_v7 = vunpack.i.h.bf16 %v2030_v6  ;;  %v2031_v15 = vunpack.i.l.bf16 %v2030_v6  ;;  %v2042_v37 = vunpack.i.h.bf16 %v2040_v23  ;;  %v2041_v12 = vunpack.i.l.bf16 %v2040_v23 }
  0xd2   : > { %v1132_v9 = vsel %vm1082_vm3, %v1116_v42, %v2031_v15  ;;  %v1083_v24 = vsel %vm1082_vm3, %v1066_v1, %v2032_v7  ;;  %v1117_v46 = vsel %vm1065_vm2, %v3121_v21, %v2041_v12  ;;  %v1128_v41 = vsel %vm1065_vm2, %v3132_v53, %v2042_v37  ;;  %v2258_v42 = vld [vmem:[%s2523_s28 + $0x8] sm:$0xff] }
  0xd3   : > { %v2045_v14 = vpop.permute.xlu0 %2044  ;;  %v2060_v4 = vpop.permute.xlu1 %2059  ;;  %v1148_v39 = vsel %vm1099_vm4, %v1132_v9, %v2036_v29  ;;  %v1100_v19 = vsel %vm1099_vm4, %v1083_v24, %v2037_v57  ;;  %v1133_v28 = vsel %vm1082_vm3, %v1117_v46, %v2021_v52  ;;  %v1144_v51 = vsel %vm1082_vm3, %v1128_v41, %v2022_v16  ;;  %v3788_v1 = vld [vmem:[#allocation9_spill] sm:$0xff] }
  0xd4   : > { %v2062_v36 = vunpack.i.h.bf16 %v2060_v4  ;;  %v2061_v54 = vunpack.i.l.bf16 %v2060_v4  ;;  %1303 = vmatprep.mubr.f32.mxu0 %v1148_v39  ;;  %v2047_v62 = vunpack.i.h.bf16 %v2045_v14  ;;  %v2046_v43 = vunpack.i.l.bf16 %v2045_v14 }
  0xd5   : > { %1304 = vmatmul.mubr.f32.vlgmr.msra.gmra.mrb[0].mxu0 %v1100_v19  ;;  %v1930_v15 = vpack.c.bf16 %v1199_v63, %v1198_v30 }
  0xd6   : > { %v1149_v21 = vsel %vm1099_vm4, %v1133_v28, %v2061_v54  ;;  %v1160_v53 = vsel %vm1099_vm4, %v1144_v51, %v2062_v36  ;;  %v1067_v3 = vsel %vm1065_vm2, %v2258_v42, %v2046_v43  ;;  %v1078_v9 = vsel %vm1065_vm2, %v3788_v1, %v2047_v62 }
  0xd7   : > { %v2050_v18 = vpop.permute.xlu0 %2049  ;;  %v2065_v47 = vpop.permute.xlu1 %2064  ;;  %1308 = vmatprep.mubr.f32.mxu0 %v1149_v21  ;;  %1363 = vmatprep.mubr.f32.mxu1 %v1160_v53 }
  0xd8   : > { %v2052_v0 = vunpack.i.h.bf16 %v2050_v18  ;;  %v2051_v57 = vunpack.i.l.bf16 %v2050_v18  ;;  %v2067_v29 = vunpack.i.h.bf16 %v2065_v47  ;;  %v2066_v6 = vunpack.i.l.bf16 %v2065_v47 }
  0xda   : > { %v1084_v41 = vsel %vm1082_vm3, %v1067_v3, %v2051_v57  ;;  %v1095_v16 = vsel %vm1082_vm3, %v1078_v9, %v2052_v0  ;;  %v1118_v4 = vsel %vm1065_vm2, %v3141_v32, %v2066_v6  ;;  %v1129_v39 = vsel %vm1065_vm2, %v3137_v58, %v2067_v29 }
  0xdb   : > { %v2055_v23 = vpop.permute.xlu0 %2054  ;;  %v2075_v7 = vpop.permute.xlu1 %2074 }
  0xdc   : > { %v2057_v37 = vunpack.i.h.bf16 %v2055_v23  ;;  %v2056_v12 = vunpack.i.l.bf16 %v2055_v23  ;;  %v2077_v24 = vunpack.i.h.bf16 %v2075_v7  ;;  %v2076_v46 = vunpack.i.l.bf16 %v2075_v7  ;;  %v3789_v23 = vld [vmem:[#allocation10_spill] sm:$0xff] }
  0xde   : > { %v1101_v52 = vsel %vm1099_vm4, %v1084_v41, %v2056_v12  ;;  %v1112_v14 = vsel %vm1099_vm4, %v1095_v16, %v2057_v37  ;;  %v1134_v51 = vsel %vm1082_vm3, %v1118_v4, %v2076_v46  ;;  %v1145_v21 = vsel %vm1082_vm3, %v1129_v39, %v2077_v24  ;;  %v2259_v37 = vld [vmem:[%s2523_s28 + $0x98] sm:$0xff] }
  0xdf   : > { %v2070_v19 = vpop.permute.xlu0 %2069  ;;  %1309 = vmatmul.mubr.f32.gmra.mrb[2].mxu0 %v1101_v52  ;;  %1364 = vmatmul.mubr.f32.vlgmr.msra.gmra.mrb[0].mxu1 %v1112_v14  ;;  %v2085_v36 = vpop.permute.xlu1 %2084 }
  0xe0   : > { %v2087_v54 = vunpack.i.h.bf16 %v2085_v36  ;;  %v2086_v28 = vunpack.i.l.bf16 %v2085_v36  ;;  %1929 = vmatpush3.bf16.msra.mxu1 %v3280_v35  ;;  %v2072_v47 = vunpack.i.h.bf16 %v2070_v19  ;;  %v2071_v62 = vunpack.i.l.bf16 %v2070_v19 }
  0xe1   : > { %1931 = vmatprep.subr.bf16.mxu1 %v1930_v15 }
  0xe2   : > { %v1150_v53 = vsel %vm1099_vm4, %v1134_v51, %v2086_v28  ;;  %v1161_v32 = vsel %vm1099_vm4, %v1145_v21, %v2087_v54  ;;  %v1068_v7 = vsel %vm1065_vm2, %v3789_v23, %v2071_v62  ;;  %v1079_v12 = vsel %vm1065_vm2, %v2259_v37, %v2072_v47 }
  0xe3   : > { %v2080_v18 = vpop.permute.xlu0 %2079  ;;  %v2095_v58 = vpop.permute.xlu1 %2094  ;;  %1313 = vmatprep.mubr.f32.mxu0 %v1150_v53  ;;  %1368 = vmatprep.mubr.f32.mxu1 %v1161_v32 }
  0xe4   : > { %1933 = vmatpush3.bf16.msra.mxu1 %v1930_v15  ;;  %v2082_v43 = vunpack.i.h.bf16 %v2080_v18  ;;  %v2081_v30 = vunpack.i.l.bf16 %v2080_v18  ;;  %v2097_v35 = vunpack.i.h.bf16 %v2095_v58  ;;  %v2096_v63 = vunpack.i.l.bf16 %v2095_v58 }
  0xe6   : > { %v1085_v1 = vsel %vm1082_vm3, %v1068_v7, %v2081_v30  ;;  %v1096_v15 = vsel %vm1082_vm3, %v1079_v12, %v2082_v43  ;;  %v1119_v46 = vsel %vm1065_vm2, %v3146_v20, %v2096_v63  ;;  %v1130_v41 = vsel %vm1065_vm2, %v3149_v25, %v2097_v35  ;;  %v2260_v30 = vld [vmem:[%s2523_s28 + $0x20] sm:$0xff]  ;;  %v3790_v63 = vld [vmem:[#allocation13_spill] sm:$0xff] }
  0xe7   : > { %v2090_v0 = vpop.permute.xlu0 %2089  ;;  %v2105_v57 = vpop.permute.xlu1 %2104 }
  0xe8   : > { %v2092_v29 = vunpack.i.h.bf16 %v2090_v0  ;;  %v2091_v6 = vunpack.i.l.bf16 %v2090_v0  ;;  %v2107_v42 = vunpack.i.h.bf16 %v2105_v57  ;;  %v2106_v3 = vunpack.i.l.bf16 %v2105_v57 }
  0xea   : > { %v1102_v9 = vsel %vm1099_vm4, %v1085_v1, %v2091_v6  ;;  %v1113_v24 = vsel %vm1099_vm4, %v1096_v15, %v2092_v29  ;;  %v1135_v39 = vsel %vm1082_vm3, %v1119_v46, %v2106_v3  ;;  %v1146_v19 = vsel %vm1082_vm3, %v1130_v41, %v2107_v42 }
  0xeb   : > { %v2100_v16 = vpop.permute.xlu0 %2099  ;;  %1314 = vmatmul.mubr.f32.gmra.mrb[4].mxu0 %v1102_v9  ;;  %1369 = vmatmul.mubr.f32.gmra.mrb[2].mxu1 %v1113_v24  ;;  %v2115_v52 = vpop.permute.xlu1 %2114 }
  0xec   : > { %v2117_v14 = vunpack.i.h.bf16 %v2115_v52  ;;  %v2116_v4 = vunpack.i.l.bf16 %v2115_v52  ;;  %v2102_v25 = vunpack.i.h.bf16 %v2100_v16  ;;  %v2101_v51 = vunpack.i.l.bf16 %v2100_v16 }
  0xee   : > { %v1151_v36 = vsel %vm1099_vm4, %v1135_v39, %v2116_v4  ;;  %v1162_v54 = vsel %vm1099_vm4, %v1146_v19, %v2117_v14  ;;  %v1069_v35 = vsel %vm1065_vm2, %v2260_v30, %v2101_v51  ;;  %v1080_v0 = vsel %vm1065_vm2, %v3790_v63, %v2102_v25  ;;  %v2261_v51 = vld [vmem:[%s2523_s28 + $0xb0] sm:$0xff] }
  0xef   : > { %v2110_v28 = vpop.permute.xlu0 %2109  ;;  %v2125_v20 = vpop.permute.xlu1 %2124  ;;  %1318 = vmatprep.mubr.f32.mxu0 %v1151_v36  ;;  %1373 = vmatprep.mubr.f32.mxu1 %v1162_v54 }
  0xf0   : > { %v2112_v21 = vunpack.i.h.bf16 %v2110_v28  ;;  %v2111_v53 = vunpack.i.l.bf16 %v2110_v28  ;;  %v2127_v32 = vunpack.i.h.bf16 %v2125_v20  ;;  %v2126_v18 = vunpack.i.l.bf16 %v2125_v20  ;;  %v3791_v20 = vld [vmem:[#allocation16_spill] sm:$0xff] }
  0xf2   : > { %v1086_v6 = vsel %vm1082_vm3, %v1069_v35, %v2111_v53  ;;  %v1097_v23 = vsel %vm1082_vm3, %v1080_v0, %v2112_v21  ;;  %v1120_v12 = vsel %vm1065_vm2, %v3161_v33, %v2126_v18  ;;  %v1131_v42 = vsel %vm1065_vm2, %v3166_v55, %v2127_v32 }
  0xf3   : > { %v2120_v58 = vpop.permute.xlu0 %2119  ;;  %v2135_v47 = vpop.permute.xlu1 %2134 }
  0xf4   : > { %v2122_v62 = vunpack.i.h.bf16 %v2120_v58  ;;  %v2121_v43 = vunpack.i.l.bf16 %v2120_v58  ;;  %v2137_v57 = vunpack.i.h.bf16 %v2135_v47  ;;  %v2136_v29 = vunpack.i.l.bf16 %v2135_v47 }
  0xf6   : > { %v1103_v7 = vsel %vm1099_vm4, %v1086_v6, %v2121_v43  ;;  %v1114_v37 = vsel %vm1099_vm4, %v1097_v23, %v2122_v62  ;;  %v1136_v24 = vsel %vm1082_vm3, %v1120_v12, %v2136_v29  ;;  %v1147_v46 = vsel %vm1082_vm3, %v1131_v42, %v2137_v57  ;;  %v3792_v6 = vld [vmem:[#allocation17_spill] sm:$0xff] }
  0xf7   : > { %v2130_v3 = vpop.permute.xlu0 %2129  ;;  %1319 = vmatmul.mubr.f32.gmra.mrb[6].mxu0 %v1103_v7  ;;  %1374 = vmatmul.mubr.f32.gmra.mrb[4].mxu1 %v1114_v37  ;;  %v2145_v1 = vpop.permute.xlu1 %2144 }
  0xf8   : > { %v2147_v15 = vunpack.i.h.bf16 %v2145_v1  ;;  %v2146_v9 = vunpack.i.l.bf16 %v2145_v1  ;;  %v2132_v55 = vunpack.i.h.bf16 %v2130_v3  ;;  %v2131_v14 = vunpack.i.l.bf16 %v2130_v3 }
  0xfa   : > { %v1152_v41 = vsel %vm1099_vm4, %v1136_v24, %v2146_v9  ;;  %v1163_v16 = vsel %vm1099_vm4, %v1147_v46, %v2147_v15  ;;  %v1070_v25 = vsel %vm1065_vm2, %v3791_v20, %v2131_v14  ;;  %v1081_v21 = vsel %vm1065_vm2, %v2261_v51, %v2132_v55  ;;  %v3793_v46 = vld [vmem:[#allocation19_spill] sm:$0xff] }
  0xfb   : > { %v2140_v52 = vpop.permute.xlu0 %2139  ;;  %1323 = vmatprep.mubr.f32.mxu0 %v1152_v41  ;;  %1378 = vmatprep.mubr.f32.mxu1 %v1163_v16  ;;  %v2155_v33 = vpop.permute.xlu1 %2154 }
  0xfc   : > { %v2142_v4 = vunpack.i.h.bf16 %v2140_v52  ;;  %v2141_v39 = vunpack.i.l.bf16 %v2140_v52  ;;  %v2157_v53 = vunpack.i.h.bf16 %v2155_v33  ;;  %v2156_v32 = vunpack.i.l.bf16 %v2155_v33 }
  0xfe   : > { %v1087_v18 = vsel %vm1082_vm3, %v1070_v25, %v2141_v39  ;;  %v1098_v58 = vsel %vm1082_vm3, %v1081_v21, %v2142_v4  ;;  %v1121_v29 = vsel %vm1065_vm2, %v3184_v38, %v2156_v32  ;;  %v1071_v23 = vsel %vm1065_vm2, %v3792_v6, %v2157_v53  ;;  %v2262_v25 = vld [vmem:[%s2523_s28 + $0x50] sm:$0xff] }
  0xff   : > { %v2150_v19 = vpop.permute.xlu0 %2149  ;;  %v2165_v36 = vpop.permute.xlu1 %2164 }
 0x100   : > { %v2152_v54 = vunpack.i.h.bf16 %v2150_v19  ;;  %v2151_v28 = vunpack.i.l.bf16 %v2150_v19  ;;  %v2167_v30 = vunpack.i.h.bf16 %v2165_v36  ;;  %v2166_v35 = vunpack.i.l.bf16 %v2165_v36 }
 0x102   : > { %v1104_v47 = vsel %vm1099_vm4, %v1087_v18, %v2151_v28  ;;  %v1115_v62 = vsel %vm1099_vm4, %v1098_v58, %v2152_v54  ;;  %v2263_v58 = vld [vmem:[%s2533_s11 + $0x90] sm:$0xff] }
 0x103   : > { %v2160_v43 = vpop.permute.xlu0 %2159  ;;  %1324 = vmatmul.mubr.f32.gmra.mrb[8].mxu0 %v1104_v47  ;;  %1379 = vmatmul.mubr.f32.gmra.mrb[6].mxu1 %v1115_v62  ;;  %v2175_v63 = vpop.permute.xlu1 %2174  ;;  %v767_v47 = vrot.slane %v2263_v58, 2 }
 0x104   : > { %v2162_v0 = vunpack.i.h.bf16 %v2160_v43  ;;  %v2161_v57 = vunpack.i.l.bf16 %v2160_v43  ;;  %1870 = vmatprep.mubr.msk.f32.mxu1 %vm1065_vm2, %v3172_v11  ;;  %v2177_v38 = vunpack.i.h.bf16 %v2175_v63  ;;  %v2176_v9 = vunpack.i.l.bf16 %v2175_v63  ;;  %v2264_v43 = vld [vmem:[%s2533_s11 + $0x98] sm:$0xff] }
 0x106   : > { %v1137_v7 = vsel %vm1082_vm3, %v1121_v29, %v2161_v57  ;;  %v1088_v37 = vsel %vm1082_vm3, %v1071_v23, %v2162_v0  ;;  %v3794_v0 = vld [vmem:[#allocation35_spill] sm:$0xff] }
 0x107   : > { %v2170_v12 = vpop.permute.xlu0 %2169  ;;  %1871 = vmatmul.mubr.msk.f32.vlgmr.msra.gmra.mrb[8].mxu1 %vm1065_vm2, %v3179_v10  ;;  %v1153_v42 = vsel %vm1099_vm4, %v1137_v7, %v2166_v35  ;;  %v1105_v3 = vsel %vm1099_vm4, %v1088_v37, %v2167_v30  ;;  %v2185_v1 = vpop.permute.xlu1 %2184  ;;  %v768_v30 = vrot.slane %v2264_v43, 2  ;;  %v2265_v37 = vld [vmem:[%s2533_s11 + $0xa0] sm:$0x3] }
 0x108   : > { %v2172_v11 = vunpack.i.h.bf16 %v2170_v12  ;;  %v2171_v15 = vunpack.i.l.bf16 %v2170_v12  ;;  %1328 = vmatprep.mubr.f32.mxu0 %v1153_v42  ;;  %1873 = vmatprep.mubr.msk.f32.mxu1 %vm1065_vm2, %v3192_v5  ;;  %v2187_v5 = vunpack.i.h.bf16 %v2185_v1  ;;  %v2186_v55 = vunpack.i.l.bf16 %v2185_v1 }
 0x109   : > { %1329 = vmatmul.mubr.f32.gmra.mrb[10].mxu0 %v1105_v3  ;;  %v770_v12 = vrot.slane %v2265_v37, 2 }
 0x10a   : > { %v1122_v24 = vsel %vm1065_vm2, %v3214_v22, %v2171_v15  ;;  %v1072_v10 = vsel %vm1065_vm2, %v3793_v46, %v2172_v11  ;;  %v1123_v20 = vsel %vm1065_vm2, %v3222_v17, %v2186_v55  ;;  %v1073_v51 = vsel %vm1065_vm2, %v2262_v25, %v2187_v5 }
 0x10b   : > { %v2180_v41 = vpop.permute.xlu0 %2179  ;;  %1874 = vmatmul.mubr.msk.f32.gmra.mrb[10].mxu1 %vm1065_vm2, %v3206_v48  ;;  %v2195_v16 = vpop.permute.xlu1 %2194  ;;  %v1138_v14 = vsel %vm1082_vm3, %v1122_v24, %v2176_v9  ;;  %v1089_v22 = vsel %vm1082_vm3, %v1072_v10, %v2177_v38  ;;  %v771_v10 = vsel %vm464_vm1, %v768_v30, %v770_v12 }
 0x10c   : > { %v2182_v52 = vunpack.i.h.bf16 %v2180_v41  ;;  %v2181_v33 = vunpack.i.l.bf16 %v2180_v41  ;;  %1876 = vmatprep.mubr.msk.f32.mxu1 %vm1065_vm2, %v3209_v59  ;;  %v2197_v48 = vunpack.i.h.bf16 %v2195_v16  ;;  %v2196_v36 = vunpack.i.l.bf16 %v2195_v16  ;;  %v2266_v16 = vld [vmem:[%s2523_s28 + $0x68] sm:$0xff] }
 0x10e   : > { %v1154_v4 = vsel %vm1099_vm4, %v1138_v14, %v2181_v33  ;;  %v1106_v39 = vsel %vm1099_vm4, %v1089_v22, %v2182_v52 }
 0x10f   : > { %v2190_v19 = vpop.permute.xlu0 %2189  ;;  %1333 = vmatprep.mubr.f32.mxu0 %v1154_v4  ;;  %1877 = vmatmul.mubr.msk.f32.gmra.mrb[12].mxu1 %vm1065_vm2, %v3217_v27  ;;  %v2205_v59 = vpop.permute.xlu1 %2204 }
 0x110   : > { %v2192_v54 = vunpack.i.h.bf16 %v2190_v19  ;;  %v2191_v28 = vunpack.i.l.bf16 %v2190_v19  ;;  %1334 = vmatmul.mubr.f32.gmra.mrb[12].mxu0 %v1106_v39  ;;  %1879 = vmatprep.mubr.msk.f32.mxu1 %vm1065_vm2, %v3226_v8  ;;  %v2207_v35 = vunpack.i.h.bf16 %v2205_v59  ;;  %v2206_v63 = vunpack.i.l.bf16 %v2205_v59 }
 0x112   : > { %v1139_v21 = vsel %vm1082_vm3, %v1123_v20, %v2191_v28  ;;  %v1090_v27 = vsel %vm1082_vm3, %v1073_v51, %v2192_v54 }
 0x113   : > { %v2200_v53 = vpop.permute.xlu0 %2199  ;;  %1880 = vmatmul.mubr.msk.f32.gmra.mrb[14].mxu1 %vm1065_vm2, %v3229_v13  ;;  %v1155_v32 = vsel %vm1099_vm4, %v1139_v21, %v2196_v36  ;;  %v1107_v18 = vsel %vm1099_vm4, %v1090_v27, %v2197_v48  ;;  %v2215_v8 = vpop.permute.xlu1 %2214 }
 0x114   : > { %v2202_v17 = vunpack.i.h.bf16 %v2200_v53  ;;  %v2201_v62 = vunpack.i.l.bf16 %v2200_v53  ;;  %1338 = vmatprep.mubr.f32.mxu0 %v1155_v32  ;;  %1882 = vmatprep.mubr.msk.f32.mxu1 %vm1065_vm2, %v3250_v60  ;;  %v769_v60 = vsel %vm464_vm1, %v767_v47, %v768_v30  ;;  %v2217_v42 = vunpack.i.h.bf16 %v2215_v8 }
 0x115   : > { %1339 = vmatmul.mubr.f32.gmra.mrb[14].mxu0 %v1107_v18  ;;  %v2216_v3 = vunpack.i.l.bf16 %v2215_v8 }
 0x116   : > { %v1124_v13 = vsel %vm1065_vm2, %v3265_v45, %v2201_v62  ;;  %v1074_v57 = vsel %vm1065_vm2, %v3794_v0, %v2202_v17  ;;  %v1075_v52 = vsel %vm1065_vm2, %v2266_v16, %v2217_v42 }
 0x117   : > { %v2210_v29 = vpop.permute.xlu0 %2209  ;;  %1883 = vmatmul.mubr.msk.f32.gmra.mrb[16].mxu1 %vm1065_vm2, %v3253_v61  ;;  %v2225_v6 = vpop.permute.xlu1 %2224  ;;  %v1140_v45 = vsel %vm1082_vm3, %v1124_v13, %v2206_v63  ;;  %v1091_v1 = vsel %vm1082_vm3, %v1074_v57, %v2207_v35  ;;  %v1125_v41 = vsel %vm1065_vm2, %v3270_v56, %v2216_v3 }
 0x118   : > { %v2212_v23 = vunpack.i.h.bf16 %v2210_v29  ;;  %v2211_v7 = vunpack.i.l.bf16 %v2210_v29  ;;  %1885 = vmatprep.mubr.msk.f32.mxu1 %vm1065_vm2, %v3262_v40  ;;  %v2227_v40 = vunpack.i.h.bf16 %v2225_v6  ;;  %v2226_v38 = vunpack.i.l.bf16 %v2225_v6 }
 0x11a   : > { %v1156_v11 = vsel %vm1099_vm4, %v1140_v45, %v2211_v7  ;;  %v1108_v61 = vsel %vm1099_vm4, %v1091_v1, %v2212_v23 }
 0x11b   : > { %v2220_v15 = vpop.permute.xlu0 %2219  ;;  %1343 = vmatprep.mubr.f32.mxu0 %v1156_v11  ;;  %1886 = vmatmul.mubr.msk.f32.gmra.mrb[18].mxu1 %vm1065_vm2, %v3278_v26  ;;  %v2235_v9 = vpop.permute.xlu1 %2234 }
 0x11c   : > { %v2222_v24 = vunpack.i.h.bf16 %v2220_v15  ;;  %v2221_v46 = vunpack.i.l.bf16 %v2220_v15  ;;  %1344 = vmatmul.mubr.f32.gmra.mrb[16].mxu0 %v1108_v61  ;;  %1888 = vmatprep.mubr.msk.f32.mxu1 %vm1065_vm2, %v769_v60  ;;  %v2237_v56 = vunpack.i.h.bf16 %v2235_v9  ;;  %v2236_v19 = vunpack.i.l.bf16 %v2235_v9 }
 0x11e   : > { %v1141_v33 = vsel %vm1082_vm3, %v1125_v41, %v2221_v46  ;;  %v1092_v26 = vsel %vm1082_vm3, %v1075_v52, %v2222_v24  ;;  %v3527_v24 = vld [vmem:[#allocation4] ss:$0 sm:$0xff] }
 0x11f   : > { %v2230_v5 = vpop.permute.xlu0 %2229  ;;  %1889 = vmatmul.mubr.msk.f32.gmra.mrb[20].mxu1 %vm1065_vm2, %v771_v10  ;;  %v1157_v55 = vsel %vm1099_vm4, %v1141_v33, %v2226_v38  ;;  %v1109_v14 = vsel %vm1099_vm4, %v1092_v26, %v2227_v40  ;;  %v2245_v22 = vpop.permute.xlu1 %2244 }
 0x120   : > { %v2232_v4 = vunpack.i.h.bf16 %v2230_v5  ;;  %v2231_v39 = vunpack.i.l.bf16 %v2230_v5  ;;  %1348 = vmatprep.mubr.f32.mxu0 %v1157_v55  ;;  %1891 = vmatprep.mubr.msk.f32.mxu1 %vm1065_vm2, %v3302_v31  ;;  %v2247_v25 = vunpack.i.h.bf16 %v2245_v22  ;;  %v2246_v51 = vunpack.i.l.bf16 %v2245_v22 }
 0x121   : > { %1349 = vmatmul.mubr.f32.gmra.mrb[18].mxu0 %v1109_v14 }
 0x122   : > { %v1126_v48 = vsel %vm1065_vm2, %v3305_v2, %v2231_v39  ;;  %v1076_v36 = vsel %vm1065_vm2, %v3273_v50, %v2232_v4  ;;  %v1077_v58 = vsel %vm1065_vm2, %v3002_v44, %v2247_v25 }
 0x123   : > { %v2240_v59 = vpop.permute.xlu0 %2239  ;;  %1892 = vmatmul.mubr.msk.f32.gmra.mrb[22].mxu1 %vm1065_vm2, %v3313_v49  ;;  %v2255_v20 = vpop.permute.xlu1 %2254  ;;  %v1142_v31 = vsel %vm1082_vm3, %v1126_v48, %v2236_v19  ;;  %v1093_v21 = vsel %vm1082_vm3, %v1076_v36, %v2237_v56  ;;  %v1127_v49 = vsel %vm1065_vm2, %v3331_v34, %v2246_v51 }
 0x124   : > { %v2242_v54 = vunpack.i.h.bf16 %v2240_v59  ;;  %v2241_v28 = vunpack.i.l.bf16 %v2240_v59  ;;  %v2257_v50 = vunpack.i.h.bf16 %v2255_v20  ;;  %v2256_v32 = vunpack.i.l.bf16 %v2255_v20 }
 0x126   : > { %v1158_v27 = vsel %vm1099_vm4, %v1142_v31, %v2241_v28  ;;  %v1110_v2 = vsel %vm1099_vm4, %v1093_v21, %v2242_v54 }
 0x127   : > { %v2250_v53 = vpop.permute.xlu0 %2249  ;;  %1353 = vmatprep.mubr.f32.mxu0 %v1158_v27 }
 0x128   : > { %v2252_v18 = vunpack.i.h.bf16 %v2250_v53  ;;  %v2251_v8 = vunpack.i.l.bf16 %v2250_v53  ;;  %1354 = vmatmul.mubr.f32.gmra.mrb[20].mxu0 %v1110_v2 }
 0x12a   : > { %v1143_v47 = vsel %vm1082_vm3, %v1127_v49, %v2251_v8  ;;  %v1094_v17 = vsel %vm1082_vm3, %v1077_v58, %v2252_v18 }
 0x12b   : > { %v1159_v62 = vsel %vm1099_vm4, %v1143_v47, %v2256_v32  ;;  %v1111_v43 = vsel %vm1099_vm4, %v1094_v17, %v2257_v50 }
 0x12c   : > { %1358 = vmatprep.mubr.f32.mxu0 %v1159_v62 }
 0x12d   : > { %1359 = vmatmul.mubr.f32.gmra.mrb[22].mxu0 %v1111_v43 }
 0x1a8   : > { %v1794_v30 = vpop.f32.mrb[0].mxu0 }
 0x1a9   : > { %v1795_v35 = vpop.f32.mrb[1].mxu0 }
 0x1aa   : > { %v1796_v63 = vadd.f32 %v1795_v35, %v1794_v30 }
 0x1ac   : > { %v1306_v52 = vadd.f32 %v1796_v63, %v3527_v24 }
 0x1b2   : > { %v1797_v13 = vpop.f32.mrb[2].mxu0  ;;  %v1830_v0 = vpop.f32.mrb[0].mxu1 }
 0x1b3   : > { %v1798_v57 = vpop.f32.mrb[3].mxu0  ;;  %v1831_v34 = vpop.f32.mrb[1].mxu1 }
 0x1b4   : > { %v1799_v44 = vadd.f32 %v1798_v57, %v1797_v13  ;;  %v3519_v29 = vadd.f32 %v1831_v34, %v1830_v0 }
 0x1b6   : > { %v1311_v41 = vadd.f32 %v1799_v44, %v3527_v24 }
 0x1be   : > { %v1800_v6 = vpop.f32.mrb[4].mxu0  ;;  %v1833_v23 = vpop.f32.mrb[2].mxu1 }
 0x1bf   : > { %v1801_v7 = vpop.f32.mrb[5].mxu0  ;;  %v1834_v60 = vpop.f32.mrb[3].mxu1 }
 0x1c0   : > { %v1802_v37 = vadd.f32 %v1801_v7, %v1800_v6  ;;  %v3521_v12 = vadd.f32 %v1834_v60, %v1833_v23 }
 0x1c2   : > { %v1316_v48 = vadd.f32 %v1802_v37, %v3527_v24  ;;  %v1371_v37 = vadd.f32 %v3521_v12, %v3527_v24 }
 0x1ca   : > { %v1803_v42 = vpop.f32.mrb[6].mxu0  ;;  %v1836_v3 = vpop.f32.mrb[4].mxu1 }
 0x1cb   : > { %v1804_v45 = vpop.f32.mrb[7].mxu0  ;;  %v1837_v1 = vpop.f32.mrb[5].mxu1 }
 0x1cc   : > { %v1805_v11 = vadd.f32 %v1804_v45, %v1803_v42  ;;  %v3523_v61 = vadd.f32 %v1837_v1, %v1836_v3  ;;  %v1366_v3 = vadd.f32 %v3519_v29, %v3527_v24 }
 0x1ce   : > { %v1321_v4 = vadd.f32 %v1805_v11, %v3527_v24  ;;  %v1376_v29 = vadd.f32 %v3523_v61, %v3527_v24 }
 0x1d6   : > { %v1806_v15 = vpop.f32.mrb[8].mxu0  ;;  %v1839_v40 = vpop.f32.mrb[6].mxu1 }
 0x1d7   : > { %v1807_v38 = vpop.f32.mrb[9].mxu0  ;;  %v1840_v9 = vpop.f32.mrb[7].mxu1 }
 0x1d8   : > { %v1808_v46 = vadd.f32 %v1807_v38, %v1806_v15  ;;  %v3529_v10 = vadd.f32 %v1840_v9, %v1839_v40 }
 0x1da   : > { %v1872_v16 = vpop.f32.mrb[8].mxu1  ;;  %v1326_v31 = vadd.f32 %v1808_v46, %v3527_v24  ;;  %v1381_v12 = vadd.f32 %v3529_v10, %v3527_v24 }
 0x1db   : > { %v1456_v33 = vadd.f32 %v1872_v16, %v1311_v41  ;;  %v1450_v26 = vpop.f32.mrb[9].mxu1 }
 0x1dc   : > { %v1451_v5 = vadd.f32 %v1450_v26, %v1306_v52  ;;  %v1809_v55 = vpop.f32.mrb[10].mxu0 }
 0x1dd   : > { %v1530_v14 = vmax.f32 %v1456_v33, 0.0  ;;  %v1810_v22 = vpop.f32.mrb[11].mxu0 }
 0x1de   : > { %v1529_v39 = vmax.f32 %v1451_v5, 0.0  ;;  %v1811_v56 = vadd.f32 %v1810_v22, %v1809_v55  ;;  %v1875_v19 = vpop.f32.mrb[10].mxu1 }
 0x1df   : > { %1546 = vst.msk [vmem:[%s3536_s17 + $0x8] sm:$0xff] %vm1082_vm3, %v1530_v14  ;;  %v1466_v36 = vadd.f32 %v1875_v19, %v1321_v4  ;;  %v1460_v59 = vpop.f32.mrb[11].mxu1 }
 0x1e0   : > { %1545 = vst.msk [vmem:[%s3536_s17] sm:$0xff] %vm1082_vm3, %v1529_v39  ;;  %v1461_v54 = vadd.f32 %v1460_v59, %v1316_v48  ;;  %v1331_v28 = vadd.f32 %v1811_v56, %v3527_v24 }
 0x1e1   : > { %v1532_v20 = vmax.f32 %v1466_v36, 0.0 }
 0x1e2   : > { %v1531_v25 = vmax.f32 %v1461_v54, 0.0  ;;  %v1878_v51 = vpop.f32.mrb[12].mxu1 }
 0x1e3   : > { %1548 = vst.msk [vmem:[%s3536_s17 + $0x18] sm:$0xff] %vm1082_vm3, %v1532_v20  ;;  %v1476_v21 = vadd.f32 %v1878_v51, %v1331_v28  ;;  %v1812_v27 = vpop.f32.mrb[12].mxu0  ;;  %v1470_v2 = vpop.f32.mrb[13].mxu1 }
 0x1e4   : > { %1547 = vst.msk [vmem:[%s3536_s17 + $0x10] sm:$0xff] %vm1082_vm3, %v1531_v25  ;;  %v1471_v53 = vadd.f32 %v1470_v2, %v1326_v31  ;;  %v1813_v50 = vpop.f32.mrb[13].mxu0 }
 0x1e5   : > { %v1534_v32 = vmax.f32 %v1476_v21, 0.0  ;;  %v1814_v18 = vadd.f32 %v1813_v50, %v1812_v27 }
 0x1e6   : > { %v1533_v8 = vmax.f32 %v1471_v53, 0.0  ;;  %v1881_v49 = vpop.f32.mrb[14].mxu1 }
 0x1e7   : > { %1550 = vst.msk [vmem:[%s3536_s17 + $0x28] sm:$0xff] %vm1082_vm3, %v1534_v32  ;;  %v1336_v58 = vadd.f32 %v1814_v18, %v3527_v24  ;;  %v1480_v47 = vpop.f32.mrb[15].mxu1 }
 0x1e8   : > { %1549 = vst.msk [vmem:[%s3536_s17 + $0x20] sm:$0xff] %vm1082_vm3, %v1533_v8  ;;  %v1815_v17 = vpop.f32.mrb[14].mxu0 }
 0x1e9   : > { %v1481_v62 = vadd.f32 %v1480_v47, %v1336_v58  ;;  %v1816_v43 = vpop.f32.mrb[15].mxu0 }
 0x1ea   : > { %v1817_v30 = vadd.f32 %v1816_v43, %v1815_v17  ;;  %v1884_v35 = vpop.f32.mrb[16].mxu1 }
 0x1eb   : > { %v1535_v63 = vmax.f32 %v1481_v62, 0.0  ;;  %v1490_v13 = vpop.f32.mrb[17].mxu1 }
 0x1ec   : > { %v1341_v0 = vadd.f32 %v1817_v30, %v3527_v24 }
 0x1ed   : > { %1551 = vst.msk [vmem:[%s3536_s17 + $0x30] sm:$0xff] %vm1082_vm3, %v1535_v63 }
 0x1ee   : > { %v1486_v57 = vadd.f32 %v1881_v49, %v1341_v0  ;;  %v1887_v34 = vpop.f32.mrb[18].mxu1 }
 0x1ef   : > { %v1818_v44 = vpop.f32.mrb[16].mxu0  ;;  %v1500_v6 = vpop.f32.mrb[19].mxu1 }
 0x1f0   : > { %v1536_v23 = vmax.f32 %v1486_v57, 0.0  ;;  %v1819_v7 = vpop.f32.mrb[17].mxu0 }
 0x1f1   : > { %v1820_v60 = vadd.f32 %v1819_v7, %v1818_v44 }
 0x1f2   : > { %1552 = vst.msk [vmem:[%s3536_s17 + $0x38] sm:$0xff] %vm1082_vm3, %v1536_v23  ;;  %v1890_v42 = vpop.f32.mrb[20].mxu1 }
 0x1f3   : > { %v1346_v45 = vadd.f32 %v1820_v60, %v3527_v24  ;;  %v1516_v1 = vadd.f32 %v1890_v42, %v1371_v37  ;;  %v1510_v11 = vpop.f32.mrb[21].mxu1 }
 0x1f4   : > { %v1511_v15 = vadd.f32 %v1510_v11, %v1366_v3  ;;  %v1821_v40 = vpop.f32.mrb[18].mxu0 }
 0x1f5   : > { %v1491_v38 = vadd.f32 %v1490_v13, %v1346_v45  ;;  %v1542_v9 = vmax.f32 %v1516_v1, 0.0  ;;  %v1822_v46 = vpop.f32.mrb[19].mxu0 }
 0x1f6   : > { %v1541_v41 = vmax.f32 %v1511_v15, 0.0  ;;  %v1823_v16 = vadd.f32 %v1822_v46, %v1821_v40  ;;  %v1893_v52 = vpop.f32.mrb[22].mxu1 }
 0x1f7   : > { %v1537_v33 = vmax.f32 %v1491_v38, 0.0  ;;  %1558 = vst.msk [vmem:[%s3536_s17 + $0x68] sm:$0xff] %vm1082_vm3, %v1542_v9  ;;  %v1526_v26 = vadd.f32 %v1893_v52, %v1381_v12  ;;  %v1520_v5 = vpop.f32.mrb[23].mxu1 }
 0x1f8   : > { %1557 = vst.msk [vmem:[%s3536_s17 + $0x60] sm:$0xff] %vm1082_vm3, %v1541_v41  ;;  %v1351_v55 = vadd.f32 %v1823_v16, %v3527_v24  ;;  %v1521_v14 = vadd.f32 %v1520_v5, %v1376_v29 }
 0x1f9   : > { %1553 = vst.msk [vmem:[%s3536_s17 + $0x40] sm:$0xff] %vm1082_vm3, %v1537_v33  ;;  %v1544_v10 = vmax.f32 %v1526_v26, 0.0 }
 0x1fa   : > { %v1496_v22 = vadd.f32 %v1884_v35, %v1351_v55  ;;  %v1543_v4 = vmax.f32 %v1521_v14, 0.0 }
 0x1fb   : > { %1560 = vst.msk [vmem:[%s3536_s17 + $0x78] sm:$0xff] %vm1082_vm3, %v1544_v10  ;;  %v1824_v61 = vpop.f32.mrb[20].mxu0 }
 0x1fc   : > { %v1538_v39 = vmax.f32 %v1496_v22, 0.0  ;;  %1559 = vst.msk [vmem:[%s3536_s17 + $0x70] sm:$0xff] %vm1082_vm3, %v1543_v4  ;;  %v1825_v56 = vpop.f32.mrb[21].mxu0 }
 0x1fd   : > { %v1826_v19 = vadd.f32 %v1825_v56, %v1824_v61 }
 0x1fe   : > { %1554 = vst.msk [vmem:[%s3536_s17 + $0x48] sm:$0xff] %vm1082_vm3, %v1538_v39 }
 0x1ff   : > { %v1356_v48 = vadd.f32 %v1826_v19, %v3527_v24 }
 0x200   : > { %v1827_v36 = vpop.f32.mrb[22].mxu0 }
 0x201   : > { %v1501_v59 = vadd.f32 %v1500_v6, %v1356_v48  ;;  %v1828_v54 = vpop.f32.mrb[23].mxu0 }
 0x202   : > { %v1829_v28 = vadd.f32 %v1828_v54, %v1827_v36 }
 0x203   : > { %v1539_v20 = vmax.f32 %v1501_v59, 0.0 }
 0x204   : > { %v1361_v25 = vadd.f32 %v1829_v28, %v3527_v24 }
 0x205   : > { %1555 = vst.msk [vmem:[%s3536_s17 + $0x50] sm:$0xff] %vm1082_vm3, %v1539_v20 }
 0x206   : > { %v1506_v51 = vadd.f32 %v1887_v34, %v1361_v25 }
 0x208   : > { %v1540_v31 = vmax.f32 %v1506_v51, 0.0 }
 0x20a   : > { %1556 = vst.msk [vmem:[%s3536_s17 + $0x58] sm:$0xff] %vm1082_vm3, %v1540_v31 }
 0x20b PF: > { %s17_s22 = sadd.s32 1, %s2369_s22   ;;  %s3795_s18 = smov %s2361_s20 }
 0x20c   : > { %p14_p8 = scmp.ge.s32.totalorder %s17_s22, 6   ;;  %s3796_s19 = smov %s2365_s21 }
 0x20d   : > { %s3797_s20 = smov %s3800_s24  ;;  %s3798_s21 = smov %s3804_s25 }
 0x20e   :  { %16 = sbr.rel (!%p14_p8) target bundleno = 4 (0x4), region = 85 }
 0x215   :  { %1593 = vsyncpa [#allocation3], 1 }
 0x216   :  { %1595 = vsyncpa [#allocation3 + $0x1], 1 }
 0x217   :  { %1596 = vsyncpa [#allocation5], 1 }

// kernel: cnn_forward.5
= control target key start
LH: loop header
LB: loop body
LE: loop exit
PB: predicated region body
PF: predicated region fallthrough
CT: control target
= control target key end

     0   :  { %s15271_s0 = inlined_call_operand.hbm [shape: f32[2,16384], index: 0, kind: input, shape index: {}]   ;;  %s15272_s1 = inlined_call_operand.vmem [shape: f32[2,16384,64], index: 1, kind: input, shape index: {}]   ;;  %s15273_s2 = inlined_call_operand.hbm [shape: f32[2,1,64], index: 2, kind: input, shape index: {}]   ;;  %s15274_s3 = inlined_call_operand.hbm [shape: f32[128,10], index: 3, kind: input, shape index: {}]   ;;  %s15275_s4 = inlined_call_operand.hbm [shape: f32[2,2,10], index: 4, kind: output, shape index: {}]  }
   0x1   :  { %15281 = sst [smem:[#allocation14_spill]] %s15273_s2 }
   0x2   :  { %15282 = sst [smem:[#allocation15_spill]] %s15274_s3 }
   0x3   :  { %9 = vsyncpa [#allocation4], 0 }
   0x4   :  { %10 = vsyncpa [#allocation7], 0 }
   0x5   :  { %12 = vsyncpa [#allocation7 + $0x1], 0 }
   0x6   :  { %13 = vsyncpa [#allocation5], 0 }
   0x7   :  { %15 = vsyncpa [#allocation5 + $0x1], 0  ;;  %s12508_s15 = smov 0   ;;  %s12510_s16 = smov 0  }
   0x8   :  { %s12512_s17 = smov 0   ;;  %s12514_s18 = smov 0  }
   0x9   :  { %s12516_s19 = smov 0   ;;  %s12518_s20 = smov 0  }
   0xa LB: > { %s33_s21 = sadd.s32 1, %s12467_s19  ;;  %s94_s22 = sadd.s32 1, %s12459_s17  ;;  %s12471_s20 = sphi %s12518_s20, %s21_s20   ;;  %s12467_s19 = sphi %s12516_s19, %s15304_s19   ;;  %s12463_s18 = sphi %s12514_s18, %s15303_s18   ;;  %s12459_s17 = sphi %s12512_s17, %s15302_s17   ;;  %s12455_s16 = sphi %s12510_s16, %s15301_s16   ;;  %s12451_s15 = sphi %s12508_s15, %s15300_s15  }
   0xb   : > { %p35_p0 = scmp.ge.s32.totalorder %s33_s21, 2  ;;  %p101_p1 = scmp.ne.s32.totalorder %s12459_s17, %s12455_s16 }
   0xc   : > { %p102_p2 = scmp.eq.s32.totalorder %s12471_s20, 0  ;;  %p12207_p5 = scmp.lt.s32.totalorder %s12471_s20, 2 }
   0xd   : > { %s15306_s21 = smov (%p35_p0, %s33_s21), 0  ;;  %s210_s24 = sand.u32 1, %s12471_s20  }
   0xe   : > { %15283 = sst [smem:[#allocation13_spill]] %s15306_s21  ;;  %p103_p4 = por %p102_p2, %p101_p1 }
   0xf   : > { %s91_s23 = ssub.s32 %s12467_s19, %s15306_s21  ;;  %s212_s25 = sand.u32 1, %s12459_s17  }
  0x10   : > { %p92_p6 = scmp.eq.s32.totalorder %s91_s23, 0  ;;  %s7835_s26 = sshll.u32 %s12467_s19, 4 }
  0x11   : > { %s15284_s2 = sld [smem:[#allocation14_spill]]  ;;  %s213_s5 = scalar_lea.vmem [#allocation6], %s212_s25 }
  0x12   : > { %s12556_s27 = scalar_select %p92_p6, %s12459_s17, %s94_s22  }
  0x13   : > { %s220_s6 = sshll.u32 %s213_s5, 4  ;;  %p12563_p7 = pnand %p12207_p5, %p103_p4  ;;  %s12567_s6 = int_to_ptr.vmem [resolvable:$true] %s220_s6 }
  0x14   : > { %s12569_s8 = sshll.u32 %s212_s25, 6  ;;  %s12571_s9 = scalar_lea.sflag [#allocation7], %s210_s24 }
  0x15   : > { %p12299_p9 = pneg %p12563_p7 }
  0x17   : > { %s12561_s30 = scalar_lea.hbm %s15284_s2, %s7835_s26  ;;  %s12302_s13 = scalar_lea.hbm %s15284_s2, 32 }
  0x18   : > { %s12297_s10 = scalar_lea.hbm %s12561_s30, 16  ;;  %p12303_p12 = scmp.lt.u32.totalorder %s12561_s30, %s15284_s2 }
  0x19   : > { %p12298_p8 = scmp.ne.s32.totalorder %s12561_s30, %s12297_s10  ;;  %p12304_p13 = scmp.lt.u32.totalorder %s12302_s13, %s12297_s10 }
  0x1a   : > { %p12306_p2 = scmp.lt.u32.totalorder %s12297_s10, %s12561_s30 }
  0x1b   : > { %p12300_p10 = pnand %p12299_p9, %p12298_p8  ;;  %p12305_p0 = por %p12304_p13, %p12303_p12 }
  0x1d   : > { %p12301_p11 = pneg %p12300_p10  ;;  %p12307_p4 = por %p12306_p2, %p12305_p0 }
  0x1f   : > { %p12308_p5 = pnand %p12307_p4, %p12301_p11 }
  0x21   : > { %12311 = shalt.err (!%p12308_p5)
}
  0x22   : > { %s12312_s23 = scalar_lea.vmem %s12567_s6, 16  ;;  %s12473_s24 = smov [#allocation6]  }
  0x23   : > { %p12313_p6 = scmp.ne.s32.totalorder %s12567_s6, %s12312_s23  ;;  %s12317_s25 = sshll.u32 %s12473_s24, 4  ;;  %s12318_s25 = int_to_ptr.vmem [resolvable:$false] %s12317_s25 }
  0x24   : > { %s12319_s26 = scalar_lea.vmem %s12318_s25, 32  ;;  %p12320_p3 = scmp.lt.s32.totalorder %s12567_s6, %s12318_s25 }
  0x25   : > { %p12315_p8 = pnand %p12313_p6, %p12299_p9  ;;  %p12321_p12 = scmp.lt.s32.totalorder %s12319_s26, %s12312_s23 }
  0x27   : > { %p12316_p10 = pneg %p12315_p8  ;;  %p12322_p13 = por %p12321_p12, %p12320_p3 }
  0x29   : > { %p12323_p0 = pnand %p12322_p13, %p12316_p10 }
  0x2b   : > { %12326 = shalt.err (!%p12323_p0)
}
  0x2c   : > { %12198 = dma.hbm_to_vmem [thread:$0]  (!%p12563_p7), %s12561_s30, 16, %s12567_s6, %s12571_s9  }
  0x2d   : > { %s7851_s28 = sshll.u32 %s12467_s19, 10  ;;  %s231_s29 = scalar_lea.vmem [#allocation8], %s12569_s8 }
  0x2e   : > { %s238_s5 = sshll.u32 %s231_s29, 4  ;;  %s12602_s10 = sadd.s32 4294967295, %s12471_s20   ;;  %s12628_s5 = int_to_ptr.vmem [resolvable:$true] %s238_s5 }
  0x2f   : > { %s7831_s11 = sadd.s32 4294967294, %s12471_s20   ;;  %p107_p3 = scmp.ne.s32.totalorder %s12455_s16, %s12451_s15 }
  0x30   : > { %p15276_p11 = scmp.eq.s32.totalorder %s12602_s10, 0  ;;  %p157_p2 = scmp.eq.s32.totalorder %s12602_s10, 1 }
  0x31   : > { %p163_p4 = scmp.eq.s32.totalorder %s7831_s11, 1  ;;  %p7832_p5 = scmp.ge.s32.totalorder %s12471_s20, 1 }
  0x32   : > { %p12612_p6 = por %p15276_p11, %p107_p3  ;;  %p12619_p8 = por %p157_p2, %p101_p1 }
  0x33   : > { %p12623_p10 = por %p163_p4, %p107_p3  ;;  %p170_p12 = scmp.lt.s32.totalorder %s12471_s20, 3 }
  0x34   : > { %s15286_s12 = scalar_select %p12612_p6, 1, 0 }
  0x35   : > { %s15287_s30 = scalar_select %p12619_p8, 1, 0 }
  0x36   : > { %s15288_s6 = scalar_select %p12623_p10, 1, 0 }
  0x37   : > { %p12630_p13 = pnand %p7832_p5, %p170_p12  ;;  %s12474_s13 = smov [#allocation3]  }
  0x38   : > { %s186_s14 = sshll.u32 %s12474_s13, 4  ;;  %s15290_s3 = sld [smem:[#allocation15_spill]]  ;;  %s12641_s14 = int_to_ptr.vmem [resolvable:$true] %s186_s14 }
  0x39   : > { %s15289_s8 = scalar_select %p12630_p13, 1, 0 }
  0x3a   : > { %p12191_p1 = pneg %p12630_p13 }
  0x3c   : > { %p12645_p0 = pnand %p12191_p1, %p15276_p11 }
  0x3e   : > { %s12637_s24 = scalar_lea.hbm %s15290_s3, %s7851_s28  ;;  %s12332_s11 = scalar_lea.hbm %s15290_s3, 2048 }
  0x3f   : > { %s12327_s26 = scalar_lea.hbm %s12637_s24, 1024  ;;  %p12333_p5 = scmp.lt.u32.totalorder %s12637_s24, %s15290_s3 }
  0x40   : > { %p12328_p3 = scmp.ne.s32.totalorder %s12637_s24, %s12327_s26  ;;  %p12334_p12 = scmp.lt.u32.totalorder %s12332_s11, %s12327_s26 }
  0x41   : > { %p12336_p1 = scmp.lt.u32.totalorder %s12327_s26, %s12637_s24 }
  0x42   : > { %p12330_p2 = pnand %p12328_p3, %p12299_p9  ;;  %p12335_p10 = por %p12334_p12, %p12333_p5 }
  0x44   : > { %p12331_p4 = pneg %p12330_p2  ;;  %p12337_p11 = por %p12336_p1, %p12335_p10 }
  0x46   : > { %p12338_p8 = pnand %p12337_p11, %p12331_p4 }
  0x48   : > { %12341 = shalt.err (!%p12338_p8)
}
  0x49   : > { %s12342_s23 = scalar_lea.vmem %s12628_s5, 1024  ;;  %s12475_s28 = smov [#allocation8]  }
  0x4a   : > { %p12343_p3 = scmp.ne.s32.totalorder %s12628_s5, %s12342_s23  ;;  %s12347_s29 = sshll.u32 %s12475_s28, 4  ;;  %s12348_s29 = int_to_ptr.vmem [resolvable:$false] %s12347_s29 }
  0x4b   : > { %s12349_s13 = scalar_lea.vmem %s12348_s29, 2048  ;;  %p12350_p13 = scmp.lt.s32.totalorder %s12628_s5, %s12348_s29 }
  0x4c   : > { %p12345_p2 = pnand %p12343_p3, %p12299_p9  ;;  %p12351_p5 = scmp.lt.s32.totalorder %s12349_s13, %s12342_s23 }
  0x4e   : > { %p12346_p6 = pneg %p12345_p2  ;;  %p12352_p12 = por %p12351_p5, %p12350_p13 }
  0x50   : > { %p12353_p10 = pnand %p12352_p12, %p12346_p6 }
  0x52   : > { %12356 = shalt.err (!%p12353_p10)
}
  0x53   : > { %s12476_s26 = smov 128   ;;  %s12477_s11 = smov 8  }
  0x54   : > { %12201 = dma.hbm_to_vmem [thread:$0]  (!%p12563_p7), %s12637_s24, 1024, %s12628_s5, %s12571_s9, %s12476_s26, %s12476_s26, %s12477_s11  }
  0x55   : > { %s12357_s28 = scalar_lea.hbm %s15271_s0, 4096  ;;  %p12359_p11 = pneg %p12645_p0 }
  0x56   : > { %p12358_p9 = scmp.ne.s32.totalorder %s15271_s0, %s12357_s28  ;;  %p12364_p13 = scmp.lt.u32.totalorder %s12357_s28, %s15271_s0 }
  0x58   : > { %p12360_p6 = pnand %p12359_p11, %p12358_p9 }
  0x5a   : > { %p12361_p8 = pneg %p12360_p6 }
  0x5c   : > { %p12366_p4 = pnand %p12364_p13, %p12361_p8 }
  0x5e   : > { %12369 = shalt.err (!%p12366_p4)
}
  0x5f   : > { %s12370_s7 = scalar_lea.vmem %s12641_s14, 4096  ;;  %p12378_p2 = scmp.lt.s32.totalorder %s12641_s14, %s12641_s14 }
  0x60   : > { %p12371_p7 = scmp.ne.s32.totalorder %s12641_s14, %s12370_s7  ;;  %p12379_p5 = scmp.lt.s32.totalorder %s12370_s7, %s12370_s7 }
  0x62   : > { %p12373_p1 = pnand %p12371_p7, %p12359_p11  ;;  %p12380_p12 = por %p12379_p5, %p12378_p2 }
  0x64   : > { %p12374_p3 = pneg %p12373_p1 }
  0x66   : > { %p12381_p10 = pnand %p12380_p12, %p12374_p3 }
  0x68   : > { %12384 = shalt.err (!%p12381_p10)
}
  0x69   : > { %12194 = dma.hbm_to_vmem [thread:$0]  (!%p12645_p0), %s15271_s0, 4096, %s12641_s14, [#allocation4]  }
  0x6a   : > { %p15292_p9 = scmp.ne.s32.totalorder %s15289_s8, 0 }
  0x6b   : > { %p15293_p6 = scmp.eq.s32.totalorder (!%p15292_p9), %s12602_s10, 0 }
  0x6c   : > { %250 = sbr.rel (%p15292_p9) target bundleno = 1614 (0x64e), region = 36 }
  0x73   : > { %12438 = dma.done.wait (%p15293_p6), [#allocation4], 4096   ;;  %p15294_p11 = pmov %p15293_p6 }
  0x74   : > { %s256_s21 = sand.u32 1, %s12602_s10   ;;  %s12702_s9 = sand.u32 1, %s12455_s16  }
  0x75   : > { %12440 = vsyncadd (%p15294_p11), [#allocation4], 4294963200  ;;  %s257_s5 = scalar_lea.sflag [#allocation7], %s256_s21  ;;  %s259_s24 = scalar_lea.vmem [#allocation6], %s12702_s9 }
  0x76   : > { %p15295_p8 = scmp.ne.s32.totalorder %s15286_s12, 0 }
  0x78   : > { %12442 = dma.done.wait (%p15295_p8), %s257_s5, 1040  }
  0x79   : > { %12444 = vsyncadd (%p15295_p8), %s257_s5, 4294966256  ;;  %p308_p0 = scmp.lt.s32.totalorder %s12463_s18, 1  ;;  %v12478_v47 = vmov 1983009808   ;;  %v2441_v49 = vlaneseq  ;;  %vm322_vm0 = vcmask 517120   ;;  %s7841_s10 = sshll.u32 %s12702_s9, 6 }
  0x7a   : > { %v2439_v48 = vunpack.c.l.s4 %v12478_v47  ;;  %s268_s12 = scalar_lea.vmem [#allocation8], %s7841_s10  ;;  %vm12481_vm1 = vmmov 0   ;;  %vm7613_vm2 = vcmask 523264   ;;  %s7842_s11 = sshll.u32 %s12702_s9, 1  ;;  %vm7687_vm3 = vcmask 74752  }
  0x7b   : > { %s309_s8 = scalar_select %p308_p0, %s12463_s18, 1 }
  0x7c   : > { %v2440_v63 = vunpack.c.0.s8 %v2439_v48  ;;  %s7848_s22 = sshll.u32 %s12463_s18, 5  ;;  %s305_s28 = scalar_lea.vmem [#allocation9], %s7842_s11 }
  0x7d   : > { %s7852_s14 = sshll.u32 %s309_s8, 14  ;;  %s7703_s23 = sshll.u32 %s305_s28, 4  ;;  %s15224_s23 = int_to_ptr.vmem [resolvable:$true] %s7703_s23 }
  0x7e   : > { %s12714_s26 = scalar_lea.vmem %s15272_s1, %s7852_s14  ;;  %s15222_s2 = scalar_lea.hbm %s15275_s4, %s7848_s22 }
  0x7f   : > { %v373_v0 = vld [vmem:[%s12714_s26 + $0x80] sm:$0xff]  ;;  %v374_v1 = vld [vmem:[%s12714_s26 + $0x88] sm:$0xff]  ;;  %v375_v11 = vld [vmem:[%s12714_s26 + $0x90] sm:$0xff]  ;;  %s7690_s3 = scalar_lea.sflag [#allocation5], %s12702_s9  ;;  %s12385_s21 = scalar_lea.vmem %s15224_s23, 32 }
  0x80   : > { %v405_v2 = vld [vmem:[%s12714_s26 + $0x180] sm:$0xff]  ;;  %v10121_v3 = vpack.c.bf16 %v374_v1, %v373_v0  ;;  %v406_v4 = vld [vmem:[%s12714_s26 + $0x188] sm:$0xff]  ;;  %v376_v13 = vld [vmem:[%s12714_s26 + $0x98] sm:$0xff]  ;;  %v2442_v0 = vshrl.u32 %v2441_v49, 7  ;;  %p12386_p13 = scmp.ne.s32.totalorder %s15224_s23, %s12385_s21  ;;  %p15296_p4 = scmp.ne.s32.totalorder %s15287_s30, 0 }
  0x81   : > { %v357_v5 = vld [vmem:[%s12714_s26] sm:$0xff]  ;;  %v358_v6 = vld [vmem:[%s12714_s26 + $0x8] sm:$0xff]  ;;  %v10153_v7 = vpack.c.bf16 %v406_v4, %v405_v2  ;;  %v407_v14 = vld [vmem:[%s12714_s26 + $0x190] sm:$0xff]  ;;  %v10125_v16 = vpack.c.bf16 %v376_v13, %v375_v11  ;;  %s12482_s18 = smov [#allocation9]  }
  0x82   : > { %v10123_v8 = vpack.c.bf16 %v358_v6, %v357_v5  ;;  %v389_v9 = vld [vmem:[%s12714_s26 + $0x100] sm:$0xff]  ;;  %v390_v10 = vld [vmem:[%s12714_s26 + $0x108] sm:$0xff]  ;;  %10122 = vmatprep.subr.bf16.mxu0 %v10121_v3  ;;  %v408_v15 = vld [vmem:[%s12714_s26 + $0x198] sm:$0xff]  ;;  %v12766_v13 = vsub.s32 %v2440_v63, %v2442_v0  ;;  %p12387_p7 = pnand %p12386_p13, %p15296_p4  ;;  %s12389_s5 = sshll.u32 %s12482_s18, 4  ;;  %s12390_s5 = int_to_ptr.vmem [resolvable:$false] %s12389_s5 }
  0x83   : > { %v10155_v12 = vpack.c.bf16 %v390_v10, %v389_v9  ;;  %10154 = vmatprep.subr.bf16.mxu1 %v10153_v7  ;;  %v10157_v17 = vpack.c.bf16 %v408_v15, %v407_v14  ;;  %v359_v18 = vld [vmem:[%s12714_s26 + $0x10] sm:$0xff]  ;;  %v360_v19 = vld [vmem:[%s12714_s26 + $0x18] sm:$0xff]  ;;  %v377_v23 = vld [vmem:[%s12714_s26 + $0xa0] sm:$0xff]  ;;  %p12392_p3 = scmp.lt.s32.totalorder %s15224_s23, %s12390_s5 }
  0x84   : > { %10124 = vmatpush3.bf16.msra.mxu0 %v10123_v8  ;;  %v391_v20 = vld [vmem:[%s12714_s26 + $0x110] sm:$0xff]  ;;  %v10127_v21 = vpack.c.bf16 %v360_v19, %v359_v18  ;;  %v392_v22 = vld [vmem:[%s12714_s26 + $0x118] sm:$0xff]  ;;  %v378_v24 = vld [vmem:[%s12714_s26 + $0xa8] sm:$0xff]  ;;  %p12388_p1 = pneg %p12387_p7 }
  0x85   : > { %10156 = vmatpush3.bf16.msra.mxu1 %v10155_v12  ;;  %10126 = vmatprep.subr.bf16.mxu0 %v10125_v16  ;;  %v10159_v25 = vpack.c.bf16 %v392_v22, %v391_v20  ;;  %v10129_v26 = vpack.c.bf16 %v378_v24, %v377_v23  ;;  %v409_v27 = vld [vmem:[%s12714_s26 + $0x1a0] sm:$0xff]  ;;  %v410_v28 = vld [vmem:[%s12714_s26 + $0x1a8] sm:$0xff]  ;;  %v379_v35 = vld [vmem:[%s12714_s26 + $0xb0] sm:$0xff] }
  0x86   : > { %10158 = vmatprep.subr.bf16.mxu1 %v10157_v17  ;;  %v361_v29 = vld [vmem:[%s12714_s26 + $0x20] sm:$0xff]  ;;  %v10161_v30 = vpack.c.bf16 %v410_v28, %v409_v27  ;;  %v362_v31 = vld [vmem:[%s12714_s26 + $0x28] sm:$0xff]  ;;  %v380_v36 = vld [vmem:[%s12714_s26 + $0xb8] sm:$0xff] }
  0x87   : > { %v393_v32 = vld [vmem:[%s12714_s26 + $0x120] sm:$0xff]  ;;  %v394_v33 = vld [vmem:[%s12714_s26 + $0x128] sm:$0xff]  ;;  %v10131_v34 = vpack.c.bf16 %v362_v31, %v361_v29  ;;  %v411_v37 = vld [vmem:[%s12714_s26 + $0x1b0] sm:$0xff]  ;;  %v10133_v39 = vpack.c.bf16 %v380_v36, %v379_v35 }
  0x88   : > { %10128 = vmatpush3.bf16.msra.mxu0 %v10127_v21  ;;  %v10163_v38 = vpack.c.bf16 %v394_v33, %v393_v32  ;;  %v412_v40 = vld [vmem:[%s12714_s26 + $0x1b8] sm:$0xff]  ;;  %v363_v41 = vld [vmem:[%s12714_s26 + $0x30] sm:$0xff]  ;;  %v381_v46 = vld [vmem:[%s12714_s26 + $0xc0] sm:$0xff] }
  0x89   : > { %10160 = vmatpush3.bf16.msra.mxu1 %v10159_v25  ;;  %10130 = vmatprep.subr.bf16.mxu0 %v10129_v26  ;;  %v364_v42 = vld [vmem:[%s12714_s26 + $0x38] sm:$0xff]  ;;  %v10165_v43 = vpack.c.bf16 %v412_v40, %v411_v37  ;;  %v395_v44 = vld [vmem:[%s12714_s26 + $0x130] sm:$0xff]  ;;  %v382_v50 = vld [vmem:[%s12714_s26 + $0xc8] sm:$0xff] }
  0x8a   : > { %10162 = vmatprep.subr.bf16.mxu1 %v10161_v30  ;;  %v396_v45 = vld [vmem:[%s12714_s26 + $0x138] sm:$0xff]  ;;  %v413_v51 = vld [vmem:[%s12714_s26 + $0x1c0] sm:$0xff]  ;;  %v414_v52 = vld [vmem:[%s12714_s26 + $0x1c8] sm:$0xff]  ;;  %v10135_v53 = vpack.c.bf16 %v364_v42, %v363_v41  ;;  %v10137_v55 = vpack.c.bf16 %v382_v50, %v381_v46 }
  0x8b   : > { %v10167_v54 = vpack.c.bf16 %v396_v45, %v395_v44  ;;  %v365_v56 = vld [vmem:[%s12714_s26 + $0x40] sm:$0xff]  ;;  %v366_v57 = vld [vmem:[%s12714_s26 + $0x48] sm:$0xff]  ;;  %v10169_v59 = vpack.c.bf16 %v414_v52, %v413_v51  ;;  %v383_v61 = vld [vmem:[%s12714_s26 + $0xd0] sm:$0xff] }
  0x8c   : > { %10132 = vmatpush3.bf16.msra.mxu0 %v10131_v34  ;;  %v397_v58 = vld [vmem:[%s12714_s26 + $0x140] sm:$0xff]  ;;  %v398_v60 = vld [vmem:[%s12714_s26 + $0x148] sm:$0xff]  ;;  %v384_v62 = vld [vmem:[%s12714_s26 + $0xd8] sm:$0xff]  ;;  %v10139_v3 = vpack.c.bf16 %v366_v57, %v365_v56 }
  0x8d   : > { %10164 = vmatpush3.bf16.msra.mxu1 %v10163_v38  ;;  %10134 = vmatprep.subr.bf16.mxu0 %v10133_v39  ;;  %v415_v1 = vld [vmem:[%s12714_s26 + $0x1d0] sm:$0xff]  ;;  %v416_v2 = vld [vmem:[%s12714_s26 + $0x1d8] sm:$0xff]  ;;  %v10171_v4 = vpack.c.bf16 %v398_v60, %v397_v58  ;;  %v10141_v5 = vpack.c.bf16 %v384_v62, %v383_v61  ;;  %v385_v11 = vld [vmem:[%s12714_s26 + $0xe0] sm:$0xff] }
  0x8e   : > { %10166 = vmatprep.subr.bf16.mxu1 %v10165_v43  ;;  %v367_v6 = vld [vmem:[%s12714_s26 + $0x50] sm:$0xff]  ;;  %v368_v7 = vld [vmem:[%s12714_s26 + $0x58] sm:$0xff]  ;;  %v10173_v9 = vpack.c.bf16 %v416_v2, %v415_v1  ;;  %v386_v12 = vld [vmem:[%s12714_s26 + $0xe8] sm:$0xff] }
  0x8f   : > { %v399_v8 = vld [vmem:[%s12714_s26 + $0x150] sm:$0xff]  ;;  %v400_v10 = vld [vmem:[%s12714_s26 + $0x158] sm:$0xff]  ;;  %v417_v14 = vld [vmem:[%s12714_s26 + $0x1e0] sm:$0xff]  ;;  %v10143_v16 = vpack.c.bf16 %v368_v7, %v367_v6  ;;  %v10145_v19 = vpack.c.bf16 %v386_v12, %v385_v11 }
  0x90   : > { %10136 = vmatpush3.bf16.msra.mxu0 %v10135_v53  ;;  %v418_v15 = vld [vmem:[%s12714_s26 + $0x1e8] sm:$0xff]  ;;  %v369_v17 = vld [vmem:[%s12714_s26 + $0x60] sm:$0xff]  ;;  %v10175_v18 = vpack.c.bf16 %v400_v10, %v399_v8  ;;  %v387_v25 = vld [vmem:[%s12714_s26 + $0xf0] sm:$0xff] }
  0x91   : > { %10168 = vmatpush3.bf16.msra.mxu1 %v10167_v54  ;;  %10138 = vmatprep.subr.bf16.mxu0 %v10137_v55  ;;  %v370_v20 = vld [vmem:[%s12714_s26 + $0x68] sm:$0xff]  ;;  %v401_v21 = vld [vmem:[%s12714_s26 + $0x160] sm:$0xff]  ;;  %v10177_v23 = vpack.c.bf16 %v418_v15, %v417_v14  ;;  %v388_v26 = vld [vmem:[%s12714_s26 + $0xf8] sm:$0xff] }
  0x92   : > { %10170 = vmatprep.subr.bf16.mxu1 %v10169_v59  ;;  %v325_v22 = vld [vmem:[#allocation3] sm:$0xff]  ;;  %v419_v29 = vld [vmem:[%s12714_s26 + $0x1f0] sm:$0xff]  ;;  %v420_v30 = vld [vmem:[%s12714_s26 + $0x1f8] sm:$0xff]  ;;  %v10147_v31 = vpack.c.bf16 %v370_v20, %v369_v17  ;;  %v10149_v35 = vpack.c.bf16 %v388_v26, %v387_v25 }
  0x93   : > { %v402_v24 = vld [vmem:[%s12714_s26 + $0x168] sm:$0xff]  ;;  %v2444_v27 = vrot.slane %v325_v22, %v12766_v13  ;;  %v2437_v28 = vcombine.high %v325_v22, %v325_v22  ;;  %v371_v36 = vld [vmem:[%s12714_s26 + $0x70] sm:$0xff]  ;;  %v372_v37 = vld [vmem:[%s12714_s26 + $0x78] sm:$0xff]  ;;  %v10181_v39 = vpack.c.bf16 %v420_v30, %v419_v29 }
  0x94   : > { %10140 = vmatpush3.bf16.msra.mxu0 %v10139_v3  ;;  %v10179_v34 = vpack.c.bf16 %v402_v24, %v401_v21  ;;  %v403_v38 = vld [vmem:[%s12714_s26 + $0x170] sm:$0xff]  ;;  %v404_v40 = vld [vmem:[%s12714_s26 + $0x178] sm:$0xff]  ;;  %v437_v42 = vld [vmem:[%s12714_s26 + $0x280] sm:$0xff]  ;;  %v10151_v46 = vpack.c.bf16 %v372_v37, %v371_v36 }
  0x95   : > { %10172 = vmatpush3.bf16.msra.mxu1 %v10171_v4  ;;  %10142 = vmatprep.subr.bf16.mxu0 %v10141_v5  ;;  %v2452_v32 = vcombine.high %v2444_v27, %v2444_v27  ;;  %v2451_v33 = vrot.slane %v2437_v28, %v12766_v13  ;;  %v438_v43 = vld [vmem:[%s12714_s26 + $0x288] sm:$0xff]  ;;  %v469_v44 = vld [vmem:[%s12714_s26 + $0x380] sm:$0xff]  ;;  %v10183_v47 = vpack.c.bf16 %v404_v40, %v403_v38  ;;  %v439_v54 = vld [vmem:[%s12714_s26 + $0x290] sm:$0xff] }
  0x96   : > { %10174 = vmatprep.subr.bf16.mxu1 %v10173_v9  ;;  %v470_v45 = vld [vmem:[%s12714_s26 + $0x388] sm:$0xff]  ;;  %v10185_v48 = vpack.c.bf16 %v438_v43, %v437_v42  ;;  %v421_v49 = vld [vmem:[%s12714_s26 + $0x200] sm:$0xff]  ;;  %v440_v55 = vld [vmem:[%s12714_s26 + $0x298] sm:$0xff] }
  0x97   : > { %3173 = vmatprep.mubr.f32.mxu0 %v2452_v32  ;;  %v2453_v41 = vcombine.high %v2451_v33, %v2451_v33  ;;  %v422_v50 = vld [vmem:[%s12714_s26 + $0x208] sm:$0xff]  ;;  %v453_v51 = vld [vmem:[%s12714_s26 + $0x300] sm:$0xff]  ;;  %v10217_v52 = vpack.c.bf16 %v470_v45, %v469_v44  ;;  %v471_v56 = vld [vmem:[%s12714_s26 + $0x390] sm:$0xff]  ;;  %v10189_v60 = vpack.c.bf16 %v440_v55, %v439_v54 }
  0x98   : > { %10144 = vmatpush3.bf16.msra.mxu0 %v10143_v16  ;;  %v454_v53 = vld [vmem:[%s12714_s26 + $0x308] sm:$0xff]  ;;  %v472_v57 = vld [vmem:[%s12714_s26 + $0x398] sm:$0xff]  ;;  %v10187_v58 = vpack.c.bf16 %v422_v50, %v421_v49  ;;  %v423_v61 = vld [vmem:[%s12714_s26 + $0x210] sm:$0xff] }
  0x99   : > { %10176 = vmatpush3.bf16.msra.mxu1 %v10175_v18  ;;  %10146 = vmatprep.subr.bf16.mxu0 %v10145_v19  ;;  %v10219_v59 = vpack.c.bf16 %v454_v53, %v453_v51  ;;  %v424_v62 = vld [vmem:[%s12714_s26 + $0x218] sm:$0xff]  ;;  %v455_v63 = vld [vmem:[%s12714_s26 + $0x310] sm:$0xff]  ;;  %v10221_v0 = vpack.c.bf16 %v472_v57, %v471_v56  ;;  %v441_v2 = vld [vmem:[%s12714_s26 + $0x2a0] sm:$0xff] }
  0x9a   : > { %10178 = vmatprep.subr.bf16.mxu1 %v10177_v23  ;;  %3243 = vmatprep.mubr.f32.mxu1 %v2453_v41  ;;  %v456_v1 = vld [vmem:[%s12714_s26 + $0x318] sm:$0xff]  ;;  %v442_v3 = vld [vmem:[%s12714_s26 + $0x2a8] sm:$0xff]  ;;  %v473_v4 = vld [vmem:[%s12714_s26 + $0x3a0] sm:$0xff]  ;;  %v10191_v6 = vpack.c.bf16 %v424_v62, %v423_v61 }
  0x9b   : > { %v474_v5 = vld [vmem:[%s12714_s26 + $0x3a8] sm:$0xff]  ;;  %v10223_v7 = vpack.c.bf16 %v456_v1, %v455_v63  ;;  %v10193_v8 = vpack.c.bf16 %v442_v3, %v441_v2  ;;  %v425_v9 = vld [vmem:[%s12714_s26 + $0x220] sm:$0xff]  ;;  %v443_v15 = vld [vmem:[%s12714_s26 + $0x2b0] sm:$0xff] }
  0x9c   : > { %10148 = vmatpush3.bf16.msra.mxu0 %v10147_v31  ;;  %v426_v10 = vld [vmem:[%s12714_s26 + $0x228] sm:$0xff]  ;;  %v457_v11 = vld [vmem:[%s12714_s26 + $0x320] sm:$0xff]  ;;  %v10225_v12 = vpack.c.bf16 %v474_v5, %v473_v4  ;;  %v444_v16 = vld [vmem:[%s12714_s26 + $0x2b8] sm:$0xff] }
  0x9d   : > { %10180 = vmatpush3.bf16.msra.mxu1 %v10179_v34  ;;  %10150 = vmatprep.subr.bf16.mxu0 %v10149_v35  ;;  %v458_v14 = vld [vmem:[%s12714_s26 + $0x328] sm:$0xff]  ;;  %v475_v17 = vld [vmem:[%s12714_s26 + $0x3b0] sm:$0xff]  ;;  %v476_v18 = vld [vmem:[%s12714_s26 + $0x3b8] sm:$0xff]  ;;  %v10195_v19 = vpack.c.bf16 %v426_v10, %v425_v9  ;;  %v10197_v21 = vpack.c.bf16 %v444_v16, %v443_v15 }
  0x9e   : > { %10182 = vmatprep.subr.bf16.mxu1 %v10181_v39  ;;  %v10227_v20 = vpack.c.bf16 %v458_v14, %v457_v11  ;;  %v427_v22 = vld [vmem:[%s12714_s26 + $0x230] sm:$0xff]  ;;  %v428_v23 = vld [vmem:[%s12714_s26 + $0x238] sm:$0xff]  ;;  %v10229_v25 = vpack.c.bf16 %v476_v18, %v475_v17  ;;  %v446_v28 = vld [vmem:[%s12714_s26 + $0x2c8] sm:$0xff] }
  0x9f   : > { %v459_v24 = vld [vmem:[%s12714_s26 + $0x330] sm:$0xff]  ;;  %v460_v26 = vld [vmem:[%s12714_s26 + $0x338] sm:$0xff]  ;;  %v477_v29 = vld [vmem:[%s12714_s26 + $0x3c0] sm:$0xff]  ;;  %v10199_v32 = vpack.c.bf16 %v428_v23, %v427_v22 }
  0xa0   : > { %10152 = vmatpush3.bf16.msra.mxu0 %v10151_v46  ;;  %v478_v30 = vld [vmem:[%s12714_s26 + $0x3c8] sm:$0xff]  ;;  %v10231_v35 = vpack.c.bf16 %v460_v26, %v459_v24  ;;  %v429_v37 = vld [vmem:[%s12714_s26 + $0x240] sm:$0xff]  ;;  %v447_v42 = vld [vmem:[%s12714_s26 + $0x2d0] sm:$0xff] }
  0xa1   : > { %10184 = vmatpush3.bf16.msra.mxu1 %v10183_v47  ;;  %10186 = vmatprep.subr.bf16.mxu0 %v10185_v48  ;;  %v326_v31 = vld [vmem:[#allocation3 + $0x8] sm:$0xff]  ;;  %v461_v39 = vld [vmem:[%s12714_s26 + $0x340] sm:$0xff]  ;;  %v10233_v40 = vpack.c.bf16 %v478_v30, %v477_v29  ;;  %v448_v43 = vld [vmem:[%s12714_s26 + $0x2d8] sm:$0xff] }
  0xa2   : > { %10218 = vmatprep.subr.bf16.mxu1 %v10217_v52  ;;  %v2454_v34 = vcombine.high %v326_v31, %v326_v31  ;;  %v430_v38 = vld [vmem:[%s12714_s26 + $0x248] sm:$0xff]  ;;  %v479_v46 = vld [vmem:[%s12714_s26 + $0x3d0] sm:$0xff]  ;;  %v480_v47 = vld [vmem:[%s12714_s26 + $0x3d8] sm:$0xff]  ;;  %v10205_v51 = vpack.c.bf16 %v448_v43, %v447_v42 }
  0xa3   : > { %3174 = vmatmul.mubr.f32.vlgmr.msra.gmra.mrb[0].mxu0 %v2444_v27  ;;  %v445_v27 = vld [vmem:[%s12714_s26 + $0x2c0] sm:$0xff]  ;;  %v462_v41 = vld [vmem:[%s12714_s26 + $0x348] sm:$0xff]  ;;  %v10203_v48 = vpack.c.bf16 %v430_v38, %v429_v37  ;;  %v431_v52 = vld [vmem:[%s12714_s26 + $0x250] sm:$0xff]  ;;  %v10237_v55 = vpack.c.bf16 %v480_v47, %v479_v46 }
  0xa4   : > { %3244 = vmatmul.mubr.f32.vlgmr.msra.gmra.mrb[0].mxu1 %v2451_v33  ;;  %10188 = vmatpush3.bf16.msra.mxu0 %v10187_v58  ;;  %v12821_v33 = vrot.slane %v326_v31, %v12766_v13  ;;  %v10201_v36 = vpack.c.bf16 %v446_v28, %v445_v27  ;;  %v12832_v45 = vrot.slane %v2454_v34, %v12766_v13  ;;  %v432_v53 = vld [vmem:[%s12714_s26 + $0x258] sm:$0xff]  ;;  %v463_v54 = vld [vmem:[%s12714_s26 + $0x350] sm:$0xff]  ;;  %v449_v57 = vld [vmem:[%s12714_s26 + $0x2e0] sm:$0xff] }
  0xa5   : > { %10220 = vmatpush3.bf16.msra.mxu1 %v10219_v59  ;;  %10190 = vmatprep.subr.bf16.mxu0 %v10189_v60  ;;  %v10235_v50 = vpack.c.bf16 %v462_v41, %v461_v39  ;;  %v464_v56 = vld [vmem:[%s12714_s26 + $0x358] sm:$0xff]  ;;  %v450_v58 = vld [vmem:[%s12714_s26 + $0x2e8] sm:$0xff]  ;;  %v481_v59 = vld [vmem:[%s12714_s26 + $0x3e0] sm:$0xff]  ;;  %v10207_v61 = vpack.c.bf16 %v432_v53, %v431_v52 }
  0xa6   : > { %10222 = vmatprep.subr.bf16.mxu1 %v10221_v0  ;;  %v2469_v44 = vcombine.high %v12821_v33, %v12821_v33  ;;  %v2470_v49 = vcombine.high %v12832_v45, %v12832_v45  ;;  %v482_v60 = vld [vmem:[%s12714_s26 + $0x3e8] sm:$0xff]  ;;  %v10239_v62 = vpack.c.bf16 %v464_v56, %v463_v54  ;;  %v10209_v63 = vpack.c.bf16 %v450_v58, %v449_v57  ;;  %v433_v0 = vld [vmem:[%s12714_s26 + $0x260] sm:$0xff]  ;;  %v451_v5 = vld [vmem:[%s12714_s26 + $0x2f0] sm:$0xff] }
  0xa7   : > { %v434_v1 = vld [vmem:[%s12714_s26 + $0x268] sm:$0xff]  ;;  %v465_v2 = vld [vmem:[%s12714_s26 + $0x360] sm:$0xff]  ;;  %v10241_v3 = vpack.c.bf16 %v482_v60, %v481_v59  ;;  %v436_v14 = vld [vmem:[%s12714_s26 + $0x278] sm:$0xff] }
  0xa8   : > { %10192 = vmatpush3.bf16.msra.mxu0 %v10191_v6  ;;  %3313 = vmatprep.mubr.f32.mxu0 %v2469_v44  ;;  %v466_v4 = vld [vmem:[%s12714_s26 + $0x368] sm:$0xff]  ;;  %v452_v6 = vld [vmem:[%s12714_s26 + $0x2f8] sm:$0xff]  ;;  %v10211_v9 = vpack.c.bf16 %v434_v1, %v433_v0  ;;  %v467_v15 = vld [vmem:[%s12714_s26 + $0x370] sm:$0xff] }
  0xa9   : > { %10224 = vmatpush3.bf16.msra.mxu1 %v10223_v7  ;;  %10194 = vmatprep.subr.bf16.mxu0 %v10193_v8  ;;  %v483_v7 = vld [vmem:[%s12714_s26 + $0x3f0] sm:$0xff]  ;;  %v484_v8 = vld [vmem:[%s12714_s26 + $0x3f8] sm:$0xff]  ;;  %v10243_v10 = vpack.c.bf16 %v466_v4, %v465_v2  ;;  %v10213_v11 = vpack.c.bf16 %v452_v6, %v451_v5  ;;  %v501_v18 = vld [vmem:[%s12714_s26 + $0x480] sm:$0xff] }
  0xaa   : > { %10226 = vmatprep.subr.bf16.mxu1 %v10225_v12  ;;  %3383 = vmatprep.mubr.f32.mxu1 %v2470_v49  ;;  %v435_v12 = vld [vmem:[%s12714_s26 + $0x270] sm:$0xff]  ;;  %v10245_v16 = vpack.c.bf16 %v484_v8, %v483_v7  ;;  %v468_v17 = vld [vmem:[%s12714_s26 + $0x378] sm:$0xff]  ;;  %v485_v23 = vld [vmem:[%s12714_s26 + $0x400] sm:$0xff] }
  0xab   : > { %v10215_v22 = vpack.c.bf16 %v436_v14, %v435_v12  ;;  %v10247_v24 = vpack.c.bf16 %v468_v17, %v467_v15  ;;  %v486_v26 = vld [vmem:[%s12714_s26 + $0x408] sm:$0xff]  ;;  %v517_v27 = vld [vmem:[%s12714_s26 + $0x500] sm:$0xff]  ;;  %v503_v30 = vld [vmem:[%s12714_s26 + $0x490] sm:$0xff] }
  0xac   : > { %10196 = vmatpush3.bf16.msra.mxu0 %v10195_v19  ;;  %v502_v19 = vld [vmem:[%s12714_s26 + $0x488] sm:$0xff]  ;;  %v504_v31 = vld [vmem:[%s12714_s26 + $0x498] sm:$0xff]  ;;  %v487_v39 = vld [vmem:[%s12714_s26 + $0x410] sm:$0xff] }
  0xad   : > { %10228 = vmatpush3.bf16.msra.mxu1 %v10227_v20  ;;  %10198 = vmatprep.subr.bf16.mxu0 %v10197_v21  ;;  %v533_v20 = vld [vmem:[%s12714_s26 + $0x580] sm:$0xff]  ;;  %v534_v21 = vld [vmem:[%s12714_s26 + $0x588] sm:$0xff]  ;;  %v536_v34 = vld [vmem:[%s12714_s26 + $0x598] sm:$0xff]  ;;  %v10253_v38 = vpack.c.bf16 %v504_v31, %v503_v30 }
  0xae   : > { %10230 = vmatprep.subr.bf16.mxu1 %v10229_v25  ;;  %v10249_v25 = vpack.c.bf16 %v502_v19, %v501_v18  ;;  %v518_v28 = vld [vmem:[%s12714_s26 + $0x508] sm:$0xff]  ;;  %v10281_v29 = vpack.c.bf16 %v534_v21, %v533_v20  ;;  %v327_v37 = vld [vmem:[#allocation3 + $0x10] sm:$0xff]  ;;  %v505_v47 = vld [vmem:[%s12714_s26 + $0x4a0] sm:$0xff] }
  0xaf   : > { %v519_v41 = vld [vmem:[%s12714_s26 + $0x510] sm:$0xff]  ;;  %v12874_v42 = vrot.slane %v327_v37, %v12766_v13  ;;  %v2471_v43 = vcombine.high %v327_v37, %v327_v37  ;;  %v520_v46 = vld [vmem:[%s12714_s26 + $0x518] sm:$0xff]  ;;  %v537_v49 = vld [vmem:[%s12714_s26 + $0x5a0] sm:$0xff] }
  0xb0   : > { %10200 = vmatpush3.bf16.msra.mxu0 %v10199_v32  ;;  %v535_v32 = vld [vmem:[%s12714_s26 + $0x590] sm:$0xff]  ;;  %v490_v56 = vld [vmem:[%s12714_s26 + $0x428] sm:$0xff]  ;;  %v521_v57 = vld [vmem:[%s12714_s26 + $0x520] sm:$0xff] }
  0xb1   : > { %10232 = vmatpush3.bf16.msra.mxu1 %v10231_v35  ;;  %10202 = vmatprep.subr.bf16.mxu0 %v10201_v36  ;;  %v10251_v35 = vpack.c.bf16 %v486_v26, %v485_v23  ;;  %v10283_v36 = vpack.c.bf16 %v518_v28, %v517_v27  ;;  %v10285_v44 = vpack.c.bf16 %v536_v34, %v535_v32  ;;  %v522_v60 = vld [vmem:[%s12714_s26 + $0x528] sm:$0xff]  ;;  %v492_v4 = vld [vmem:[%s12714_s26 + $0x438] sm:$0xff]  ;;  %v523_v5 = vld [vmem:[%s12714_s26 + $0x530] sm:$0xff] }
  0xb2   : > { %10234 = vmatprep.subr.bf16.mxu1 %v10233_v40  ;;  %v488_v40 = vld [vmem:[%s12714_s26 + $0x418] sm:$0xff]  ;;  %v12885_v52 = vrot.slane %v2471_v43, %v12766_v13  ;;  %v10291_v1 = vpack.c.bf16 %v522_v60, %v521_v57  ;;  %v509_v8 = vld [vmem:[%s12714_s26 + $0x4c0] sm:$0xff]  ;;  %v494_v17 = vld [vmem:[%s12714_s26 + $0x448] sm:$0xff] }
  0xb3   : > { %v10255_v53 = vpack.c.bf16 %v488_v40, %v487_v39  ;;  %v524_v7 = vld [vmem:[%s12714_s26 + $0x538] sm:$0xff]  ;;  %v525_v18 = vld [vmem:[%s12714_s26 + $0x540] sm:$0xff]  ;;  %v526_v20 = vld [vmem:[%s12714_s26 + $0x548] sm:$0xff] }
  0xb4   : > { %10204 = vmatpush3.bf16.msra.mxu0 %v10203_v48  ;;  %v506_v48 = vld [vmem:[%s12714_s26 + $0x4a8] sm:$0xff]  ;;  %v2487_v58 = vcombine.high %v12885_v52, %v12885_v52  ;;  %v10295_v14 = vpack.c.bf16 %v524_v7, %v523_v5  ;;  %v511_v21 = vld [vmem:[%s12714_s26 + $0x4d0] sm:$0xff]  ;;  %v10299_v26 = vpack.c.bf16 %v526_v20, %v525_v18  ;;  %v528_v32 = vld [vmem:[%s12714_s26 + $0x558] sm:$0xff] }
  0xb5   : > { %10236 = vmatpush3.bf16.msra.mxu1 %v10235_v50  ;;  %10206 = vmatprep.subr.bf16.mxu0 %v10205_v51  ;;  %v538_v50 = vld [vmem:[%s12714_s26 + $0x5a8] sm:$0xff]  ;;  %v2486_v51 = vcombine.high %v12874_v42, %v12874_v42  ;;  %v10257_v54 = vpack.c.bf16 %v506_v48, %v505_v47  ;;  %v543_v23 = vld [vmem:[%s12714_s26 + $0x5d0] sm:$0xff]  ;;  %v513_v34 = vld [vmem:[%s12714_s26 + $0x4e0] sm:$0xff] }
  0xb6   : > { %10238 = vmatprep.subr.bf16.mxu1 %v10237_v55  ;;  %v489_v55 = vld [vmem:[%s12714_s26 + $0x420] sm:$0xff]  ;;  %v10289_v59 = vpack.c.bf16 %v538_v50, %v537_v49  ;;  %v495_v28 = vld [vmem:[%s12714_s26 + $0x450] sm:$0xff]  ;;  %v546_v37 = vld [vmem:[%s12714_s26 + $0x5e8] sm:$0xff] }
  0xb7   : > { %v10259_v0 = vpack.c.bf16 %v490_v56, %v489_v55  ;;  %v527_v30 = vld [vmem:[%s12714_s26 + $0x550] sm:$0xff]  ;;  %v498_v43 = vld [vmem:[%s12714_s26 + $0x468] sm:$0xff]  ;;  %v516_v49 = vld [vmem:[%s12714_s26 + $0x4f8] sm:$0xff] }
  0xb8   : > { %10208 = vmatpush3.bf16.msra.mxu0 %v10207_v61  ;;  %v508_v61 = vld [vmem:[%s12714_s26 + $0x4b8] sm:$0xff]  ;;  %v10303_v39 = vpack.c.bf16 %v528_v32, %v527_v30  ;;  %v530_v47 = vld [vmem:[%s12714_s26 + $0x568] sm:$0xff]  ;;  %v515_v48 = vld [vmem:[%s12714_s26 + $0x4f0] sm:$0xff] }
  0xb9   : > { %10240 = vmatpush3.bf16.msra.mxu1 %v10239_v62  ;;  %10210 = vmatprep.subr.bf16.mxu0 %v10209_v63  ;;  %v539_v62 = vld [vmem:[%s12714_s26 + $0x5b0] sm:$0xff]  ;;  %v540_v63 = vld [vmem:[%s12714_s26 + $0x5b8] sm:$0xff]  ;;  %v10277_v55 = vpack.c.bf16 %v516_v49, %v515_v48  ;;  %v550_v5 = vld [vmem:[%s12714_s26 + $0x608] sm:$0xff] }
  0xba   : > { %10242 = vmatprep.subr.bf16.mxu1 %v10241_v3  ;;  %v491_v3 = vld [vmem:[%s12714_s26 + $0x430] sm:$0xff]  ;;  %v10293_v6 = vpack.c.bf16 %v540_v63, %v539_v62  ;;  %v500_v57 = vld [vmem:[%s12714_s26 + $0x478] sm:$0xff]  ;;  %v597_v62 = vld [vmem:[%s12714_s26 + $0x780] sm:$0xff] }
  0xbb   : > { %v10263_v12 = vpack.c.bf16 %v492_v4, %v491_v3  ;;  %v547_v50 = vld [vmem:[%s12714_s26 + $0x5f0] sm:$0xff]  ;;  %v532_v60 = vld [vmem:[%s12714_s26 + $0x578] sm:$0xff]  ;;  %v598_v63 = vld [vmem:[%s12714_s26 + $0x788] sm:$0xff] }
  0xbc   : > { %10212 = vmatpush3.bf16.msra.mxu0 %v10211_v9  ;;  %v510_v9 = vld [vmem:[%s12714_s26 + $0x4c8] sm:$0xff]  ;;  %v499_v56 = vld [vmem:[%s12714_s26 + $0x470] sm:$0xff]  ;;  %v549_v4 = vld [vmem:[%s12714_s26 + $0x600] sm:$0xff]  ;;  %v10345_v7 = vpack.c.bf16 %v598_v63, %v597_v62 }
  0xbd   : > { %10244 = vmatpush3.bf16.msra.mxu1 %v10243_v10  ;;  %10214 = vmatprep.subr.bf16.mxu0 %v10213_v11  ;;  %v541_v10 = vld [vmem:[%s12714_s26 + $0x5c0] sm:$0xff]  ;;  %v542_v11 = vld [vmem:[%s12714_s26 + $0x5c8] sm:$0xff]  ;;  %v10265_v15 = vpack.c.bf16 %v510_v9, %v509_v8  ;;  %v567_v9 = vld [vmem:[%s12714_s26 + $0x690] sm:$0xff] }
  0xbe   : > { %10246 = vmatprep.subr.bf16.mxu1 %v10245_v16  ;;  %v493_v16 = vld [vmem:[%s12714_s26 + $0x440] sm:$0xff]  ;;  %v10297_v19 = vpack.c.bf16 %v542_v11, %v541_v10  ;;  %v582_v8 = vld [vmem:[%s12714_s26 + $0x708] sm:$0xff]  ;;  %v568_v10 = vld [vmem:[%s12714_s26 + $0x698] sm:$0xff] }
  0xbf   : > { %v10317_v18 = vpack.c.bf16 %v568_v10, %v567_v9  ;;  %v552_v20 = vld [vmem:[%s12714_s26 + $0x618] sm:$0xff]  ;;  %v587_v48 = vld [vmem:[%s12714_s26 + $0x730] sm:$0xff]  ;;  %v577_v10 = vld [vmem:[%s12714_s26 + $0x6e0] sm:$0xff] }
  0xc0   : > { %10216 = vmatpush3.bf16.msra.mxu0 %v10215_v22  ;;  %v512_v22 = vld [vmem:[%s12714_s26 + $0x4d8] sm:$0xff]  ;;  %v575_v62 = vld [vmem:[%s12714_s26 + $0x6d0] sm:$0xff] }
  0xc1   : > { %10248 = vmatpush3.bf16.msra.mxu1 %v10247_v24  ;;  %10250 = vmatprep.subr.bf16.mxu0 %v10249_v25  ;;  %v544_v24 = vld [vmem:[%s12714_s26 + $0x5d8] sm:$0xff]  ;;  %v10267_v25 = vpack.c.bf16 %v494_v17, %v493_v16  ;;  %v10269_v27 = vpack.c.bf16 %v512_v22, %v511_v21  ;;  %v10315_v16 = vpack.c.bf16 %v550_v5, %v549_v4  ;;  %v583_v21 = vld [vmem:[%s12714_s26 + $0x710] sm:$0xff] }
  0xc2   : > { %10282 = vmatprep.subr.bf16.mxu1 %v10281_v29  ;;  %v496_v29 = vld [vmem:[%s12714_s26 + $0x458] sm:$0xff]  ;;  %v10301_v31 = vpack.c.bf16 %v544_v24, %v543_v23  ;;  %v569_v24 = vld [vmem:[%s12714_s26 + $0x6a0] sm:$0xff]  ;;  %v559_v5 = vld [vmem:[%s12714_s26 + $0x650] sm:$0xff] }
  0xc3   : > { %3314 = vmatmul.mubr.f32.vlgmr.msra.gmra.mrb[2].mxu0 %v12821_v33  ;;  %v10287_v33 = vpack.c.bf16 %v520_v46, %v519_v41  ;;  %v497_v41 = vld [vmem:[%s12714_s26 + $0x460] sm:$0xff]  ;;  %v584_v23 = vld [vmem:[%s12714_s26 + $0x718] sm:$0xff] }
  0xc4   : > { %10252 = vmatpush3.bf16.msra.mxu0 %v10251_v35  ;;  %3384 = vmatmul.mubr.f32.vlgmr.msra.gmra.mrb[2].mxu1 %v12832_v45  ;;  %v507_v45 = vld [vmem:[%s12714_s26 + $0x4b0] sm:$0xff]  ;;  %v514_v35 = vld [vmem:[%s12714_s26 + $0x4e8] sm:$0xff]  ;;  %v576_v63 = vld [vmem:[%s12714_s26 + $0x6d8] sm:$0xff] }
  0xc5   : > { %10284 = vmatpush3.bf16.msra.mxu1 %v10283_v36  ;;  %10254 = vmatprep.subr.bf16.mxu0 %v10253_v38  ;;  %v10261_v2 = vpack.c.bf16 %v508_v61, %v507_v45  ;;  %v545_v36 = vld [vmem:[%s12714_s26 + $0x5e0] sm:$0xff]  ;;  %v10271_v38 = vpack.c.bf16 %v496_v29, %v495_v28  ;;  %v10273_v40 = vpack.c.bf16 %v514_v35, %v513_v34  ;;  %v566_v61 = vld [vmem:[%s12714_s26 + $0x688] sm:$0xff]  ;;  %v592_v9 = vld [vmem:[%s12714_s26 + $0x758] sm:$0xff] }
  0xc6   : > { %10286 = vmatprep.subr.bf16.mxu1 %v10285_v44  ;;  %3453 = vmatprep.mubr.f32.mxu0 %v2486_v51  ;;  %v529_v44 = vld [vmem:[%s12714_s26 + $0x560] sm:$0xff]  ;;  %v10305_v46 = vpack.c.bf16 %v546_v37, %v545_v36  ;;  %v548_v51 = vld [vmem:[%s12714_s26 + $0x5f8] sm:$0xff]  ;;  %v602_v28 = vld [vmem:[%s12714_s26 + $0x7a8] sm:$0xff]  ;;  %v10333_v4 = vpack.c.bf16 %v576_v63, %v575_v62 }
  0xc7   : > { %3523 = vmatprep.mubr.f32.mxu1 %v2487_v58  ;;  %v531_v58 = vld [vmem:[%s12714_s26 + $0x570] sm:$0xff]  ;;  %v565_v45 = vld [vmem:[%s12714_s26 + $0x680] sm:$0xff]  ;;  %v586_v37 = vld [vmem:[%s12714_s26 + $0x728] sm:$0xff] }
  0xc8   : > { %10256 = vmatpush3.bf16.msra.mxu0 %v10255_v53  ;;  %v10275_v53 = vpack.c.bf16 %v498_v43, %v497_v41  ;;  %v10313_v3 = vpack.c.bf16 %v566_v61, %v565_v45  ;;  %v553_v34 = vld [vmem:[%s12714_s26 + $0x620] sm:$0xff]  ;;  %v590_v61 = vld [vmem:[%s12714_s26 + $0x748] sm:$0xff]  ;;  %v647_v62 = vld [vmem:[%s12714_s26 + $0x910] sm:$0xff] }
  0xc9   : > { %10288 = vmatpush3.bf16.msra.mxu1 %v10287_v33  ;;  %10258 = vmatprep.subr.bf16.mxu0 %v10257_v54  ;;  %v328_v33 = vld [vmem:[#allocation3 + $0x18] sm:$0xff]  ;;  %v10307_v54 = vpack.c.bf16 %v530_v47, %v529_v44 }
  0xca   : > { %10290 = vmatprep.subr.bf16.mxu1 %v10289_v59  ;;  %v10309_v59 = vpack.c.bf16 %v548_v51, %v547_v50  ;;  %v12945_v11 = vrot.slane %v328_v33, %v12766_v13  ;;  %v585_v35 = vld [vmem:[%s12714_s26 + $0x720] sm:$0xff]  ;;  %v556_v47 = vld [vmem:[%s12714_s26 + $0x638] sm:$0xff] }
  0xcb   : > { %v10355_v43 = vpack.c.bf16 %v586_v37, %v585_v35  ;;  %v588_v50 = vld [vmem:[%s12714_s26 + $0x738] sm:$0xff]  ;;  %v573_v51 = vld [vmem:[%s12714_s26 + $0x6c0] sm:$0xff]  ;;  %v595_v35 = vld [vmem:[%s12714_s26 + $0x770] sm:$0xff] }
  0xcc   : > { %10260 = vmatpush3.bf16.msra.mxu0 %v10259_v0  ;;  %v2488_v0 = vcombine.high %v328_v33, %v328_v33  ;;  %v605_v33 = vld [vmem:[%s12714_s26 + $0x7c0] sm:$0xff]  ;;  %v596_v37 = vld [vmem:[%s12714_s26 + $0x778] sm:$0xff] }
  0xcd   : > { %10292 = vmatpush3.bf16.msra.mxu1 %v10291_v1  ;;  %10262 = vmatprep.subr.bf16.mxu0 %v10261_v2  ;;  %v10279_v1 = vpack.c.bf16 %v500_v57, %v499_v56  ;;  %v10311_v2 = vpack.c.bf16 %v532_v60, %v531_v58  ;;  %v10359_v56 = vpack.c.bf16 %v588_v50, %v587_v48  ;;  %v557_v58 = vld [vmem:[%s12714_s26 + $0x640] sm:$0xff]  ;;  %v614_v48 = vld [vmem:[%s12714_s26 + $0x808] sm:$0xff] }
  0xce   : > { %10294 = vmatprep.subr.bf16.mxu1 %v10293_v6  ;;  %v581_v6 = vld [vmem:[%s12714_s26 + $0x700] sm:$0xff] }
  0xcf   : > { %v10347_v17 = vpack.c.bf16 %v582_v8, %v581_v6  ;;  %v589_v60 = vld [vmem:[%s12714_s26 + $0x740] sm:$0xff]  ;;  %v560_v6 = vld [vmem:[%s12714_s26 + $0x658] sm:$0xff] }
  0xd0   : > { %10264 = vmatpush3.bf16.msra.mxu0 %v10263_v12  ;;  %v599_v12 = vld [vmem:[%s12714_s26 + $0x790] sm:$0xff] }
  0xd1   : > { %10296 = vmatpush3.bf16.msra.mxu1 %v10295_v14  ;;  %10266 = vmatprep.subr.bf16.mxu0 %v10265_v15  ;;  %v600_v14 = vld [vmem:[%s12714_s26 + $0x798] sm:$0xff]  ;;  %v12950_v15 = vrot.slane %v2488_v0, %v12766_v13  ;;  %v607_v0 = vld [vmem:[%s12714_s26 + $0x7d0] sm:$0xff] }
  0xd2   : > { %10298 = vmatprep.subr.bf16.mxu1 %v10297_v19  ;;  %v551_v19 = vld [vmem:[%s12714_s26 + $0x610] sm:$0xff]  ;;  %v10349_v22 = vpack.c.bf16 %v600_v14, %v599_v12  ;;  %v578_v12 = vld [vmem:[%s12714_s26 + $0x6e8] sm:$0xff]  ;;  %v609_v14 = vld [vmem:[%s12714_s26 + $0x7e0] sm:$0xff] }
  0xd3   : > { %v2504_v29 = vcombine.high %v12950_v15, %v12950_v15  ;;  %v10319_v30 = vpack.c.bf16 %v552_v20, %v551_v19  ;;  %v10337_v19 = vpack.c.bf16 %v578_v12, %v577_v10  ;;  %v561_v20 = vld [vmem:[%s12714_s26 + $0x660] sm:$0xff] }
  0xd4   : > { %10268 = vmatpush3.bf16.msra.mxu0 %v10267_v25  ;;  %v570_v25 = vld [vmem:[%s12714_s26 + $0x6a8] sm:$0xff]  ;;  %v617_v10 = vld [vmem:[%s12714_s26 + $0x820] sm:$0xff] }
  0xd5   : > { %10300 = vmatpush3.bf16.msra.mxu1 %v10299_v26  ;;  %10270 = vmatprep.subr.bf16.mxu0 %v10269_v27  ;;  %v2503_v26 = vcombine.high %v12945_v11, %v12945_v11  ;;  %v601_v27 = vld [vmem:[%s12714_s26 + $0x7a0] sm:$0xff]  ;;  %v10321_v32 = vpack.c.bf16 %v570_v25, %v569_v24  ;;  %v594_v24 = vld [vmem:[%s12714_s26 + $0x768] sm:$0xff]  ;;  %v579_v25 = vld [vmem:[%s12714_s26 + $0x6f0] sm:$0xff] }
  0xd6   : > { %10302 = vmatprep.subr.bf16.mxu1 %v10301_v31  ;;  %v10351_v31 = vpack.c.bf16 %v584_v23, %v583_v21  ;;  %v10353_v36 = vpack.c.bf16 %v602_v28, %v601_v27  ;;  %v562_v21 = vld [vmem:[%s12714_s26 + $0x668] sm:$0xff]  ;;  %v611_v27 = vld [vmem:[%s12714_s26 + $0x7f0] sm:$0xff]  ;;  %v612_v28 = vld [vmem:[%s12714_s26 + $0x7f8] sm:$0xff] }
  0xd7   : > { %v649_v12 = vld [vmem:[%s12714_s26 + $0x920] sm:$0xff] }
  0xd8   : > { %10272 = vmatpush3.bf16.msra.mxu0 %v10271_v38  ;;  %v571_v38 = vld [vmem:[%s12714_s26 + $0x6b0] sm:$0xff] }
  0xd9   : > { %10304 = vmatpush3.bf16.msra.mxu1 %v10303_v39  ;;  %10274 = vmatprep.subr.bf16.mxu0 %v10273_v40  ;;  %v572_v39 = vld [vmem:[%s12714_s26 + $0x6b8] sm:$0xff] }
  0xda   : > { %10306 = vmatprep.subr.bf16.mxu1 %v10305_v46  ;;  %v604_v40 = vld [vmem:[%s12714_s26 + $0x7b8] sm:$0xff]  ;;  %v10325_v44 = vpack.c.bf16 %v572_v39, %v571_v38  ;;  %v555_v46 = vld [vmem:[%s12714_s26 + $0x630] sm:$0xff]  ;;  %v629_v38 = vld [vmem:[%s12714_s26 + $0x880] sm:$0xff] }
  0xdb   : > { %v630_v39 = vld [vmem:[%s12714_s26 + $0x888] sm:$0xff] }
  0xdc   : > { %10276 = vmatpush3.bf16.msra.mxu0 %v10275_v53  ;;  %v574_v53 = vld [vmem:[%s12714_s26 + $0x6c8] sm:$0xff] }
  0xdd   : > { %10308 = vmatpush3.bf16.msra.mxu1 %v10307_v54  ;;  %10278 = vmatprep.subr.bf16.mxu0 %v10277_v55  ;;  %v606_v54 = vld [vmem:[%s12714_s26 + $0x7c8] sm:$0xff]  ;;  %v10327_v55 = vpack.c.bf16 %v556_v47, %v555_v46  ;;  %v10329_v57 = vpack.c.bf16 %v574_v53, %v573_v51  ;;  %v10377_v46 = vpack.c.bf16 %v630_v39, %v629_v38  ;;  %v613_v47 = vld [vmem:[%s12714_s26 + $0x800] sm:$0xff]  ;;  %v631_v53 = vld [vmem:[%s12714_s26 + $0x890] sm:$0xff] }
  0xde   : > { %10310 = vmatprep.subr.bf16.mxu1 %v10309_v59  ;;  %v558_v59 = vld [vmem:[%s12714_s26 + $0x648] sm:$0xff]  ;;  %v10361_v45 = vpack.c.bf16 %v606_v54, %v605_v33  ;;  %v632_v33 = vld [vmem:[%s12714_s26 + $0x898] sm:$0xff] }
  0xdf   : > { %v646_v51 = vld [vmem:[%s12714_s26 + $0x908] sm:$0xff] }
  0xe0   : > { %10280 = vmatpush3.bf16.msra.mxu0 %v10279_v1  ;;  %v608_v1 = vld [vmem:[%s12714_s26 + $0x7d8] sm:$0xff]  ;;  %v654_v39 = vld [vmem:[%s12714_s26 + $0x948] sm:$0xff] }
  0xe1   : > { %10312 = vmatpush3.bf16.msra.mxu1 %v10311_v2  ;;  %10314 = vmatprep.subr.bf16.mxu0 %v10313_v3  ;;  %v10331_v2 = vpack.c.bf16 %v558_v59, %v557_v58  ;;  %v10363_v3 = vpack.c.bf16 %v590_v61, %v589_v60  ;;  %v10365_v8 = vpack.c.bf16 %v608_v1, %v607_v0  ;;  %v616_v61 = vld [vmem:[%s12714_s26 + $0x818] sm:$0xff]  ;;  %v633_v1 = vld [vmem:[%s12714_s26 + $0x8a0] sm:$0xff] }
  0xe2   : > { %10346 = vmatprep.subr.bf16.mxu1 %v10345_v7  ;;  %v591_v7 = vld [vmem:[%s12714_s26 + $0x750] sm:$0xff]  ;;  %v10379_v58 = vpack.c.bf16 %v614_v48, %v613_v47  ;;  %v10381_v60 = vpack.c.bf16 %v632_v33, %v631_v53  ;;  %v648_v0 = vld [vmem:[%s12714_s26 + $0x918] sm:$0xff]  ;;  %v641_v33 = vld [vmem:[%s12714_s26 + $0x8e0] sm:$0xff] }
  0xe3   : > { %3454 = vmatmul.mubr.f32.vlgmr.msra.gmra.mrb[4].mxu0 %v12874_v42  ;;  %v554_v42 = vld [vmem:[%s12714_s26 + $0x628] sm:$0xff]  ;;  %v623_v48 = vld [vmem:[%s12714_s26 + $0x850] sm:$0xff]  ;;  %v656_v53 = vld [vmem:[%s12714_s26 + $0x958] sm:$0xff] }
  0xe4   : > { %10316 = vmatpush3.bf16.msra.mxu0 %v10315_v16  ;;  %3524 = vmatmul.mubr.f32.vlgmr.msra.gmra.mrb[4].mxu1 %v12885_v52  ;;  %v603_v52 = vld [vmem:[%s12714_s26 + $0x7b0] sm:$0xff]  ;;  %v10323_v41 = vpack.c.bf16 %v554_v42, %v553_v34  ;;  %v610_v16 = vld [vmem:[%s12714_s26 + $0x7e8] sm:$0xff]  ;;  %v564_v42 = vld [vmem:[%s12714_s26 + $0x678] sm:$0xff] }
  0xe5   : > { %10348 = vmatpush3.bf16.msra.mxu1 %v10347_v17  ;;  %10318 = vmatprep.subr.bf16.mxu0 %v10317_v18  ;;  %v10357_v49 = vpack.c.bf16 %v604_v40, %v603_v52  ;;  %v10335_v17 = vpack.c.bf16 %v560_v6, %v559_v5  ;;  %v10367_v18 = vpack.c.bf16 %v592_v9, %v591_v7  ;;  %v563_v34 = vld [vmem:[%s12714_s26 + $0x670] sm:$0xff]  ;;  %v661_v52 = vld [vmem:[%s12714_s26 + $0x980] sm:$0xff]  ;;  %v662_v40 = vld [vmem:[%s12714_s26 + $0x988] sm:$0xff] }
  0xe6   : > { %10350 = vmatprep.subr.bf16.mxu1 %v10349_v22  ;;  %3593 = vmatprep.mubr.f32.mxu0 %v2503_v26  ;;  %v593_v22 = vld [vmem:[%s12714_s26 + $0x760] sm:$0xff]  ;;  %v10369_v23 = vpack.c.bf16 %v610_v16, %v609_v14  ;;  %v580_v26 = vld [vmem:[%s12714_s26 + $0x6f8] sm:$0xff]  ;;  %v10409_v50 = vpack.c.bf16 %v662_v40, %v661_v52  ;;  %v666_v5 = vld [vmem:[%s12714_s26 + $0x9a8] sm:$0xff] }
  0xe7   : > { %3663 = vmatprep.mubr.f32.mxu1 %v2504_v29  ;;  %v10339_v29 = vpack.c.bf16 %v562_v21, %v561_v20  ;;  %v650_v16 = vld [vmem:[%s12714_s26 + $0x928] sm:$0xff]  ;;  %v639_v52 = vld [vmem:[%s12714_s26 + $0x8d0] sm:$0xff]  ;;  %v640_v40 = vld [vmem:[%s12714_s26 + $0x8d8] sm:$0xff] }
  0xe8   : > { %10320 = vmatpush3.bf16.msra.mxu0 %v10319_v30  ;;  %v329_v30 = vld [vmem:[#allocation3 + $0x20] sm:$0xff]  ;;  %v10419_v21 = vpack.c.bf16 %v650_v16, %v649_v12  ;;  %v10397_v47 = vpack.c.bf16 %v640_v40, %v639_v52  ;;  %v659_v12 = vld [vmem:[%s12714_s26 + $0x970] sm:$0xff]  ;;  %v660_v16 = vld [vmem:[%s12714_s26 + $0x978] sm:$0xff] }
  0xe9   : > { %10352 = vmatpush3.bf16.msra.mxu1 %v10351_v31  ;;  %10322 = vmatprep.subr.bf16.mxu0 %v10321_v32  ;;  %v10371_v31 = vpack.c.bf16 %v594_v24, %v593_v22  ;;  %v10341_v32 = vpack.c.bf16 %v580_v26, %v579_v25  ;;  %v13021_v54 = vrot.slane %v329_v30, %v12766_v13  ;;  %v620_v24 = vld [vmem:[%s12714_s26 + $0x838] sm:$0xff]  ;;  %v651_v25 = vld [vmem:[%s12714_s26 + $0x930] sm:$0xff] }
  0xea   : > { %10354 = vmatprep.subr.bf16.mxu1 %v10353_v36  ;;  %v10373_v36 = vpack.c.bf16 %v612_v28, %v611_v27  ;;  %v652_v27 = vld [vmem:[%s12714_s26 + $0x938] sm:$0xff]  ;;  %v637_v28 = vld [vmem:[%s12714_s26 + $0x8c0] sm:$0xff]  ;;  %v711_v52 = vld [vmem:[%s12714_s26 + $0xb10] sm:$0xff] }
  0xec   : > { %10324 = vmatpush3.bf16.msra.mxu0 %v10323_v41  ;;  %v2505_v41 = vcombine.high %v329_v30, %v329_v30  ;;  %v669_v30 = vld [vmem:[%s12714_s26 + $0x9c0] sm:$0xff] }
  0xed   : > { %10356 = vmatpush3.bf16.msra.mxu1 %v10355_v43  ;;  %10326 = vmatprep.subr.bf16.mxu0 %v10325_v44  ;;  %v10343_v43 = vpack.c.bf16 %v564_v42, %v563_v34  ;;  %v10375_v44 = vpack.c.bf16 %v596_v37, %v595_v35  ;;  %v10423_v34 = vpack.c.bf16 %v652_v27, %v651_v25  ;;  %v621_v35 = vld [vmem:[%s12714_s26 + $0x840] sm:$0xff]  ;;  %v678_v25 = vld [vmem:[%s12714_s26 + $0xa08] sm:$0xff] }
  0xee   : > { %10358 = vmatprep.subr.bf16.mxu1 %v10357_v49  ;;  %v645_v49 = vld [vmem:[%s12714_s26 + $0x900] sm:$0xff] }
  0xef   : > { %v10411_v59 = vpack.c.bf16 %v646_v51, %v645_v49  ;;  %v653_v37 = vld [vmem:[%s12714_s26 + $0x940] sm:$0xff]  ;;  %v624_v49 = vld [vmem:[%s12714_s26 + $0x858] sm:$0xff] }
  0xf0   : > { %10328 = vmatpush3.bf16.msra.mxu0 %v10327_v55  ;;  %v663_v55 = vld [vmem:[%s12714_s26 + $0x990] sm:$0xff] }
  0xf1   : > { %10360 = vmatpush3.bf16.msra.mxu1 %v10359_v56  ;;  %10330 = vmatprep.subr.bf16.mxu0 %v10329_v57  ;;  %v664_v56 = vld [vmem:[%s12714_s26 + $0x998] sm:$0xff]  ;;  %v13026_v57 = vrot.slane %v2505_v41, %v12766_v13  ;;  %v671_v41 = vld [vmem:[%s12714_s26 + $0x9d0] sm:$0xff] }
  0xf2   : > { %10362 = vmatprep.subr.bf16.mxu1 %v10361_v45  ;;  %v615_v45 = vld [vmem:[%s12714_s26 + $0x810] sm:$0xff]  ;;  %v10413_v63 = vpack.c.bf16 %v664_v56, %v663_v55  ;;  %v642_v55 = vld [vmem:[%s12714_s26 + $0x8e8] sm:$0xff]  ;;  %v673_v56 = vld [vmem:[%s12714_s26 + $0x9e0] sm:$0xff] }
  0xf3   : > { %v2521_v6 = vcombine.high %v13026_v57, %v13026_v57  ;;  %v10383_v7 = vpack.c.bf16 %v616_v61, %v615_v45  ;;  %v10401_v45 = vpack.c.bf16 %v642_v55, %v641_v33  ;;  %v625_v61 = vld [vmem:[%s12714_s26 + $0x860] sm:$0xff] }
  0xf4   : > { %10332 = vmatpush3.bf16.msra.mxu0 %v10331_v2  ;;  %v634_v2 = vld [vmem:[%s12714_s26 + $0x8a8] sm:$0xff]  ;;  %v681_v33 = vld [vmem:[%s12714_s26 + $0xa20] sm:$0xff] }
  0xf5   : > { %10364 = vmatpush3.bf16.msra.mxu1 %v10363_v3  ;;  %10334 = vmatprep.subr.bf16.mxu0 %v10333_v4  ;;  %v2520_v3 = vcombine.high %v13021_v54, %v13021_v54  ;;  %v665_v4 = vld [vmem:[%s12714_s26 + $0x9a0] sm:$0xff]  ;;  %v10385_v9 = vpack.c.bf16 %v634_v2, %v633_v1  ;;  %v658_v1 = vld [vmem:[%s12714_s26 + $0x968] sm:$0xff]  ;;  %v643_v2 = vld [vmem:[%s12714_s26 + $0x8f0] sm:$0xff] }
  0xf6   : > { %10366 = vmatprep.subr.bf16.mxu1 %v10365_v8  ;;  %v10415_v8 = vpack.c.bf16 %v648_v0, %v647_v62  ;;  %v10417_v14 = vpack.c.bf16 %v666_v5, %v665_v4  ;;  %v626_v62 = vld [vmem:[%s12714_s26 + $0x868] sm:$0xff]  ;;  %v675_v4 = vld [vmem:[%s12714_s26 + $0x9f0] sm:$0xff]  ;;  %v676_v5 = vld [vmem:[%s12714_s26 + $0x9f8] sm:$0xff] }
  0xf7   : > { %v713_v55 = vld [vmem:[%s12714_s26 + $0xb20] sm:$0xff] }
  0xf8   : > { %10336 = vmatpush3.bf16.msra.mxu0 %v10335_v17  ;;  %v635_v17 = vld [vmem:[%s12714_s26 + $0x8b0] sm:$0xff] }
  0xf9   : > { %10368 = vmatpush3.bf16.msra.mxu1 %v10367_v18  ;;  %10338 = vmatprep.subr.bf16.mxu0 %v10337_v19  ;;  %v636_v18 = vld [vmem:[%s12714_s26 + $0x8b8] sm:$0xff] }
  0xfa   : > { %10370 = vmatprep.subr.bf16.mxu1 %v10369_v23  ;;  %v668_v19 = vld [vmem:[%s12714_s26 + $0x9b8] sm:$0xff]  ;;  %v10389_v22 = vpack.c.bf16 %v636_v18, %v635_v17  ;;  %v619_v23 = vld [vmem:[%s12714_s26 + $0x830] sm:$0xff]  ;;  %v693_v17 = vld [vmem:[%s12714_s26 + $0xa80] sm:$0xff] }
  0xfb   : > { %v694_v18 = vld [vmem:[%s12714_s26 + $0xa88] sm:$0xff] }
  0xfc   : > { %10340 = vmatpush3.bf16.msra.mxu0 %v10339_v29  ;;  %v638_v29 = vld [vmem:[%s12714_s26 + $0x8c8] sm:$0xff] }
  0xfd   : > { %10372 = vmatpush3.bf16.msra.mxu1 %v10371_v31  ;;  %10342 = vmatprep.subr.bf16.mxu0 %v10341_v32  ;;  %v670_v31 = vld [vmem:[%s12714_s26 + $0x9c8] sm:$0xff]  ;;  %v10391_v32 = vpack.c.bf16 %v620_v24, %v619_v23  ;;  %v10393_v42 = vpack.c.bf16 %v638_v29, %v637_v28  ;;  %v10441_v23 = vpack.c.bf16 %v694_v18, %v693_v17  ;;  %v677_v24 = vld [vmem:[%s12714_s26 + $0xa00] sm:$0xff]  ;;  %v695_v29 = vld [vmem:[%s12714_s26 + $0xa90] sm:$0xff] }
  0xfe   : > { %10374 = vmatprep.subr.bf16.mxu1 %v10373_v36  ;;  %v622_v36 = vld [vmem:[%s12714_s26 + $0x848] sm:$0xff]  ;;  %v10425_v38 = vpack.c.bf16 %v670_v31, %v669_v30  ;;  %v696_v30 = vld [vmem:[%s12714_s26 + $0xa98] sm:$0xff] }
  0xff   : > { %v710_v28 = vld [vmem:[%s12714_s26 + $0xb08] sm:$0xff] }
 0x100   : > { %10344 = vmatpush3.bf16.msra.mxu0 %v10343_v43  ;;  %v672_v43 = vld [vmem:[%s12714_s26 + $0x9d8] sm:$0xff]  ;;  %v718_v18 = vld [vmem:[%s12714_s26 + $0xb48] sm:$0xff] }
 0x101   : > { %10376 = vmatpush3.bf16.msra.mxu1 %v10375_v44  ;;  %10378 = vmatprep.subr.bf16.mxu0 %v10377_v46  ;;  %v10395_v44 = vpack.c.bf16 %v622_v36, %v621_v35  ;;  %v10427_v46 = vpack.c.bf16 %v654_v39, %v653_v37  ;;  %v10429_v51 = vpack.c.bf16 %v672_v43, %v671_v41  ;;  %v680_v39 = vld [vmem:[%s12714_s26 + $0xa18] sm:$0xff]  ;;  %v697_v43 = vld [vmem:[%s12714_s26 + $0xaa0] sm:$0xff] }
 0x102   : > { %10410 = vmatprep.subr.bf16.mxu1 %v10409_v50  ;;  %v655_v50 = vld [vmem:[%s12714_s26 + $0x950] sm:$0xff]  ;;  %v10443_v35 = vpack.c.bf16 %v678_v25, %v677_v24  ;;  %v10445_v37 = vpack.c.bf16 %v696_v30, %v695_v29  ;;  %v712_v41 = vld [vmem:[%s12714_s26 + $0xb18] sm:$0xff]  ;;  %v705_v30 = vld [vmem:[%s12714_s26 + $0xae0] sm:$0xff] }
 0x103   : > { %3594 = vmatmul.mubr.f32.vlgmr.msra.gmra.mrb[6].mxu0 %v12945_v11  ;;  %v618_v11 = vld [vmem:[%s12714_s26 + $0x828] sm:$0xff]  ;;  %v687_v25 = vld [vmem:[%s12714_s26 + $0xa50] sm:$0xff]  ;;  %v720_v29 = vld [vmem:[%s12714_s26 + $0xb58] sm:$0xff] }
 0x104   : > { %10380 = vmatpush3.bf16.msra.mxu0 %v10379_v58  ;;  %3664 = vmatmul.mubr.f32.vlgmr.msra.gmra.mrb[6].mxu1 %v12950_v15  ;;  %v667_v15 = vld [vmem:[%s12714_s26 + $0x9b0] sm:$0xff]  ;;  %v10387_v20 = vpack.c.bf16 %v618_v11, %v617_v10  ;;  %v674_v58 = vld [vmem:[%s12714_s26 + $0x9e8] sm:$0xff]  ;;  %v628_v11 = vld [vmem:[%s12714_s26 + $0x878] sm:$0xff] }
 0x105   : > { %10412 = vmatpush3.bf16.msra.mxu1 %v10411_v59  ;;  %10382 = vmatprep.subr.bf16.mxu0 %v10381_v60  ;;  %v10421_v26 = vpack.c.bf16 %v668_v19, %v667_v15  ;;  %v10399_v59 = vpack.c.bf16 %v624_v49, %v623_v48  ;;  %v10431_v60 = vpack.c.bf16 %v656_v53, %v655_v50  ;;  %v627_v10 = vld [vmem:[%s12714_s26 + $0x870] sm:$0xff]  ;;  %v725_v15 = vld [vmem:[%s12714_s26 + $0xb80] sm:$0xff]  ;;  %v726_v19 = vld [vmem:[%s12714_s26 + $0xb88] sm:$0xff] }
 0x106   : > { %10414 = vmatprep.subr.bf16.mxu1 %v10413_v63  ;;  %3733 = vmatprep.mubr.f32.mxu0 %v2520_v3  ;;  %v657_v63 = vld [vmem:[%s12714_s26 + $0x960] sm:$0xff]  ;;  %v10433_v0 = vpack.c.bf16 %v674_v58, %v673_v56  ;;  %v644_v3 = vld [vmem:[%s12714_s26 + $0x8f8] sm:$0xff]  ;;  %v10473_v27 = vpack.c.bf16 %v726_v19, %v725_v15  ;;  %v730_v48 = vld [vmem:[%s12714_s26 + $0xba8] sm:$0xff] }
 0x107   : > { %3803 = vmatprep.mubr.f32.mxu1 %v2521_v6  ;;  %v10403_v6 = vpack.c.bf16 %v626_v62, %v625_v61  ;;  %v714_v58 = vld [vmem:[%s12714_s26 + $0xb28] sm:$0xff]  ;;  %v703_v15 = vld [vmem:[%s12714_s26 + $0xad0] sm:$0xff]  ;;  %v704_v19 = vld [vmem:[%s12714_s26 + $0xad8] sm:$0xff] }
 0x108   : > { %10384 = vmatpush3.bf16.msra.mxu0 %v10383_v7  ;;  %v330_v7 = vld [vmem:[#allocation3 + $0x28] sm:$0xff]  ;;  %v10483_v62 = vpack.c.bf16 %v714_v58, %v713_v55  ;;  %v10461_v24 = vpack.c.bf16 %v704_v19, %v703_v15  ;;  %v724_v58 = vld [vmem:[%s12714_s26 + $0xb78] sm:$0xff] }
 0x109   : > { %10416 = vmatpush3.bf16.msra.mxu1 %v10415_v8  ;;  %10386 = vmatprep.subr.bf16.mxu0 %v10385_v9  ;;  %v10435_v8 = vpack.c.bf16 %v658_v1, %v657_v63  ;;  %v10405_v9 = vpack.c.bf16 %v644_v3, %v643_v2  ;;  %v13097_v31 = vrot.slane %v330_v7, %v12766_v13  ;;  %v684_v1 = vld [vmem:[%s12714_s26 + $0xa38] sm:$0xff]  ;;  %v715_v2 = vld [vmem:[%s12714_s26 + $0xb30] sm:$0xff] }
 0x10a   : > { %10418 = vmatprep.subr.bf16.mxu1 %v10417_v14  ;;  %v10437_v14 = vpack.c.bf16 %v676_v5, %v675_v4  ;;  %v716_v4 = vld [vmem:[%s12714_s26 + $0xb38] sm:$0xff]  ;;  %v701_v5 = vld [vmem:[%s12714_s26 + $0xac0] sm:$0xff]  ;;  %v723_v55 = vld [vmem:[%s12714_s26 + $0xb70] sm:$0xff] }
 0x10b   : > { %v775_v15 = vld [vmem:[%s12714_s26 + $0xd10] sm:$0xff] }
 0x10c   : > { %10388 = vmatpush3.bf16.msra.mxu0 %v10387_v20  ;;  %v2522_v20 = vcombine.high %v330_v7, %v330_v7  ;;  %v733_v7 = vld [vmem:[%s12714_s26 + $0xbc0] sm:$0xff] }
 0x10d   : > { %10420 = vmatpush3.bf16.msra.mxu1 %v10419_v21  ;;  %10390 = vmatprep.subr.bf16.mxu0 %v10389_v22  ;;  %v10407_v21 = vpack.c.bf16 %v628_v11, %v627_v10  ;;  %v10439_v22 = vpack.c.bf16 %v660_v16, %v659_v12  ;;  %v10487_v10 = vpack.c.bf16 %v716_v4, %v715_v2  ;;  %v685_v12 = vld [vmem:[%s12714_s26 + $0xa40] sm:$0xff]  ;;  %v742_v2 = vld [vmem:[%s12714_s26 + $0xc08] sm:$0xff] }
 0x10e   : > { %10422 = vmatprep.subr.bf16.mxu1 %v10421_v26  ;;  %v709_v26 = vld [vmem:[%s12714_s26 + $0xb00] sm:$0xff] }
 0x10f   : > { %v10475_v36 = vpack.c.bf16 %v710_v28, %v709_v26  ;;  %v717_v16 = vld [vmem:[%s12714_s26 + $0xb40] sm:$0xff]  ;;  %v688_v26 = vld [vmem:[%s12714_s26 + $0xa58] sm:$0xff] }
 0x110   : > { %10392 = vmatpush3.bf16.msra.mxu0 %v10391_v32  ;;  %v727_v32 = vld [vmem:[%s12714_s26 + $0xb90] sm:$0xff] }
 0x111   : > { %10424 = vmatpush3.bf16.msra.mxu1 %v10423_v34  ;;  %10394 = vmatprep.subr.bf16.mxu0 %v10393_v42  ;;  %v728_v34 = vld [vmem:[%s12714_s26 + $0xb98] sm:$0xff]  ;;  %v13102_v42 = vrot.slane %v2522_v20, %v12766_v13  ;;  %v735_v20 = vld [vmem:[%s12714_s26 + $0xbd0] sm:$0xff] }
 0x112   : > { %10426 = vmatprep.subr.bf16.mxu1 %v10425_v38  ;;  %v679_v38 = vld [vmem:[%s12714_s26 + $0xa10] sm:$0xff]  ;;  %v10477_v40 = vpack.c.bf16 %v728_v34, %v727_v32  ;;  %v706_v32 = vld [vmem:[%s12714_s26 + $0xae8] sm:$0xff]  ;;  %v737_v34 = vld [vmem:[%s12714_s26 + $0xbe0] sm:$0xff] }
 0x113   : > { %v2538_v49 = vcombine.high %v13102_v42, %v13102_v42  ;;  %v10447_v50 = vpack.c.bf16 %v680_v39, %v679_v38  ;;  %v10465_v38 = vpack.c.bf16 %v706_v32, %v705_v30  ;;  %v689_v39 = vld [vmem:[%s12714_s26 + $0xa60] sm:$0xff] }
 0x114   : > { %10396 = vmatpush3.bf16.msra.mxu0 %v10395_v44  ;;  %v698_v44 = vld [vmem:[%s12714_s26 + $0xaa8] sm:$0xff]  ;;  %v745_v30 = vld [vmem:[%s12714_s26 + $0xc20] sm:$0xff] }
 0x115   : > { %10428 = vmatpush3.bf16.msra.mxu1 %v10427_v46  ;;  %10398 = vmatprep.subr.bf16.mxu0 %v10397_v47  ;;  %v2537_v46 = vcombine.high %v13097_v31, %v13097_v31  ;;  %v729_v47 = vld [vmem:[%s12714_s26 + $0xba0] sm:$0xff]  ;;  %v10449_v53 = vpack.c.bf16 %v698_v44, %v697_v43  ;;  %v722_v43 = vld [vmem:[%s12714_s26 + $0xb68] sm:$0xff]  ;;  %v707_v44 = vld [vmem:[%s12714_s26 + $0xaf0] sm:$0xff] }
 0x116   : > { %10430 = vmatprep.subr.bf16.mxu1 %v10429_v51  ;;  %v10479_v51 = vpack.c.bf16 %v712_v41, %v711_v52  ;;  %v10481_v56 = vpack.c.bf16 %v730_v48, %v729_v47  ;;  %v690_v52 = vld [vmem:[%s12714_s26 + $0xa68] sm:$0xff]  ;;  %v739_v47 = vld [vmem:[%s12714_s26 + $0xbf0] sm:$0xff]  ;;  %v740_v48 = vld [vmem:[%s12714_s26 + $0xbf8] sm:$0xff] }
 0x117   : > { %v777_v32 = vld [vmem:[%s12714_s26 + $0xd20] sm:$0xff] }
 0x118   : > { %10400 = vmatpush3.bf16.msra.mxu0 %v10399_v59  ;;  %v699_v59 = vld [vmem:[%s12714_s26 + $0xab0] sm:$0xff] }
 0x119   : > { %10432 = vmatpush3.bf16.msra.mxu1 %v10431_v60  ;;  %10402 = vmatprep.subr.bf16.mxu0 %v10401_v45  ;;  %v700_v60 = vld [vmem:[%s12714_s26 + $0xab8] sm:$0xff] }
 0x11a   : > { %10434 = vmatprep.subr.bf16.mxu1 %v10433_v0  ;;  %v732_v45 = vld [vmem:[%s12714_s26 + $0xbb8] sm:$0xff]  ;;  %v10453_v63 = vpack.c.bf16 %v700_v60, %v699_v59  ;;  %v683_v0 = vld [vmem:[%s12714_s26 + $0xa30] sm:$0xff]  ;;  %v757_v59 = vld [vmem:[%s12714_s26 + $0xc80] sm:$0xff] }
 0x11b   : > { %v758_v60 = vld [vmem:[%s12714_s26 + $0xc88] sm:$0xff] }
 0x11c   : > { %10404 = vmatpush3.bf16.msra.mxu0 %v10403_v6  ;;  %v702_v6 = vld [vmem:[%s12714_s26 + $0xac8] sm:$0xff] }
 0x11d   : > { %10436 = vmatpush3.bf16.msra.mxu1 %v10435_v8  ;;  %10406 = vmatprep.subr.bf16.mxu0 %v10405_v9  ;;  %v734_v8 = vld [vmem:[%s12714_s26 + $0xbc8] sm:$0xff]  ;;  %v10455_v9 = vpack.c.bf16 %v684_v1, %v683_v0  ;;  %v10457_v11 = vpack.c.bf16 %v702_v6, %v701_v5  ;;  %v10505_v0 = vpack.c.bf16 %v758_v60, %v757_v59  ;;  %v741_v1 = vld [vmem:[%s12714_s26 + $0xc00] sm:$0xff]  ;;  %v759_v6 = vld [vmem:[%s12714_s26 + $0xc90] sm:$0xff] }
 0x11e   : > { %10438 = vmatprep.subr.bf16.mxu1 %v10437_v14  ;;  %v686_v14 = vld [vmem:[%s12714_s26 + $0xa48] sm:$0xff]  ;;  %v10489_v17 = vpack.c.bf16 %v734_v8, %v733_v7  ;;  %v760_v7 = vld [vmem:[%s12714_s26 + $0xc98] sm:$0xff] }
 0x11f   : > { %v774_v5 = vld [vmem:[%s12714_s26 + $0xd08] sm:$0xff] }
 0x120   : > { %10408 = vmatpush3.bf16.msra.mxu0 %v10407_v21  ;;  %v736_v21 = vld [vmem:[%s12714_s26 + $0xbd8] sm:$0xff]  ;;  %v782_v60 = vld [vmem:[%s12714_s26 + $0xd48] sm:$0xff] }
 0x121   : > { %10440 = vmatpush3.bf16.msra.mxu1 %v10439_v22  ;;  %10442 = vmatprep.subr.bf16.mxu0 %v10441_v23  ;;  %v10459_v22 = vpack.c.bf16 %v686_v14, %v685_v12  ;;  %v10491_v23 = vpack.c.bf16 %v718_v18, %v717_v16  ;;  %v10493_v28 = vpack.c.bf16 %v736_v21, %v735_v20  ;;  %v744_v18 = vld [vmem:[%s12714_s26 + $0xc18] sm:$0xff]  ;;  %v761_v21 = vld [vmem:[%s12714_s26 + $0xca0] sm:$0xff] }
 0x122   : > { %10474 = vmatprep.subr.bf16.mxu1 %v10473_v27  ;;  %v719_v27 = vld [vmem:[%s12714_s26 + $0xb50] sm:$0xff]  ;;  %v10507_v12 = vpack.c.bf16 %v742_v2, %v741_v1  ;;  %v10509_v16 = vpack.c.bf16 %v760_v7, %v759_v6  ;;  %v776_v20 = vld [vmem:[%s12714_s26 + $0xd18] sm:$0xff]  ;;  %v769_v7 = vld [vmem:[%s12714_s26 + $0xce0] sm:$0xff] }
 0x123   : > { %3734 = vmatmul.mubr.f32.vlgmr.msra.gmra.mrb[8].mxu0 %v13021_v54  ;;  %v682_v54 = vld [vmem:[%s12714_s26 + $0xa28] sm:$0xff]  ;;  %v751_v2 = vld [vmem:[%s12714_s26 + $0xc50] sm:$0xff]  ;;  %v784_v6 = vld [vmem:[%s12714_s26 + $0xd58] sm:$0xff] }
 0x124   : > { %10444 = vmatpush3.bf16.msra.mxu0 %v10443_v35  ;;  %3804 = vmatmul.mubr.f32.vlgmr.msra.gmra.mrb[8].mxu1 %v13026_v57  ;;  %v731_v57 = vld [vmem:[%s12714_s26 + $0xbb0] sm:$0xff]  ;;  %v10451_v61 = vpack.c.bf16 %v682_v54, %v681_v33  ;;  %v738_v35 = vld [vmem:[%s12714_s26 + $0xbe8] sm:$0xff]  ;;  %v692_v54 = vld [vmem:[%s12714_s26 + $0xa78] sm:$0xff] }
 0x125   : > { %10476 = vmatpush3.bf16.msra.mxu1 %v10475_v36  ;;  %10446 = vmatprep.subr.bf16.mxu0 %v10445_v37  ;;  %v10485_v3 = vpack.c.bf16 %v732_v45, %v731_v57  ;;  %v10463_v36 = vpack.c.bf16 %v688_v26, %v687_v25  ;;  %v10495_v37 = vpack.c.bf16 %v720_v29, %v719_v27  ;;  %v691_v33 = vld [vmem:[%s12714_s26 + $0xa70] sm:$0xff]  ;;  %v789_v57 = vld [vmem:[%s12714_s26 + $0xd80] sm:$0xff]  ;;  %v790_v45 = vld [vmem:[%s12714_s26 + $0xd88] sm:$0xff] }
 0x126   : > { %10478 = vmatprep.subr.bf16.mxu1 %v10477_v40  ;;  %3873 = vmatprep.mubr.f32.mxu0 %v2537_v46  ;;  %v721_v40 = vld [vmem:[%s12714_s26 + $0xb60] sm:$0xff]  ;;  %v10497_v41 = vpack.c.bf16 %v738_v35, %v737_v34  ;;  %v708_v46 = vld [vmem:[%s12714_s26 + $0xaf8] sm:$0xff]  ;;  %v10537_v4 = vpack.c.bf16 %v790_v45, %v789_v57  ;;  %v794_v25 = vld [vmem:[%s12714_s26 + $0xda8] sm:$0xff] }
 0x127   : > { %3943 = vmatprep.mubr.f32.mxu1 %v2538_v49  ;;  %v10467_v49 = vpack.c.bf16 %v690_v52, %v689_v39  ;;  %v778_v35 = vld [vmem:[%s12714_s26 + $0xd28] sm:$0xff]  ;;  %v767_v57 = vld [vmem:[%s12714_s26 + $0xcd0] sm:$0xff]  ;;  %v768_v45 = vld [vmem:[%s12714_s26 + $0xcd8] sm:$0xff] }
 0x128   : > { %10448 = vmatpush3.bf16.msra.mxu0 %v10447_v50  ;;  %v331_v50 = vld [vmem:[#allocation3 + $0x30] sm:$0xff]  ;;  %v10547_v52 = vpack.c.bf16 %v778_v35, %v777_v32  ;;  %v10525_v1 = vpack.c.bf16 %v768_v45, %v767_v57 }
 0x129   : > { %10480 = vmatpush3.bf16.msra.mxu1 %v10479_v51  ;;  %10450 = vmatprep.subr.bf16.mxu0 %v10449_v53  ;;  %v10499_v51 = vpack.c.bf16 %v722_v43, %v721_v40  ;;  %v10469_v53 = vpack.c.bf16 %v708_v46, %v707_v44  ;;  %v13173_v8 = vrot.slane %v331_v50, %v12766_v13  ;;  %v748_v43 = vld [vmem:[%s12714_s26 + $0xc38] sm:$0xff]  ;;  %v779_v44 = vld [vmem:[%s12714_s26 + $0xd30] sm:$0xff] }
 0x12a   : > { %10482 = vmatprep.subr.bf16.mxu1 %v10481_v56  ;;  %v10501_v56 = vpack.c.bf16 %v740_v48, %v739_v47  ;;  %v780_v47 = vld [vmem:[%s12714_s26 + $0xd38] sm:$0xff]  ;;  %v765_v48 = vld [vmem:[%s12714_s26 + $0xcc0] sm:$0xff]  ;;  %v787_v32 = vld [vmem:[%s12714_s26 + $0xd70] sm:$0xff] }
 0x12b   : > { %v788_v35 = vld [vmem:[%s12714_s26 + $0xd78] sm:$0xff]  ;;  %v839_v57 = vld [vmem:[%s12714_s26 + $0xf10] sm:$0xff] }
 0x12c   : > { %10452 = vmatpush3.bf16.msra.mxu0 %v10451_v61  ;;  %v2539_v61 = vcombine.high %v331_v50, %v331_v50  ;;  %v797_v50 = vld [vmem:[%s12714_s26 + $0xdc0] sm:$0xff] }
 0x12d   : > { %10484 = vmatpush3.bf16.msra.mxu1 %v10483_v62  ;;  %10454 = vmatprep.subr.bf16.mxu0 %v10453_v63  ;;  %v10471_v62 = vpack.c.bf16 %v692_v54, %v691_v33  ;;  %v10503_v63 = vpack.c.bf16 %v724_v58, %v723_v55  ;;  %v10551_v33 = vpack.c.bf16 %v780_v47, %v779_v44  ;;  %v749_v55 = vld [vmem:[%s12714_s26 + $0xc40] sm:$0xff]  ;;  %v806_v44 = vld [vmem:[%s12714_s26 + $0xe08] sm:$0xff] }
 0x12e   : > { %10486 = vmatprep.subr.bf16.mxu1 %v10485_v3  ;;  %v773_v3 = vld [vmem:[%s12714_s26 + $0xd00] sm:$0xff] }
 0x12f   : > { %v10539_v14 = vpack.c.bf16 %v774_v5, %v773_v3  ;;  %v781_v58 = vld [vmem:[%s12714_s26 + $0xd40] sm:$0xff]  ;;  %v752_v3 = vld [vmem:[%s12714_s26 + $0xc58] sm:$0xff] }
 0x130   : > { %10456 = vmatpush3.bf16.msra.mxu0 %v10455_v9  ;;  %v791_v9 = vld [vmem:[%s12714_s26 + $0xd90] sm:$0xff] }
 0x131   : > { %10488 = vmatpush3.bf16.msra.mxu1 %v10487_v10  ;;  %10458 = vmatprep.subr.bf16.mxu0 %v10457_v11  ;;  %v792_v10 = vld [vmem:[%s12714_s26 + $0xd98] sm:$0xff]  ;;  %v13178_v11 = vrot.slane %v2539_v61, %v12766_v13  ;;  %v799_v61 = vld [vmem:[%s12714_s26 + $0xdd0] sm:$0xff] }
 0x132   : > { %10490 = vmatprep.subr.bf16.mxu1 %v10489_v17  ;;  %v743_v17 = vld [vmem:[%s12714_s26 + $0xc10] sm:$0xff]  ;;  %v10541_v19 = vpack.c.bf16 %v792_v10, %v791_v9  ;;  %v770_v9 = vld [vmem:[%s12714_s26 + $0xce8] sm:$0xff]  ;;  %v801_v10 = vld [vmem:[%s12714_s26 + $0xde0] sm:$0xff] }
 0x133   : > { %v2555_v26 = vcombine.high %v13178_v11, %v13178_v11  ;;  %v10511_v27 = vpack.c.bf16 %v744_v18, %v743_v17  ;;  %v10529_v17 = vpack.c.bf16 %v770_v9, %v769_v7  ;;  %v753_v18 = vld [vmem:[%s12714_s26 + $0xc60] sm:$0xff] }
 0x134   : > { %10460 = vmatpush3.bf16.msra.mxu0 %v10459_v22  ;;  %v762_v22 = vld [vmem:[%s12714_s26 + $0xca8] sm:$0xff]  ;;  %v809_v7 = vld [vmem:[%s12714_s26 + $0xe20] sm:$0xff] }
 0x135   : > { %10492 = vmatpush3.bf16.msra.mxu1 %v10491_v23  ;;  %10462 = vmatprep.subr.bf16.mxu0 %v10461_v24  ;;  %v2554_v23 = vcombine.high %v13173_v8, %v13173_v8  ;;  %v793_v24 = vld [vmem:[%s12714_s26 + $0xda0] sm:$0xff]  ;;  %v10513_v29 = vpack.c.bf16 %v762_v22, %v761_v21  ;;  %v786_v21 = vld [vmem:[%s12714_s26 + $0xd68] sm:$0xff]  ;;  %v771_v22 = vld [vmem:[%s12714_s26 + $0xcf0] sm:$0xff] }
 0x136   : > { %10494 = vmatprep.subr.bf16.mxu1 %v10493_v28  ;;  %v10543_v28 = vpack.c.bf16 %v776_v20, %v775_v15  ;;  %v10545_v34 = vpack.c.bf16 %v794_v25, %v793_v24  ;;  %v754_v15 = vld [vmem:[%s12714_s26 + $0xc68] sm:$0xff]  ;;  %v803_v24 = vld [vmem:[%s12714_s26 + $0xdf0] sm:$0xff]  ;;  %v804_v25 = vld [vmem:[%s12714_s26 + $0xdf8] sm:$0xff] }
 0x137   : > { %v841_v9 = vld [vmem:[%s12714_s26 + $0xf20] sm:$0xff] }
 0x138   : > { %10464 = vmatpush3.bf16.msra.mxu0 %v10463_v36  ;;  %v763_v36 = vld [vmem:[%s12714_s26 + $0xcb0] sm:$0xff] }
 0x139   : > { %10496 = vmatpush3.bf16.msra.mxu1 %v10495_v37  ;;  %10466 = vmatprep.subr.bf16.mxu0 %v10465_v38  ;;  %v764_v37 = vld [vmem:[%s12714_s26 + $0xcb8] sm:$0xff] }
 0x13a   : > { %10498 = vmatprep.subr.bf16.mxu1 %v10497_v41  ;;  %v796_v38 = vld [vmem:[%s12714_s26 + $0xdb8] sm:$0xff]  ;;  %v10517_v40 = vpack.c.bf16 %v764_v37, %v763_v36  ;;  %v747_v41 = vld [vmem:[%s12714_s26 + $0xc30] sm:$0xff]  ;;  %v821_v36 = vld [vmem:[%s12714_s26 + $0xe80] sm:$0xff] }
 0x13b   : > { %v822_v37 = vld [vmem:[%s12714_s26 + $0xe88] sm:$0xff] }
 0x13c   : > { %10468 = vmatpush3.bf16.msra.mxu0 %v10467_v49  ;;  %v766_v49 = vld [vmem:[%s12714_s26 + $0xcc8] sm:$0xff] }
 0x13d   : > { %10500 = vmatpush3.bf16.msra.mxu1 %v10499_v51  ;;  %10470 = vmatprep.subr.bf16.mxu0 %v10469_v53  ;;  %v798_v51 = vld [vmem:[%s12714_s26 + $0xdc8] sm:$0xff]  ;;  %v10519_v53 = vpack.c.bf16 %v748_v43, %v747_v41  ;;  %v10521_v54 = vpack.c.bf16 %v766_v49, %v765_v48  ;;  %v10569_v41 = vpack.c.bf16 %v822_v37, %v821_v36  ;;  %v805_v43 = vld [vmem:[%s12714_s26 + $0xe00] sm:$0xff]  ;;  %v823_v49 = vld [vmem:[%s12714_s26 + $0xe90] sm:$0xff] }
 0x13e   : > { %10502 = vmatprep.subr.bf16.mxu1 %v10501_v56  ;;  %v750_v56 = vld [vmem:[%s12714_s26 + $0xc48] sm:$0xff]  ;;  %v10553_v59 = vpack.c.bf16 %v798_v51, %v797_v50  ;;  %v824_v50 = vld [vmem:[%s12714_s26 + $0xe98] sm:$0xff] }
 0x13f   : > { %v838_v48 = vld [vmem:[%s12714_s26 + $0xf08] sm:$0xff] }
 0x140   : > { %10472 = vmatpush3.bf16.msra.mxu0 %v10471_v62  ;;  %v800_v62 = vld [vmem:[%s12714_s26 + $0xdd8] sm:$0xff]  ;;  %v846_v37 = vld [vmem:[%s12714_s26 + $0xf48] sm:$0xff] }
 0x141   : > { %10504 = vmatpush3.bf16.msra.mxu1 %v10503_v63  ;;  %10506 = vmatprep.subr.bf16.mxu0 %v10505_v0  ;;  %v10523_v63 = vpack.c.bf16 %v750_v56, %v749_v55  ;;  %v10555_v0 = vpack.c.bf16 %v782_v60, %v781_v58  ;;  %v10557_v5 = vpack.c.bf16 %v800_v62, %v799_v61  ;;  %v808_v60 = vld [vmem:[%s12714_s26 + $0xe18] sm:$0xff]  ;;  %v825_v62 = vld [vmem:[%s12714_s26 + $0xea0] sm:$0xff] }
 0x142   : > { %10538 = vmatprep.subr.bf16.mxu1 %v10537_v4  ;;  %v783_v4 = vld [vmem:[%s12714_s26 + $0xd50] sm:$0xff]  ;;  %v10571_v55 = vpack.c.bf16 %v806_v44, %v805_v43  ;;  %v10573_v58 = vpack.c.bf16 %v824_v50, %v823_v49  ;;  %v840_v61 = vld [vmem:[%s12714_s26 + $0xf18] sm:$0xff]  ;;  %v833_v50 = vld [vmem:[%s12714_s26 + $0xee0] sm:$0xff] }
 0x143   : > { %3874 = vmatmul.mubr.f32.vlgmr.msra.gmra.mrb[10].mxu0 %v13097_v31  ;;  %v746_v31 = vld [vmem:[%s12714_s26 + $0xc28] sm:$0xff]  ;;  %v815_v44 = vld [vmem:[%s12714_s26 + $0xe50] sm:$0xff]  ;;  %v848_v49 = vld [vmem:[%s12714_s26 + $0xf58] sm:$0xff] }
 0x144   : > { %10508 = vmatpush3.bf16.msra.mxu0 %v10507_v12  ;;  %3944 = vmatmul.mubr.f32.vlgmr.msra.gmra.mrb[10].mxu1 %v13102_v42  ;;  %v795_v42 = vld [vmem:[%s12714_s26 + $0xdb0] sm:$0xff]  ;;  %v10515_v39 = vpack.c.bf16 %v746_v31, %v745_v30  ;;  %v802_v12 = vld [vmem:[%s12714_s26 + $0xde8] sm:$0xff]  ;;  %v756_v31 = vld [vmem:[%s12714_s26 + $0xc78] sm:$0xff] }
 0x145   : > { %10540 = vmatpush3.bf16.msra.mxu1 %v10539_v14  ;;  %10510 = vmatprep.subr.bf16.mxu0 %v10509_v16  ;;  %v10549_v46 = vpack.c.bf16 %v796_v38, %v795_v42  ;;  %v10527_v14 = vpack.c.bf16 %v752_v3, %v751_v2  ;;  %v10559_v16 = vpack.c.bf16 %v784_v6, %v783_v4  ;;  %v755_v30 = vld [vmem:[%s12714_s26 + $0xc70] sm:$0xff]  ;;  %v853_v42 = vld [vmem:[%s12714_s26 + $0xf80] sm:$0xff]  ;;  %v854_v38 = vld [vmem:[%s12714_s26 + $0xf88] sm:$0xff] }
 0x146   : > { %10542 = vmatprep.subr.bf16.mxu1 %v10541_v19  ;;  %4013 = vmatprep.mubr.f32.mxu0 %v2554_v23  ;;  %v785_v19 = vld [vmem:[%s12714_s26 + $0xd60] sm:$0xff]  ;;  %v10561_v20 = vpack.c.bf16 %v802_v12, %v801_v10  ;;  %v772_v23 = vld [vmem:[%s12714_s26 + $0xcf8] sm:$0xff]  ;;  %v10601_v47 = vpack.c.bf16 %v854_v38, %v853_v42  ;;  %v858_v2 = vld [vmem:[%s12714_s26 + $0xfa8] sm:$0xff] }
 0x147   : > { %4083 = vmatprep.mubr.f32.mxu1 %v2555_v26  ;;  %v10531_v26 = vpack.c.bf16 %v754_v15, %v753_v18  ;;  %v842_v12 = vld [vmem:[%s12714_s26 + $0xf28] sm:$0xff]  ;;  %v831_v42 = vld [vmem:[%s12714_s26 + $0xed0] sm:$0xff]  ;;  %v832_v38 = vld [vmem:[%s12714_s26 + $0xed8] sm:$0xff] }
 0x148   : > { %10512 = vmatpush3.bf16.msra.mxu0 %v10511_v27  ;;  %v332_v27 = vld [vmem:[#allocation3 + $0x38] sm:$0xff]  ;;  %v10611_v15 = vpack.c.bf16 %v842_v12, %v841_v9  ;;  %v10589_v43 = vpack.c.bf16 %v832_v38, %v831_v42  ;;  %v333_v9 = vld [vmem:[#allocation3 + $0x40] sm:$0xff] }
 0x149   : > { %10544 = vmatpush3.bf16.msra.mxu1 %v10543_v28  ;;  %10514 = vmatprep.subr.bf16.mxu0 %v10513_v29  ;;  %v10563_v28 = vpack.c.bf16 %v786_v21, %v785_v19  ;;  %v10533_v29 = vpack.c.bf16 %v772_v23, %v771_v22  ;;  %v13249_v51 = vrot.slane %v332_v27, %v12766_v13  ;;  %v812_v21 = vld [vmem:[%s12714_s26 + $0xe38] sm:$0xff]  ;;  %v843_v22 = vld [vmem:[%s12714_s26 + $0xf30] sm:$0xff] }
 0x14a   : > { %10546 = vmatprep.subr.bf16.mxu1 %v10545_v34  ;;  %v10565_v34 = vpack.c.bf16 %v804_v25, %v803_v24  ;;  %v844_v24 = vld [vmem:[%s12714_s26 + $0xf38] sm:$0xff]  ;;  %v829_v25 = vld [vmem:[%s12714_s26 + $0xec0] sm:$0xff] }
 0x14b   : > { %v920_v42 = vld [vmem:[%s12714_s26 + $0x1198] sm:$0xff] }
 0x14c   : > { %10516 = vmatpush3.bf16.msra.mxu0 %v10515_v39  ;;  %v2556_v39 = vcombine.high %v332_v27, %v332_v27  ;;  %v861_v27 = vld [vmem:[%s12714_s26 + $0xfc0] sm:$0xff] }
 0x14d   : > { %10548 = vmatpush3.bf16.msra.mxu1 %v10547_v52  ;;  %10518 = vmatprep.subr.bf16.mxu0 %v10517_v40  ;;  %v10535_v52 = vpack.c.bf16 %v756_v31, %v755_v30  ;;  %v10567_v40 = vpack.c.bf16 %v788_v35, %v787_v32  ;;  %v10615_v30 = vpack.c.bf16 %v844_v24, %v843_v22  ;;  %v813_v32 = vld [vmem:[%s12714_s26 + $0xe40] sm:$0xff] }
 0x14e   : > { %10550 = vmatprep.subr.bf16.mxu1 %v10549_v46  ;;  %v837_v46 = vld [vmem:[%s12714_s26 + $0xf00] sm:$0xff]  ;;  %v2573_v24 = vcombine.high %v333_v9, %v333_v9 }
 0x14f   : > { %v10603_v56 = vpack.c.bf16 %v838_v48, %v837_v46  ;;  %v845_v35 = vld [vmem:[%s12714_s26 + $0xf40] sm:$0xff]  ;;  %v816_v46 = vld [vmem:[%s12714_s26 + $0xe58] sm:$0xff] }
 0x150   : > { %10520 = vmatpush3.bf16.msra.mxu0 %v10519_v53  ;;  %v855_v53 = vld [vmem:[%s12714_s26 + $0xf90] sm:$0xff]  ;;  %v917_v22 = vld [vmem:[%s12714_s26 + $0x1180] sm:$0xff]  ;;  %v13332_v38 = vrot.slane %v2573_v24, %v12766_v13  ;;  %v896_v24 = vld [vmem:[%s12714_s26 + $0x10d8] sm:$0xff] }
 0x151   : > { %10552 = vmatpush3.bf16.msra.mxu1 %v10551_v33  ;;  %10522 = vmatprep.subr.bf16.mxu0 %v10521_v54  ;;  %v856_v33 = vld [vmem:[%s12714_s26 + $0xf98] sm:$0xff]  ;;  %v13254_v54 = vrot.slane %v2556_v39, %v12766_v13  ;;  %v863_v39 = vld [vmem:[%s12714_s26 + $0xfd0] sm:$0xff] }
 0x152   : > { %10554 = vmatprep.subr.bf16.mxu1 %v10553_v59  ;;  %v807_v59 = vld [vmem:[%s12714_s26 + $0xe10] sm:$0xff]  ;;  %v10605_v45 = vpack.c.bf16 %v856_v33, %v855_v53  ;;  %v834_v53 = vld [vmem:[%s12714_s26 + $0xee8] sm:$0xff]  ;;  %v865_v33 = vld [vmem:[%s12714_s26 + $0xfe0] sm:$0xff] }
 0x153   : > { %v2572_v3 = vcombine.high %v13254_v54, %v13254_v54  ;;  %v10575_v4 = vpack.c.bf16 %v808_v60, %v807_v59  ;;  %v10593_v59 = vpack.c.bf16 %v834_v53, %v833_v50  ;;  %v817_v60 = vld [vmem:[%s12714_s26 + $0xe60] sm:$0xff] }
 0x154   : > { %10524 = vmatpush3.bf16.msra.mxu0 %v10523_v63  ;;  %v826_v63 = vld [vmem:[%s12714_s26 + $0xea8] sm:$0xff]  ;;  %v921_v53 = vld [vmem:[%s12714_s26 + $0x11a0] sm:$0xff] }
 0x155   : > { %10556 = vmatpush3.bf16.msra.mxu1 %v10555_v0  ;;  %10526 = vmatprep.subr.bf16.mxu0 %v10525_v1  ;;  %v2571_v0 = vcombine.high %v13249_v51, %v13249_v51  ;;  %v857_v1 = vld [vmem:[%s12714_s26 + $0xfa0] sm:$0xff]  ;;  %v10577_v6 = vpack.c.bf16 %v826_v63, %v825_v62  ;;  %v850_v63 = vld [vmem:[%s12714_s26 + $0xf68] sm:$0xff] }
 0x156   : > { %10558 = vmatprep.subr.bf16.mxu1 %v10557_v5  ;;  %v10607_v5 = vpack.c.bf16 %v840_v61, %v839_v57  ;;  %v10609_v10 = vpack.c.bf16 %v858_v2, %v857_v1  ;;  %v818_v57 = vld [vmem:[%s12714_s26 + $0xe68] sm:$0xff]  ;;  %v836_v1 = vld [vmem:[%s12714_s26 + $0xef8] sm:$0xff] }
 0x158   : > { %10528 = vmatpush3.bf16.msra.mxu0 %v10527_v14  ;;  %v827_v14 = vld [vmem:[%s12714_s26 + $0xeb0] sm:$0xff] }
 0x159   : > { %10560 = vmatpush3.bf16.msra.mxu1 %v10559_v16  ;;  %10530 = vmatprep.subr.bf16.mxu0 %v10529_v17  ;;  %v828_v16 = vld [vmem:[%s12714_s26 + $0xeb8] sm:$0xff] }
 0x15a   : > { %10562 = vmatprep.subr.bf16.mxu1 %v10561_v20  ;;  %v860_v17 = vld [vmem:[%s12714_s26 + $0xfb8] sm:$0xff]  ;;  %v10581_v19 = vpack.c.bf16 %v828_v16, %v827_v14  ;;  %v811_v20 = vld [vmem:[%s12714_s26 + $0xe30] sm:$0xff] }
 0x15b   : > { %v819_v16 = vld [vmem:[%s12714_s26 + $0xe70] sm:$0xff] }
 0x15c   : > { %10532 = vmatpush3.bf16.msra.mxu0 %v10531_v26  ;;  %v830_v26 = vld [vmem:[%s12714_s26 + $0xec8] sm:$0xff] }
 0x15d   : > { %10564 = vmatpush3.bf16.msra.mxu1 %v10563_v28  ;;  %10534 = vmatprep.subr.bf16.mxu0 %v10533_v29  ;;  %v862_v28 = vld [vmem:[%s12714_s26 + $0xfc8] sm:$0xff]  ;;  %v10583_v29 = vpack.c.bf16 %v812_v21, %v811_v20  ;;  %v10585_v31 = vpack.c.bf16 %v830_v26, %v829_v25 }
 0x15e   : > { %10566 = vmatprep.subr.bf16.mxu1 %v10565_v34  ;;  %v814_v34 = vld [vmem:[%s12714_s26 + $0xe48] sm:$0xff]  ;;  %v10617_v36 = vpack.c.bf16 %v862_v28, %v861_v27  ;;  %v869_v28 = vld [vmem:[%s12714_s26 + $0x1000] sm:$0xff] }
 0x15f   : > { %v886_v20 = vld [vmem:[%s12714_s26 + $0x1088] sm:$0xff] }
 0x160   : > { %10536 = vmatpush3.bf16.msra.mxu0 %v10535_v52  ;;  %v864_v52 = vld [vmem:[%s12714_s26 + $0xfd8] sm:$0xff] }
 0x161   : > { %10568 = vmatpush3.bf16.msra.mxu1 %v10567_v40  ;;  %10570 = vmatprep.subr.bf16.mxu0 %v10569_v41  ;;  %v10587_v40 = vpack.c.bf16 %v814_v34, %v813_v32  ;;  %v10619_v41 = vpack.c.bf16 %v846_v37, %v845_v35  ;;  %v10621_v48 = vpack.c.bf16 %v864_v52, %v863_v39  ;;  %v902_v32 = vld [vmem:[%s12714_s26 + $0x1108] sm:$0xff]  ;;  %v887_v34 = vld [vmem:[%s12714_s26 + $0x1090] sm:$0xff]  ;;  %v888_v35 = vld [vmem:[%s12714_s26 + $0x1098] sm:$0xff] }
 0x162   : > { %10602 = vmatprep.subr.bf16.mxu1 %v10601_v47  ;;  %v847_v47 = vld [vmem:[%s12714_s26 + $0xf50] sm:$0xff] }
 0x163   : > { %4014 = vmatmul.mubr.f32.vlgmr.msra.gmra.mrb[12].mxu0 %v13173_v8  ;;  %v810_v8 = vld [vmem:[%s12714_s26 + $0xe28] sm:$0xff]  ;;  %v919_v37 = vld [vmem:[%s12714_s26 + $0x1190] sm:$0xff] }
 0x164   : > { %10572 = vmatpush3.bf16.msra.mxu0 %v10571_v55  ;;  %4084 = vmatmul.mubr.f32.vlgmr.msra.gmra.mrb[12].mxu1 %v13178_v11  ;;  %v859_v11 = vld [vmem:[%s12714_s26 + $0xfb0] sm:$0xff]  ;;  %v10579_v18 = vpack.c.bf16 %v810_v8, %v809_v7  ;;  %v866_v55 = vld [vmem:[%s12714_s26 + $0xfe8] sm:$0xff]  ;;  %v10595_v8 = vpack.c.bf16 %v818_v57, %v817_v60  ;;  %v873_v60 = vld [vmem:[%s12714_s26 + $0x1020] sm:$0xff] }
 0x165   : > { %10604 = vmatpush3.bf16.msra.mxu1 %v10603_v56  ;;  %10574 = vmatprep.subr.bf16.mxu0 %v10573_v58  ;;  %v10613_v23 = vpack.c.bf16 %v860_v17, %v859_v11  ;;  %v10591_v56 = vpack.c.bf16 %v816_v46, %v815_v44  ;;  %v10623_v58 = vpack.c.bf16 %v848_v49, %v847_v47  ;;  %v820_v11 = vld [vmem:[%s12714_s26 + $0xe78] sm:$0xff]  ;;  %v851_v17 = vld [vmem:[%s12714_s26 + $0xf70] sm:$0xff]  ;;  %v890_v49 = vld [vmem:[%s12714_s26 + $0x10a8] sm:$0xff] }
 0x166   : > { %10606 = vmatprep.subr.bf16.mxu1 %v10605_v45  ;;  %4153 = vmatprep.mubr.f32.mxu0 %v2571_v0  ;;  %v849_v45 = vld [vmem:[%s12714_s26 + $0xf60] sm:$0xff]  ;;  %v10625_v62 = vpack.c.bf16 %v866_v55, %v865_v33  ;;  %v835_v0 = vld [vmem:[%s12714_s26 + $0xef0] sm:$0xff]  ;;  %v10599_v25 = vpack.c.bf16 %v820_v11, %v819_v16  ;;  %v10669_v46 = vpack.c.bf16 %v920_v42, %v919_v37  ;;  %v904_v47 = vld [vmem:[%s12714_s26 + $0x1118] sm:$0xff] }
 0x167   : > { %4223 = vmatprep.mubr.f32.mxu1 %v2572_v3  ;;  %v10627_v12 = vpack.c.bf16 %v850_v63, %v849_v45  ;;  %v10597_v14 = vpack.c.bf16 %v836_v1, %v835_v0  ;;  %v903_v44 = vld [vmem:[%s12714_s26 + $0x1110] sm:$0xff]  ;;  %v922_v33 = vld [vmem:[%s12714_s26 + $0x11a8] sm:$0xff]  ;;  %v2589_v55 = vcombine.high %v13332_v38, %v13332_v38  ;;  %v905_v57 = vld [vmem:[%s12714_s26 + $0x1120] sm:$0xff] }
 0x168   : > { %10576 = vmatpush3.bf16.msra.mxu0 %v10575_v4  ;;  %v867_v4 = vld [vmem:[%s12714_s26 + $0xff0] sm:$0xff]  ;;  %v10673_v45 = vpack.c.bf16 %v922_v33, %v921_v53  ;;  %v892_v63 = vld [vmem:[%s12714_s26 + $0x10b8] sm:$0xff]  ;;  %v897_v37 = vld [vmem:[%s12714_s26 + $0x10e0] sm:$0xff] }
 0x169   : > { %10608 = vmatpush3.bf16.msra.mxu1 %v10607_v5  ;;  %10578 = vmatprep.subr.bf16.mxu0 %v10577_v6  ;;  %v868_v5 = vld [vmem:[%s12714_s26 + $0xff8] sm:$0xff]  ;;  %v898_v42 = vld [vmem:[%s12714_s26 + $0x10e8] sm:$0xff]  ;;  %v899_v53 = vld [vmem:[%s12714_s26 + $0x10f0] sm:$0xff] }
 0x16a   : > { %10610 = vmatprep.subr.bf16.mxu1 %v10609_v10  ;;  %v924_v0 = vld [vmem:[%s12714_s26 + $0x11b8] sm:$0xff] }
 0x16b   : > { %v900_v33 = vld [vmem:[%s12714_s26 + $0x10f8] sm:$0xff] }
 0x16c   : > { %10580 = vmatpush3.bf16.msra.mxu0 %v10579_v18  ;;  %v10629_v18 = vpack.c.bf16 %v868_v5, %v867_v4  ;;  %v875_v4 = vld [vmem:[%s12714_s26 + $0x1030] sm:$0xff]  ;;  %v876_v5 = vld [vmem:[%s12714_s26 + $0x1038] sm:$0xff] }
 0x16d   : > { %10612 = vmatpush3.bf16.msra.mxu1 %v10611_v15  ;;  %10582 = vmatprep.subr.bf16.mxu0 %v10581_v19  ;;  %v852_v15 = vld [vmem:[%s12714_s26 + $0xf78] sm:$0xff]  ;;  %v885_v19 = vld [vmem:[%s12714_s26 + $0x1080] sm:$0xff]  ;;  %v10647_v16 = vpack.c.bf16 %v876_v5, %v875_v4 }
 0x16e   : > { %10614 = vmatprep.subr.bf16.mxu1 %v10613_v23  ;;  %v918_v23 = vld [vmem:[%s12714_s26 + $0x1188] sm:$0xff]  ;;  %v10631_v26 = vpack.c.bf16 %v852_v15, %v851_v17  ;;  %v10633_v27 = vpack.c.bf16 %v886_v20, %v885_v19  ;;  %v909_v19 = vld [vmem:[%s12714_s26 + $0x1140] sm:$0xff]  ;;  %v916_v4 = vld [vmem:[%s12714_s26 + $0x1178] sm:$0xff] }
 0x16f   : > { %v878_v15 = vld [vmem:[%s12714_s26 + $0x1048] sm:$0xff]  ;;  %v949_v5 = vld [vmem:[%s12714_s26 + $0x1280] sm:$0xff] }
 0x170   : > { %10584 = vmatpush3.bf16.msra.mxu0 %v10583_v29  ;;  %v870_v29 = vld [vmem:[%s12714_s26 + $0x1008] sm:$0xff] }
 0x171   : > { %10616 = vmatpush3.bf16.msra.mxu1 %v10615_v30  ;;  %10586 = vmatprep.subr.bf16.mxu0 %v10585_v31  ;;  %v901_v30 = vld [vmem:[%s12714_s26 + $0x1100] sm:$0xff]  ;;  %v10665_v31 = vpack.c.bf16 %v918_v23, %v917_v22  ;;  %v10635_v39 = vpack.c.bf16 %v870_v29, %v869_v28  ;;  %v910_v22 = vld [vmem:[%s12714_s26 + $0x1148] sm:$0xff]  ;;  %v895_v23 = vld [vmem:[%s12714_s26 + $0x10d0] sm:$0xff] }
 0x172   : > { %10618 = vmatprep.subr.bf16.mxu1 %v10617_v36  ;;  %v13327_v36 = vrot.slane %v333_v9, %v12766_v13  ;;  %v10667_v52 = vpack.c.bf16 %v902_v32, %v901_v30  ;;  %v893_v9 = vld [vmem:[%s12714_s26 + $0x10c0] sm:$0xff]  ;;  %v10683_v28 = vpack.c.bf16 %v910_v22, %v909_v19  ;;  %v10653_v29 = vpack.c.bf16 %v896_v24, %v895_v23  ;;  %v879_v30 = vld [vmem:[%s12714_s26 + $0x1050] sm:$0xff]  ;;  %v984_v24 = vld [vmem:[%s12714_s26 + $0x1398] sm:$0xff] }
 0x173   : > { %v911_v32 = vld [vmem:[%s12714_s26 + $0x1150] sm:$0xff] }
 0x174   : > { %10588 = vmatpush3.bf16.msra.mxu0 %v10587_v40  ;;  %v10637_v40 = vpack.c.bf16 %v888_v35, %v887_v34  ;;  %v2588_v50 = vcombine.high %v13327_v36, %v13327_v36  ;;  %v912_v35 = vld [vmem:[%s12714_s26 + $0x1158] sm:$0xff]  ;;  %v951_v19 = vld [vmem:[%s12714_s26 + $0x1290] sm:$0xff] }
 0x175   : > { %10620 = vmatpush3.bf16.msra.mxu1 %v10619_v41  ;;  %10590 = vmatprep.subr.bf16.mxu0 %v10589_v43  ;;  %v871_v41 = vld [vmem:[%s12714_s26 + $0x1010] sm:$0xff]  ;;  %v872_v43 = vld [vmem:[%s12714_s26 + $0x1018] sm:$0xff] }
 0x176   : > { %v7885_v61 = vpop.f32.mrb[0].mxu0  ;;  %10622 = vmatprep.subr.bf16.mxu1 %v10621_v48  ;;  %v889_v48 = vld [vmem:[%s12714_s26 + $0x10a0] sm:$0xff]  ;;  %v983_v23 = vld [vmem:[%s12714_s26 + $0x1390] sm:$0xff] }
 0x177   : > { %v7920_v2 = vpop.f32.mrb[0].mxu1  ;;  %v7886_v3 = vpop.f32.mrb[1].mxu0 }
 0x178   : > { %v7887_v6 = vadd.f32 %v7886_v3, %v7885_v61  ;;  %v7921_v7 = vpop.f32.mrb[1].mxu1  ;;  %10592 = vmatpush3.bf16.msra.mxu0 %v10591_v56  ;;  %v10639_v56 = vpack.c.bf16 %v872_v43, %v871_v41  ;;  %v906_v61 = vld [vmem:[%s12714_s26 + $0x1128] sm:$0xff]  ;;  %v10687_v41 = vpack.c.bf16 %v912_v35, %v911_v32  ;;  %v10657_v43 = vpack.c.bf16 %v898_v42, %v897_v37  ;;  %v953_v35 = vld [vmem:[%s12714_s26 + $0x12a0] sm:$0xff] }
 0x179   : > { %v7922_v10 = vadd.f32 %v7921_v7, %v7920_v2  ;;  %10624 = vmatpush3.bf16.msra.mxu1 %v10623_v58  ;;  %10594 = vmatprep.subr.bf16.mxu0 %v10593_v59  ;;  %v10671_v58 = vpack.c.bf16 %v904_v47, %v903_v44  ;;  %v10641_v59 = vpack.c.bf16 %v890_v49, %v889_v48  ;;  %v881_v44 = vld [vmem:[%s12714_s26 + $0x1060] sm:$0xff]  ;;  %v954_v37 = vld [vmem:[%s12714_s26 + $0x12a8] sm:$0xff] }
 0x17a   : > { %10626 = vmatprep.subr.bf16.mxu1 %v10625_v62  ;;  %v891_v62 = vld [vmem:[%s12714_s26 + $0x10b0] sm:$0xff]  ;;  %v10675_v2 = vpack.c.bf16 %v906_v61, %v905_v57  ;;  %v913_v47 = vld [vmem:[%s12714_s26 + $0x1160] sm:$0xff]  ;;  %v10733_v32 = vpack.c.bf16 %v984_v24, %v983_v23  ;;  %v962_v24 = vld [vmem:[%s12714_s26 + $0x12e8] sm:$0xff] }
 0x17b   : > { %v13316_v21 = vadd.f32 %v7922_v10, %v7887_v6  ;;  %v10645_v3 = vpack.c.bf16 %v892_v63, %v891_v62  ;;  %v907_v6 = vld [vmem:[%s12714_s26 + $0x1130] sm:$0xff]  ;;  %v894_v10 = vld [vmem:[%s12714_s26 + $0x10c8] sm:$0xff]  ;;  %v10661_v63 = vpack.c.bf16 %v900_v33, %v899_v53  ;;  %v956_v53 = vld [vmem:[%s12714_s26 + $0x12b8] sm:$0xff] }
 0x17c   : > { %10596 = vmatpush3.bf16.msra.mxu0 %v10595_v8  ;;  %v908_v8 = vld [vmem:[%s12714_s26 + $0x1138] sm:$0xff]  ;;  %v10649_v17 = vpack.c.bf16 %v894_v10, %v893_v9  ;;  %v961_v23 = vld [vmem:[%s12714_s26 + $0x12e0] sm:$0xff] }
 0x17d   : > { %10628 = vmatpush3.bf16.msra.mxu1 %v10627_v12  ;;  %10598 = vmatprep.subr.bf16.mxu0 %v10597_v14  ;;  %v925_v12 = vld [vmem:[%s12714_s26 + $0x11c0] sm:$0xff]  ;;  %v926_v14 = vld [vmem:[%s12714_s26 + $0x11c8] sm:$0xff]  ;;  %v10679_v11 = vpack.c.bf16 %v908_v8, %v907_v6  ;;  %v988_v33 = vld [vmem:[%s12714_s26 + $0x13b8] sm:$0xff] }
 0x17e   : > { %10630 = vmatprep.subr.bf16.mxu1 %v10629_v18  ;;  %v877_v18 = vld [vmem:[%s12714_s26 + $0x1040] sm:$0xff]  ;;  %v10681_v20 = vpack.c.bf16 %v926_v14, %v925_v12  ;;  %v950_v6 = vld [vmem:[%s12714_s26 + $0x1288] sm:$0xff] }
 0x17f   : > { %v982_v8 = vld [vmem:[%s12714_s26 + $0x1388] sm:$0xff]  ;;  %v10697_v14 = vpack.c.bf16 %v950_v6, %v949_v5  ;;  %v973_v5 = vld [vmem:[%s12714_s26 + $0x1340] sm:$0xff] }
 0x180   : > { %10600 = vmatpush3.bf16.msra.mxu0 %v10599_v25  ;;  %v927_v25 = vld [vmem:[%s12714_s26 + $0x11d0] sm:$0xff] }
 0x181   : > { %10632 = vmatpush3.bf16.msra.mxu1 %v10631_v26  ;;  %10634 = vmatprep.subr.bf16.mxu0 %v10633_v27  ;;  %v928_v26 = vld [vmem:[%s12714_s26 + $0x11d8] sm:$0xff]  ;;  %v10651_v27 = vpack.c.bf16 %v878_v15, %v877_v18  ;;  %v966_v15 = vld [vmem:[%s12714_s26 + $0x1308] sm:$0xff] }
 0x182   : > { %10666 = vmatprep.subr.bf16.mxu1 %v10665_v31  ;;  %v880_v31 = vld [vmem:[%s12714_s26 + $0x1058] sm:$0xff]  ;;  %v10685_v34 = vpack.c.bf16 %v928_v26, %v927_v25 }
 0x183   : > { %4154 = vmatmul.mubr.f32.vlgmr.msra.gmra.mrb[14].mxu0 %v13249_v51  ;;  %v874_v51 = vld [vmem:[%s12714_s26 + $0x1028] sm:$0xff] }
 0x184   : > { %10636 = vmatpush3.bf16.msra.mxu0 %v10635_v39  ;;  %4224 = vmatmul.mubr.f32.vlgmr.msra.gmra.mrb[14].mxu1 %v13254_v54  ;;  %v923_v54 = vld [vmem:[%s12714_s26 + $0x11b0] sm:$0xff]  ;;  %v10643_v1 = vpack.c.bf16 %v874_v51, %v873_v60  ;;  %v929_v39 = vld [vmem:[%s12714_s26 + $0x11e0] sm:$0xff] }
 0x185   : > { %10668 = vmatpush3.bf16.msra.mxu1 %v10667_v52  ;;  %10638 = vmatprep.subr.bf16.mxu0 %v10637_v40  ;;  %v10677_v7 = vpack.c.bf16 %v924_v0, %v923_v54  ;;  %v930_v52 = vld [vmem:[%s12714_s26 + $0x11e8] sm:$0xff]  ;;  %v10655_v40 = vpack.c.bf16 %v880_v31, %v879_v30  ;;  %v883_v54 = vld [vmem:[%s12714_s26 + $0x1070] sm:$0xff]  ;;  %v884_v0 = vld [vmem:[%s12714_s26 + $0x1078] sm:$0xff] }
 0x186   : > { %10670 = vmatprep.subr.bf16.mxu1 %v10669_v46  ;;  %4293 = vmatprep.mubr.f32.mxu0 %v2588_v50  ;;  %v882_v46 = vld [vmem:[%s12714_s26 + $0x1068] sm:$0xff]  ;;  %v10689_v49 = vpack.c.bf16 %v930_v52, %v929_v39  ;;  %v936_v30 = vld [vmem:[%s12714_s26 + $0x1218] sm:$0xff]  ;;  %v967_v31 = vld [vmem:[%s12714_s26 + $0x1310] sm:$0xff] }
 0x187   : > { %4363 = vmatprep.mubr.f32.mxu1 %v2589_v55  ;;  %v914_v50 = vld [vmem:[%s12714_s26 + $0x1168] sm:$0xff]  ;;  %v10659_v57 = vpack.c.bf16 %v882_v46, %v881_v44  ;;  %v985_v39 = vld [vmem:[%s12714_s26 + $0x13a0] sm:$0xff]  ;;  %v10705_v44 = vpack.c.bf16 %v954_v37, %v953_v35 }
 0x188   : > { %10640 = vmatpush3.bf16.msra.mxu0 %v10639_v56  ;;  %v10691_v62 = vpack.c.bf16 %v914_v50, %v913_v47  ;;  %v986_v52 = vld [vmem:[%s12714_s26 + $0x13a8] sm:$0xff]  ;;  %v937_v46 = vld [vmem:[%s12714_s26 + $0x1220] sm:$0xff]  ;;  %v955_v50 = vld [vmem:[%s12714_s26 + $0x12b0] sm:$0xff] }
 0x189   : > { %10672 = vmatpush3.bf16.msra.mxu1 %v10671_v58  ;;  %10642 = vmatprep.subr.bf16.mxu0 %v10641_v59  ;;  %v931_v58 = vld [vmem:[%s12714_s26 + $0x11f0] sm:$0xff]  ;;  %v932_v59 = vld [vmem:[%s12714_s26 + $0x11f8] sm:$0xff]  ;;  %v969_v47 = vld [vmem:[%s12714_s26 + $0x1320] sm:$0xff] }
 0x18a   : > { %10674 = vmatprep.subr.bf16.mxu1 %v10673_v45  ;;  %v334_v45 = vld [vmem:[#allocation3 + $0x48] sm:$0xff] }
 0x18b   : > { %v2590_v9 = vcombine.high %v334_v45, %v334_v45  ;;  %v13406_v22 = vrot.slane %v334_v45, %v12766_v13  ;;  %v972_v45 = vld [vmem:[%s12714_s26 + $0x1338] sm:$0xff] }
 0x18c   : > { %10644 = vmatpush3.bf16.msra.mxu0 %v10643_v1  ;;  %v915_v1 = vld [vmem:[%s12714_s26 + $0x1170] sm:$0xff] }
 0x18d   : > { %10676 = vmatpush3.bf16.msra.mxu1 %v10675_v2  ;;  %10646 = vmatprep.subr.bf16.mxu0 %v10645_v3  ;;  %v10693_v3 = vpack.c.bf16 %v932_v59, %v931_v58  ;;  %v10695_v12 = vpack.c.bf16 %v916_v4, %v915_v1  ;;  %v13411_v25 = vrot.slane %v2590_v9, %v12766_v13  ;;  %v939_v59 = vld [vmem:[%s12714_s26 + $0x1230] sm:$0xff]  ;;  %v942_v4 = vld [vmem:[%s12714_s26 + $0x1248] sm:$0xff]  ;;  %v960_v9 = vld [vmem:[%s12714_s26 + $0x12d8] sm:$0xff] }
 0x18e   : > { %10678 = vmatprep.subr.bf16.mxu1 %v10677_v7  ;;  %v981_v7 = vld [vmem:[%s12714_s26 + $0x1380] sm:$0xff]  ;;  %v2605_v42 = vcombine.high %v13406_v22, %v13406_v22  ;;  %v10709_v58 = vpack.c.bf16 %v956_v53, %v955_v50 }
 0x18f   : > { %v10729_v18 = vpack.c.bf16 %v982_v8, %v981_v7  ;;  %v974_v7 = vld [vmem:[%s12714_s26 + $0x1348] sm:$0xff]  ;;  %v959_v8 = vld [vmem:[%s12714_s26 + $0x12d0] sm:$0xff] }
 0x190   : > { %10648 = vmatpush3.bf16.msra.mxu0 %v10647_v16  ;;  %v933_v16 = vld [vmem:[%s12714_s26 + $0x1200] sm:$0xff] }
 0x191   : > { %10680 = vmatpush3.bf16.msra.mxu1 %v10679_v11  ;;  %10650 = vmatprep.subr.bf16.mxu0 %v10649_v17  ;;  %v934_v11 = vld [vmem:[%s12714_s26 + $0x1208] sm:$0xff]  ;;  %v965_v17 = vld [vmem:[%s12714_s26 + $0x1300] sm:$0xff] }
 0x192   : > { %10682 = vmatprep.subr.bf16.mxu1 %v10681_v20  ;;  %v952_v20 = vld [vmem:[%s12714_s26 + $0x1298] sm:$0xff]  ;;  %v10699_v26 = vpack.c.bf16 %v934_v11, %v933_v16  ;;  %v10747_v16 = vpack.c.bf16 %v974_v7, %v973_v5  ;;  %v10717_v11 = vpack.c.bf16 %v960_v9, %v959_v8  ;;  %v1015_v5 = vld [vmem:[%s12714_s26 + $0x1490] sm:$0xff] }
 0x193   : > { %v1047_v8 = vld [vmem:[%s12714_s26 + $0x1590] sm:$0xff]  ;;  %v1048_v9 = vld [vmem:[%s12714_s26 + $0x1598] sm:$0xff] }
 0x194   : > { %10652 = vmatpush3.bf16.msra.mxu0 %v10651_v27  ;;  %v10731_v27 = vpack.c.bf16 %v966_v15, %v965_v17  ;;  %v943_v17 = vld [vmem:[%s12714_s26 + $0x1250] sm:$0xff] }
 0x195   : > { %10684 = vmatpush3.bf16.msra.mxu1 %v10683_v28  ;;  %10654 = vmatprep.subr.bf16.mxu0 %v10653_v29  ;;  %v10701_v28 = vpack.c.bf16 %v952_v20, %v951_v19  ;;  %v935_v29 = vld [vmem:[%s12714_s26 + $0x1210] sm:$0xff]  ;;  %v976_v20 = vld [vmem:[%s12714_s26 + $0x1358] sm:$0xff] }
 0x196   : > { %v7955_v48 = vpop.f32.mrb[2].mxu0  ;;  %10686 = vmatprep.subr.bf16.mxu1 %v10685_v34  ;;  %v968_v34 = vld [vmem:[%s12714_s26 + $0x1318] sm:$0xff]  ;;  %v975_v15 = vld [vmem:[%s12714_s26 + $0x1350] sm:$0xff] }
 0x197   : > { %v7956_v55 = vpop.f32.mrb[3].mxu0  ;;  %v7990_v56 = vpop.f32.mrb[2].mxu1 }
 0x198   : > { %v7957_v60 = vadd.f32 %v7956_v55, %v7955_v48  ;;  %10656 = vmatpush3.bf16.msra.mxu0 %v10655_v40  ;;  %v7991_v51 = vpop.f32.mrb[3].mxu1  ;;  %v2606_v40 = vcombine.high %v13411_v25, %v13411_v25  ;;  %v10737_v48 = vpack.c.bf16 %v986_v52, %v985_v39  ;;  %v963_v39 = vld [vmem:[%s12714_s26 + $0x12f0] sm:$0xff]  ;;  %v964_v52 = vld [vmem:[%s12714_s26 + $0x12f8] sm:$0xff] }
 0x199   : > { %v7992_v61 = vadd.f32 %v7991_v51, %v7990_v56  ;;  %10688 = vmatpush3.bf16.msra.mxu1 %v10687_v41  ;;  %10658 = vmatprep.subr.bf16.mxu0 %v10657_v43  ;;  %v10703_v41 = vpack.c.bf16 %v936_v30, %v935_v29  ;;  %v10735_v43 = vpack.c.bf16 %v968_v34, %v967_v31  ;;  %v971_v51 = vld [vmem:[%s12714_s26 + $0x1330] sm:$0xff]  ;;  %v945_v31 = vld [vmem:[%s12714_s26 + $0x1260] sm:$0xff] }
 0x19a   : > { %v3316_v2 = vadd.f32 %v7957_v60, %v13316_v21  ;;  %10690 = vmatprep.subr.bf16.mxu1 %v10689_v49  ;;  %v10663_v21 = vpack.c.bf16 %v884_v0, %v883_v54  ;;  %v970_v49 = vld [vmem:[%s12714_s26 + $0x1328] sm:$0xff]  ;;  %v940_v60 = vld [vmem:[%s12714_s26 + $0x1238] sm:$0xff]  ;;  %v10743_v1 = vpack.c.bf16 %v972_v45, %v971_v51  ;;  %v10751_v29 = vpack.c.bf16 %v976_v20, %v975_v15  ;;  %v977_v34 = vld [vmem:[%s12714_s26 + $0x1360] sm:$0xff] }
 0x19b   : > { %v10739_v56 = vpack.c.bf16 %v970_v49, %v969_v47  ;;  %v990_v54 = vld [vmem:[%s12714_s26 + $0x13c8] sm:$0xff]  ;;  %v10711_v0 = vpack.c.bf16 %v940_v60, %v939_v59  ;;  %v10721_v30 = vpack.c.bf16 %v962_v24, %v961_v23  ;;  %v10725_v53 = vpack.c.bf16 %v964_v52, %v963_v39  ;;  %v980_v59 = vld [vmem:[%s12714_s26 + $0x1378] sm:$0xff]  ;;  %v1013_v60 = vld [vmem:[%s12714_s26 + $0x1480] sm:$0xff] }
 0x19c   : > { %v13397_v10 = vadd.f32 %v7992_v61, %v3316_v2  ;;  %10660 = vmatpush3.bf16.msra.mxu0 %v10659_v57  ;;  %v957_v61 = vld [vmem:[%s12714_s26 + $0x12c0] sm:$0xff]  ;;  %v1014_v51 = vld [vmem:[%s12714_s26 + $0x1488] sm:$0xff]  ;;  %v10797_v15 = vpack.c.bf16 %v1048_v9, %v1047_v8  ;;  %v1020_v39 = vld [vmem:[%s12714_s26 + $0x14b8] sm:$0xff] }
 0x19d   : > { %10692 = vmatpush3.bf16.msra.mxu1 %v10691_v62  ;;  %10662 = vmatprep.subr.bf16.mxu0 %v10661_v63  ;;  %v958_v62 = vld [vmem:[%s12714_s26 + $0x12c8] sm:$0xff]  ;;  %v989_v63 = vld [vmem:[%s12714_s26 + $0x13c0] sm:$0xff]  ;;  %v1052_v52 = vld [vmem:[%s12714_s26 + $0x15b8] sm:$0xff] }
 0x19e   : > { %10694 = vmatprep.subr.bf16.mxu1 %v10693_v3  ;;  %v10713_v2 = vpack.c.bf16 %v958_v62, %v957_v61  ;;  %v941_v3 = vld [vmem:[%s12714_s26 + $0x1240] sm:$0xff]  ;;  %v10745_v6 = vpack.c.bf16 %v990_v54, %v989_v63  ;;  %v1046_v45 = vld [vmem:[%s12714_s26 + $0x1588] sm:$0xff]  ;;  %v10761_v54 = vpack.c.bf16 %v1014_v51, %v1013_v60 }
 0x19f   : > { %v1017_v20 = vld [vmem:[%s12714_s26 + $0x14a0] sm:$0xff]  ;;  %v1018_v23 = vld [vmem:[%s12714_s26 + $0x14a8] sm:$0xff] }
 0x1a0   : > { %10664 = vmatpush3.bf16.msra.mxu0 %v10663_v21  ;;  %v991_v21 = vld [vmem:[%s12714_s26 + $0x13d0] sm:$0xff]  ;;  %v1037_v60 = vld [vmem:[%s12714_s26 + $0x1540] sm:$0xff]  ;;  %v1026_v9 = vld [vmem:[%s12714_s26 + $0x14e8] sm:$0xff] }
 0x1a1   : > { %10696 = vmatpush3.bf16.msra.mxu1 %v10695_v12  ;;  %10698 = vmatprep.subr.bf16.mxu0 %v10697_v14  ;;  %v992_v12 = vld [vmem:[%s12714_s26 + $0x13d8] sm:$0xff]  ;;  %v10715_v14 = vpack.c.bf16 %v942_v4, %v941_v3  ;;  %v1030_v4 = vld [vmem:[%s12714_s26 + $0x1508] sm:$0xff]  ;;  %v1025_v8 = vld [vmem:[%s12714_s26 + $0x14e0] sm:$0xff] }
 0x1a2   : > { %10730 = vmatprep.subr.bf16.mxu1 %v10729_v18  ;;  %v944_v18 = vld [vmem:[%s12714_s26 + $0x1258] sm:$0xff]  ;;  %v10749_v19 = vpack.c.bf16 %v992_v12, %v991_v21 }
 0x1a3   : > { %4294 = vmatmul.mubr.f32.vlgmr.msra.gmra.mrb[16].mxu0 %v13327_v36  ;;  %v938_v36 = vld [vmem:[%s12714_s26 + $0x1228] sm:$0xff] }
 0x1a4   : > { %10700 = vmatpush3.bf16.msra.mxu0 %v10699_v26  ;;  %4364 = vmatmul.mubr.f32.vlgmr.msra.gmra.mrb[16].mxu1 %v13332_v38  ;;  %v987_v38 = vld [vmem:[%s12714_s26 + $0x13b0] sm:$0xff]  ;;  %v10707_v55 = vpack.c.bf16 %v938_v36, %v937_v46  ;;  %v993_v26 = vld [vmem:[%s12714_s26 + $0x13e0] sm:$0xff] }
 0x1a5   : > { %10732 = vmatpush3.bf16.msra.mxu1 %v10731_v27  ;;  %10702 = vmatprep.subr.bf16.mxu0 %v10701_v28  ;;  %v10741_v57 = vpack.c.bf16 %v988_v33, %v987_v38  ;;  %v994_v27 = vld [vmem:[%s12714_s26 + $0x13e8] sm:$0xff]  ;;  %v10719_v28 = vpack.c.bf16 %v944_v18, %v943_v17  ;;  %v947_v38 = vld [vmem:[%s12714_s26 + $0x1270] sm:$0xff]  ;;  %v948_v33 = vld [vmem:[%s12714_s26 + $0x1278] sm:$0xff] }
 0x1a6   : > { %10734 = vmatprep.subr.bf16.mxu1 %v10733_v32  ;;  %4433 = vmatprep.mubr.f32.mxu0 %v2605_v42  ;;  %v946_v32 = vld [vmem:[%s12714_s26 + $0x1268] sm:$0xff]  ;;  %v10753_v37 = vpack.c.bf16 %v994_v27, %v993_v26  ;;  %v1000_v17 = vld [vmem:[%s12714_s26 + $0x1418] sm:$0xff]  ;;  %v1031_v18 = vld [vmem:[%s12714_s26 + $0x1510] sm:$0xff] }
 0x1a7   : > { %4503 = vmatprep.mubr.f32.mxu1 %v2606_v40  ;;  %v978_v42 = vld [vmem:[%s12714_s26 + $0x1368] sm:$0xff]  ;;  %v10723_v47 = vpack.c.bf16 %v946_v32, %v945_v31  ;;  %v1049_v26 = vld [vmem:[%s12714_s26 + $0x15a0] sm:$0xff]  ;;  %v10769_v31 = vpack.c.bf16 %v1018_v23, %v1017_v20 }
 0x1a8   : > { %10704 = vmatpush3.bf16.msra.mxu0 %v10703_v41  ;;  %v10755_v50 = vpack.c.bf16 %v978_v42, %v977_v34  ;;  %v1050_v27 = vld [vmem:[%s12714_s26 + $0x15a8] sm:$0xff]  ;;  %v1001_v32 = vld [vmem:[%s12714_s26 + $0x1420] sm:$0xff]  ;;  %v1019_v42 = vld [vmem:[%s12714_s26 + $0x14b0] sm:$0xff] }
 0x1a9   : > { %10736 = vmatpush3.bf16.msra.mxu1 %v10735_v43  ;;  %10706 = vmatprep.subr.bf16.mxu0 %v10705_v44  ;;  %v995_v43 = vld [vmem:[%s12714_s26 + $0x13f0] sm:$0xff]  ;;  %v996_v44 = vld [vmem:[%s12714_s26 + $0x13f8] sm:$0xff]  ;;  %v1033_v34 = vld [vmem:[%s12714_s26 + $0x1520] sm:$0xff] }
 0x1aa   : > { %10738 = vmatprep.subr.bf16.mxu1 %v10737_v48  ;;  %v335_v48 = vld [vmem:[#allocation3 + $0x50] sm:$0xff] }
 0x1ab   : > { %v2607_v61 = vcombine.high %v335_v48, %v335_v48  ;;  %v13485_v7 = vrot.slane %v335_v48, %v12766_v13  ;;  %v1036_v48 = vld [vmem:[%s12714_s26 + $0x1538] sm:$0xff] }
 0x1ac   : > { %10708 = vmatpush3.bf16.msra.mxu0 %v10707_v55  ;;  %v979_v55 = vld [vmem:[%s12714_s26 + $0x1370] sm:$0xff] }
 0x1ad   : > { %10740 = vmatpush3.bf16.msra.mxu1 %v10739_v56  ;;  %10710 = vmatprep.subr.bf16.mxu0 %v10709_v58  ;;  %v10757_v58 = vpack.c.bf16 %v996_v44, %v995_v43  ;;  %v10759_v63 = vpack.c.bf16 %v980_v59, %v979_v55  ;;  %v13490_v21 = vrot.slane %v2607_v61, %v12766_v13  ;;  %v1003_v44 = vld [vmem:[%s12714_s26 + $0x1430] sm:$0xff]  ;;  %v1006_v59 = vld [vmem:[%s12714_s26 + $0x1448] sm:$0xff]  ;;  %v1024_v61 = vld [vmem:[%s12714_s26 + $0x14d8] sm:$0xff] }
 0x1ae   : > { %10742 = vmatprep.subr.bf16.mxu1 %v10741_v57  ;;  %v1045_v57 = vld [vmem:[%s12714_s26 + $0x1580] sm:$0xff]  ;;  %v2622_v24 = vcombine.high %v13485_v7, %v13485_v7  ;;  %v10773_v43 = vpack.c.bf16 %v1020_v39, %v1019_v42 }
 0x1af   : > { %v10793_v3 = vpack.c.bf16 %v1046_v45, %v1045_v57  ;;  %v1038_v57 = vld [vmem:[%s12714_s26 + $0x1548] sm:$0xff]  ;;  %v1023_v45 = vld [vmem:[%s12714_s26 + $0x14d0] sm:$0xff] }
 0x1b0   : > { %10712 = vmatpush3.bf16.msra.mxu0 %v10711_v0  ;;  %v997_v0 = vld [vmem:[%s12714_s26 + $0x1400] sm:$0xff] }
 0x1b1   : > { %10744 = vmatpush3.bf16.msra.mxu1 %v10743_v1  ;;  %10714 = vmatprep.subr.bf16.mxu0 %v10713_v2  ;;  %v998_v1 = vld [vmem:[%s12714_s26 + $0x1408] sm:$0xff]  ;;  %v1029_v2 = vld [vmem:[%s12714_s26 + $0x1500] sm:$0xff] }
 0x1b2   : > { %10746 = vmatprep.subr.bf16.mxu1 %v10745_v6  ;;  %v1016_v6 = vld [vmem:[%s12714_s26 + $0x1498] sm:$0xff]  ;;  %v10763_v12 = vpack.c.bf16 %v998_v1, %v997_v0  ;;  %v10811_v0 = vpack.c.bf16 %v1038_v57, %v1037_v60  ;;  %v10781_v1 = vpack.c.bf16 %v1024_v61, %v1023_v45  ;;  %v1079_v60 = vld [vmem:[%s12714_s26 + $0x1690] sm:$0xff] }
 0x1b3   : > { %v1111_v45 = vld [vmem:[%s12714_s26 + $0x1790] sm:$0xff]  ;;  %v1112_v61 = vld [vmem:[%s12714_s26 + $0x1798] sm:$0xff] }
 0x1b4   : > { %10716 = vmatpush3.bf16.msra.mxu0 %v10715_v14  ;;  %v10795_v14 = vpack.c.bf16 %v1030_v4, %v1029_v2  ;;  %v1007_v2 = vld [vmem:[%s12714_s26 + $0x1450] sm:$0xff] }
 0x1b5   : > { %10748 = vmatpush3.bf16.msra.mxu1 %v10747_v16  ;;  %10718 = vmatprep.subr.bf16.mxu0 %v10717_v11  ;;  %v10765_v16 = vpack.c.bf16 %v1016_v6, %v1015_v5  ;;  %v999_v11 = vld [vmem:[%s12714_s26 + $0x1410] sm:$0xff]  ;;  %v1040_v6 = vld [vmem:[%s12714_s26 + $0x1558] sm:$0xff] }
 0x1b6   : > { %v8025_v35 = vpop.f32.mrb[4].mxu0  ;;  %10750 = vmatprep.subr.bf16.mxu1 %v10749_v19  ;;  %v1032_v19 = vld [vmem:[%s12714_s26 + $0x1518] sm:$0xff]  ;;  %v1039_v4 = vld [vmem:[%s12714_s26 + $0x1550] sm:$0xff] }
 0x1b7   : > { %v8026_v40 = vpop.f32.mrb[5].mxu0  ;;  %v8060_v41 = vpop.f32.mrb[4].mxu1 }
 0x1b8   : > { %v8027_v46 = vadd.f32 %v8026_v40, %v8025_v35  ;;  %10720 = vmatpush3.bf16.msra.mxu0 %v10719_v28  ;;  %v8061_v36 = vpop.f32.mrb[5].mxu1  ;;  %v2623_v28 = vcombine.high %v13490_v21, %v13490_v21  ;;  %v10801_v35 = vpack.c.bf16 %v1050_v27, %v1049_v26  ;;  %v1027_v26 = vld [vmem:[%s12714_s26 + $0x14f0] sm:$0xff]  ;;  %v1028_v27 = vld [vmem:[%s12714_s26 + $0x14f8] sm:$0xff] }
 0x1b9   : > { %v8062_v49 = vadd.f32 %v8061_v36, %v8060_v41  ;;  %10752 = vmatpush3.bf16.msra.mxu1 %v10751_v29  ;;  %10722 = vmatprep.subr.bf16.mxu0 %v10721_v30  ;;  %v10767_v29 = vpack.c.bf16 %v1000_v17, %v999_v11  ;;  %v10799_v30 = vpack.c.bf16 %v1032_v19, %v1031_v18  ;;  %v1035_v36 = vld [vmem:[%s12714_s26 + $0x1530] sm:$0xff]  ;;  %v1009_v18 = vld [vmem:[%s12714_s26 + $0x1460] sm:$0xff] }
 0x1ba   : > { %v3456_v56 = vadd.f32 %v8027_v46, %v13397_v10  ;;  %10754 = vmatprep.subr.bf16.mxu1 %v10753_v37  ;;  %v10727_v10 = vpack.c.bf16 %v948_v33, %v947_v38  ;;  %v1034_v37 = vld [vmem:[%s12714_s26 + $0x1528] sm:$0xff]  ;;  %v1004_v46 = vld [vmem:[%s12714_s26 + $0x1438] sm:$0xff]  ;;  %v10807_v55 = vpack.c.bf16 %v1036_v48, %v1035_v36  ;;  %v10815_v11 = vpack.c.bf16 %v1040_v6, %v1039_v4  ;;  %v1041_v19 = vld [vmem:[%s12714_s26 + $0x1560] sm:$0xff] }
 0x1bb   : > { %v10803_v41 = vpack.c.bf16 %v1034_v37, %v1033_v34  ;;  %v1054_v38 = vld [vmem:[%s12714_s26 + $0x15c8] sm:$0xff]  ;;  %v10775_v33 = vpack.c.bf16 %v1004_v46, %v1003_v44  ;;  %v10785_v17 = vpack.c.bf16 %v1026_v9, %v1025_v8  ;;  %v10789_v39 = vpack.c.bf16 %v1028_v27, %v1027_v26  ;;  %v1044_v44 = vld [vmem:[%s12714_s26 + $0x1578] sm:$0xff]  ;;  %v1077_v46 = vld [vmem:[%s12714_s26 + $0x1680] sm:$0xff] }
 0x1bc   : > { %v13476_v62 = vadd.f32 %v8062_v49, %v3456_v56  ;;  %10724 = vmatpush3.bf16.msra.mxu0 %v10723_v47  ;;  %v1021_v49 = vld [vmem:[%s12714_s26 + $0x14c0] sm:$0xff]  ;;  %v1078_v36 = vld [vmem:[%s12714_s26 + $0x1688] sm:$0xff]  ;;  %v10861_v4 = vpack.c.bf16 %v1112_v61, %v1111_v45  ;;  %v1084_v26 = vld [vmem:[%s12714_s26 + $0x16b8] sm:$0xff] }
 0x1bd   : > { %10756 = vmatpush3.bf16.msra.mxu1 %v10755_v50  ;;  %10726 = vmatprep.subr.bf16.mxu0 %v10725_v53  ;;  %v1022_v50 = vld [vmem:[%s12714_s26 + $0x14c8] sm:$0xff]  ;;  %v1053_v53 = vld [vmem:[%s12714_s26 + $0x15c0] sm:$0xff]  ;;  %v1116_v27 = vld [vmem:[%s12714_s26 + $0x17b8] sm:$0xff] }
 0x1be   : > { %10758 = vmatprep.subr.bf16.mxu1 %v10757_v58  ;;  %v10777_v56 = vpack.c.bf16 %v1022_v50, %v1021_v49  ;;  %v1005_v58 = vld [vmem:[%s12714_s26 + $0x1440] sm:$0xff]  ;;  %v10809_v51 = vpack.c.bf16 %v1054_v38, %v1053_v53  ;;  %v1110_v48 = vld [vmem:[%s12714_s26 + $0x1788] sm:$0xff]  ;;  %v10825_v38 = vpack.c.bf16 %v1078_v36, %v1077_v46 }
 0x1bf   : > { %v1081_v6 = vld [vmem:[%s12714_s26 + $0x16a0] sm:$0xff]  ;;  %v1082_v8 = vld [vmem:[%s12714_s26 + $0x16a8] sm:$0xff] }
 0x1c0   : > { %10728 = vmatpush3.bf16.msra.mxu0 %v10727_v10  ;;  %v1055_v10 = vld [vmem:[%s12714_s26 + $0x15d0] sm:$0xff]  ;;  %v1101_v46 = vld [vmem:[%s12714_s26 + $0x1740] sm:$0xff]  ;;  %v1090_v61 = vld [vmem:[%s12714_s26 + $0x16e8] sm:$0xff] }
 0x1c1   : > { %10760 = vmatpush3.bf16.msra.mxu1 %v10759_v63  ;;  %10762 = vmatprep.subr.bf16.mxu0 %v10761_v54  ;;  %v1056_v63 = vld [vmem:[%s12714_s26 + $0x15d8] sm:$0xff]  ;;  %v10779_v54 = vpack.c.bf16 %v1006_v59, %v1005_v58  ;;  %v1094_v59 = vld [vmem:[%s12714_s26 + $0x1708] sm:$0xff]  ;;  %v1089_v45 = vld [vmem:[%s12714_s26 + $0x16e0] sm:$0xff] }
 0x1c2   : > { %10794 = vmatprep.subr.bf16.mxu1 %v10793_v3  ;;  %v1008_v3 = vld [vmem:[%s12714_s26 + $0x1458] sm:$0xff]  ;;  %v10813_v5 = vpack.c.bf16 %v1056_v63, %v1055_v10 }
 0x1c3   : > { %4434 = vmatmul.mubr.f32.vlgmr.msra.gmra.mrb[18].mxu0 %v13406_v22  ;;  %v1002_v22 = vld [vmem:[%s12714_s26 + $0x1428] sm:$0xff] }
 0x1c4   : > { %10764 = vmatpush3.bf16.msra.mxu0 %v10763_v12  ;;  %4504 = vmatmul.mubr.f32.vlgmr.msra.gmra.mrb[18].mxu1 %v13411_v25  ;;  %v1051_v25 = vld [vmem:[%s12714_s26 + $0x15b0] sm:$0xff]  ;;  %v10771_v40 = vpack.c.bf16 %v1002_v22, %v1001_v32  ;;  %v1057_v12 = vld [vmem:[%s12714_s26 + $0x15e0] sm:$0xff] }
 0x1c5   : > { %10796 = vmatpush3.bf16.msra.mxu1 %v10795_v14  ;;  %10766 = vmatprep.subr.bf16.mxu0 %v10765_v16  ;;  %v10805_v47 = vpack.c.bf16 %v1052_v52, %v1051_v25  ;;  %v1058_v14 = vld [vmem:[%s12714_s26 + $0x15e8] sm:$0xff]  ;;  %v10783_v16 = vpack.c.bf16 %v1008_v3, %v1007_v2  ;;  %v1011_v25 = vld [vmem:[%s12714_s26 + $0x1470] sm:$0xff]  ;;  %v1012_v52 = vld [vmem:[%s12714_s26 + $0x1478] sm:$0xff] }
 0x1c6   : > { %10798 = vmatprep.subr.bf16.mxu1 %v10797_v15  ;;  %4573 = vmatprep.mubr.f32.mxu0 %v2622_v24  ;;  %v1010_v15 = vld [vmem:[%s12714_s26 + $0x1468] sm:$0xff]  ;;  %v10817_v23 = vpack.c.bf16 %v1058_v14, %v1057_v12  ;;  %v1064_v2 = vld [vmem:[%s12714_s26 + $0x1618] sm:$0xff]  ;;  %v1095_v3 = vld [vmem:[%s12714_s26 + $0x1710] sm:$0xff] }
 0x1c7   : > { %4643 = vmatprep.mubr.f32.mxu1 %v2623_v28  ;;  %v1042_v24 = vld [vmem:[%s12714_s26 + $0x1568] sm:$0xff]  ;;  %v10787_v34 = vpack.c.bf16 %v1010_v15, %v1009_v18  ;;  %v1113_v12 = vld [vmem:[%s12714_s26 + $0x17a0] sm:$0xff]  ;;  %v10833_v18 = vpack.c.bf16 %v1082_v8, %v1081_v6 }
 0x1c8   : > { %10768 = vmatpush3.bf16.msra.mxu0 %v10767_v29  ;;  %v10819_v42 = vpack.c.bf16 %v1042_v24, %v1041_v19  ;;  %v1114_v14 = vld [vmem:[%s12714_s26 + $0x17a8] sm:$0xff]  ;;  %v1065_v15 = vld [vmem:[%s12714_s26 + $0x1620] sm:$0xff]  ;;  %v1083_v24 = vld [vmem:[%s12714_s26 + $0x16b0] sm:$0xff] }
 0x1c9   : > { %10800 = vmatpush3.bf16.msra.mxu1 %v10799_v30  ;;  %10770 = vmatprep.subr.bf16.mxu0 %v10769_v31  ;;  %v1059_v30 = vld [vmem:[%s12714_s26 + $0x15f0] sm:$0xff]  ;;  %v1060_v31 = vld [vmem:[%s12714_s26 + $0x15f8] sm:$0xff]  ;;  %v1097_v19 = vld [vmem:[%s12714_s26 + $0x1720] sm:$0xff] }
 0x1ca   : > { %10802 = vmatprep.subr.bf16.mxu1 %v10801_v35  ;;  %v336_v35 = vld [vmem:[#allocation3 + $0x58] sm:$0xff] }
 0x1cb   : > { %v2624_v49 = vcombine.high %v336_v35, %v336_v35  ;;  %v13564_v57 = vrot.slane %v336_v35, %v12766_v13  ;;  %v1100_v35 = vld [vmem:[%s12714_s26 + $0x1738] sm:$0xff] }
 0x1cc   : > { %10772 = vmatpush3.bf16.msra.mxu0 %v10771_v40  ;;  %v1043_v40 = vld [vmem:[%s12714_s26 + $0x1570] sm:$0xff] }
 0x1cd   : > { %10804 = vmatpush3.bf16.msra.mxu1 %v10803_v41  ;;  %10774 = vmatprep.subr.bf16.mxu0 %v10773_v43  ;;  %v10821_v43 = vpack.c.bf16 %v1060_v31, %v1059_v30  ;;  %v10823_v53 = vpack.c.bf16 %v1044_v44, %v1043_v40  ;;  %v13569_v10 = vrot.slane %v2624_v49, %v12766_v13  ;;  %v1067_v31 = vld [vmem:[%s12714_s26 + $0x1630] sm:$0xff]  ;;  %v1070_v44 = vld [vmem:[%s12714_s26 + $0x1648] sm:$0xff]  ;;  %v1088_v49 = vld [vmem:[%s12714_s26 + $0x16d8] sm:$0xff] }
 0x1ce   : > { %10806 = vmatprep.subr.bf16.mxu1 %v10805_v47  ;;  %v1109_v47 = vld [vmem:[%s12714_s26 + $0x1780] sm:$0xff]  ;;  %v2639_v9 = vcombine.high %v13564_v57, %v13564_v57  ;;  %v10837_v30 = vpack.c.bf16 %v1084_v26, %v1083_v24 }
 0x1cf   : > { %v10857_v58 = vpack.c.bf16 %v1110_v48, %v1109_v47  ;;  %v1102_v47 = vld [vmem:[%s12714_s26 + $0x1748] sm:$0xff]  ;;  %v1087_v48 = vld [vmem:[%s12714_s26 + $0x16d0] sm:$0xff] }
 0x1d0   : > { %10776 = vmatpush3.bf16.msra.mxu0 %v10775_v33  ;;  %v1061_v33 = vld [vmem:[%s12714_s26 + $0x1600] sm:$0xff] }
 0x1d1   : > { %10808 = vmatpush3.bf16.msra.mxu1 %v10807_v55  ;;  %10778 = vmatprep.subr.bf16.mxu0 %v10777_v56  ;;  %v1062_v55 = vld [vmem:[%s12714_s26 + $0x1608] sm:$0xff]  ;;  %v1093_v56 = vld [vmem:[%s12714_s26 + $0x1700] sm:$0xff] }
 0x1d2   : > { %10810 = vmatprep.subr.bf16.mxu1 %v10809_v51  ;;  %v1080_v51 = vld [vmem:[%s12714_s26 + $0x1698] sm:$0xff]  ;;  %v10827_v63 = vpack.c.bf16 %v1062_v55, %v1061_v33  ;;  %v10875_v33 = vpack.c.bf16 %v1102_v47, %v1101_v46  ;;  %v10845_v55 = vpack.c.bf16 %v1088_v49, %v1087_v48  ;;  %v1143_v46 = vld [vmem:[%s12714_s26 + $0x1890] sm:$0xff] }
 0x1d3   : > { %v1175_v48 = vld [vmem:[%s12714_s26 + $0x1990] sm:$0xff]  ;;  %v1176_v49 = vld [vmem:[%s12714_s26 + $0x1998] sm:$0xff] }
 0x1d4   : > { %10780 = vmatpush3.bf16.msra.mxu0 %v10779_v54  ;;  %v10859_v54 = vpack.c.bf16 %v1094_v59, %v1093_v56  ;;  %v1071_v56 = vld [vmem:[%s12714_s26 + $0x1650] sm:$0xff] }
 0x1d5   : > { %10812 = vmatpush3.bf16.msra.mxu1 %v10811_v0  ;;  %10782 = vmatprep.subr.bf16.mxu0 %v10781_v1  ;;  %v10829_v0 = vpack.c.bf16 %v1080_v51, %v1079_v60  ;;  %v1063_v1 = vld [vmem:[%s12714_s26 + $0x1610] sm:$0xff]  ;;  %v1104_v51 = vld [vmem:[%s12714_s26 + $0x1758] sm:$0xff] }
 0x1d6   : > { %v8095_v20 = vpop.f32.mrb[6].mxu0  ;;  %10814 = vmatprep.subr.bf16.mxu1 %v10813_v5  ;;  %v1096_v5 = vld [vmem:[%s12714_s26 + $0x1718] sm:$0xff]  ;;  %v1103_v59 = vld [vmem:[%s12714_s26 + $0x1750] sm:$0xff] }
 0x1d7   : > { %v8096_v28 = vpop.f32.mrb[7].mxu0  ;;  %v8130_v29 = vpop.f32.mrb[6].mxu1 }
 0x1d8   : > { %v8097_v32 = vadd.f32 %v8096_v28, %v8095_v20  ;;  %10784 = vmatpush3.bf16.msra.mxu0 %v10783_v16  ;;  %v8131_v22 = vpop.f32.mrb[7].mxu1  ;;  %v2640_v16 = vcombine.high %v13569_v10, %v13569_v10  ;;  %v10865_v20 = vpack.c.bf16 %v1114_v14, %v1113_v12  ;;  %v1091_v12 = vld [vmem:[%s12714_s26 + $0x16f0] sm:$0xff]  ;;  %v1092_v14 = vld [vmem:[%s12714_s26 + $0x16f8] sm:$0xff] }
 0x1d9   : > { %v8132_v37 = vadd.f32 %v8131_v22, %v8130_v29  ;;  %10816 = vmatpush3.bf16.msra.mxu1 %v10815_v11  ;;  %10786 = vmatprep.subr.bf16.mxu0 %v10785_v17  ;;  %v10831_v11 = vpack.c.bf16 %v1064_v2, %v1063_v1  ;;  %v10863_v17 = vpack.c.bf16 %v1096_v5, %v1095_v3  ;;  %v1099_v22 = vld [vmem:[%s12714_s26 + $0x1730] sm:$0xff]  ;;  %v1073_v3 = vld [vmem:[%s12714_s26 + $0x1660] sm:$0xff] }
 0x1da   : > { %v3596_v41 = vadd.f32 %v8097_v32, %v13476_v62  ;;  %10818 = vmatprep.subr.bf16.mxu1 %v10817_v23  ;;  %v10791_v62 = vpack.c.bf16 %v1012_v52, %v1011_v25  ;;  %v1098_v23 = vld [vmem:[%s12714_s26 + $0x1728] sm:$0xff]  ;;  %v1068_v32 = vld [vmem:[%s12714_s26 + $0x1638] sm:$0xff]  ;;  %v10871_v40 = vpack.c.bf16 %v1100_v35, %v1099_v22  ;;  %v10879_v1 = vpack.c.bf16 %v1104_v51, %v1103_v59  ;;  %v1105_v5 = vld [vmem:[%s12714_s26 + $0x1760] sm:$0xff] }
 0x1db   : > { %v10867_v29 = vpack.c.bf16 %v1098_v23, %v1097_v19  ;;  %v1118_v25 = vld [vmem:[%s12714_s26 + $0x17c8] sm:$0xff]  ;;  %v10839_v52 = vpack.c.bf16 %v1068_v32, %v1067_v31  ;;  %v10849_v2 = vpack.c.bf16 %v1090_v61, %v1089_v45  ;;  %v10853_v26 = vpack.c.bf16 %v1092_v14, %v1091_v12  ;;  %v1108_v31 = vld [vmem:[%s12714_s26 + $0x1778] sm:$0xff]  ;;  %v1141_v32 = vld [vmem:[%s12714_s26 + $0x1880] sm:$0xff] }
 0x1dc   : > { %v13555_v50 = vadd.f32 %v8132_v37, %v3596_v41  ;;  %10788 = vmatpush3.bf16.msra.mxu0 %v10787_v34  ;;  %v1085_v37 = vld [vmem:[%s12714_s26 + $0x16c0] sm:$0xff]  ;;  %v1142_v22 = vld [vmem:[%s12714_s26 + $0x1888] sm:$0xff]  ;;  %v10925_v59 = vpack.c.bf16 %v1176_v49, %v1175_v48  ;;  %v1148_v12 = vld [vmem:[%s12714_s26 + $0x18b8] sm:$0xff] }
 0x1dd   : > { %10820 = vmatpush3.bf16.msra.mxu1 %v10819_v42  ;;  %10790 = vmatprep.subr.bf16.mxu0 %v10789_v39  ;;  %v1086_v42 = vld [vmem:[%s12714_s26 + $0x16c8] sm:$0xff]  ;;  %v1117_v39 = vld [vmem:[%s12714_s26 + $0x17c0] sm:$0xff]  ;;  %v1180_v14 = vld [vmem:[%s12714_s26 + $0x19b8] sm:$0xff] }
 0x1de   : > { %10822 = vmatprep.subr.bf16.mxu1 %v10821_v43  ;;  %v10841_v41 = vpack.c.bf16 %v1086_v42, %v1085_v37  ;;  %v1069_v43 = vld [vmem:[%s12714_s26 + $0x1640] sm:$0xff]  ;;  %v10873_v36 = vpack.c.bf16 %v1118_v25, %v1117_v39  ;;  %v1174_v35 = vld [vmem:[%s12714_s26 + $0x1988] sm:$0xff]  ;;  %v10889_v25 = vpack.c.bf16 %v1142_v22, %v1141_v32 }
 0x1df   : > { %v1145_v51 = vld [vmem:[%s12714_s26 + $0x18a0] sm:$0xff]  ;;  %v1146_v45 = vld [vmem:[%s12714_s26 + $0x18a8] sm:$0xff] }
 0x1e0   : > { %10792 = vmatpush3.bf16.msra.mxu0 %v10791_v62  ;;  %v1119_v62 = vld [vmem:[%s12714_s26 + $0x17d0] sm:$0xff]  ;;  %v1165_v32 = vld [vmem:[%s12714_s26 + $0x1940] sm:$0xff]  ;;  %v1154_v49 = vld [vmem:[%s12714_s26 + $0x18e8] sm:$0xff] }
 0x1e1   : > { %10824 = vmatpush3.bf16.msra.mxu1 %v10823_v53  ;;  %10826 = vmatprep.subr.bf16.mxu0 %v10825_v38  ;;  %v1120_v53 = vld [vmem:[%s12714_s26 + $0x17d8] sm:$0xff]  ;;  %v10843_v38 = vpack.c.bf16 %v1070_v44, %v1069_v43  ;;  %v1158_v44 = vld [vmem:[%s12714_s26 + $0x1908] sm:$0xff]  ;;  %v1153_v48 = vld [vmem:[%s12714_s26 + $0x18e0] sm:$0xff] }
 0x1e2   : > { %10858 = vmatprep.subr.bf16.mxu1 %v10857_v58  ;;  %v1072_v58 = vld [vmem:[%s12714_s26 + $0x1658] sm:$0xff]  ;;  %v10877_v60 = vpack.c.bf16 %v1120_v53, %v1119_v62 }
 0x1e3   : > { %4574 = vmatmul.mubr.f32.vlgmr.msra.gmra.mrb[20].mxu0 %v13485_v7  ;;  %v1066_v7 = vld [vmem:[%s12714_s26 + $0x1628] sm:$0xff] }
 0x1e4   : > { %10828 = vmatpush3.bf16.msra.mxu0 %v10827_v63  ;;  %4644 = vmatmul.mubr.f32.vlgmr.msra.gmra.mrb[20].mxu1 %v13490_v21  ;;  %v1115_v21 = vld [vmem:[%s12714_s26 + $0x17b0] sm:$0xff]  ;;  %v10835_v28 = vpack.c.bf16 %v1066_v7, %v1065_v15  ;;  %v1121_v63 = vld [vmem:[%s12714_s26 + $0x17e0] sm:$0xff] }
 0x1e5   : > { %10860 = vmatpush3.bf16.msra.mxu1 %v10859_v54  ;;  %10830 = vmatprep.subr.bf16.mxu0 %v10829_v0  ;;  %v10869_v34 = vpack.c.bf16 %v1116_v27, %v1115_v21  ;;  %v1122_v54 = vld [vmem:[%s12714_s26 + $0x17e8] sm:$0xff]  ;;  %v10847_v0 = vpack.c.bf16 %v1072_v58, %v1071_v56  ;;  %v1075_v21 = vld [vmem:[%s12714_s26 + $0x1670] sm:$0xff]  ;;  %v1076_v27 = vld [vmem:[%s12714_s26 + $0x1678] sm:$0xff] }
 0x1e6   : > { %10862 = vmatprep.subr.bf16.mxu1 %v10861_v4  ;;  %4713 = vmatprep.mubr.f32.mxu0 %v2639_v9  ;;  %v1074_v4 = vld [vmem:[%s12714_s26 + $0x1668] sm:$0xff]  ;;  %v10881_v8 = vpack.c.bf16 %v1122_v54, %v1121_v63  ;;  %v1128_v56 = vld [vmem:[%s12714_s26 + $0x1818] sm:$0xff]  ;;  %v1159_v58 = vld [vmem:[%s12714_s26 + $0x1910] sm:$0xff] }
 0x1e7   : > { %4783 = vmatprep.mubr.f32.mxu1 %v2640_v16  ;;  %v1106_v9 = vld [vmem:[%s12714_s26 + $0x1768] sm:$0xff]  ;;  %v10851_v19 = vpack.c.bf16 %v1074_v4, %v1073_v3  ;;  %v1177_v63 = vld [vmem:[%s12714_s26 + $0x19a0] sm:$0xff]  ;;  %v10897_v3 = vpack.c.bf16 %v1146_v45, %v1145_v51 }
 0x1e8   : > { %10832 = vmatpush3.bf16.msra.mxu0 %v10831_v11  ;;  %v10883_v24 = vpack.c.bf16 %v1106_v9, %v1105_v5  ;;  %v1178_v54 = vld [vmem:[%s12714_s26 + $0x19a8] sm:$0xff]  ;;  %v1129_v4 = vld [vmem:[%s12714_s26 + $0x1820] sm:$0xff]  ;;  %v1147_v9 = vld [vmem:[%s12714_s26 + $0x18b0] sm:$0xff] }
 0x1e9   : > { %10864 = vmatpush3.bf16.msra.mxu1 %v10863_v17  ;;  %10834 = vmatprep.subr.bf16.mxu0 %v10833_v18  ;;  %v1123_v17 = vld [vmem:[%s12714_s26 + $0x17f0] sm:$0xff]  ;;  %v1124_v18 = vld [vmem:[%s12714_s26 + $0x17f8] sm:$0xff]  ;;  %v1161_v5 = vld [vmem:[%s12714_s26 + $0x1920] sm:$0xff] }
 0x1ea   : > { %10866 = vmatprep.subr.bf16.mxu1 %v10865_v20  ;;  %v337_v20 = vld [vmem:[#allocation3 + $0x60] sm:$0xff] }
 0x1eb   : > { %v2641_v37 = vcombine.high %v337_v20, %v337_v20  ;;  %v13643_v47 = vrot.slane %v337_v20, %v12766_v13  ;;  %v1164_v20 = vld [vmem:[%s12714_s26 + $0x1938] sm:$0xff] }
 0x1ec   : > { %10836 = vmatpush3.bf16.msra.mxu0 %v10835_v28  ;;  %v1107_v28 = vld [vmem:[%s12714_s26 + $0x1770] sm:$0xff] }
 0x1ed   : > { %10868 = vmatpush3.bf16.msra.mxu1 %v10867_v29  ;;  %10838 = vmatprep.subr.bf16.mxu0 %v10837_v30  ;;  %v10885_v30 = vpack.c.bf16 %v1124_v18, %v1123_v17  ;;  %v10887_v39 = vpack.c.bf16 %v1108_v31, %v1107_v28  ;;  %v13648_v62 = vrot.slane %v2641_v37, %v12766_v13  ;;  %v1131_v18 = vld [vmem:[%s12714_s26 + $0x1830] sm:$0xff]  ;;  %v1134_v31 = vld [vmem:[%s12714_s26 + $0x1848] sm:$0xff]  ;;  %v1152_v37 = vld [vmem:[%s12714_s26 + $0x18d8] sm:$0xff] }
 0x1ee   : > { %10870 = vmatprep.subr.bf16.mxu1 %v10869_v34  ;;  %v1173_v34 = vld [vmem:[%s12714_s26 + $0x1980] sm:$0xff]  ;;  %v2656_v61 = vcombine.high %v13643_v47, %v13643_v47  ;;  %v10901_v17 = vpack.c.bf16 %v1148_v12, %v1147_v9 }
 0x1ef   : > { %v10921_v43 = vpack.c.bf16 %v1174_v35, %v1173_v34  ;;  %v1166_v34 = vld [vmem:[%s12714_s26 + $0x1948] sm:$0xff]  ;;  %v1151_v35 = vld [vmem:[%s12714_s26 + $0x18d0] sm:$0xff] }
 0x1f0   : > { %10840 = vmatpush3.bf16.msra.mxu0 %v10839_v52  ;;  %v1125_v52 = vld [vmem:[%s12714_s26 + $0x1800] sm:$0xff] }
 0x1f1   : > { %10872 = vmatpush3.bf16.msra.mxu1 %v10871_v40  ;;  %10842 = vmatprep.subr.bf16.mxu0 %v10841_v41  ;;  %v1126_v40 = vld [vmem:[%s12714_s26 + $0x1808] sm:$0xff]  ;;  %v1157_v41 = vld [vmem:[%s12714_s26 + $0x1900] sm:$0xff] }
 0x1f2   : > { %10874 = vmatprep.subr.bf16.mxu1 %v10873_v36  ;;  %v1144_v36 = vld [vmem:[%s12714_s26 + $0x1898] sm:$0xff]  ;;  %v10891_v53 = vpack.c.bf16 %v1126_v40, %v1125_v52  ;;  %v10939_v52 = vpack.c.bf16 %v1166_v34, %v1165_v32  ;;  %v10909_v40 = vpack.c.bf16 %v1152_v37, %v1151_v35  ;;  %v1207_v32 = vld [vmem:[%s12714_s26 + $0x1a90] sm:$0xff] }
 0x1f3   : > { %v1239_v35 = vld [vmem:[%s12714_s26 + $0x1b90] sm:$0xff]  ;;  %v1240_v37 = vld [vmem:[%s12714_s26 + $0x1b98] sm:$0xff] }
 0x1f4   : > { %10844 = vmatpush3.bf16.msra.mxu0 %v10843_v38  ;;  %v10923_v38 = vpack.c.bf16 %v1158_v44, %v1157_v41  ;;  %v1135_v41 = vld [vmem:[%s12714_s26 + $0x1850] sm:$0xff] }
 0x1f5   : > { %10876 = vmatpush3.bf16.msra.mxu1 %v10875_v33  ;;  %10846 = vmatprep.subr.bf16.mxu0 %v10845_v55  ;;  %v10893_v33 = vpack.c.bf16 %v1144_v36, %v1143_v46  ;;  %v1127_v55 = vld [vmem:[%s12714_s26 + $0x1810] sm:$0xff]  ;;  %v1168_v36 = vld [vmem:[%s12714_s26 + $0x1958] sm:$0xff] }
 0x1f6   : > { %v8165_v6 = vpop.f32.mrb[8].mxu0  ;;  %10878 = vmatprep.subr.bf16.mxu1 %v10877_v60  ;;  %v1160_v60 = vld [vmem:[%s12714_s26 + $0x1918] sm:$0xff]  ;;  %v1167_v44 = vld [vmem:[%s12714_s26 + $0x1950] sm:$0xff] }
 0x1f7   : > { %v8166_v16 = vpop.f32.mrb[9].mxu0  ;;  %v8200_v11 = vpop.f32.mrb[8].mxu1 }
 0x1f8   : > { %v8167_v15 = vadd.f32 %v8166_v16, %v8165_v6  ;;  %10848 = vmatpush3.bf16.msra.mxu0 %v10847_v0  ;;  %v8201_v7 = vpop.f32.mrb[9].mxu1  ;;  %v2657_v0 = vcombine.high %v13648_v62, %v13648_v62  ;;  %v10929_v6 = vpack.c.bf16 %v1178_v54, %v1177_v63  ;;  %v1155_v63 = vld [vmem:[%s12714_s26 + $0x18f0] sm:$0xff]  ;;  %v1156_v54 = vld [vmem:[%s12714_s26 + $0x18f8] sm:$0xff] }
 0x1f9   : > { %v8202_v23 = vadd.f32 %v8201_v7, %v8200_v11  ;;  %10880 = vmatpush3.bf16.msra.mxu1 %v10879_v1  ;;  %10850 = vmatprep.subr.bf16.mxu0 %v10849_v2  ;;  %v10895_v1 = vpack.c.bf16 %v1128_v56, %v1127_v55  ;;  %v10927_v2 = vpack.c.bf16 %v1160_v60, %v1159_v58  ;;  %v1163_v7 = vld [vmem:[%s12714_s26 + $0x1930] sm:$0xff]  ;;  %v1137_v58 = vld [vmem:[%s12714_s26 + $0x1860] sm:$0xff] }
 0x1fa   : > { %v3736_v29 = vadd.f32 %v8167_v15, %v13555_v50  ;;  %10882 = vmatprep.subr.bf16.mxu1 %v10881_v8  ;;  %v10855_v50 = vpack.c.bf16 %v1076_v27, %v1075_v21  ;;  %v1162_v8 = vld [vmem:[%s12714_s26 + $0x1928] sm:$0xff]  ;;  %v1132_v15 = vld [vmem:[%s12714_s26 + $0x1838] sm:$0xff]  ;;  %v10935_v28 = vpack.c.bf16 %v1164_v20, %v1163_v7  ;;  %v10943_v55 = vpack.c.bf16 %v1168_v36, %v1167_v44  ;;  %v1169_v60 = vld [vmem:[%s12714_s26 + $0x1960] sm:$0xff] }
 0x1fb   : > { %v10931_v11 = vpack.c.bf16 %v1162_v8, %v1161_v5  ;;  %v1182_v21 = vld [vmem:[%s12714_s26 + $0x19c8] sm:$0xff]  ;;  %v10903_v27 = vpack.c.bf16 %v1132_v15, %v1131_v18  ;;  %v10913_v56 = vpack.c.bf16 %v1154_v49, %v1153_v48  ;;  %v10917_v12 = vpack.c.bf16 %v1156_v54, %v1155_v63  ;;  %v1172_v18 = vld [vmem:[%s12714_s26 + $0x1978] sm:$0xff]  ;;  %v1205_v15 = vld [vmem:[%s12714_s26 + $0x1a80] sm:$0xff] }
 0x1fc   : > { %v13634_v42 = vadd.f32 %v8202_v23, %v3736_v29  ;;  %10852 = vmatpush3.bf16.msra.mxu0 %v10851_v19  ;;  %v1149_v23 = vld [vmem:[%s12714_s26 + $0x18c0] sm:$0xff]  ;;  %v1206_v7 = vld [vmem:[%s12714_s26 + $0x1a88] sm:$0xff]  ;;  %v10989_v44 = vpack.c.bf16 %v1240_v37, %v1239_v35  ;;  %v1212_v63 = vld [vmem:[%s12714_s26 + $0x1ab8] sm:$0xff] }
 0x1fd   : > { %10884 = vmatpush3.bf16.msra.mxu1 %v10883_v24  ;;  %10854 = vmatprep.subr.bf16.mxu0 %v10853_v26  ;;  %v1150_v24 = vld [vmem:[%s12714_s26 + $0x18c8] sm:$0xff]  ;;  %v1181_v26 = vld [vmem:[%s12714_s26 + $0x19c0] sm:$0xff]  ;;  %v1244_v54 = vld [vmem:[%s12714_s26 + $0x1bb8] sm:$0xff] }
 0x1fe   : > { %10886 = vmatprep.subr.bf16.mxu1 %v10885_v30  ;;  %v10905_v29 = vpack.c.bf16 %v1150_v24, %v1149_v23  ;;  %v1133_v30 = vld [vmem:[%s12714_s26 + $0x1840] sm:$0xff]  ;;  %v10937_v22 = vpack.c.bf16 %v1182_v21, %v1181_v26  ;;  %v1238_v20 = vld [vmem:[%s12714_s26 + $0x1b88] sm:$0xff]  ;;  %v10953_v21 = vpack.c.bf16 %v1206_v7, %v1205_v15 }
 0x1ff   : > { %v1209_v36 = vld [vmem:[%s12714_s26 + $0x1aa0] sm:$0xff]  ;;  %v1210_v48 = vld [vmem:[%s12714_s26 + $0x1aa8] sm:$0xff] }
 0x200   : > { %10856 = vmatpush3.bf16.msra.mxu0 %v10855_v50  ;;  %v1183_v50 = vld [vmem:[%s12714_s26 + $0x19d0] sm:$0xff]  ;;  %v1229_v15 = vld [vmem:[%s12714_s26 + $0x1b40] sm:$0xff]  ;;  %v1218_v37 = vld [vmem:[%s12714_s26 + $0x1ae8] sm:$0xff] }
 0x201   : > { %10888 = vmatpush3.bf16.msra.mxu1 %v10887_v39  ;;  %10890 = vmatprep.subr.bf16.mxu0 %v10889_v25  ;;  %v1184_v39 = vld [vmem:[%s12714_s26 + $0x19d8] sm:$0xff]  ;;  %v10907_v25 = vpack.c.bf16 %v1134_v31, %v1133_v30  ;;  %v1222_v31 = vld [vmem:[%s12714_s26 + $0x1b08] sm:$0xff]  ;;  %v1217_v35 = vld [vmem:[%s12714_s26 + $0x1ae0] sm:$0xff] }
 0x202   : > { %10922 = vmatprep.subr.bf16.mxu1 %v10921_v43  ;;  %v1136_v43 = vld [vmem:[%s12714_s26 + $0x1858] sm:$0xff]  ;;  %v10941_v46 = vpack.c.bf16 %v1184_v39, %v1183_v50 }
 0x203   : > { %4714 = vmatmul.mubr.f32.vlgmr.msra.gmra.mrb[22].mxu0 %v13564_v57  ;;  %v1130_v57 = vld [vmem:[%s12714_s26 + $0x1828] sm:$0xff] }
 0x204   : > { %10892 = vmatpush3.bf16.msra.mxu0 %v10891_v53  ;;  %4784 = vmatmul.mubr.f32.vlgmr.msra.gmra.mrb[22].mxu1 %v13569_v10  ;;  %v1179_v10 = vld [vmem:[%s12714_s26 + $0x19b0] sm:$0xff]  ;;  %v10899_v16 = vpack.c.bf16 %v1130_v57, %v1129_v4  ;;  %v1185_v53 = vld [vmem:[%s12714_s26 + $0x19e0] sm:$0xff] }
 0x205   : > { %10924 = vmatpush3.bf16.msra.mxu1 %v10923_v38  ;;  %10894 = vmatprep.subr.bf16.mxu0 %v10893_v33  ;;  %v10933_v19 = vpack.c.bf16 %v1180_v14, %v1179_v10  ;;  %v1186_v38 = vld [vmem:[%s12714_s26 + $0x19e8] sm:$0xff]  ;;  %v10911_v33 = vpack.c.bf16 %v1136_v43, %v1135_v41  ;;  %v1139_v10 = vld [vmem:[%s12714_s26 + $0x1870] sm:$0xff]  ;;  %v1140_v14 = vld [vmem:[%s12714_s26 + $0x1878] sm:$0xff] }
 0x206   : > { %10926 = vmatprep.subr.bf16.mxu1 %v10925_v59  ;;  %4853 = vmatprep.mubr.f32.mxu0 %v2656_v61  ;;  %v1138_v59 = vld [vmem:[%s12714_s26 + $0x1868] sm:$0xff]  ;;  %v10945_v45 = vpack.c.bf16 %v1186_v38, %v1185_v53  ;;  %v1192_v41 = vld [vmem:[%s12714_s26 + $0x1a18] sm:$0xff]  ;;  %v1223_v43 = vld [vmem:[%s12714_s26 + $0x1b10] sm:$0xff] }
 0x207   : > { %4923 = vmatprep.mubr.f32.mxu1 %v2657_v0  ;;  %v1170_v61 = vld [vmem:[%s12714_s26 + $0x1968] sm:$0xff]  ;;  %v10915_v5 = vpack.c.bf16 %v1138_v59, %v1137_v58  ;;  %v1241_v53 = vld [vmem:[%s12714_s26 + $0x1ba0] sm:$0xff]  ;;  %v10961_v58 = vpack.c.bf16 %v1210_v48, %v1209_v36 }
 0x208   : > { %10896 = vmatpush3.bf16.msra.mxu0 %v10895_v1  ;;  %v10947_v9 = vpack.c.bf16 %v1170_v61, %v1169_v60  ;;  %v1242_v38 = vld [vmem:[%s12714_s26 + $0x1ba8] sm:$0xff]  ;;  %v1193_v59 = vld [vmem:[%s12714_s26 + $0x1a20] sm:$0xff]  ;;  %v1211_v61 = vld [vmem:[%s12714_s26 + $0x1ab0] sm:$0xff] }
 0x209   : > { %10928 = vmatpush3.bf16.msra.mxu1 %v10927_v2  ;;  %10898 = vmatprep.subr.bf16.mxu0 %v10897_v3  ;;  %v1187_v2 = vld [vmem:[%s12714_s26 + $0x19f0] sm:$0xff]  ;;  %v1188_v3 = vld [vmem:[%s12714_s26 + $0x19f8] sm:$0xff]  ;;  %v1225_v60 = vld [vmem:[%s12714_s26 + $0x1b20] sm:$0xff] }
 0x20a   : > { %10930 = vmatprep.subr.bf16.mxu1 %v10929_v6  ;;  %v338_v6 = vld [vmem:[#allocation3 + $0x68] sm:$0xff] }
 0x20b   : > { %v2658_v23 = vcombine.high %v338_v6, %v338_v6  ;;  %v13722_v34 = vrot.slane %v338_v6, %v12766_v13  ;;  %v1228_v6 = vld [vmem:[%s12714_s26 + $0x1b38] sm:$0xff] }
 0x20c   : > { %10900 = vmatpush3.bf16.msra.mxu0 %v10899_v16  ;;  %v1171_v16 = vld [vmem:[%s12714_s26 + $0x1970] sm:$0xff] }
 0x20d   : > { %10932 = vmatpush3.bf16.msra.mxu1 %v10931_v11  ;;  %10902 = vmatprep.subr.bf16.mxu0 %v10901_v17  ;;  %v10949_v17 = vpack.c.bf16 %v1188_v3, %v1187_v2  ;;  %v10951_v26 = vpack.c.bf16 %v1172_v18, %v1171_v16  ;;  %v13727_v50 = vrot.slane %v2658_v23, %v12766_v13  ;;  %v1195_v3 = vld [vmem:[%s12714_s26 + $0x1a30] sm:$0xff]  ;;  %v1198_v18 = vld [vmem:[%s12714_s26 + $0x1a48] sm:$0xff]  ;;  %v1216_v23 = vld [vmem:[%s12714_s26 + $0x1ad8] sm:$0xff] }
 0x20e   : > { %10934 = vmatprep.subr.bf16.mxu1 %v10933_v19  ;;  %v1237_v19 = vld [vmem:[%s12714_s26 + $0x1b80] sm:$0xff]  ;;  %v2673_v49 = vcombine.high %v13722_v34, %v13722_v34  ;;  %v10965_v2 = vpack.c.bf16 %v1212_v63, %v1211_v61 }
 0x20f   : > { %v10985_v30 = vpack.c.bf16 %v1238_v20, %v1237_v19  ;;  %v1230_v19 = vld [vmem:[%s12714_s26 + $0x1b48] sm:$0xff]  ;;  %v1215_v20 = vld [vmem:[%s12714_s26 + $0x1ad0] sm:$0xff] }
 0x210   : > { %10904 = vmatpush3.bf16.msra.mxu0 %v10903_v27  ;;  %v1189_v27 = vld [vmem:[%s12714_s26 + $0x1a00] sm:$0xff] }
 0x211   : > { %10936 = vmatpush3.bf16.msra.mxu1 %v10935_v28  ;;  %10906 = vmatprep.subr.bf16.mxu0 %v10905_v29  ;;  %v1190_v28 = vld [vmem:[%s12714_s26 + $0x1a08] sm:$0xff]  ;;  %v1221_v29 = vld [vmem:[%s12714_s26 + $0x1b00] sm:$0xff] }
 0x212   : > { %10938 = vmatprep.subr.bf16.mxu1 %v10937_v22  ;;  %v1208_v22 = vld [vmem:[%s12714_s26 + $0x1a98] sm:$0xff]  ;;  %v10955_v39 = vpack.c.bf16 %v1190_v28, %v1189_v27  ;;  %v11003_v27 = vpack.c.bf16 %v1230_v19, %v1229_v15  ;;  %v10973_v28 = vpack.c.bf16 %v1216_v23, %v1215_v20  ;;  %v1271_v15 = vld [vmem:[%s12714_s26 + $0x1c90] sm:$0xff] }
 0x213   : > { %v1303_v20 = vld [vmem:[%s12714_s26 + $0x1d90] sm:$0xff]  ;;  %v1304_v23 = vld [vmem:[%s12714_s26 + $0x1d98] sm:$0xff] }
 0x214   : > { %10908 = vmatpush3.bf16.msra.mxu0 %v10907_v25  ;;  %v10987_v25 = vpack.c.bf16 %v1222_v31, %v1221_v29  ;;  %v1199_v29 = vld [vmem:[%s12714_s26 + $0x1a50] sm:$0xff] }
 0x215   : > { %10940 = vmatpush3.bf16.msra.mxu1 %v10939_v52  ;;  %10910 = vmatprep.subr.bf16.mxu0 %v10909_v40  ;;  %v10957_v52 = vpack.c.bf16 %v1208_v22, %v1207_v32  ;;  %v1191_v40 = vld [vmem:[%s12714_s26 + $0x1a10] sm:$0xff]  ;;  %v1232_v22 = vld [vmem:[%s12714_s26 + $0x1b58] sm:$0xff] }
 0x216   : > { %v8235_v51 = vpop.f32.mrb[10].mxu0  ;;  %10942 = vmatprep.subr.bf16.mxu1 %v10941_v46  ;;  %v1224_v46 = vld [vmem:[%s12714_s26 + $0x1b18] sm:$0xff]  ;;  %v1231_v31 = vld [vmem:[%s12714_s26 + $0x1b50] sm:$0xff] }
 0x217   : > { %v8236_v0 = vpop.f32.mrb[11].mxu0  ;;  %v8270_v1 = vpop.f32.mrb[10].mxu1 }
 0x218   : > { %v8237_v4 = vadd.f32 %v8236_v0, %v8235_v51  ;;  %10912 = vmatpush3.bf16.msra.mxu0 %v10911_v33  ;;  %v8271_v57 = vpop.f32.mrb[11].mxu1  ;;  %v2674_v33 = vcombine.high %v13727_v50, %v13727_v50  ;;  %v10993_v51 = vpack.c.bf16 %v1242_v38, %v1241_v53  ;;  %v1219_v53 = vld [vmem:[%s12714_s26 + $0x1af0] sm:$0xff]  ;;  %v1220_v38 = vld [vmem:[%s12714_s26 + $0x1af8] sm:$0xff] }
 0x219   : > { %v8272_v8 = vadd.f32 %v8271_v57, %v8270_v1  ;;  %10944 = vmatpush3.bf16.msra.mxu1 %v10943_v55  ;;  %10914 = vmatprep.subr.bf16.mxu0 %v10913_v56  ;;  %v10959_v55 = vpack.c.bf16 %v1192_v41, %v1191_v40  ;;  %v10991_v56 = vpack.c.bf16 %v1224_v46, %v1223_v43  ;;  %v1227_v57 = vld [vmem:[%s12714_s26 + $0x1b30] sm:$0xff]  ;;  %v1201_v43 = vld [vmem:[%s12714_s26 + $0x1a60] sm:$0xff] }
 0x21a   : > { %v3876_v11 = vadd.f32 %v8237_v4, %v13634_v42  ;;  %10946 = vmatprep.subr.bf16.mxu1 %v10945_v45  ;;  %v10919_v42 = vpack.c.bf16 %v1140_v14, %v1139_v10  ;;  %v1226_v45 = vld [vmem:[%s12714_s26 + $0x1b28] sm:$0xff]  ;;  %v1196_v4 = vld [vmem:[%s12714_s26 + $0x1a38] sm:$0xff]  ;;  %v10999_v16 = vpack.c.bf16 %v1228_v6, %v1227_v57  ;;  %v11007_v40 = vpack.c.bf16 %v1232_v22, %v1231_v31  ;;  %v1233_v46 = vld [vmem:[%s12714_s26 + $0x1b60] sm:$0xff] }
 0x21b   : > { %v10995_v1 = vpack.c.bf16 %v1226_v45, %v1225_v60  ;;  %v1246_v10 = vld [vmem:[%s12714_s26 + $0x1bc8] sm:$0xff]  ;;  %v10967_v14 = vpack.c.bf16 %v1196_v4, %v1195_v3  ;;  %v10977_v41 = vpack.c.bf16 %v1218_v37, %v1217_v35  ;;  %v10981_v63 = vpack.c.bf16 %v1220_v38, %v1219_v53  ;;  %v1236_v3 = vld [vmem:[%s12714_s26 + $0x1b78] sm:$0xff]  ;;  %v1269_v4 = vld [vmem:[%s12714_s26 + $0x1c80] sm:$0xff] }
 0x21c   : > { %v13713_v24 = vadd.f32 %v8272_v8, %v3876_v11  ;;  %10916 = vmatpush3.bf16.msra.mxu0 %v10915_v5  ;;  %v1213_v8 = vld [vmem:[%s12714_s26 + $0x1ac0] sm:$0xff]  ;;  %v1270_v57 = vld [vmem:[%s12714_s26 + $0x1c88] sm:$0xff]  ;;  %v11053_v31 = vpack.c.bf16 %v1304_v23, %v1303_v20  ;;  %v1276_v53 = vld [vmem:[%s12714_s26 + $0x1cb8] sm:$0xff] }
 0x21d   : > { %10948 = vmatpush3.bf16.msra.mxu1 %v10947_v9  ;;  %10918 = vmatprep.subr.bf16.mxu0 %v10917_v12  ;;  %v1214_v9 = vld [vmem:[%s12714_s26 + $0x1ac8] sm:$0xff]  ;;  %v1245_v12 = vld [vmem:[%s12714_s26 + $0x1bc0] sm:$0xff]  ;;  %v1308_v38 = vld [vmem:[%s12714_s26 + $0x1db8] sm:$0xff] }
 0x21e   : > { %10950 = vmatprep.subr.bf16.mxu1 %v10949_v17  ;;  %v10969_v11 = vpack.c.bf16 %v1214_v9, %v1213_v8  ;;  %v1197_v17 = vld [vmem:[%s12714_s26 + $0x1a40] sm:$0xff]  ;;  %v11001_v7 = vpack.c.bf16 %v1246_v10, %v1245_v12  ;;  %v1302_v6 = vld [vmem:[%s12714_s26 + $0x1d88] sm:$0xff]  ;;  %v11017_v10 = vpack.c.bf16 %v1270_v57, %v1269_v4 }
 0x21f   : > { %v1273_v22 = vld [vmem:[%s12714_s26 + $0x1ca0] sm:$0xff]  ;;  %v1274_v35 = vld [vmem:[%s12714_s26 + $0x1ca8] sm:$0xff] }
 0x220   : > { %10920 = vmatpush3.bf16.msra.mxu0 %v10919_v42  ;;  %v1247_v42 = vld [vmem:[%s12714_s26 + $0x1bd0] sm:$0xff]  ;;  %v1293_v4 = vld [vmem:[%s12714_s26 + $0x1d40] sm:$0xff]  ;;  %v1282_v23 = vld [vmem:[%s12714_s26 + $0x1ce8] sm:$0xff] }
 0x221   : > { %10952 = vmatpush3.bf16.msra.mxu1 %v10951_v26  ;;  %10954 = vmatprep.subr.bf16.mxu0 %v10953_v21  ;;  %v1248_v26 = vld [vmem:[%s12714_s26 + $0x1bd8] sm:$0xff]  ;;  %v10971_v21 = vpack.c.bf16 %v1198_v18, %v1197_v17  ;;  %v1286_v18 = vld [vmem:[%s12714_s26 + $0x1d08] sm:$0xff]  ;;  %v1281_v20 = vld [vmem:[%s12714_s26 + $0x1ce0] sm:$0xff] }
 0x222   : > { %10986 = vmatprep.subr.bf16.mxu1 %v10985_v30  ;;  %v1200_v30 = vld [vmem:[%s12714_s26 + $0x1a58] sm:$0xff]  ;;  %v11005_v32 = vpack.c.bf16 %v1248_v26, %v1247_v42 }
 0x223   : > { %4854 = vmatmul.mubr.f32.vlgmr.msra.gmra.mrb[24].mxu0 %v13643_v47  ;;  %v1194_v47 = vld [vmem:[%s12714_s26 + $0x1a28] sm:$0xff] }
 0x224   : > { %10956 = vmatpush3.bf16.msra.mxu0 %v10955_v39  ;;  %4924 = vmatmul.mubr.f32.vlgmr.msra.gmra.mrb[24].mxu1 %v13648_v62  ;;  %v1243_v62 = vld [vmem:[%s12714_s26 + $0x1bb0] sm:$0xff]  ;;  %v10963_v0 = vpack.c.bf16 %v1194_v47, %v1193_v59  ;;  %v1249_v39 = vld [vmem:[%s12714_s26 + $0x1be0] sm:$0xff] }
 0x225   : > { %10988 = vmatpush3.bf16.msra.mxu1 %v10987_v25  ;;  %10958 = vmatprep.subr.bf16.mxu0 %v10957_v52  ;;  %v10997_v5 = vpack.c.bf16 %v1244_v54, %v1243_v62  ;;  %v1250_v25 = vld [vmem:[%s12714_s26 + $0x1be8] sm:$0xff]  ;;  %v10975_v52 = vpack.c.bf16 %v1200_v30, %v1199_v29  ;;  %v1203_v62 = vld [vmem:[%s12714_s26 + $0x1a70] sm:$0xff]  ;;  %v1204_v54 = vld [vmem:[%s12714_s26 + $0x1a78] sm:$0xff] }
 0x226   : > { %10990 = vmatprep.subr.bf16.mxu1 %v10989_v44  ;;  %4993 = vmatprep.mubr.f32.mxu0 %v2673_v49  ;;  %v1202_v44 = vld [vmem:[%s12714_s26 + $0x1a68] sm:$0xff]  ;;  %v11009_v48 = vpack.c.bf16 %v1250_v25, %v1249_v39  ;;  %v1256_v29 = vld [vmem:[%s12714_s26 + $0x1c18] sm:$0xff]  ;;  %v1287_v30 = vld [vmem:[%s12714_s26 + $0x1d10] sm:$0xff] }
 0x227   : > { %5063 = vmatprep.mubr.f32.mxu1 %v2674_v33  ;;  %v1234_v49 = vld [vmem:[%s12714_s26 + $0x1b68] sm:$0xff]  ;;  %v10979_v60 = vpack.c.bf16 %v1202_v44, %v1201_v43  ;;  %v1305_v39 = vld [vmem:[%s12714_s26 + $0x1da0] sm:$0xff]  ;;  %v11025_v43 = vpack.c.bf16 %v1274_v35, %v1273_v22 }
 0x228   : > { %10960 = vmatpush3.bf16.msra.mxu0 %v10959_v55  ;;  %v11011_v61 = vpack.c.bf16 %v1234_v49, %v1233_v46  ;;  %v1306_v25 = vld [vmem:[%s12714_s26 + $0x1da8] sm:$0xff]  ;;  %v1257_v44 = vld [vmem:[%s12714_s26 + $0x1c20] sm:$0xff]  ;;  %v1275_v49 = vld [vmem:[%s12714_s26 + $0x1cb0] sm:$0xff] }
 0x229   : > { %10992 = vmatpush3.bf16.msra.mxu1 %v10991_v56  ;;  %10962 = vmatprep.subr.bf16.mxu0 %v10961_v58  ;;  %v1251_v56 = vld [vmem:[%s12714_s26 + $0x1bf0] sm:$0xff]  ;;  %v1252_v58 = vld [vmem:[%s12714_s26 + $0x1bf8] sm:$0xff]  ;;  %v1289_v46 = vld [vmem:[%s12714_s26 + $0x1d20] sm:$0xff] }
 0x22a   : > { %10994 = vmatprep.subr.bf16.mxu1 %v10993_v51  ;;  %v339_v51 = vld [vmem:[#allocation3 + $0x70] sm:$0xff] }
 0x22b   : > { %v2675_v8 = vcombine.high %v339_v51, %v339_v51  ;;  %v13801_v19 = vrot.slane %v339_v51, %v12766_v13  ;;  %v1292_v51 = vld [vmem:[%s12714_s26 + $0x1d38] sm:$0xff] }
 0x22c   : > { %10964 = vmatpush3.bf16.msra.mxu0 %v10963_v0  ;;  %v1235_v0 = vld [vmem:[%s12714_s26 + $0x1b70] sm:$0xff] }
 0x22d   : > { %10996 = vmatpush3.bf16.msra.mxu1 %v10995_v1  ;;  %10966 = vmatprep.subr.bf16.mxu0 %v10965_v2  ;;  %v11013_v2 = vpack.c.bf16 %v1252_v58, %v1251_v56  ;;  %v11015_v12 = vpack.c.bf16 %v1236_v3, %v1235_v0  ;;  %v13806_v42 = vrot.slane %v2675_v8, %v12766_v13  ;;  %v1259_v58 = vld [vmem:[%s12714_s26 + $0x1c30] sm:$0xff]  ;;  %v1262_v3 = vld [vmem:[%s12714_s26 + $0x1c48] sm:$0xff]  ;;  %v1280_v8 = vld [vmem:[%s12714_s26 + $0x1cd8] sm:$0xff] }
 0x22e   : > { %10998 = vmatprep.subr.bf16.mxu1 %v10997_v5  ;;  %v1301_v5 = vld [vmem:[%s12714_s26 + $0x1d80] sm:$0xff]  ;;  %v2690_v37 = vcombine.high %v13801_v19, %v13801_v19  ;;  %v11029_v56 = vpack.c.bf16 %v1276_v53, %v1275_v49 }
 0x22f   : > { %v11049_v17 = vpack.c.bf16 %v1302_v6, %v1301_v5  ;;  %v1294_v5 = vld [vmem:[%s12714_s26 + $0x1d48] sm:$0xff]  ;;  %v1279_v6 = vld [vmem:[%s12714_s26 + $0x1cd0] sm:$0xff] }
 0x230   : > { %10968 = vmatpush3.bf16.msra.mxu0 %v10967_v14  ;;  %v1253_v14 = vld [vmem:[%s12714_s26 + $0x1c00] sm:$0xff] }
 0x231   : > { %11000 = vmatpush3.bf16.msra.mxu1 %v10999_v16  ;;  %10970 = vmatprep.subr.bf16.mxu0 %v10969_v11  ;;  %v1254_v16 = vld [vmem:[%s12714_s26 + $0x1c08] sm:$0xff]  ;;  %v1285_v11 = vld [vmem:[%s12714_s26 + $0x1d00] sm:$0xff] }
 0x232   : > { %11002 = vmatprep.subr.bf16.mxu1 %v11001_v7  ;;  %v1272_v7 = vld [vmem:[%s12714_s26 + $0x1c98] sm:$0xff]  ;;  %v11019_v26 = vpack.c.bf16 %v1254_v16, %v1253_v14  ;;  %v11067_v14 = vpack.c.bf16 %v1294_v5, %v1293_v4  ;;  %v11037_v16 = vpack.c.bf16 %v1280_v8, %v1279_v6  ;;  %v1335_v4 = vld [vmem:[%s12714_s26 + $0x1e90] sm:$0xff] }
 0x233   : > { %v1367_v6 = vld [vmem:[%s12714_s26 + $0x1f90] sm:$0xff]  ;;  %v1368_v8 = vld [vmem:[%s12714_s26 + $0x1f98] sm:$0xff] }
 0x234   : > { %10972 = vmatpush3.bf16.msra.mxu0 %v10971_v21  ;;  %v11051_v21 = vpack.c.bf16 %v1286_v18, %v1285_v11  ;;  %v1263_v11 = vld [vmem:[%s12714_s26 + $0x1c50] sm:$0xff] }
 0x235   : > { %11004 = vmatpush3.bf16.msra.mxu1 %v11003_v27  ;;  %10974 = vmatprep.subr.bf16.mxu0 %v10973_v28  ;;  %v11021_v27 = vpack.c.bf16 %v1272_v7, %v1271_v15  ;;  %v1255_v28 = vld [vmem:[%s12714_s26 + $0x1c10] sm:$0xff]  ;;  %v1296_v7 = vld [vmem:[%s12714_s26 + $0x1d58] sm:$0xff] }
 0x236   : > { %v8305_v36 = vpop.f32.mrb[12].mxu0  ;;  %11006 = vmatprep.subr.bf16.mxu1 %v11005_v32  ;;  %v1288_v32 = vld [vmem:[%s12714_s26 + $0x1d18] sm:$0xff]  ;;  %v1295_v18 = vld [vmem:[%s12714_s26 + $0x1d50] sm:$0xff] }
 0x237   : > { %v8306_v33 = vpop.f32.mrb[13].mxu0  ;;  %v8340_v55 = vpop.f32.mrb[12].mxu1 }
 0x238   : > { %v8307_v59 = vadd.f32 %v8306_v33, %v8305_v36  ;;  %10976 = vmatpush3.bf16.msra.mxu0 %v10975_v52  ;;  %v8341_v47 = vpop.f32.mrb[13].mxu1  ;;  %v2691_v52 = vcombine.high %v13806_v42, %v13806_v42  ;;  %v11057_v36 = vpack.c.bf16 %v1306_v25, %v1305_v39  ;;  %v1283_v39 = vld [vmem:[%s12714_s26 + $0x1cf0] sm:$0xff]  ;;  %v1284_v25 = vld [vmem:[%s12714_s26 + $0x1cf8] sm:$0xff] }
 0x239   : > { %v8342_v45 = vadd.f32 %v8341_v47, %v8340_v55  ;;  %11008 = vmatpush3.bf16.msra.mxu1 %v11007_v40  ;;  %10978 = vmatprep.subr.bf16.mxu0 %v10977_v41  ;;  %v11023_v40 = vpack.c.bf16 %v1256_v29, %v1255_v28  ;;  %v11055_v41 = vpack.c.bf16 %v1288_v32, %v1287_v30  ;;  %v1291_v47 = vld [vmem:[%s12714_s26 + $0x1d30] sm:$0xff]  ;;  %v1265_v30 = vld [vmem:[%s12714_s26 + $0x1c60] sm:$0xff] }
 0x23a   : > { %v4016_v1 = vadd.f32 %v8307_v59, %v13713_v24  ;;  %11010 = vmatprep.subr.bf16.mxu1 %v11009_v48  ;;  %v10983_v24 = vpack.c.bf16 %v1204_v54, %v1203_v62  ;;  %v1290_v48 = vld [vmem:[%s12714_s26 + $0x1d28] sm:$0xff]  ;;  %v1260_v59 = vld [vmem:[%s12714_s26 + $0x1c38] sm:$0xff]  ;;  %v11063_v0 = vpack.c.bf16 %v1292_v51, %v1291_v47  ;;  %v11071_v28 = vpack.c.bf16 %v1296_v7, %v1295_v18  ;;  %v1297_v32 = vld [vmem:[%s12714_s26 + $0x1d60] sm:$0xff] }
 0x23b   : > { %v11059_v55 = vpack.c.bf16 %v1290_v48, %v1289_v46  ;;  %v1310_v62 = vld [vmem:[%s12714_s26 + $0x1dc8] sm:$0xff]  ;;  %v11031_v54 = vpack.c.bf16 %v1260_v59, %v1259_v58  ;;  %v11041_v29 = vpack.c.bf16 %v1282_v23, %v1281_v20  ;;  %v11045_v53 = vpack.c.bf16 %v1284_v25, %v1283_v39  ;;  %v1300_v58 = vld [vmem:[%s12714_s26 + $0x1d78] sm:$0xff]  ;;  %v1333_v59 = vld [vmem:[%s12714_s26 + $0x1e80] sm:$0xff] }
 0x23c   : > { %v13792_v9 = vadd.f32 %v8342_v45, %v4016_v1  ;;  %10980 = vmatpush3.bf16.msra.mxu0 %v10979_v60  ;;  %v1277_v45 = vld [vmem:[%s12714_s26 + $0x1cc0] sm:$0xff]  ;;  %v1334_v47 = vld [vmem:[%s12714_s26 + $0x1e88] sm:$0xff]  ;;  %v11117_v18 = vpack.c.bf16 %v1368_v8, %v1367_v6  ;;  %v1340_v39 = vld [vmem:[%s12714_s26 + $0x1eb8] sm:$0xff] }
 0x23d   : > { %11012 = vmatpush3.bf16.msra.mxu1 %v11011_v61  ;;  %10982 = vmatprep.subr.bf16.mxu0 %v10981_v63  ;;  %v1278_v61 = vld [vmem:[%s12714_s26 + $0x1cc8] sm:$0xff]  ;;  %v1309_v63 = vld [vmem:[%s12714_s26 + $0x1dc0] sm:$0xff]  ;;  %v1372_v25 = vld [vmem:[%s12714_s26 + $0x1fb8] sm:$0xff] }
 0x23e   : > { %11014 = vmatprep.subr.bf16.mxu1 %v11013_v2  ;;  %v11033_v1 = vpack.c.bf16 %v1278_v61, %v1277_v45  ;;  %v1261_v2 = vld [vmem:[%s12714_s26 + $0x1c40] sm:$0xff]  ;;  %v11065_v57 = vpack.c.bf16 %v1310_v62, %v1309_v63  ;;  %v1366_v51 = vld [vmem:[%s12714_s26 + $0x1f88] sm:$0xff]  ;;  %v11081_v62 = vpack.c.bf16 %v1334_v47, %v1333_v59 }
 0x23f   : > { %v1337_v7 = vld [vmem:[%s12714_s26 + $0x1ea0] sm:$0xff]  ;;  %v1338_v20 = vld [vmem:[%s12714_s26 + $0x1ea8] sm:$0xff] }
 0x240   : > { %10984 = vmatpush3.bf16.msra.mxu0 %v10983_v24  ;;  %v1311_v24 = vld [vmem:[%s12714_s26 + $0x1dd0] sm:$0xff]  ;;  %v1357_v59 = vld [vmem:[%s12714_s26 + $0x1f40] sm:$0xff]  ;;  %v1346_v8 = vld [vmem:[%s12714_s26 + $0x1ee8] sm:$0xff] }
 0x241   : > { %11016 = vmatpush3.bf16.msra.mxu1 %v11015_v12  ;;  %11018 = vmatprep.subr.bf16.mxu0 %v11017_v10  ;;  %v1312_v12 = vld [vmem:[%s12714_s26 + $0x1dd8] sm:$0xff]  ;;  %v11035_v10 = vpack.c.bf16 %v1262_v3, %v1261_v2  ;;  %v1350_v3 = vld [vmem:[%s12714_s26 + $0x1f08] sm:$0xff]  ;;  %v1345_v6 = vld [vmem:[%s12714_s26 + $0x1ee0] sm:$0xff] }
 0x242   : > { %11050 = vmatprep.subr.bf16.mxu1 %v11049_v17  ;;  %v1264_v17 = vld [vmem:[%s12714_s26 + $0x1c58] sm:$0xff]  ;;  %v11069_v15 = vpack.c.bf16 %v1312_v12, %v1311_v24 }
 0x243   : > { %4994 = vmatmul.mubr.f32.vlgmr.msra.gmra.mrb[26].mxu0 %v13722_v34  ;;  %v1258_v34 = vld [vmem:[%s12714_s26 + $0x1c28] sm:$0xff] }
 0x244   : > { %11020 = vmatpush3.bf16.msra.mxu0 %v11019_v26  ;;  %5064 = vmatmul.mubr.f32.vlgmr.msra.gmra.mrb[26].mxu1 %v13727_v50  ;;  %v1307_v50 = vld [vmem:[%s12714_s26 + $0x1db0] sm:$0xff]  ;;  %v11027_v33 = vpack.c.bf16 %v1258_v34, %v1257_v44  ;;  %v1313_v26 = vld [vmem:[%s12714_s26 + $0x1de0] sm:$0xff] }
 0x245   : > { %11052 = vmatpush3.bf16.msra.mxu1 %v11051_v21  ;;  %11022 = vmatprep.subr.bf16.mxu0 %v11021_v27  ;;  %v11061_v60 = vpack.c.bf16 %v1308_v38, %v1307_v50  ;;  %v1314_v21 = vld [vmem:[%s12714_s26 + $0x1de8] sm:$0xff]  ;;  %v11039_v27 = vpack.c.bf16 %v1264_v17, %v1263_v11  ;;  %v1267_v50 = vld [vmem:[%s12714_s26 + $0x1c70] sm:$0xff]  ;;  %v1268_v38 = vld [vmem:[%s12714_s26 + $0x1c78] sm:$0xff] }
 0x246   : > { %11054 = vmatprep.subr.bf16.mxu1 %v11053_v31  ;;  %5133 = vmatprep.mubr.f32.mxu0 %v2690_v37  ;;  %v1266_v31 = vld [vmem:[%s12714_s26 + $0x1c68] sm:$0xff]  ;;  %v11073_v35 = vpack.c.bf16 %v1314_v21, %v1313_v26  ;;  %v1320_v11 = vld [vmem:[%s12714_s26 + $0x1e18] sm:$0xff]  ;;  %v1351_v17 = vld [vmem:[%s12714_s26 + $0x1f10] sm:$0xff] }
 0x247   : > { %5203 = vmatprep.mubr.f32.mxu1 %v2691_v52  ;;  %v1298_v37 = vld [vmem:[%s12714_s26 + $0x1d68] sm:$0xff]  ;;  %v11043_v46 = vpack.c.bf16 %v1266_v31, %v1265_v30  ;;  %v1369_v26 = vld [vmem:[%s12714_s26 + $0x1fa0] sm:$0xff]  ;;  %v11089_v30 = vpack.c.bf16 %v1338_v20, %v1337_v7 }
 0x248   : > { %11024 = vmatpush3.bf16.msra.mxu0 %v11023_v40  ;;  %v11075_v49 = vpack.c.bf16 %v1298_v37, %v1297_v32  ;;  %v1370_v21 = vld [vmem:[%s12714_s26 + $0x1fa8] sm:$0xff]  ;;  %v1321_v31 = vld [vmem:[%s12714_s26 + $0x1e20] sm:$0xff]  ;;  %v1339_v37 = vld [vmem:[%s12714_s26 + $0x1eb0] sm:$0xff] }
 0x249   : > { %11056 = vmatpush3.bf16.msra.mxu1 %v11055_v41  ;;  %11026 = vmatprep.subr.bf16.mxu0 %v11025_v43  ;;  %v1315_v41 = vld [vmem:[%s12714_s26 + $0x1df0] sm:$0xff]  ;;  %v1316_v43 = vld [vmem:[%s12714_s26 + $0x1df8] sm:$0xff]  ;;  %v1353_v32 = vld [vmem:[%s12714_s26 + $0x1f20] sm:$0xff] }
 0x24a   : > { %11058 = vmatprep.subr.bf16.mxu1 %v11057_v36  ;;  %v340_v36 = vld [vmem:[#allocation3 + $0x78] sm:$0xff] }
 0x24b   : > { %v2692_v45 = vcombine.high %v340_v36, %v340_v36  ;;  %v13880_v5 = vrot.slane %v340_v36, %v12766_v13  ;;  %v1356_v36 = vld [vmem:[%s12714_s26 + $0x1f38] sm:$0xff] }
 0x24c   : > { %11028 = vmatpush3.bf16.msra.mxu0 %v11027_v33  ;;  %v1299_v33 = vld [vmem:[%s12714_s26 + $0x1d70] sm:$0xff] }
 0x24d   : > { %11060 = vmatpush3.bf16.msra.mxu1 %v11059_v55  ;;  %11030 = vmatprep.subr.bf16.mxu0 %v11029_v56  ;;  %v11077_v56 = vpack.c.bf16 %v1316_v43, %v1315_v41  ;;  %v11079_v63 = vpack.c.bf16 %v1300_v58, %v1299_v33  ;;  %v13885_v24 = vrot.slane %v2692_v45, %v12766_v13  ;;  %v1323_v43 = vld [vmem:[%s12714_s26 + $0x1e30] sm:$0xff]  ;;  %v1326_v58 = vld [vmem:[%s12714_s26 + $0x1e48] sm:$0xff]  ;;  %v1344_v45 = vld [vmem:[%s12714_s26 + $0x1ed8] sm:$0xff] }
 0x24e   : > { %11062 = vmatprep.subr.bf16.mxu1 %v11061_v60  ;;  %v1365_v60 = vld [vmem:[%s12714_s26 + $0x1f80] sm:$0xff]  ;;  %v2707_v23 = vcombine.high %v13880_v5, %v13880_v5  ;;  %v11093_v41 = vpack.c.bf16 %v1340_v39, %v1339_v37 }
 0x24f   : > { %v11113_v2 = vpack.c.bf16 %v1366_v51, %v1365_v60  ;;  %v1358_v60 = vld [vmem:[%s12714_s26 + $0x1f48] sm:$0xff]  ;;  %v1343_v51 = vld [vmem:[%s12714_s26 + $0x1ed0] sm:$0xff] }
 0x250   : > { %11032 = vmatpush3.bf16.msra.mxu0 %v11031_v54  ;;  %v1317_v54 = vld [vmem:[%s12714_s26 + $0x1e00] sm:$0xff] }
 0x251   : > { %11064 = vmatpush3.bf16.msra.mxu1 %v11063_v0  ;;  %11034 = vmatprep.subr.bf16.mxu0 %v11033_v1  ;;  %v1318_v0 = vld [vmem:[%s12714_s26 + $0x1e08] sm:$0xff]  ;;  %v1349_v1 = vld [vmem:[%s12714_s26 + $0x1f00] sm:$0xff] }
 0x252   : > { %11066 = vmatprep.subr.bf16.mxu1 %v11065_v57  ;;  %v1336_v57 = vld [vmem:[%s12714_s26 + $0x1e98] sm:$0xff]  ;;  %v11083_v12 = vpack.c.bf16 %v1318_v0, %v1317_v54  ;;  %v11131_v54 = vpack.c.bf16 %v1358_v60, %v1357_v59  ;;  %v11101_v0 = vpack.c.bf16 %v1344_v45, %v1343_v51  ;;  %v1399_v59 = vld [vmem:[%s12714_s26 + $0x2090] sm:$0xff] }
 0x253   : > { %v1431_v51 = vld [vmem:[%s12714_s26 + $0x2190] sm:$0xff]  ;;  %v1432_v45 = vld [vmem:[%s12714_s26 + $0x2198] sm:$0xff] }
 0x254   : > { %11036 = vmatpush3.bf16.msra.mxu0 %v11035_v10  ;;  %v11115_v10 = vpack.c.bf16 %v1350_v3, %v1349_v1  ;;  %v1327_v1 = vld [vmem:[%s12714_s26 + $0x1e50] sm:$0xff] }
 0x255   : > { %11068 = vmatpush3.bf16.msra.mxu1 %v11067_v14  ;;  %11038 = vmatprep.subr.bf16.mxu0 %v11037_v16  ;;  %v11085_v14 = vpack.c.bf16 %v1336_v57, %v1335_v4  ;;  %v1319_v16 = vld [vmem:[%s12714_s26 + $0x1e10] sm:$0xff]  ;;  %v1360_v57 = vld [vmem:[%s12714_s26 + $0x1f58] sm:$0xff] }
 0x256   : > { %v8375_v22 = vpop.f32.mrb[14].mxu0  ;;  %11070 = vmatprep.subr.bf16.mxu1 %v11069_v15  ;;  %v1352_v15 = vld [vmem:[%s12714_s26 + $0x1f18] sm:$0xff]  ;;  %v1359_v3 = vld [vmem:[%s12714_s26 + $0x1f50] sm:$0xff] }
 0x257   : > { %v8376_v52 = vpop.f32.mrb[15].mxu0  ;;  %v8410_v40 = vpop.f32.mrb[14].mxu1 }
 0x258   : > { %v8377_v44 = vadd.f32 %v8376_v52, %v8375_v22  ;;  %11040 = vmatpush3.bf16.msra.mxu0 %v11039_v27  ;;  %v8411_v34 = vpop.f32.mrb[15].mxu1  ;;  %v2708_v27 = vcombine.high %v13885_v24, %v13885_v24  ;;  %v11121_v22 = vpack.c.bf16 %v1370_v21, %v1369_v26  ;;  %v1347_v26 = vld [vmem:[%s12714_s26 + $0x1ef0] sm:$0xff]  ;;  %v1348_v21 = vld [vmem:[%s12714_s26 + $0x1ef8] sm:$0xff] }
 0x259   : > { %v8412_v48 = vadd.f32 %v8411_v34, %v8410_v40  ;;  %11072 = vmatpush3.bf16.msra.mxu1 %v11071_v28  ;;  %11042 = vmatprep.subr.bf16.mxu0 %v11041_v29  ;;  %v11087_v28 = vpack.c.bf16 %v1320_v11, %v1319_v16  ;;  %v11119_v29 = vpack.c.bf16 %v1352_v15, %v1351_v17  ;;  %v1355_v34 = vld [vmem:[%s12714_s26 + $0x1f30] sm:$0xff]  ;;  %v1329_v17 = vld [vmem:[%s12714_s26 + $0x1e60] sm:$0xff] }
 0x25a   : > { %v4156_v55 = vadd.f32 %v8377_v44, %v13792_v9  ;;  %11074 = vmatprep.subr.bf16.mxu1 %v11073_v35  ;;  %v11047_v9 = vpack.c.bf16 %v1268_v38, %v1267_v50  ;;  %v1354_v35 = vld [vmem:[%s12714_s26 + $0x1f28] sm:$0xff]  ;;  %v1324_v44 = vld [vmem:[%s12714_s26 + $0x1e38] sm:$0xff]  ;;  %v11127_v33 = vpack.c.bf16 %v1356_v36, %v1355_v34  ;;  %v11135_v16 = vpack.c.bf16 %v1360_v57, %v1359_v3  ;;  %v1361_v15 = vld [vmem:[%s12714_s26 + $0x1f60] sm:$0xff] }
 0x25b   : > { %v11123_v40 = vpack.c.bf16 %v1354_v35, %v1353_v32  ;;  %v1374_v50 = vld [vmem:[%s12714_s26 + $0x1fc8] sm:$0xff]  ;;  %v11095_v38 = vpack.c.bf16 %v1324_v44, %v1323_v43  ;;  %v11105_v11 = vpack.c.bf16 %v1346_v8, %v1345_v6  ;;  %v11109_v39 = vpack.c.bf16 %v1348_v21, %v1347_v26  ;;  %v1364_v43 = vld [vmem:[%s12714_s26 + $0x1f78] sm:$0xff]  ;;  %v1397_v44 = vld [vmem:[%s12714_s26 + $0x2080] sm:$0xff] }
 0x25c   : > { %v13871_v61 = vadd.f32 %v8412_v48, %v4156_v55  ;;  %11044 = vmatpush3.bf16.msra.mxu0 %v11043_v46  ;;  %v1341_v48 = vld [vmem:[%s12714_s26 + $0x1ec0] sm:$0xff]  ;;  %v1398_v34 = vld [vmem:[%s12714_s26 + $0x2088] sm:$0xff]  ;;  %v11181_v3 = vpack.c.bf16 %v1432_v45, %v1431_v51  ;;  %v1404_v26 = vld [vmem:[%s12714_s26 + $0x20b8] sm:$0xff] }
 0x25d   : > { %11076 = vmatpush3.bf16.msra.mxu1 %v11075_v49  ;;  %11046 = vmatprep.subr.bf16.mxu0 %v11045_v53  ;;  %v1342_v49 = vld [vmem:[%s12714_s26 + $0x1ec8] sm:$0xff]  ;;  %v1373_v53 = vld [vmem:[%s12714_s26 + $0x1fc0] sm:$0xff]  ;;  %v1436_v21 = vld [vmem:[%s12714_s26 + $0x21b8] sm:$0xff] }
 0x25e   : > { %11078 = vmatprep.subr.bf16.mxu1 %v11077_v56  ;;  %v11097_v55 = vpack.c.bf16 %v1342_v49, %v1341_v48  ;;  %v1325_v56 = vld [vmem:[%s12714_s26 + $0x1e40] sm:$0xff]  ;;  %v11129_v47 = vpack.c.bf16 %v1374_v50, %v1373_v53  ;;  %v1430_v36 = vld [vmem:[%s12714_s26 + $0x2188] sm:$0xff]  ;;  %v11145_v50 = vpack.c.bf16 %v1398_v34, %v1397_v44 }
 0x25f   : > { %v1401_v57 = vld [vmem:[%s12714_s26 + $0x20a0] sm:$0xff]  ;;  %v1402_v6 = vld [vmem:[%s12714_s26 + $0x20a8] sm:$0xff] }
 0x260   : > { %11048 = vmatpush3.bf16.msra.mxu0 %v11047_v9  ;;  %v1375_v9 = vld [vmem:[%s12714_s26 + $0x1fd0] sm:$0xff]  ;;  %v1421_v44 = vld [vmem:[%s12714_s26 + $0x2140] sm:$0xff]  ;;  %v1410_v45 = vld [vmem:[%s12714_s26 + $0x20e8] sm:$0xff] }
 0x261   : > { %11080 = vmatpush3.bf16.msra.mxu1 %v11079_v63  ;;  %11082 = vmatprep.subr.bf16.mxu0 %v11081_v62  ;;  %v1376_v63 = vld [vmem:[%s12714_s26 + $0x1fd8] sm:$0xff]  ;;  %v11099_v62 = vpack.c.bf16 %v1326_v58, %v1325_v56  ;;  %v1414_v58 = vld [vmem:[%s12714_s26 + $0x2108] sm:$0xff]  ;;  %v1409_v51 = vld [vmem:[%s12714_s26 + $0x20e0] sm:$0xff] }
 0x262   : > { %11114 = vmatprep.subr.bf16.mxu1 %v11113_v2  ;;  %v1328_v2 = vld [vmem:[%s12714_s26 + $0x1e58] sm:$0xff]  ;;  %v11133_v4 = vpack.c.bf16 %v1376_v63, %v1375_v9 }
 0x263   : > { %5134 = vmatmul.mubr.f32.vlgmr.msra.gmra.mrb[28].mxu0 %v13801_v19  ;;  %v1322_v19 = vld [vmem:[%s12714_s26 + $0x1e28] sm:$0xff] }
 0x264   : > { %11084 = vmatpush3.bf16.msra.mxu0 %v11083_v12  ;;  %5204 = vmatmul.mubr.f32.vlgmr.msra.gmra.mrb[28].mxu1 %v13806_v42  ;;  %v1371_v42 = vld [vmem:[%s12714_s26 + $0x1fb0] sm:$0xff]  ;;  %v11091_v52 = vpack.c.bf16 %v1322_v19, %v1321_v31  ;;  %v1377_v12 = vld [vmem:[%s12714_s26 + $0x1fe0] sm:$0xff] }
 0x265   : > { %11116 = vmatpush3.bf16.msra.mxu1 %v11115_v10  ;;  %11086 = vmatprep.subr.bf16.mxu0 %v11085_v14  ;;  %v11125_v46 = vpack.c.bf16 %v1372_v25, %v1371_v42  ;;  %v1378_v10 = vld [vmem:[%s12714_s26 + $0x1fe8] sm:$0xff]  ;;  %v11103_v14 = vpack.c.bf16 %v1328_v2, %v1327_v1  ;;  %v1331_v42 = vld [vmem:[%s12714_s26 + $0x1e70] sm:$0xff]  ;;  %v1332_v25 = vld [vmem:[%s12714_s26 + $0x1e78] sm:$0xff] }
 0x266   : > { %11118 = vmatprep.subr.bf16.mxu1 %v11117_v18  ;;  %5273 = vmatprep.mubr.f32.mxu0 %v2707_v23  ;;  %v1330_v18 = vld [vmem:[%s12714_s26 + $0x1e68] sm:$0xff]  ;;  %v11137_v20 = vpack.c.bf16 %v1378_v10, %v1377_v12  ;;  %v1384_v1 = vld [vmem:[%s12714_s26 + $0x2018] sm:$0xff]  ;;  %v1415_v2 = vld [vmem:[%s12714_s26 + $0x2110] sm:$0xff] }
 0x267   : > { %5343 = vmatprep.mubr.f32.mxu1 %v2708_v27  ;;  %v1362_v23 = vld [vmem:[%s12714_s26 + $0x1f68] sm:$0xff]  ;;  %v11107_v32 = vpack.c.bf16 %v1330_v18, %v1329_v17  ;;  %v1433_v12 = vld [vmem:[%s12714_s26 + $0x21a0] sm:$0xff]  ;;  %v11153_v17 = vpack.c.bf16 %v1402_v6, %v1401_v57 }
 0x268   : > { %11088 = vmatpush3.bf16.msra.mxu0 %v11087_v28  ;;  %v11139_v37 = vpack.c.bf16 %v1362_v23, %v1361_v15  ;;  %v1434_v10 = vld [vmem:[%s12714_s26 + $0x21a8] sm:$0xff]  ;;  %v1385_v18 = vld [vmem:[%s12714_s26 + $0x2020] sm:$0xff]  ;;  %v1403_v23 = vld [vmem:[%s12714_s26 + $0x20b0] sm:$0xff] }
 0x269   : > { %11120 = vmatpush3.bf16.msra.mxu1 %v11119_v29  ;;  %11090 = vmatprep.subr.bf16.mxu0 %v11089_v30  ;;  %v1379_v29 = vld [vmem:[%s12714_s26 + $0x1ff0] sm:$0xff]  ;;  %v1380_v30 = vld [vmem:[%s12714_s26 + $0x1ff8] sm:$0xff]  ;;  %v1417_v15 = vld [vmem:[%s12714_s26 + $0x2120] sm:$0xff] }
 0x26a   : > { %11122 = vmatprep.subr.bf16.mxu1 %v11121_v22  ;;  %v341_v22 = vld [vmem:[#allocation3 + $0x80] sm:$0xff] }
 0x26b   : > { %v2709_v48 = vcombine.high %v341_v22, %v341_v22  ;;  %v13959_v60 = vrot.slane %v341_v22, %v12766_v13  ;;  %v1420_v22 = vld [vmem:[%s12714_s26 + $0x2138] sm:$0xff] }
 0x26c   : > { %11092 = vmatpush3.bf16.msra.mxu0 %v11091_v52  ;;  %v1363_v52 = vld [vmem:[%s12714_s26 + $0x1f70] sm:$0xff] }
 0x26d   : > { %11124 = vmatpush3.bf16.msra.mxu1 %v11123_v40  ;;  %11094 = vmatprep.subr.bf16.mxu0 %v11093_v41  ;;  %v11141_v41 = vpack.c.bf16 %v1380_v30, %v1379_v29  ;;  %v11143_v53 = vpack.c.bf16 %v1364_v43, %v1363_v52  ;;  %v13964_v9 = vrot.slane %v2709_v48, %v12766_v13  ;;  %v1387_v30 = vld [vmem:[%s12714_s26 + $0x2030] sm:$0xff]  ;;  %v1390_v43 = vld [vmem:[%s12714_s26 + $0x2048] sm:$0xff]  ;;  %v1408_v48 = vld [vmem:[%s12714_s26 + $0x20d8] sm:$0xff] }
 0x26e   : > { %11126 = vmatprep.subr.bf16.mxu1 %v11125_v46  ;;  %v1429_v46 = vld [vmem:[%s12714_s26 + $0x2180] sm:$0xff]  ;;  %v2724_v8 = vcombine.high %v13959_v60, %v13959_v60  ;;  %v11157_v29 = vpack.c.bf16 %v1404_v26, %v1403_v23 }
 0x26f   : > { %v11177_v56 = vpack.c.bf16 %v1430_v36, %v1429_v46  ;;  %v1422_v46 = vld [vmem:[%s12714_s26 + $0x2148] sm:$0xff]  ;;  %v1407_v36 = vld [vmem:[%s12714_s26 + $0x20d0] sm:$0xff] }
 0x270   : > { %11096 = vmatpush3.bf16.msra.mxu0 %v11095_v38  ;;  %v1381_v38 = vld [vmem:[%s12714_s26 + $0x2000] sm:$0xff] }
 0x271   : > { %11128 = vmatpush3.bf16.msra.mxu1 %v11127_v33  ;;  %11098 = vmatprep.subr.bf16.mxu0 %v11097_v55  ;;  %v1382_v33 = vld [vmem:[%s12714_s26 + $0x2008] sm:$0xff]  ;;  %v1413_v55 = vld [vmem:[%s12714_s26 + $0x2100] sm:$0xff] }
 0x272   : > { %11130 = vmatprep.subr.bf16.mxu1 %v11129_v47  ;;  %v1400_v47 = vld [vmem:[%s12714_s26 + $0x2098] sm:$0xff]  ;;  %v11147_v63 = vpack.c.bf16 %v1382_v33, %v1381_v38  ;;  %v11195_v38 = vpack.c.bf16 %v1422_v46, %v1421_v44  ;;  %v11165_v33 = vpack.c.bf16 %v1408_v48, %v1407_v36  ;;  %v1463_v44 = vld [vmem:[%s12714_s26 + $0x2290] sm:$0xff] }
 0x273   : > { %v1495_v36 = vld [vmem:[%s12714_s26 + $0x2390] sm:$0xff]  ;;  %v1496_v48 = vld [vmem:[%s12714_s26 + $0x2398] sm:$0xff] }
 0x274   : > { %11100 = vmatpush3.bf16.msra.mxu0 %v11099_v62  ;;  %v11179_v62 = vpack.c.bf16 %v1414_v58, %v1413_v55  ;;  %v1391_v55 = vld [vmem:[%s12714_s26 + $0x2050] sm:$0xff] }
 0x275   : > { %11132 = vmatpush3.bf16.msra.mxu1 %v11131_v54  ;;  %11102 = vmatprep.subr.bf16.mxu0 %v11101_v0  ;;  %v11149_v54 = vpack.c.bf16 %v1400_v47, %v1399_v59  ;;  %v1383_v0 = vld [vmem:[%s12714_s26 + $0x2010] sm:$0xff]  ;;  %v1424_v47 = vld [vmem:[%s12714_s26 + $0x2158] sm:$0xff] }
 0x276   : > { %v8445_v7 = vpop.f32.mrb[16].mxu0  ;;  %11134 = vmatprep.subr.bf16.mxu1 %v11133_v4  ;;  %v1416_v4 = vld [vmem:[%s12714_s26 + $0x2118] sm:$0xff]  ;;  %v1423_v58 = vld [vmem:[%s12714_s26 + $0x2150] sm:$0xff] }
 0x277   : > { %v8446_v27 = vpop.f32.mrb[17].mxu0  ;;  %v8480_v28 = vpop.f32.mrb[16].mxu1 }
 0x278   : > { %v8447_v31 = vadd.f32 %v8446_v27, %v8445_v7  ;;  %11104 = vmatpush3.bf16.msra.mxu0 %v11103_v14  ;;  %v8481_v19 = vpop.f32.mrb[17].mxu1  ;;  %v2725_v14 = vcombine.high %v13964_v9, %v13964_v9  ;;  %v11185_v7 = vpack.c.bf16 %v1434_v10, %v1433_v12  ;;  %v1411_v12 = vld [vmem:[%s12714_s26 + $0x20f0] sm:$0xff]  ;;  %v1412_v10 = vld [vmem:[%s12714_s26 + $0x20f8] sm:$0xff] }
 0x279   : > { %v8482_v35 = vadd.f32 %v8481_v19, %v8480_v28  ;;  %11136 = vmatpush3.bf16.msra.mxu1 %v11135_v16  ;;  %11106 = vmatprep.subr.bf16.mxu0 %v11105_v11  ;;  %v11151_v16 = vpack.c.bf16 %v1384_v1, %v1383_v0  ;;  %v11183_v11 = vpack.c.bf16 %v1416_v4, %v1415_v2  ;;  %v1419_v19 = vld [vmem:[%s12714_s26 + $0x2130] sm:$0xff]  ;;  %v1393_v2 = vld [vmem:[%s12714_s26 + $0x2060] sm:$0xff] }
 0x27a   : > { %v4296_v40 = vadd.f32 %v8447_v31, %v13871_v61  ;;  %11138 = vmatprep.subr.bf16.mxu1 %v11137_v20  ;;  %v11111_v61 = vpack.c.bf16 %v1332_v25, %v1331_v42  ;;  %v1418_v20 = vld [vmem:[%s12714_s26 + $0x2128] sm:$0xff]  ;;  %v1388_v31 = vld [vmem:[%s12714_s26 + $0x2038] sm:$0xff]  ;;  %v11191_v52 = vpack.c.bf16 %v1420_v22, %v1419_v19  ;;  %v11199_v0 = vpack.c.bf16 %v1424_v47, %v1423_v58  ;;  %v1425_v4 = vld [vmem:[%s12714_s26 + $0x2160] sm:$0xff] }
 0x27b   : > { %v11187_v28 = vpack.c.bf16 %v1418_v20, %v1417_v15  ;;  %v1438_v42 = vld [vmem:[%s12714_s26 + $0x21c8] sm:$0xff]  ;;  %v11159_v25 = vpack.c.bf16 %v1388_v31, %v1387_v30  ;;  %v11169_v1 = vpack.c.bf16 %v1410_v45, %v1409_v51  ;;  %v11173_v26 = vpack.c.bf16 %v1412_v10, %v1411_v12  ;;  %v1428_v30 = vld [vmem:[%s12714_s26 + $0x2178] sm:$0xff]  ;;  %v1461_v31 = vld [vmem:[%s12714_s26 + $0x2280] sm:$0xff] }
 0x27c   : > { %v13950_v49 = vadd.f32 %v8482_v35, %v4296_v40  ;;  %11108 = vmatpush3.bf16.msra.mxu0 %v11107_v32  ;;  %v1405_v35 = vld [vmem:[%s12714_s26 + $0x20c0] sm:$0xff]  ;;  %v1462_v19 = vld [vmem:[%s12714_s26 + $0x2288] sm:$0xff]  ;;  %v11245_v58 = vpack.c.bf16 %v1496_v48, %v1495_v36  ;;  %v1468_v12 = vld [vmem:[%s12714_s26 + $0x22b8] sm:$0xff] }
 0x27d   : > { %11140 = vmatpush3.bf16.msra.mxu1 %v11139_v37  ;;  %11110 = vmatprep.subr.bf16.mxu0 %v11109_v39  ;;  %v1406_v37 = vld [vmem:[%s12714_s26 + $0x20c8] sm:$0xff]  ;;  %v1437_v39 = vld [vmem:[%s12714_s26 + $0x21c0] sm:$0xff]  ;;  %v1500_v10 = vld [vmem:[%s12714_s26 + $0x23b8] sm:$0xff] }
 0x27e   : > { %11142 = vmatprep.subr.bf16.mxu1 %v11141_v41  ;;  %v11161_v40 = vpack.c.bf16 %v1406_v37, %v1405_v35  ;;  %v1389_v41 = vld [vmem:[%s12714_s26 + $0x2040] sm:$0xff]  ;;  %v11193_v34 = vpack.c.bf16 %v1438_v42, %v1437_v39  ;;  %v1494_v22 = vld [vmem:[%s12714_s26 + $0x2388] sm:$0xff]  ;;  %v11209_v42 = vpack.c.bf16 %v1462_v19, %v1461_v31 }
 0x27f   : > { %v1465_v47 = vld [vmem:[%s12714_s26 + $0x22a0] sm:$0xff]  ;;  %v1466_v51 = vld [vmem:[%s12714_s26 + $0x22a8] sm:$0xff] }
 0x280   : > { %11112 = vmatpush3.bf16.msra.mxu0 %v11111_v61  ;;  %v1439_v61 = vld [vmem:[%s12714_s26 + $0x21d0] sm:$0xff]  ;;  %v1485_v31 = vld [vmem:[%s12714_s26 + $0x2340] sm:$0xff]  ;;  %v1474_v48 = vld [vmem:[%s12714_s26 + $0x22e8] sm:$0xff] }
 0x281   : > { %11144 = vmatpush3.bf16.msra.mxu1 %v11143_v53  ;;  %11146 = vmatprep.subr.bf16.mxu0 %v11145_v50  ;;  %v1440_v53 = vld [vmem:[%s12714_s26 + $0x21d8] sm:$0xff]  ;;  %v11163_v50 = vpack.c.bf16 %v1390_v43, %v1389_v41  ;;  %v1478_v43 = vld [vmem:[%s12714_s26 + $0x2308] sm:$0xff]  ;;  %v1473_v36 = vld [vmem:[%s12714_s26 + $0x22e0] sm:$0xff] }
 0x282   : > { %11178 = vmatprep.subr.bf16.mxu1 %v11177_v56  ;;  %v1392_v56 = vld [vmem:[%s12714_s26 + $0x2058] sm:$0xff]  ;;  %v11197_v59 = vpack.c.bf16 %v1440_v53, %v1439_v61 }
 0x283   : > { %5274 = vmatmul.mubr.f32.vlgmr.msra.gmra.mrb[30].mxu0 %v13880_v5  ;;  %v1386_v5 = vld [vmem:[%s12714_s26 + $0x2028] sm:$0xff] }
 0x284   : > { %11148 = vmatpush3.bf16.msra.mxu0 %v11147_v63  ;;  %5344 = vmatmul.mubr.f32.vlgmr.msra.gmra.mrb[30].mxu1 %v13885_v24  ;;  %v1435_v24 = vld [vmem:[%s12714_s26 + $0x21b0] sm:$0xff]  ;;  %v11155_v27 = vpack.c.bf16 %v1386_v5, %v1385_v18  ;;  %v1441_v63 = vld [vmem:[%s12714_s26 + $0x21e0] sm:$0xff] }
 0x285   : > { %11180 = vmatpush3.bf16.msra.mxu1 %v11179_v62  ;;  %11150 = vmatprep.subr.bf16.mxu0 %v11149_v54  ;;  %v11189_v32 = vpack.c.bf16 %v1436_v21, %v1435_v24  ;;  %v1442_v62 = vld [vmem:[%s12714_s26 + $0x21e8] sm:$0xff]  ;;  %v11167_v54 = vpack.c.bf16 %v1392_v56, %v1391_v55  ;;  %v1395_v24 = vld [vmem:[%s12714_s26 + $0x2070] sm:$0xff]  ;;  %v1396_v21 = vld [vmem:[%s12714_s26 + $0x2078] sm:$0xff] }
 0x286   : > { %11182 = vmatprep.subr.bf16.mxu1 %v11181_v3  ;;  %5413 = vmatprep.mubr.f32.mxu0 %v2724_v8  ;;  %v1394_v3 = vld [vmem:[%s12714_s26 + $0x2068] sm:$0xff]  ;;  %v11201_v6 = vpack.c.bf16 %v1442_v62, %v1441_v63  ;;  %v1448_v55 = vld [vmem:[%s12714_s26 + $0x2218] sm:$0xff]  ;;  %v1479_v56 = vld [vmem:[%s12714_s26 + $0x2310] sm:$0xff] }
 0x287   : > { %5483 = vmatprep.mubr.f32.mxu1 %v2725_v14  ;;  %v1426_v8 = vld [vmem:[%s12714_s26 + $0x2168] sm:$0xff]  ;;  %v11171_v15 = vpack.c.bf16 %v1394_v3, %v1393_v2  ;;  %v1497_v63 = vld [vmem:[%s12714_s26 + $0x23a0] sm:$0xff]  ;;  %v11217_v2 = vpack.c.bf16 %v1466_v51, %v1465_v47 }
 0x288   : > { %11152 = vmatpush3.bf16.msra.mxu0 %v11151_v16  ;;  %v11203_v23 = vpack.c.bf16 %v1426_v8, %v1425_v4  ;;  %v1498_v62 = vld [vmem:[%s12714_s26 + $0x23a8] sm:$0xff]  ;;  %v1449_v3 = vld [vmem:[%s12714_s26 + $0x2220] sm:$0xff]  ;;  %v1467_v8 = vld [vmem:[%s12714_s26 + $0x22b0] sm:$0xff] }
 0x289   : > { %11184 = vmatpush3.bf16.msra.mxu1 %v11183_v11  ;;  %11154 = vmatprep.subr.bf16.mxu0 %v11153_v17  ;;  %v1443_v11 = vld [vmem:[%s12714_s26 + $0x21f0] sm:$0xff]  ;;  %v1444_v17 = vld [vmem:[%s12714_s26 + $0x21f8] sm:$0xff]  ;;  %v1481_v4 = vld [vmem:[%s12714_s26 + $0x2320] sm:$0xff] }
 0x28a   : > { %11186 = vmatprep.subr.bf16.mxu1 %v11185_v7  ;;  %v342_v7 = vld [vmem:[#allocation3 + $0x88] sm:$0xff] }
 0x28b   : > { %v2726_v35 = vcombine.high %v342_v7, %v342_v7  ;;  %v14038_v46 = vrot.slane %v342_v7, %v12766_v13  ;;  %v1484_v7 = vld [vmem:[%s12714_s26 + $0x2338] sm:$0xff] }
 0x28c   : > { %11156 = vmatpush3.bf16.msra.mxu0 %v11155_v27  ;;  %v1427_v27 = vld [vmem:[%s12714_s26 + $0x2170] sm:$0xff] }
 0x28d   : > { %11188 = vmatpush3.bf16.msra.mxu1 %v11187_v28  ;;  %11158 = vmatprep.subr.bf16.mxu0 %v11157_v29  ;;  %v11205_v29 = vpack.c.bf16 %v1444_v17, %v1443_v11  ;;  %v11207_v39 = vpack.c.bf16 %v1428_v30, %v1427_v27  ;;  %v14043_v61 = vrot.slane %v2726_v35, %v12766_v13  ;;  %v1451_v17 = vld [vmem:[%s12714_s26 + $0x2230] sm:$0xff]  ;;  %v1454_v30 = vld [vmem:[%s12714_s26 + $0x2248] sm:$0xff]  ;;  %v1472_v35 = vld [vmem:[%s12714_s26 + $0x22d8] sm:$0xff] }
 0x28e   : > { %11190 = vmatprep.subr.bf16.mxu1 %v11189_v32  ;;  %v1493_v32 = vld [vmem:[%s12714_s26 + $0x2380] sm:$0xff]  ;;  %v2741_v45 = vcombine.high %v14038_v46, %v14038_v46  ;;  %v11221_v11 = vpack.c.bf16 %v1468_v12, %v1467_v8 }
 0x28f   : > { %v11241_v41 = vpack.c.bf16 %v1494_v22, %v1493_v32  ;;  %v1486_v32 = vld [vmem:[%s12714_s26 + $0x2348] sm:$0xff]  ;;  %v1471_v22 = vld [vmem:[%s12714_s26 + $0x22d0] sm:$0xff] }
 0x290   : > { %11160 = vmatpush3.bf16.msra.mxu0 %v11159_v25  ;;  %v1445_v25 = vld [vmem:[%s12714_s26 + $0x2200] sm:$0xff] }
 0x291   : > { %11192 = vmatpush3.bf16.msra.mxu1 %v11191_v52  ;;  %11162 = vmatprep.subr.bf16.mxu0 %v11161_v40  ;;  %v1446_v52 = vld [vmem:[%s12714_s26 + $0x2208] sm:$0xff]  ;;  %v1477_v40 = vld [vmem:[%s12714_s26 + $0x2300] sm:$0xff] }
 0x292   : > { %11194 = vmatprep.subr.bf16.mxu1 %v11193_v34  ;;  %v1464_v34 = vld [vmem:[%s12714_s26 + $0x2298] sm:$0xff]  ;;  %v11211_v53 = vpack.c.bf16 %v1446_v52, %v1445_v25  ;;  %v11259_v25 = vpack.c.bf16 %v1486_v32, %v1485_v31  ;;  %v11229_v52 = vpack.c.bf16 %v1472_v35, %v1471_v22  ;;  %v1527_v31 = vld [vmem:[%s12714_s26 + $0x2490] sm:$0xff] }
 0x293   : > { %v1559_v22 = vld [vmem:[%s12714_s26 + $0x2590] sm:$0xff]  ;;  %v1560_v35 = vld [vmem:[%s12714_s26 + $0x2598] sm:$0xff] }
 0x294   : > { %11164 = vmatpush3.bf16.msra.mxu0 %v11163_v50  ;;  %v11243_v50 = vpack.c.bf16 %v1478_v43, %v1477_v40  ;;  %v1455_v40 = vld [vmem:[%s12714_s26 + $0x2250] sm:$0xff] }
 0x295   : > { %11196 = vmatpush3.bf16.msra.mxu1 %v11195_v38  ;;  %11166 = vmatprep.subr.bf16.mxu0 %v11165_v33  ;;  %v11213_v38 = vpack.c.bf16 %v1464_v34, %v1463_v44  ;;  %v1447_v33 = vld [vmem:[%s12714_s26 + $0x2210] sm:$0xff]  ;;  %v1488_v34 = vld [vmem:[%s12714_s26 + $0x2358] sm:$0xff] }
 0x296   : > { %v8515_v57 = vpop.f32.mrb[18].mxu0  ;;  %11198 = vmatprep.subr.bf16.mxu1 %v11197_v59  ;;  %v1480_v59 = vld [vmem:[%s12714_s26 + $0x2318] sm:$0xff]  ;;  %v1487_v43 = vld [vmem:[%s12714_s26 + $0x2350] sm:$0xff] }
 0x297   : > { %v8516_v14 = vpop.f32.mrb[19].mxu0  ;;  %v8550_v16 = vpop.f32.mrb[18].mxu1 }
 0x298   : > { %v8517_v18 = vadd.f32 %v8516_v14, %v8515_v57  ;;  %11168 = vmatpush3.bf16.msra.mxu0 %v11167_v54  ;;  %v8551_v5 = vpop.f32.mrb[19].mxu1  ;;  %v2742_v54 = vcombine.high %v14043_v61, %v14043_v61  ;;  %v11249_v57 = vpack.c.bf16 %v1498_v62, %v1497_v63  ;;  %v1475_v63 = vld [vmem:[%s12714_s26 + $0x22f0] sm:$0xff]  ;;  %v1476_v62 = vld [vmem:[%s12714_s26 + $0x22f8] sm:$0xff] }
 0x299   : > { %v8552_v20 = vadd.f32 %v8551_v5, %v8550_v16  ;;  %11200 = vmatpush3.bf16.msra.mxu1 %v11199_v0  ;;  %11170 = vmatprep.subr.bf16.mxu0 %v11169_v1  ;;  %v11215_v0 = vpack.c.bf16 %v1448_v55, %v1447_v33  ;;  %v11247_v1 = vpack.c.bf16 %v1480_v59, %v1479_v56  ;;  %v1483_v5 = vld [vmem:[%s12714_s26 + $0x2330] sm:$0xff]  ;;  %v1457_v56 = vld [vmem:[%s12714_s26 + $0x2260] sm:$0xff] }
 0x29a   : > { %v4436_v28 = vadd.f32 %v8517_v18, %v13950_v49  ;;  %11202 = vmatprep.subr.bf16.mxu1 %v11201_v6  ;;  %v11175_v49 = vpack.c.bf16 %v1396_v21, %v1395_v24  ;;  %v1482_v6 = vld [vmem:[%s12714_s26 + $0x2328] sm:$0xff]  ;;  %v1452_v18 = vld [vmem:[%s12714_s26 + $0x2238] sm:$0xff]  ;;  %v11255_v27 = vpack.c.bf16 %v1484_v7, %v1483_v5  ;;  %v11263_v33 = vpack.c.bf16 %v1488_v34, %v1487_v43  ;;  %v1489_v59 = vld [vmem:[%s12714_s26 + $0x2360] sm:$0xff] }
 0x29b   : > { %v11251_v16 = vpack.c.bf16 %v1482_v6, %v1481_v4  ;;  %v1502_v24 = vld [vmem:[%s12714_s26 + $0x23c8] sm:$0xff]  ;;  %v11223_v21 = vpack.c.bf16 %v1452_v18, %v1451_v17  ;;  %v11233_v55 = vpack.c.bf16 %v1474_v48, %v1473_v36  ;;  %v11237_v12 = vpack.c.bf16 %v1476_v62, %v1475_v63  ;;  %v1492_v17 = vld [vmem:[%s12714_s26 + $0x2378] sm:$0xff]  ;;  %v1525_v18 = vld [vmem:[%s12714_s26 + $0x2480] sm:$0xff] }
 0x29c   : > { %v14029_v37 = vadd.f32 %v8552_v20, %v4436_v28  ;;  %11172 = vmatpush3.bf16.msra.mxu0 %v11171_v15  ;;  %v1469_v20 = vld [vmem:[%s12714_s26 + $0x22c0] sm:$0xff]  ;;  %v1526_v5 = vld [vmem:[%s12714_s26 + $0x2488] sm:$0xff]  ;;  %v11309_v43 = vpack.c.bf16 %v1560_v35, %v1559_v22  ;;  %v1532_v63 = vld [vmem:[%s12714_s26 + $0x24b8] sm:$0xff] }
 0x29d   : > { %11204 = vmatpush3.bf16.msra.mxu1 %v11203_v23  ;;  %11174 = vmatprep.subr.bf16.mxu0 %v11173_v26  ;;  %v1470_v23 = vld [vmem:[%s12714_s26 + $0x22c8] sm:$0xff]  ;;  %v1501_v26 = vld [vmem:[%s12714_s26 + $0x23c0] sm:$0xff]  ;;  %v1564_v62 = vld [vmem:[%s12714_s26 + $0x25b8] sm:$0xff] }
 0x29e   : > { %11206 = vmatprep.subr.bf16.mxu1 %v11205_v29  ;;  %v11225_v28 = vpack.c.bf16 %v1470_v23, %v1469_v20  ;;  %v1453_v29 = vld [vmem:[%s12714_s26 + $0x2240] sm:$0xff]  ;;  %v11257_v19 = vpack.c.bf16 %v1502_v24, %v1501_v26  ;;  %v1558_v7 = vld [vmem:[%s12714_s26 + $0x2588] sm:$0xff]  ;;  %v11273_v24 = vpack.c.bf16 %v1526_v5, %v1525_v18 }
 0x29f   : > { %v1529_v34 = vld [vmem:[%s12714_s26 + $0x24a0] sm:$0xff]  ;;  %v1530_v36 = vld [vmem:[%s12714_s26 + $0x24a8] sm:$0xff] }
 0x2a0   : > { %11176 = vmatpush3.bf16.msra.mxu0 %v11175_v49  ;;  %v1503_v49 = vld [vmem:[%s12714_s26 + $0x23d0] sm:$0xff]  ;;  %v1549_v18 = vld [vmem:[%s12714_s26 + $0x2540] sm:$0xff]  ;;  %v1538_v35 = vld [vmem:[%s12714_s26 + $0x24e8] sm:$0xff] }
 0x2a1   : > { %11208 = vmatpush3.bf16.msra.mxu1 %v11207_v39  ;;  %11210 = vmatprep.subr.bf16.mxu0 %v11209_v42  ;;  %v1504_v39 = vld [vmem:[%s12714_s26 + $0x23d8] sm:$0xff]  ;;  %v11227_v42 = vpack.c.bf16 %v1454_v30, %v1453_v29  ;;  %v1542_v30 = vld [vmem:[%s12714_s26 + $0x2508] sm:$0xff]  ;;  %v1537_v22 = vld [vmem:[%s12714_s26 + $0x24e0] sm:$0xff] }
 0x2a2   : > { %11242 = vmatprep.subr.bf16.mxu1 %v11241_v41  ;;  %v1456_v41 = vld [vmem:[%s12714_s26 + $0x2258] sm:$0xff]  ;;  %v11261_v44 = vpack.c.bf16 %v1504_v39, %v1503_v49 }
 0x2a3   : > { %5414 = vmatmul.mubr.f32.vlgmr.msra.gmra.mrb[32].mxu0 %v13959_v60  ;;  %v1450_v60 = vld [vmem:[%s12714_s26 + $0x2228] sm:$0xff] }
 0x2a4   : > { %11212 = vmatpush3.bf16.msra.mxu0 %v11211_v53  ;;  %5484 = vmatmul.mubr.f32.vlgmr.msra.gmra.mrb[32].mxu1 %v13964_v9  ;;  %v1499_v9 = vld [vmem:[%s12714_s26 + $0x23b0] sm:$0xff]  ;;  %v11219_v14 = vpack.c.bf16 %v1450_v60, %v1449_v3  ;;  %v1505_v53 = vld [vmem:[%s12714_s26 + $0x23e0] sm:$0xff] }
 0x2a5   : > { %11244 = vmatpush3.bf16.msra.mxu1 %v11243_v50  ;;  %11214 = vmatprep.subr.bf16.mxu0 %v11213_v38  ;;  %v11253_v15 = vpack.c.bf16 %v1500_v10, %v1499_v9  ;;  %v1506_v50 = vld [vmem:[%s12714_s26 + $0x23e8] sm:$0xff]  ;;  %v11231_v38 = vpack.c.bf16 %v1456_v41, %v1455_v40  ;;  %v1459_v9 = vld [vmem:[%s12714_s26 + $0x2270] sm:$0xff]  ;;  %v1460_v10 = vld [vmem:[%s12714_s26 + $0x2278] sm:$0xff] }
 0x2a6   : > { %11246 = vmatprep.subr.bf16.mxu1 %v11245_v58  ;;  %5553 = vmatprep.mubr.f32.mxu0 %v2741_v45  ;;  %v1458_v58 = vld [vmem:[%s12714_s26 + $0x2268] sm:$0xff]  ;;  %v11265_v51 = vpack.c.bf16 %v1506_v50, %v1505_v53  ;;  %v1512_v40 = vld [vmem:[%s12714_s26 + $0x2418] sm:$0xff]  ;;  %v1543_v41 = vld [vmem:[%s12714_s26 + $0x2510] sm:$0xff] }
 0x2a7   : > { %5623 = vmatprep.mubr.f32.mxu1 %v2742_v54  ;;  %v1490_v45 = vld [vmem:[%s12714_s26 + $0x2368] sm:$0xff]  ;;  %v11235_v4 = vpack.c.bf16 %v1458_v58, %v1457_v56  ;;  %v1561_v53 = vld [vmem:[%s12714_s26 + $0x25a0] sm:$0xff]  ;;  %v11281_v56 = vpack.c.bf16 %v1530_v36, %v1529_v34 }
 0x2a8   : > { %11216 = vmatpush3.bf16.msra.mxu0 %v11215_v0  ;;  %v11267_v8 = vpack.c.bf16 %v1490_v45, %v1489_v59  ;;  %v1562_v50 = vld [vmem:[%s12714_s26 + $0x25a8] sm:$0xff]  ;;  %v1513_v58 = vld [vmem:[%s12714_s26 + $0x2420] sm:$0xff]  ;;  %v1531_v45 = vld [vmem:[%s12714_s26 + $0x24b0] sm:$0xff] }
 0x2a9   : > { %11248 = vmatpush3.bf16.msra.mxu1 %v11247_v1  ;;  %11218 = vmatprep.subr.bf16.mxu0 %v11217_v2  ;;  %v1507_v1 = vld [vmem:[%s12714_s26 + $0x23f0] sm:$0xff]  ;;  %v1508_v2 = vld [vmem:[%s12714_s26 + $0x23f8] sm:$0xff]  ;;  %v1545_v59 = vld [vmem:[%s12714_s26 + $0x2520] sm:$0xff] }
 0x2aa   : > { %11250 = vmatprep.subr.bf16.mxu1 %v11249_v57  ;;  %v343_v57 = vld [vmem:[#allocation3 + $0x90] sm:$0xff] }
 0x2ab   : > { %v2743_v20 = vcombine.high %v343_v57, %v343_v57  ;;  %v14117_v32 = vrot.slane %v343_v57, %v12766_v13  ;;  %v1548_v57 = vld [vmem:[%s12714_s26 + $0x2538] sm:$0xff] }
 0x2ac   : > { %11220 = vmatpush3.bf16.msra.mxu0 %v11219_v14  ;;  %v1491_v14 = vld [vmem:[%s12714_s26 + $0x2370] sm:$0xff] }
 0x2ad   : > { %11252 = vmatpush3.bf16.msra.mxu1 %v11251_v16  ;;  %11222 = vmatprep.subr.bf16.mxu0 %v11221_v11  ;;  %v11269_v11 = vpack.c.bf16 %v1508_v2, %v1507_v1  ;;  %v11271_v26 = vpack.c.bf16 %v1492_v17, %v1491_v14  ;;  %v14122_v49 = vrot.slane %v2743_v20, %v12766_v13  ;;  %v1515_v2 = vld [vmem:[%s12714_s26 + $0x2430] sm:$0xff]  ;;  %v1518_v17 = vld [vmem:[%s12714_s26 + $0x2448] sm:$0xff]  ;;  %v1536_v20 = vld [vmem:[%s12714_s26 + $0x24d8] sm:$0xff] }
 0x2ae   : > { %11254 = vmatprep.subr.bf16.mxu1 %v11253_v15  ;;  %v1557_v15 = vld [vmem:[%s12714_s26 + $0x2580] sm:$0xff]  ;;  %v2758_v48 = vcombine.high %v14117_v32, %v14117_v32  ;;  %v11285_v1 = vpack.c.bf16 %v1532_v63, %v1531_v45 }
 0x2af   : > { %v11305_v29 = vpack.c.bf16 %v1558_v7, %v1557_v15  ;;  %v1550_v15 = vld [vmem:[%s12714_s26 + $0x2548] sm:$0xff]  ;;  %v1535_v7 = vld [vmem:[%s12714_s26 + $0x24d0] sm:$0xff] }
 0x2b0   : > { %11224 = vmatpush3.bf16.msra.mxu0 %v11223_v21  ;;  %v1509_v21 = vld [vmem:[%s12714_s26 + $0x2400] sm:$0xff] }
 0x2b1   : > { %11256 = vmatpush3.bf16.msra.mxu1 %v11255_v27  ;;  %11226 = vmatprep.subr.bf16.mxu0 %v11225_v28  ;;  %v1510_v27 = vld [vmem:[%s12714_s26 + $0x2408] sm:$0xff]  ;;  %v1541_v28 = vld [vmem:[%s12714_s26 + $0x2500] sm:$0xff] }
 0x2b2   : > { %11258 = vmatprep.subr.bf16.mxu1 %v11257_v19  ;;  %v1528_v19 = vld [vmem:[%s12714_s26 + $0x2498] sm:$0xff]  ;;  %v11275_v39 = vpack.c.bf16 %v1510_v27, %v1509_v21  ;;  %v11323_v21 = vpack.c.bf16 %v1550_v15, %v1549_v18  ;;  %v11293_v27 = vpack.c.bf16 %v1536_v20, %v1535_v7  ;;  %v1591_v18 = vld [vmem:[%s12714_s26 + $0x2690] sm:$0xff] }
 0x2b3   : > { %v1623_v7 = vld [vmem:[%s12714_s26 + $0x2790] sm:$0xff]  ;;  %v1624_v20 = vld [vmem:[%s12714_s26 + $0x2798] sm:$0xff] }
 0x2b4   : > { %11228 = vmatpush3.bf16.msra.mxu0 %v11227_v42  ;;  %v11307_v42 = vpack.c.bf16 %v1542_v30, %v1541_v28  ;;  %v1519_v28 = vld [vmem:[%s12714_s26 + $0x2450] sm:$0xff] }
 0x2b5   : > { %11260 = vmatpush3.bf16.msra.mxu1 %v11259_v25  ;;  %11230 = vmatprep.subr.bf16.mxu0 %v11229_v52  ;;  %v11277_v25 = vpack.c.bf16 %v1528_v19, %v1527_v31  ;;  %v1511_v52 = vld [vmem:[%s12714_s26 + $0x2410] sm:$0xff]  ;;  %v1552_v19 = vld [vmem:[%s12714_s26 + $0x2558] sm:$0xff] }
 0x2b6   : > { %v8585_v47 = vpop.f32.mrb[20].mxu0  ;;  %11262 = vmatprep.subr.bf16.mxu1 %v11261_v44  ;;  %v1544_v44 = vld [vmem:[%s12714_s26 + $0x2518] sm:$0xff]  ;;  %v1551_v30 = vld [vmem:[%s12714_s26 + $0x2550] sm:$0xff] }
 0x2b7   : > { %v8586_v54 = vpop.f32.mrb[21].mxu0  ;;  %v8620_v0 = vpop.f32.mrb[20].mxu1 }
 0x2b8   : > { %v8587_v3 = vadd.f32 %v8586_v54, %v8585_v47  ;;  %11232 = vmatpush3.bf16.msra.mxu0 %v11231_v38  ;;  %v8621_v60 = vpop.f32.mrb[21].mxu1  ;;  %v2759_v38 = vcombine.high %v14122_v49, %v14122_v49  ;;  %v11313_v47 = vpack.c.bf16 %v1562_v50, %v1561_v53  ;;  %v1539_v53 = vld [vmem:[%s12714_s26 + $0x24f0] sm:$0xff]  ;;  %v1540_v50 = vld [vmem:[%s12714_s26 + $0x24f8] sm:$0xff] }
 0x2b9   : > { %v8622_v6 = vadd.f32 %v8621_v60, %v8620_v0  ;;  %11264 = vmatpush3.bf16.msra.mxu1 %v11263_v33  ;;  %11234 = vmatprep.subr.bf16.mxu0 %v11233_v55  ;;  %v11279_v33 = vpack.c.bf16 %v1512_v40, %v1511_v52  ;;  %v11311_v55 = vpack.c.bf16 %v1544_v44, %v1543_v41  ;;  %v1547_v60 = vld [vmem:[%s12714_s26 + $0x2530] sm:$0xff]  ;;  %v1521_v41 = vld [vmem:[%s12714_s26 + $0x2460] sm:$0xff] }
 0x2ba   : > { %v4576_v16 = vadd.f32 %v8587_v3, %v14029_v37  ;;  %11266 = vmatprep.subr.bf16.mxu1 %v11265_v51  ;;  %v11239_v37 = vpack.c.bf16 %v1460_v10, %v1459_v9  ;;  %v1546_v51 = vld [vmem:[%s12714_s26 + $0x2528] sm:$0xff]  ;;  %v1516_v3 = vld [vmem:[%s12714_s26 + $0x2438] sm:$0xff]  ;;  %v11319_v14 = vpack.c.bf16 %v1548_v57, %v1547_v60  ;;  %v11327_v52 = vpack.c.bf16 %v1552_v19, %v1551_v30  ;;  %v1553_v44 = vld [vmem:[%s12714_s26 + $0x2560] sm:$0xff] }
 0x2bb   : > { %v11315_v0 = vpack.c.bf16 %v1546_v51, %v1545_v59  ;;  %v1566_v9 = vld [vmem:[%s12714_s26 + $0x25c8] sm:$0xff]  ;;  %v11287_v10 = vpack.c.bf16 %v1516_v3, %v1515_v2  ;;  %v11297_v40 = vpack.c.bf16 %v1538_v35, %v1537_v22  ;;  %v11301_v63 = vpack.c.bf16 %v1540_v50, %v1539_v53  ;;  %v1556_v2 = vld [vmem:[%s12714_s26 + $0x2578] sm:$0xff]  ;;  %v1589_v3 = vld [vmem:[%s12714_s26 + $0x2680] sm:$0xff] }
 0x2bc   : > { %v14108_v23 = vadd.f32 %v8622_v6, %v4576_v16  ;;  %11236 = vmatpush3.bf16.msra.mxu0 %v11235_v4  ;;  %v1533_v6 = vld [vmem:[%s12714_s26 + $0x24c0] sm:$0xff]  ;;  %v1590_v60 = vld [vmem:[%s12714_s26 + $0x2688] sm:$0xff]  ;;  %v11373_v30 = vpack.c.bf16 %v1624_v20, %v1623_v7  ;;  %v1596_v53 = vld [vmem:[%s12714_s26 + $0x26b8] sm:$0xff] }
 0x2bd   : > { %11268 = vmatpush3.bf16.msra.mxu1 %v11267_v8  ;;  %11238 = vmatprep.subr.bf16.mxu0 %v11237_v12  ;;  %v1534_v8 = vld [vmem:[%s12714_s26 + $0x24c8] sm:$0xff]  ;;  %v1565_v12 = vld [vmem:[%s12714_s26 + $0x25c0] sm:$0xff]  ;;  %v1628_v50 = vld [vmem:[%s12714_s26 + $0x27b8] sm:$0xff] }
 0x2be   : > { %11270 = vmatprep.subr.bf16.mxu1 %v11269_v11  ;;  %v11289_v16 = vpack.c.bf16 %v1534_v8, %v1533_v6  ;;  %v1517_v11 = vld [vmem:[%s12714_s26 + $0x2440] sm:$0xff]  ;;  %v11321_v5 = vpack.c.bf16 %v1566_v9, %v1565_v12  ;;  %v1622_v57 = vld [vmem:[%s12714_s26 + $0x2788] sm:$0xff]  ;;  %v11337_v9 = vpack.c.bf16 %v1590_v60, %v1589_v3 }
 0x2bf   : > { %v1593_v19 = vld [vmem:[%s12714_s26 + $0x26a0] sm:$0xff]  ;;  %v1594_v22 = vld [vmem:[%s12714_s26 + $0x26a8] sm:$0xff] }
 0x2c0   : > { %11240 = vmatpush3.bf16.msra.mxu0 %v11239_v37  ;;  %v1567_v37 = vld [vmem:[%s12714_s26 + $0x25d0] sm:$0xff]  ;;  %v1613_v3 = vld [vmem:[%s12714_s26 + $0x2740] sm:$0xff]  ;;  %v1602_v20 = vld [vmem:[%s12714_s26 + $0x26e8] sm:$0xff] }
 0x2c1   : > { %11272 = vmatpush3.bf16.msra.mxu1 %v11271_v26  ;;  %11274 = vmatprep.subr.bf16.mxu0 %v11273_v24  ;;  %v1568_v26 = vld [vmem:[%s12714_s26 + $0x25d8] sm:$0xff]  ;;  %v11291_v24 = vpack.c.bf16 %v1518_v17, %v1517_v11  ;;  %v1606_v17 = vld [vmem:[%s12714_s26 + $0x2708] sm:$0xff]  ;;  %v1601_v7 = vld [vmem:[%s12714_s26 + $0x26e0] sm:$0xff] }
 0x2c2   : > { %11306 = vmatprep.subr.bf16.mxu1 %v11305_v29  ;;  %v1520_v29 = vld [vmem:[%s12714_s26 + $0x2458] sm:$0xff]  ;;  %v11325_v31 = vpack.c.bf16 %v1568_v26, %v1567_v37 }
 0x2c3   : > { %5554 = vmatmul.mubr.f32.vlgmr.msra.gmra.mrb[34].mxu0 %v14038_v46  ;;  %v1514_v46 = vld [vmem:[%s12714_s26 + $0x2428] sm:$0xff] }
 0x2c4   : > { %11276 = vmatpush3.bf16.msra.mxu0 %v11275_v39  ;;  %5624 = vmatmul.mubr.f32.vlgmr.msra.gmra.mrb[34].mxu1 %v14043_v61  ;;  %v1563_v61 = vld [vmem:[%s12714_s26 + $0x25b0] sm:$0xff]  ;;  %v11283_v54 = vpack.c.bf16 %v1514_v46, %v1513_v58  ;;  %v1569_v39 = vld [vmem:[%s12714_s26 + $0x25e0] sm:$0xff] }
 0x2c5   : > { %11308 = vmatpush3.bf16.msra.mxu1 %v11307_v42  ;;  %11278 = vmatprep.subr.bf16.mxu0 %v11277_v25  ;;  %v11317_v4 = vpack.c.bf16 %v1564_v62, %v1563_v61  ;;  %v1570_v42 = vld [vmem:[%s12714_s26 + $0x25e8] sm:$0xff]  ;;  %v11295_v25 = vpack.c.bf16 %v1520_v29, %v1519_v28  ;;  %v1523_v61 = vld [vmem:[%s12714_s26 + $0x2470] sm:$0xff]  ;;  %v1524_v62 = vld [vmem:[%s12714_s26 + $0x2478] sm:$0xff] }
 0x2c6   : > { %11310 = vmatprep.subr.bf16.mxu1 %v11309_v43  ;;  %5693 = vmatprep.mubr.f32.mxu0 %v2758_v48  ;;  %v1522_v43 = vld [vmem:[%s12714_s26 + $0x2468] sm:$0xff]  ;;  %v11329_v36 = vpack.c.bf16 %v1570_v42, %v1569_v39  ;;  %v1576_v28 = vld [vmem:[%s12714_s26 + $0x2618] sm:$0xff]  ;;  %v1607_v29 = vld [vmem:[%s12714_s26 + $0x2710] sm:$0xff] }
 0x2c7   : > { %5763 = vmatprep.mubr.f32.mxu1 %v2759_v38  ;;  %v1554_v48 = vld [vmem:[%s12714_s26 + $0x2568] sm:$0xff]  ;;  %v11299_v59 = vpack.c.bf16 %v1522_v43, %v1521_v41  ;;  %v1625_v39 = vld [vmem:[%s12714_s26 + $0x27a0] sm:$0xff]  ;;  %v11345_v41 = vpack.c.bf16 %v1594_v22, %v1593_v19 }
 0x2c8   : > { %11280 = vmatpush3.bf16.msra.mxu0 %v11279_v33  ;;  %v11331_v45 = vpack.c.bf16 %v1554_v48, %v1553_v44  ;;  %v1626_v42 = vld [vmem:[%s12714_s26 + $0x27a8] sm:$0xff]  ;;  %v1577_v43 = vld [vmem:[%s12714_s26 + $0x2620] sm:$0xff]  ;;  %v1595_v48 = vld [vmem:[%s12714_s26 + $0x26b0] sm:$0xff] }
 0x2c9   : > { %11312 = vmatpush3.bf16.msra.mxu1 %v11311_v55  ;;  %11282 = vmatprep.subr.bf16.mxu0 %v11281_v56  ;;  %v1571_v55 = vld [vmem:[%s12714_s26 + $0x25f0] sm:$0xff]  ;;  %v1572_v56 = vld [vmem:[%s12714_s26 + $0x25f8] sm:$0xff]  ;;  %v1609_v44 = vld [vmem:[%s12714_s26 + $0x2720] sm:$0xff] }
 0x2ca   : > { %11314 = vmatprep.subr.bf16.mxu1 %v11313_v47  ;;  %v344_v47 = vld [vmem:[#allocation3 + $0x98] sm:$0xff] }
 0x2cb   : > { %v2760_v6 = vcombine.high %v344_v47, %v344_v47  ;;  %v14196_v15 = vrot.slane %v344_v47, %v12766_v13  ;;  %v1612_v47 = vld [vmem:[%s12714_s26 + $0x2738] sm:$0xff] }
 0x2cc   : > { %11284 = vmatpush3.bf16.msra.mxu0 %v11283_v54  ;;  %v1555_v54 = vld [vmem:[%s12714_s26 + $0x2570] sm:$0xff] }
 0x2cd   : > { %11316 = vmatpush3.bf16.msra.mxu1 %v11315_v0  ;;  %11286 = vmatprep.subr.bf16.mxu0 %v11285_v1  ;;  %v11333_v1 = vpack.c.bf16 %v1572_v56, %v1571_v55  ;;  %v11335_v12 = vpack.c.bf16 %v1556_v2, %v1555_v54  ;;  %v14201_v37 = vrot.slane %v2760_v6, %v12766_v13  ;;  %v1579_v56 = vld [vmem:[%s12714_s26 + $0x2630] sm:$0xff]  ;;  %v1582_v2 = vld [vmem:[%s12714_s26 + $0x2648] sm:$0xff]  ;;  %v1600_v6 = vld [vmem:[%s12714_s26 + $0x26d8] sm:$0xff] }
 0x2ce   : > { %11318 = vmatprep.subr.bf16.mxu1 %v11317_v4  ;;  %v1621_v4 = vld [vmem:[%s12714_s26 + $0x2780] sm:$0xff]  ;;  %v2775_v35 = vcombine.high %v14196_v15, %v14196_v15  ;;  %v11349_v55 = vpack.c.bf16 %v1596_v53, %v1595_v48 }
 0x2cf   : > { %v11369_v11 = vpack.c.bf16 %v1622_v57, %v1621_v4  ;;  %v1614_v4 = vld [vmem:[%s12714_s26 + $0x2748] sm:$0xff]  ;;  %v1599_v57 = vld [vmem:[%s12714_s26 + $0x26d0] sm:$0xff] }
 0x2d0   : > { %11288 = vmatpush3.bf16.msra.mxu0 %v11287_v10  ;;  %v1573_v10 = vld [vmem:[%s12714_s26 + $0x2600] sm:$0xff] }
 0x2d1   : > { %11320 = vmatpush3.bf16.msra.mxu1 %v11319_v14  ;;  %11290 = vmatprep.subr.bf16.mxu0 %v11289_v16  ;;  %v1574_v14 = vld [vmem:[%s12714_s26 + $0x2608] sm:$0xff]  ;;  %v1605_v16 = vld [vmem:[%s12714_s26 + $0x2700] sm:$0xff] }
 0x2d2   : > { %11322 = vmatprep.subr.bf16.mxu1 %v11321_v5  ;;  %v1592_v5 = vld [vmem:[%s12714_s26 + $0x2698] sm:$0xff]  ;;  %v11339_v26 = vpack.c.bf16 %v1574_v14, %v1573_v10  ;;  %v11387_v10 = vpack.c.bf16 %v1614_v4, %v1613_v3  ;;  %v11357_v14 = vpack.c.bf16 %v1600_v6, %v1599_v57  ;;  %v1655_v3 = vld [vmem:[%s12714_s26 + $0x2890] sm:$0xff] }
 0x2d3   : > { %v1687_v57 = vld [vmem:[%s12714_s26 + $0x2990] sm:$0xff]  ;;  %v1688_v6 = vld [vmem:[%s12714_s26 + $0x2998] sm:$0xff] }
 0x2d4   : > { %11292 = vmatpush3.bf16.msra.mxu0 %v11291_v24  ;;  %v11371_v24 = vpack.c.bf16 %v1606_v17, %v1605_v16  ;;  %v1583_v16 = vld [vmem:[%s12714_s26 + $0x2650] sm:$0xff] }
 0x2d5   : > { %11324 = vmatpush3.bf16.msra.mxu1 %v11323_v21  ;;  %11294 = vmatprep.subr.bf16.mxu0 %v11293_v27  ;;  %v11341_v21 = vpack.c.bf16 %v1592_v5, %v1591_v18  ;;  %v1575_v27 = vld [vmem:[%s12714_s26 + $0x2610] sm:$0xff]  ;;  %v1616_v5 = vld [vmem:[%s12714_s26 + $0x2758] sm:$0xff] }
 0x2d6   : > { %v8655_v34 = vpop.f32.mrb[22].mxu0  ;;  %11326 = vmatprep.subr.bf16.mxu1 %v11325_v31  ;;  %v1608_v31 = vld [vmem:[%s12714_s26 + $0x2718] sm:$0xff]  ;;  %v1615_v17 = vld [vmem:[%s12714_s26 + $0x2750] sm:$0xff] }
 0x2d7   : > { %v8656_v38 = vpop.f32.mrb[23].mxu0  ;;  %v8690_v33 = vpop.f32.mrb[22].mxu1 }
 0x2d8   : > { %v8657_v58 = vadd.f32 %v8656_v38, %v8655_v34  ;;  %11296 = vmatpush3.bf16.msra.mxu0 %v11295_v25  ;;  %v8691_v46 = vpop.f32.mrb[23].mxu1  ;;  %v2776_v25 = vcombine.high %v14201_v37, %v14201_v37  ;;  %v11377_v34 = vpack.c.bf16 %v1626_v42, %v1625_v39  ;;  %v1603_v39 = vld [vmem:[%s12714_s26 + $0x26f0] sm:$0xff]  ;;  %v1604_v42 = vld [vmem:[%s12714_s26 + $0x26f8] sm:$0xff] }
 0x2d9   : > { %v8692_v51 = vadd.f32 %v8691_v46, %v8690_v33  ;;  %11328 = vmatpush3.bf16.msra.mxu1 %v11327_v52  ;;  %11298 = vmatprep.subr.bf16.mxu0 %v11297_v40  ;;  %v11343_v52 = vpack.c.bf16 %v1576_v28, %v1575_v27  ;;  %v11375_v40 = vpack.c.bf16 %v1608_v31, %v1607_v29  ;;  %v1611_v46 = vld [vmem:[%s12714_s26 + $0x2730] sm:$0xff]  ;;  %v1585_v29 = vld [vmem:[%s12714_s26 + $0x2660] sm:$0xff] }
 0x2da   : > { %v4716_v0 = vadd.f32 %v8657_v58, %v14108_v23  ;;  %11330 = vmatprep.subr.bf16.mxu1 %v11329_v36  ;;  %v11303_v23 = vpack.c.bf16 %v1524_v62, %v1523_v61  ;;  %v1610_v36 = vld [vmem:[%s12714_s26 + $0x2728] sm:$0xff]  ;;  %v1580_v58 = vld [vmem:[%s12714_s26 + $0x2638] sm:$0xff]  ;;  %v11383_v54 = vpack.c.bf16 %v1612_v47, %v1611_v46  ;;  %v11391_v27 = vpack.c.bf16 %v1616_v5, %v1615_v17  ;;  %v1617_v31 = vld [vmem:[%s12714_s26 + $0x2760] sm:$0xff] }
 0x2db   : > { %v11379_v33 = vpack.c.bf16 %v1610_v36, %v1609_v44  ;;  %v1630_v61 = vld [vmem:[%s12714_s26 + $0x27c8] sm:$0xff]  ;;  %v11351_v62 = vpack.c.bf16 %v1580_v58, %v1579_v56  ;;  %v11361_v28 = vpack.c.bf16 %v1602_v20, %v1601_v7  ;;  %v11365_v53 = vpack.c.bf16 %v1604_v42, %v1603_v39  ;;  %v1620_v56 = vld [vmem:[%s12714_s26 + $0x2778] sm:$0xff]  ;;  %v1653_v58 = vld [vmem:[%s12714_s26 + $0x2880] sm:$0xff] }
 0x2dc   : > { %v14187_v8 = vadd.f32 %v8692_v51, %v4716_v0  ;;  %11300 = vmatpush3.bf16.msra.mxu0 %v11299_v59  ;;  %v1597_v51 = vld [vmem:[%s12714_s26 + $0x26c0] sm:$0xff]  ;;  %v1654_v46 = vld [vmem:[%s12714_s26 + $0x2888] sm:$0xff]  ;;  %v11437_v17 = vpack.c.bf16 %v1688_v6, %v1687_v57  ;;  %v1660_v39 = vld [vmem:[%s12714_s26 + $0x28b8] sm:$0xff] }
 0x2dd   : > { %11332 = vmatpush3.bf16.msra.mxu1 %v11331_v45  ;;  %11302 = vmatprep.subr.bf16.mxu0 %v11301_v63  ;;  %v1598_v45 = vld [vmem:[%s12714_s26 + $0x26c8] sm:$0xff]  ;;  %v1629_v63 = vld [vmem:[%s12714_s26 + $0x27c0] sm:$0xff]  ;;  %v1692_v42 = vld [vmem:[%s12714_s26 + $0x29b8] sm:$0xff] }
 0x2de   : > { %11334 = vmatprep.subr.bf16.mxu1 %v11333_v1  ;;  %v11353_v0 = vpack.c.bf16 %v1598_v45, %v1597_v51  ;;  %v1581_v1 = vld [vmem:[%s12714_s26 + $0x2640] sm:$0xff]  ;;  %v11385_v60 = vpack.c.bf16 %v1630_v61, %v1629_v63  ;;  %v1686_v47 = vld [vmem:[%s12714_s26 + $0x2988] sm:$0xff]  ;;  %v11401_v61 = vpack.c.bf16 %v1654_v46, %v1653_v58 }
 0x2df   : > { %v1657_v5 = vld [vmem:[%s12714_s26 + $0x28a0] sm:$0xff]  ;;  %v1658_v7 = vld [vmem:[%s12714_s26 + $0x28a8] sm:$0xff] }
 0x2e0   : > { %11304 = vmatpush3.bf16.msra.mxu0 %v11303_v23  ;;  %v1631_v23 = vld [vmem:[%s12714_s26 + $0x27d0] sm:$0xff]  ;;  %v1677_v58 = vld [vmem:[%s12714_s26 + $0x2940] sm:$0xff]  ;;  %v1666_v6 = vld [vmem:[%s12714_s26 + $0x28e8] sm:$0xff] }
 0x2e1   : > { %11336 = vmatpush3.bf16.msra.mxu1 %v11335_v12  ;;  %11338 = vmatprep.subr.bf16.mxu0 %v11337_v9  ;;  %v1632_v12 = vld [vmem:[%s12714_s26 + $0x27d8] sm:$0xff]  ;;  %v11355_v9 = vpack.c.bf16 %v1582_v2, %v1581_v1  ;;  %v1670_v2 = vld [vmem:[%s12714_s26 + $0x2908] sm:$0xff]  ;;  %v1665_v57 = vld [vmem:[%s12714_s26 + $0x28e0] sm:$0xff] }
 0x2e2   : > { %11370 = vmatprep.subr.bf16.mxu1 %v11369_v11  ;;  %v1584_v11 = vld [vmem:[%s12714_s26 + $0x2658] sm:$0xff]  ;;  %v11389_v18 = vpack.c.bf16 %v1632_v12, %v1631_v23 }
 0x2e3   : > { %5694 = vmatmul.mubr.f32.vlgmr.msra.gmra.mrb[36].mxu0 %v14117_v32  ;;  %v1578_v32 = vld [vmem:[%s12714_s26 + $0x2628] sm:$0xff] }
 0x2e4   : > { %11340 = vmatpush3.bf16.msra.mxu0 %v11339_v26  ;;  %5764 = vmatmul.mubr.f32.vlgmr.msra.gmra.mrb[36].mxu1 %v14122_v49  ;;  %v1627_v49 = vld [vmem:[%s12714_s26 + $0x27b0] sm:$0xff]  ;;  %v11347_v38 = vpack.c.bf16 %v1578_v32, %v1577_v43  ;;  %v1633_v26 = vld [vmem:[%s12714_s26 + $0x27e0] sm:$0xff] }
 0x2e5   : > { %11372 = vmatpush3.bf16.msra.mxu1 %v11371_v24  ;;  %11342 = vmatprep.subr.bf16.mxu0 %v11341_v21  ;;  %v11381_v59 = vpack.c.bf16 %v1628_v50, %v1627_v49  ;;  %v1634_v24 = vld [vmem:[%s12714_s26 + $0x27e8] sm:$0xff]  ;;  %v11359_v21 = vpack.c.bf16 %v1584_v11, %v1583_v16  ;;  %v1587_v49 = vld [vmem:[%s12714_s26 + $0x2670] sm:$0xff]  ;;  %v1588_v50 = vld [vmem:[%s12714_s26 + $0x2678] sm:$0xff] }
 0x2e6   : > { %11374 = vmatprep.subr.bf16.mxu1 %v11373_v30  ;;  %5833 = vmatprep.mubr.f32.mxu0 %v2775_v35  ;;  %v1586_v30 = vld [vmem:[%s12714_s26 + $0x2668] sm:$0xff]  ;;  %v11393_v22 = vpack.c.bf16 %v1634_v24, %v1633_v26  ;;  %v1640_v16 = vld [vmem:[%s12714_s26 + $0x2818] sm:$0xff]  ;;  %v1671_v11 = vld [vmem:[%s12714_s26 + $0x2910] sm:$0xff] }
 0x2e7   : > { %5903 = vmatprep.mubr.f32.mxu1 %v2776_v25  ;;  %v1618_v35 = vld [vmem:[%s12714_s26 + $0x2768] sm:$0xff]  ;;  %v11363_v44 = vpack.c.bf16 %v1586_v30, %v1585_v29  ;;  %v1689_v26 = vld [vmem:[%s12714_s26 + $0x29a0] sm:$0xff]  ;;  %v11409_v29 = vpack.c.bf16 %v1658_v7, %v1657_v5 }
 0x2e8   : > { %11344 = vmatpush3.bf16.msra.mxu0 %v11343_v52  ;;  %v11395_v48 = vpack.c.bf16 %v1618_v35, %v1617_v31  ;;  %v1690_v24 = vld [vmem:[%s12714_s26 + $0x29a8] sm:$0xff]  ;;  %v1641_v30 = vld [vmem:[%s12714_s26 + $0x2820] sm:$0xff]  ;;  %v1659_v35 = vld [vmem:[%s12714_s26 + $0x28b0] sm:$0xff] }
 0x2e9   : > { %11376 = vmatpush3.bf16.msra.mxu1 %v11375_v40  ;;  %11346 = vmatprep.subr.bf16.mxu0 %v11345_v41  ;;  %v1635_v40 = vld [vmem:[%s12714_s26 + $0x27f0] sm:$0xff]  ;;  %v1636_v41 = vld [vmem:[%s12714_s26 + $0x27f8] sm:$0xff]  ;;  %v1673_v31 = vld [vmem:[%s12714_s26 + $0x2920] sm:$0xff] }
 0x2ea   : > { %11378 = vmatprep.subr.bf16.mxu1 %v11377_v34  ;;  %v345_v34 = vld [vmem:[#allocation3 + $0xa0] sm:$0xff] }
 0x2eb   : > { %v2777_v51 = vcombine.high %v345_v34, %v345_v34  ;;  %v14275_v4 = vrot.slane %v345_v34, %v12766_v13  ;;  %v1676_v34 = vld [vmem:[%s12714_s26 + $0x2938] sm:$0xff] }
 0x2ec   : > { %11348 = vmatpush3.bf16.msra.mxu0 %v11347_v38  ;;  %v1619_v38 = vld [vmem:[%s12714_s26 + $0x2770] sm:$0xff] }
 0x2ed   : > { %11380 = vmatpush3.bf16.msra.mxu1 %v11379_v33  ;;  %11350 = vmatprep.subr.bf16.mxu0 %v11349_v55  ;;  %v11397_v55 = vpack.c.bf16 %v1636_v41, %v1635_v40  ;;  %v11399_v63 = vpack.c.bf16 %v1620_v56, %v1619_v38  ;;  %v14280_v23 = vrot.slane %v2777_v51, %v12766_v13  ;;  %v1643_v41 = vld [vmem:[%s12714_s26 + $0x2830] sm:$0xff]  ;;  %v1646_v56 = vld [vmem:[%s12714_s26 + $0x2848] sm:$0xff]  ;;  %v1664_v51 = vld [vmem:[%s12714_s26 + $0x28d8] sm:$0xff] }
 0x2ee   : > { %11382 = vmatprep.subr.bf16.mxu1 %v11381_v59  ;;  %v1685_v59 = vld [vmem:[%s12714_s26 + $0x2980] sm:$0xff]  ;;  %v2792_v20 = vcombine.high %v14275_v4, %v14275_v4  ;;  %v11413_v40 = vpack.c.bf16 %v1660_v39, %v1659_v35 }
 0x2ef   : > { %v11433_v1 = vpack.c.bf16 %v1686_v47, %v1685_v59  ;;  %v1678_v59 = vld [vmem:[%s12714_s26 + $0x2948] sm:$0xff]  ;;  %v1663_v47 = vld [vmem:[%s12714_s26 + $0x28d0] sm:$0xff] }
 0x2f0   : > { %11352 = vmatpush3.bf16.msra.mxu0 %v11351_v62  ;;  %v1637_v62 = vld [vmem:[%s12714_s26 + $0x2800] sm:$0xff] }
 0x2f1   : > { %11384 = vmatpush3.bf16.msra.mxu1 %v11383_v54  ;;  %11354 = vmatprep.subr.bf16.mxu0 %v11353_v0  ;;  %v1638_v54 = vld [vmem:[%s12714_s26 + $0x2808] sm:$0xff]  ;;  %v1669_v0 = vld [vmem:[%s12714_s26 + $0x2900] sm:$0xff] }
 0x2f2   : > { %11386 = vmatprep.subr.bf16.mxu1 %v11385_v60  ;;  %v1656_v60 = vld [vmem:[%s12714_s26 + $0x2898] sm:$0xff]  ;;  %v11403_v12 = vpack.c.bf16 %v1638_v54, %v1637_v62  ;;  %v11451_v62 = vpack.c.bf16 %v1678_v59, %v1677_v58  ;;  %v11421_v54 = vpack.c.bf16 %v1664_v51, %v1663_v47  ;;  %v1719_v58 = vld [vmem:[%s12714_s26 + $0x2a90] sm:$0xff] }
 0x2f3   : > { %v1751_v47 = vld [vmem:[%s12714_s26 + $0x2b90] sm:$0xff]  ;;  %v1752_v51 = vld [vmem:[%s12714_s26 + $0x2b98] sm:$0xff] }
 0x2f4   : > { %11356 = vmatpush3.bf16.msra.mxu0 %v11355_v9  ;;  %v11435_v9 = vpack.c.bf16 %v1670_v2, %v1669_v0  ;;  %v1647_v0 = vld [vmem:[%s12714_s26 + $0x2850] sm:$0xff] }
 0x2f5   : > { %11388 = vmatpush3.bf16.msra.mxu1 %v11387_v10  ;;  %11358 = vmatprep.subr.bf16.mxu0 %v11357_v14  ;;  %v11405_v10 = vpack.c.bf16 %v1656_v60, %v1655_v3  ;;  %v1639_v14 = vld [vmem:[%s12714_s26 + $0x2810] sm:$0xff]  ;;  %v1680_v60 = vld [vmem:[%s12714_s26 + $0x2958] sm:$0xff] }
 0x2f6   : > { %v8725_v19 = vpop.f32.mrb[24].mxu0  ;;  %11390 = vmatprep.subr.bf16.mxu1 %v11389_v18  ;;  %v1672_v18 = vld [vmem:[%s12714_s26 + $0x2918] sm:$0xff]  ;;  %v1679_v2 = vld [vmem:[%s12714_s26 + $0x2950] sm:$0xff] }
 0x2f7   : > { %v8726_v25 = vpop.f32.mrb[25].mxu0  ;;  %v8760_v52 = vpop.f32.mrb[24].mxu1 }
 0x2f8   : > { %v8727_v43 = vadd.f32 %v8726_v25, %v8725_v19  ;;  %11360 = vmatpush3.bf16.msra.mxu0 %v11359_v21  ;;  %v8761_v32 = vpop.f32.mrb[25].mxu1  ;;  %v2793_v21 = vcombine.high %v14280_v23, %v14280_v23  ;;  %v11441_v19 = vpack.c.bf16 %v1690_v24, %v1689_v26  ;;  %v1667_v26 = vld [vmem:[%s12714_s26 + $0x28f0] sm:$0xff]  ;;  %v1668_v24 = vld [vmem:[%s12714_s26 + $0x28f8] sm:$0xff] }
 0x2f9   : > { %v8762_v36 = vadd.f32 %v8761_v32, %v8760_v52  ;;  %11392 = vmatpush3.bf16.msra.mxu1 %v11391_v27  ;;  %11362 = vmatprep.subr.bf16.mxu0 %v11361_v28  ;;  %v11407_v27 = vpack.c.bf16 %v1640_v16, %v1639_v14  ;;  %v11439_v28 = vpack.c.bf16 %v1672_v18, %v1671_v11  ;;  %v1675_v32 = vld [vmem:[%s12714_s26 + $0x2930] sm:$0xff]  ;;  %v1649_v11 = vld [vmem:[%s12714_s26 + $0x2860] sm:$0xff] }
 0x2fa   : > { %v4856_v33 = vadd.f32 %v8727_v43, %v14187_v8  ;;  %11394 = vmatprep.subr.bf16.mxu1 %v11393_v22  ;;  %v11367_v8 = vpack.c.bf16 %v1588_v50, %v1587_v49  ;;  %v1674_v22 = vld [vmem:[%s12714_s26 + $0x2928] sm:$0xff]  ;;  %v1644_v43 = vld [vmem:[%s12714_s26 + $0x2838] sm:$0xff]  ;;  %v11447_v38 = vpack.c.bf16 %v1676_v34, %v1675_v32  ;;  %v11455_v14 = vpack.c.bf16 %v1680_v60, %v1679_v2  ;;  %v1681_v18 = vld [vmem:[%s12714_s26 + $0x2960] sm:$0xff] }
 0x2fb   : > { %v11443_v52 = vpack.c.bf16 %v1674_v22, %v1673_v31  ;;  %v1694_v49 = vld [vmem:[%s12714_s26 + $0x29c8] sm:$0xff]  ;;  %v11415_v50 = vpack.c.bf16 %v1644_v43, %v1643_v41  ;;  %v11425_v16 = vpack.c.bf16 %v1666_v6, %v1665_v57  ;;  %v11429_v39 = vpack.c.bf16 %v1668_v24, %v1667_v26  ;;  %v1684_v41 = vld [vmem:[%s12714_s26 + $0x2978] sm:$0xff]  ;;  %v1717_v43 = vld [vmem:[%s12714_s26 + $0x2a80] sm:$0xff] }
 0x2fc   : > { %v14266_v45 = vadd.f32 %v8762_v36, %v4856_v33  ;;  %11364 = vmatpush3.bf16.msra.mxu0 %v11363_v44  ;;  %v1661_v36 = vld [vmem:[%s12714_s26 + $0x28c0] sm:$0xff]  ;;  %v1718_v32 = vld [vmem:[%s12714_s26 + $0x2a88] sm:$0xff]  ;;  %v11501_v2 = vpack.c.bf16 %v1752_v51, %v1751_v47  ;;  %v1724_v26 = vld [vmem:[%s12714_s26 + $0x2ab8] sm:$0xff] }
 0x2fd   : > { %11396 = vmatpush3.bf16.msra.mxu1 %v11395_v48  ;;  %11366 = vmatprep.subr.bf16.mxu0 %v11365_v53  ;;  %v1662_v48 = vld [vmem:[%s12714_s26 + $0x28c8] sm:$0xff]  ;;  %v1693_v53 = vld [vmem:[%s12714_s26 + $0x29c0] sm:$0xff]  ;;  %v1756_v24 = vld [vmem:[%s12714_s26 + $0x2bb8] sm:$0xff] }
 0x2fe   : > { %11398 = vmatprep.subr.bf16.mxu1 %v11397_v55  ;;  %v11417_v33 = vpack.c.bf16 %v1662_v48, %v1661_v36  ;;  %v1645_v55 = vld [vmem:[%s12714_s26 + $0x2840] sm:$0xff]  ;;  %v11449_v46 = vpack.c.bf16 %v1694_v49, %v1693_v53  ;;  %v1750_v34 = vld [vmem:[%s12714_s26 + $0x2b88] sm:$0xff]  ;;  %v11465_v49 = vpack.c.bf16 %v1718_v32, %v1717_v43 }
 0x2ff   : > { %v1721_v60 = vld [vmem:[%s12714_s26 + $0x2aa0] sm:$0xff]  ;;  %v1722_v57 = vld [vmem:[%s12714_s26 + $0x2aa8] sm:$0xff] }
 0x300   : > { %11368 = vmatpush3.bf16.msra.mxu0 %v11367_v8  ;;  %v1695_v8 = vld [vmem:[%s12714_s26 + $0x29d0] sm:$0xff]  ;;  %v1741_v43 = vld [vmem:[%s12714_s26 + $0x2b40] sm:$0xff]  ;;  %v1730_v51 = vld [vmem:[%s12714_s26 + $0x2ae8] sm:$0xff] }
 0x301   : > { %11400 = vmatpush3.bf16.msra.mxu1 %v11399_v63  ;;  %11402 = vmatprep.subr.bf16.mxu0 %v11401_v61  ;;  %v1696_v63 = vld [vmem:[%s12714_s26 + $0x29d8] sm:$0xff]  ;;  %v11419_v61 = vpack.c.bf16 %v1646_v56, %v1645_v55  ;;  %v1734_v56 = vld [vmem:[%s12714_s26 + $0x2b08] sm:$0xff]  ;;  %v1729_v47 = vld [vmem:[%s12714_s26 + $0x2ae0] sm:$0xff] }
 0x302   : > { %11434 = vmatprep.subr.bf16.mxu1 %v11433_v1  ;;  %v1648_v1 = vld [vmem:[%s12714_s26 + $0x2858] sm:$0xff]  ;;  %v11453_v3 = vpack.c.bf16 %v1696_v63, %v1695_v8 }
 0x303   : > { %5834 = vmatmul.mubr.f32.vlgmr.msra.gmra.mrb[38].mxu0 %v14196_v15  ;;  %v1642_v15 = vld [vmem:[%s12714_s26 + $0x2828] sm:$0xff] }
 0x304   : > { %11404 = vmatpush3.bf16.msra.mxu0 %v11403_v12  ;;  %5904 = vmatmul.mubr.f32.vlgmr.msra.gmra.mrb[38].mxu1 %v14201_v37  ;;  %v1691_v37 = vld [vmem:[%s12714_s26 + $0x29b0] sm:$0xff]  ;;  %v11411_v25 = vpack.c.bf16 %v1642_v15, %v1641_v30  ;;  %v1697_v12 = vld [vmem:[%s12714_s26 + $0x29e0] sm:$0xff] }
 0x305   : > { %11436 = vmatpush3.bf16.msra.mxu1 %v11435_v9  ;;  %11406 = vmatprep.subr.bf16.mxu0 %v11405_v10  ;;  %v11445_v44 = vpack.c.bf16 %v1692_v42, %v1691_v37  ;;  %v1698_v9 = vld [vmem:[%s12714_s26 + $0x29e8] sm:$0xff]  ;;  %v11423_v10 = vpack.c.bf16 %v1648_v1, %v1647_v0  ;;  %v1651_v37 = vld [vmem:[%s12714_s26 + $0x2870] sm:$0xff]  ;;  %v1652_v42 = vld [vmem:[%s12714_s26 + $0x2878] sm:$0xff] }
 0x306   : > { %11438 = vmatprep.subr.bf16.mxu1 %v11437_v17  ;;  %5973 = vmatprep.mubr.f32.mxu0 %v2792_v20  ;;  %v1650_v17 = vld [vmem:[%s12714_s26 + $0x2868] sm:$0xff]  ;;  %v11457_v7 = vpack.c.bf16 %v1698_v9, %v1697_v12  ;;  %v1704_v0 = vld [vmem:[%s12714_s26 + $0x2a18] sm:$0xff]  ;;  %v1735_v1 = vld [vmem:[%s12714_s26 + $0x2b10] sm:$0xff] }
 0x307   : > { %6043 = vmatprep.mubr.f32.mxu1 %v2793_v21  ;;  %v1682_v20 = vld [vmem:[%s12714_s26 + $0x2968] sm:$0xff]  ;;  %v11427_v31 = vpack.c.bf16 %v1650_v17, %v1649_v11  ;;  %v1753_v12 = vld [vmem:[%s12714_s26 + $0x2ba0] sm:$0xff]  ;;  %v11473_v11 = vpack.c.bf16 %v1722_v57, %v1721_v60 }
 0x308   : > { %11408 = vmatpush3.bf16.msra.mxu0 %v11407_v27  ;;  %v11459_v35 = vpack.c.bf16 %v1682_v20, %v1681_v18  ;;  %v1754_v9 = vld [vmem:[%s12714_s26 + $0x2ba8] sm:$0xff]  ;;  %v1705_v17 = vld [vmem:[%s12714_s26 + $0x2a20] sm:$0xff]  ;;  %v1723_v20 = vld [vmem:[%s12714_s26 + $0x2ab0] sm:$0xff] }
 0x309   : > { %11440 = vmatpush3.bf16.msra.mxu1 %v11439_v28  ;;  %11410 = vmatprep.subr.bf16.mxu0 %v11409_v29  ;;  %v1699_v28 = vld [vmem:[%s12714_s26 + $0x29f0] sm:$0xff]  ;;  %v1700_v29 = vld [vmem:[%s12714_s26 + $0x29f8] sm:$0xff]  ;;  %v1737_v18 = vld [vmem:[%s12714_s26 + $0x2b20] sm:$0xff] }
 0x30a   : > { %11442 = vmatprep.subr.bf16.mxu1 %v11441_v19  ;;  %v346_v19 = vld [vmem:[#allocation3 + $0xa8] sm:$0xff] }
 0x30b   : > { %v2794_v36 = vcombine.high %v346_v19, %v346_v19  ;;  %v14354_v59 = vrot.slane %v346_v19, %v12766_v13  ;;  %v1740_v19 = vld [vmem:[%s12714_s26 + $0x2b38] sm:$0xff] }
 0x30c   : > { %11412 = vmatpush3.bf16.msra.mxu0 %v11411_v25  ;;  %v1683_v25 = vld [vmem:[%s12714_s26 + $0x2970] sm:$0xff] }
 0x30d   : > { %11444 = vmatpush3.bf16.msra.mxu1 %v11443_v52  ;;  %11414 = vmatprep.subr.bf16.mxu0 %v11413_v40  ;;  %v11461_v40 = vpack.c.bf16 %v1700_v29, %v1699_v28  ;;  %v11463_v53 = vpack.c.bf16 %v1684_v41, %v1683_v25  ;;  %v14359_v8 = vrot.slane %v2794_v36, %v12766_v13  ;;  %v1707_v29 = vld [vmem:[%s12714_s26 + $0x2a30] sm:$0xff]  ;;  %v1710_v41 = vld [vmem:[%s12714_s26 + $0x2a48] sm:$0xff]  ;;  %v1728_v36 = vld [vmem:[%s12714_s26 + $0x2ad8] sm:$0xff] }
 0x30e   : > { %11446 = vmatprep.subr.bf16.mxu1 %v11445_v44  ;;  %v1749_v44 = vld [vmem:[%s12714_s26 + $0x2b80] sm:$0xff]  ;;  %v2809_v6 = vcombine.high %v14354_v59, %v14354_v59  ;;  %v11477_v28 = vpack.c.bf16 %v1724_v26, %v1723_v20 }
 0x30f   : > { %v11497_v55 = vpack.c.bf16 %v1750_v34, %v1749_v44  ;;  %v1742_v44 = vld [vmem:[%s12714_s26 + $0x2b48] sm:$0xff]  ;;  %v1727_v34 = vld [vmem:[%s12714_s26 + $0x2ad0] sm:$0xff] }
 0x310   : > { %11416 = vmatpush3.bf16.msra.mxu0 %v11415_v50  ;;  %v1701_v50 = vld [vmem:[%s12714_s26 + $0x2a00] sm:$0xff] }
 0x311   : > { %11448 = vmatpush3.bf16.msra.mxu1 %v11447_v38  ;;  %11418 = vmatprep.subr.bf16.mxu0 %v11417_v33  ;;  %v1702_v38 = vld [vmem:[%s12714_s26 + $0x2a08] sm:$0xff]  ;;  %v1733_v33 = vld [vmem:[%s12714_s26 + $0x2b00] sm:$0xff] }
 0x312   : > { %11450 = vmatprep.subr.bf16.mxu1 %v11449_v46  ;;  %v1720_v46 = vld [vmem:[%s12714_s26 + $0x2a98] sm:$0xff]  ;;  %v11467_v63 = vpack.c.bf16 %v1702_v38, %v1701_v50  ;;  %v11515_v50 = vpack.c.bf16 %v1742_v44, %v1741_v43  ;;  %v11485_v38 = vpack.c.bf16 %v1728_v36, %v1727_v34  ;;  %v1783_v43 = vld [vmem:[%s12714_s26 + $0x2c90] sm:$0xff] }
 0x313   : > { %v1815_v34 = vld [vmem:[%s12714_s26 + $0x2d90] sm:$0xff]  ;;  %v1816_v36 = vld [vmem:[%s12714_s26 + $0x2d98] sm:$0xff] }
 0x314   : > { %11420 = vmatpush3.bf16.msra.mxu0 %v11419_v61  ;;  %v11499_v61 = vpack.c.bf16 %v1734_v56, %v1733_v33  ;;  %v1711_v33 = vld [vmem:[%s12714_s26 + $0x2a50] sm:$0xff] }
 0x315   : > { %11452 = vmatpush3.bf16.msra.mxu1 %v11451_v62  ;;  %11422 = vmatprep.subr.bf16.mxu0 %v11421_v54  ;;  %v11469_v62 = vpack.c.bf16 %v1720_v46, %v1719_v58  ;;  %v1703_v54 = vld [vmem:[%s12714_s26 + $0x2a10] sm:$0xff]  ;;  %v1744_v46 = vld [vmem:[%s12714_s26 + $0x2b58] sm:$0xff] }
 0x316   : > { %v8795_v5 = vpop.f32.mrb[26].mxu0  ;;  %11454 = vmatprep.subr.bf16.mxu1 %v11453_v3  ;;  %v1736_v3 = vld [vmem:[%s12714_s26 + $0x2b18] sm:$0xff]  ;;  %v1743_v56 = vld [vmem:[%s12714_s26 + $0x2b50] sm:$0xff] }
 0x317   : > { %v8796_v21 = vpop.f32.mrb[27].mxu0  ;;  %v8830_v27 = vpop.f32.mrb[26].mxu1 }
 0x318   : > { %v8797_v30 = vadd.f32 %v8796_v21, %v8795_v5  ;;  %11424 = vmatpush3.bf16.msra.mxu0 %v11423_v10  ;;  %v8831_v15 = vpop.f32.mrb[27].mxu1  ;;  %v2810_v10 = vcombine.high %v14359_v8, %v14359_v8  ;;  %v11505_v5 = vpack.c.bf16 %v1754_v9, %v1753_v12  ;;  %v1731_v12 = vld [vmem:[%s12714_s26 + $0x2af0] sm:$0xff]  ;;  %v1732_v9 = vld [vmem:[%s12714_s26 + $0x2af8] sm:$0xff] }
 0x319   : > { %v8832_v22 = vadd.f32 %v8831_v15, %v8830_v27  ;;  %11456 = vmatpush3.bf16.msra.mxu1 %v11455_v14  ;;  %11426 = vmatprep.subr.bf16.mxu0 %v11425_v16  ;;  %v11471_v14 = vpack.c.bf16 %v1704_v0, %v1703_v54  ;;  %v11503_v16 = vpack.c.bf16 %v1736_v3, %v1735_v1  ;;  %v1739_v15 = vld [vmem:[%s12714_s26 + $0x2b30] sm:$0xff]  ;;  %v1713_v1 = vld [vmem:[%s12714_s26 + $0x2a60] sm:$0xff] }
 0x31a   : > { %v4996_v52 = vadd.f32 %v8797_v30, %v14266_v45  ;;  %11458 = vmatprep.subr.bf16.mxu1 %v11457_v7  ;;  %v11431_v45 = vpack.c.bf16 %v1652_v42, %v1651_v37  ;;  %v1738_v7 = vld [vmem:[%s12714_s26 + $0x2b28] sm:$0xff]  ;;  %v1708_v30 = vld [vmem:[%s12714_s26 + $0x2a38] sm:$0xff]  ;;  %v11511_v25 = vpack.c.bf16 %v1740_v19, %v1739_v15  ;;  %v11519_v54 = vpack.c.bf16 %v1744_v46, %v1743_v56  ;;  %v1745_v3 = vld [vmem:[%s12714_s26 + $0x2b60] sm:$0xff] }
 0x31b   : > { %v11507_v27 = vpack.c.bf16 %v1738_v7, %v1737_v18  ;;  %v1758_v37 = vld [vmem:[%s12714_s26 + $0x2bc8] sm:$0xff]  ;;  %v11479_v42 = vpack.c.bf16 %v1708_v30, %v1707_v29  ;;  %v11489_v0 = vpack.c.bf16 %v1730_v51, %v1729_v47  ;;  %v11493_v26 = vpack.c.bf16 %v1732_v9, %v1731_v12  ;;  %v1748_v29 = vld [vmem:[%s12714_s26 + $0x2b78] sm:$0xff]  ;;  %v1781_v30 = vld [vmem:[%s12714_s26 + $0x2c80] sm:$0xff] }
 0x31c   : > { %v14345_v48 = vadd.f32 %v8832_v22, %v4996_v52  ;;  %11428 = vmatpush3.bf16.msra.mxu0 %v11427_v31  ;;  %v1725_v22 = vld [vmem:[%s12714_s26 + $0x2ac0] sm:$0xff]  ;;  %v1782_v15 = vld [vmem:[%s12714_s26 + $0x2c88] sm:$0xff]  ;;  %v11565_v56 = vpack.c.bf16 %v1816_v36, %v1815_v34  ;;  %v1788_v12 = vld [vmem:[%s12714_s26 + $0x2cb8] sm:$0xff] }
 0x31d   : > { %11460 = vmatpush3.bf16.msra.mxu1 %v11459_v35  ;;  %11430 = vmatprep.subr.bf16.mxu0 %v11429_v39  ;;  %v1726_v35 = vld [vmem:[%s12714_s26 + $0x2ac8] sm:$0xff]  ;;  %v1757_v39 = vld [vmem:[%s12714_s26 + $0x2bc0] sm:$0xff]  ;;  %v1820_v9 = vld [vmem:[%s12714_s26 + $0x2db8] sm:$0xff] }
 0x31e   : > { %11462 = vmatprep.subr.bf16.mxu1 %v11461_v40  ;;  %v11481_v52 = vpack.c.bf16 %v1726_v35, %v1725_v22  ;;  %v1709_v40 = vld [vmem:[%s12714_s26 + $0x2a40] sm:$0xff]  ;;  %v11513_v32 = vpack.c.bf16 %v1758_v37, %v1757_v39  ;;  %v1814_v19 = vld [vmem:[%s12714_s26 + $0x2d88] sm:$0xff]  ;;  %v11529_v37 = vpack.c.bf16 %v1782_v15, %v1781_v30 }
 0x31f   : > { %v1785_v46 = vld [vmem:[%s12714_s26 + $0x2ca0] sm:$0xff]  ;;  %v1786_v47 = vld [vmem:[%s12714_s26 + $0x2ca8] sm:$0xff] }
 0x320   : > { %11432 = vmatpush3.bf16.msra.mxu0 %v11431_v45  ;;  %v1759_v45 = vld [vmem:[%s12714_s26 + $0x2bd0] sm:$0xff]  ;;  %v1805_v30 = vld [vmem:[%s12714_s26 + $0x2d40] sm:$0xff]  ;;  %v1794_v36 = vld [vmem:[%s12714_s26 + $0x2ce8] sm:$0xff] }
 0x321   : > { %11464 = vmatpush3.bf16.msra.mxu1 %v11463_v53  ;;  %11466 = vmatprep.subr.bf16.mxu0 %v11465_v49  ;;  %v1760_v53 = vld [vmem:[%s12714_s26 + $0x2bd8] sm:$0xff]  ;;  %v11483_v49 = vpack.c.bf16 %v1710_v41, %v1709_v40  ;;  %v1798_v41 = vld [vmem:[%s12714_s26 + $0x2d08] sm:$0xff]  ;;  %v1793_v34 = vld [vmem:[%s12714_s26 + $0x2ce0] sm:$0xff] }
 0x322   : > { %11498 = vmatprep.subr.bf16.mxu1 %v11497_v55  ;;  %v1712_v55 = vld [vmem:[%s12714_s26 + $0x2a58] sm:$0xff]  ;;  %v11517_v58 = vpack.c.bf16 %v1760_v53, %v1759_v45 }
 0x323   : > { %5974 = vmatmul.mubr.f32.vlgmr.msra.gmra.mrb[40].mxu0 %v14275_v4  ;;  %v1706_v4 = vld [vmem:[%s12714_s26 + $0x2a28] sm:$0xff] }
 0x324   : > { %11468 = vmatpush3.bf16.msra.mxu0 %v11467_v63  ;;  %6044 = vmatmul.mubr.f32.vlgmr.msra.gmra.mrb[40].mxu1 %v14280_v23  ;;  %v1755_v23 = vld [vmem:[%s12714_s26 + $0x2bb0] sm:$0xff]  ;;  %v11475_v21 = vpack.c.bf16 %v1706_v4, %v1705_v17  ;;  %v1761_v63 = vld [vmem:[%s12714_s26 + $0x2be0] sm:$0xff] }
 0x325   : > { %11500 = vmatpush3.bf16.msra.mxu1 %v11499_v61  ;;  %11470 = vmatprep.subr.bf16.mxu0 %v11469_v62  ;;  %v11509_v31 = vpack.c.bf16 %v1756_v24, %v1755_v23  ;;  %v1762_v61 = vld [vmem:[%s12714_s26 + $0x2be8] sm:$0xff]  ;;  %v11487_v62 = vpack.c.bf16 %v1712_v55, %v1711_v33  ;;  %v1715_v23 = vld [vmem:[%s12714_s26 + $0x2a70] sm:$0xff]  ;;  %v1716_v24 = vld [vmem:[%s12714_s26 + $0x2a78] sm:$0xff] }
 0x326   : > { %11502 = vmatprep.subr.bf16.mxu1 %v11501_v2  ;;  %6113 = vmatprep.mubr.f32.mxu0 %v2809_v6  ;;  %v1714_v2 = vld [vmem:[%s12714_s26 + $0x2a68] sm:$0xff]  ;;  %v11521_v57 = vpack.c.bf16 %v1762_v61, %v1761_v63  ;;  %v1768_v33 = vld [vmem:[%s12714_s26 + $0x2c18] sm:$0xff]  ;;  %v1799_v55 = vld [vmem:[%s12714_s26 + $0x2d10] sm:$0xff] }
 0x327   : > { %6183 = vmatprep.mubr.f32.mxu1 %v2810_v10  ;;  %v1746_v6 = vld [vmem:[%s12714_s26 + $0x2b68] sm:$0xff]  ;;  %v11491_v18 = vpack.c.bf16 %v1714_v2, %v1713_v1  ;;  %v1817_v63 = vld [vmem:[%s12714_s26 + $0x2da0] sm:$0xff]  ;;  %v11537_v1 = vpack.c.bf16 %v1786_v47, %v1785_v46 }
 0x328   : > { %11472 = vmatpush3.bf16.msra.mxu0 %v11471_v14  ;;  %v11523_v20 = vpack.c.bf16 %v1746_v6, %v1745_v3  ;;  %v1818_v61 = vld [vmem:[%s12714_s26 + $0x2da8] sm:$0xff]  ;;  %v1769_v2 = vld [vmem:[%s12714_s26 + $0x2c20] sm:$0xff]  ;;  %v1787_v6 = vld [vmem:[%s12714_s26 + $0x2cb0] sm:$0xff] }
 0x329   : > { %11504 = vmatpush3.bf16.msra.mxu1 %v11503_v16  ;;  %11474 = vmatprep.subr.bf16.mxu0 %v11473_v11  ;;  %v1763_v16 = vld [vmem:[%s12714_s26 + $0x2bf0] sm:$0xff]  ;;  %v1764_v11 = vld [vmem:[%s12714_s26 + $0x2bf8] sm:$0xff]  ;;  %v1801_v3 = vld [vmem:[%s12714_s26 + $0x2d20] sm:$0xff] }
 0x32a   : > { %11506 = vmatprep.subr.bf16.mxu1 %v11505_v5  ;;  %v347_v5 = vld [vmem:[#allocation3 + $0xb0] sm:$0xff] }
 0x32b   : > { %v2811_v22 = vcombine.high %v347_v5, %v347_v5  ;;  %v14433_v44 = vrot.slane %v347_v5, %v12766_v13  ;;  %v1804_v5 = vld [vmem:[%s12714_s26 + $0x2d38] sm:$0xff] }
 0x32c   : > { %11476 = vmatpush3.bf16.msra.mxu0 %v11475_v21  ;;  %v1747_v21 = vld [vmem:[%s12714_s26 + $0x2b70] sm:$0xff] }
 0x32d   : > { %11508 = vmatpush3.bf16.msra.mxu1 %v11507_v27  ;;  %11478 = vmatprep.subr.bf16.mxu0 %v11477_v28  ;;  %v11525_v28 = vpack.c.bf16 %v1764_v11, %v1763_v16  ;;  %v11527_v39 = vpack.c.bf16 %v1748_v29, %v1747_v21  ;;  %v14438_v45 = vrot.slane %v2811_v22, %v12766_v13  ;;  %v1771_v11 = vld [vmem:[%s12714_s26 + $0x2c30] sm:$0xff]  ;;  %v1774_v29 = vld [vmem:[%s12714_s26 + $0x2c48] sm:$0xff]  ;;  %v1792_v22 = vld [vmem:[%s12714_s26 + $0x2cd8] sm:$0xff] }
 0x32e   : > { %11510 = vmatprep.subr.bf16.mxu1 %v11509_v31  ;;  %v1813_v31 = vld [vmem:[%s12714_s26 + $0x2d80] sm:$0xff]  ;;  %v2826_v51 = vcombine.high %v14433_v44, %v14433_v44  ;;  %v11541_v16 = vpack.c.bf16 %v1788_v12, %v1787_v6 }
 0x32f   : > { %v11561_v40 = vpack.c.bf16 %v1814_v19, %v1813_v31  ;;  %v1806_v31 = vld [vmem:[%s12714_s26 + $0x2d48] sm:$0xff]  ;;  %v1791_v19 = vld [vmem:[%s12714_s26 + $0x2cd0] sm:$0xff] }
 0x330   : > { %11480 = vmatpush3.bf16.msra.mxu0 %v11479_v42  ;;  %v1765_v42 = vld [vmem:[%s12714_s26 + $0x2c00] sm:$0xff] }
 0x331   : > { %11512 = vmatpush3.bf16.msra.mxu1 %v11511_v25  ;;  %11482 = vmatprep.subr.bf16.mxu0 %v11481_v52  ;;  %v1766_v25 = vld [vmem:[%s12714_s26 + $0x2c08] sm:$0xff]  ;;  %v1797_v52 = vld [vmem:[%s12714_s26 + $0x2d00] sm:$0xff] }
 0x332   : > { %11514 = vmatprep.subr.bf16.mxu1 %v11513_v32  ;;  %v1784_v32 = vld [vmem:[%s12714_s26 + $0x2c98] sm:$0xff]  ;;  %v11531_v53 = vpack.c.bf16 %v1766_v25, %v1765_v42  ;;  %v11579_v42 = vpack.c.bf16 %v1806_v31, %v1805_v30  ;;  %v11549_v25 = vpack.c.bf16 %v1792_v22, %v1791_v19  ;;  %v1847_v30 = vld [vmem:[%s12714_s26 + $0x2e90] sm:$0xff] }
 0x333   : > { %v1879_v19 = vld [vmem:[%s12714_s26 + $0x2f90] sm:$0xff]  ;;  %v1880_v22 = vld [vmem:[%s12714_s26 + $0x2f98] sm:$0xff] }
 0x334   : > { %11484 = vmatpush3.bf16.msra.mxu0 %v11483_v49  ;;  %v11563_v49 = vpack.c.bf16 %v1798_v41, %v1797_v52  ;;  %v1775_v52 = vld [vmem:[%s12714_s26 + $0x2c50] sm:$0xff] }
 0x335   : > { %11516 = vmatpush3.bf16.msra.mxu1 %v11515_v50  ;;  %11486 = vmatprep.subr.bf16.mxu0 %v11485_v38  ;;  %v11533_v50 = vpack.c.bf16 %v1784_v32, %v1783_v43  ;;  %v1767_v38 = vld [vmem:[%s12714_s26 + $0x2c10] sm:$0xff]  ;;  %v1808_v32 = vld [vmem:[%s12714_s26 + $0x2d58] sm:$0xff] }
 0x336   : > { %v8865_v60 = vpop.f32.mrb[28].mxu0  ;;  %11518 = vmatprep.subr.bf16.mxu1 %v11517_v58  ;;  %v1800_v58 = vld [vmem:[%s12714_s26 + $0x2d18] sm:$0xff]  ;;  %v1807_v41 = vld [vmem:[%s12714_s26 + $0x2d50] sm:$0xff] }
 0x337   : > { %v8866_v10 = vpop.f32.mrb[29].mxu0  ;;  %v8900_v14 = vpop.f32.mrb[28].mxu1 }
 0x338   : > { %v8867_v17 = vadd.f32 %v8866_v10, %v8865_v60  ;;  %11488 = vmatpush3.bf16.msra.mxu0 %v11487_v62  ;;  %v8901_v4 = vpop.f32.mrb[29].mxu1  ;;  %v2827_v62 = vcombine.high %v14438_v45, %v14438_v45  ;;  %v11569_v60 = vpack.c.bf16 %v1818_v61, %v1817_v63  ;;  %v1795_v63 = vld [vmem:[%s12714_s26 + $0x2cf0] sm:$0xff]  ;;  %v1796_v61 = vld [vmem:[%s12714_s26 + $0x2cf8] sm:$0xff] }
 0x339   : > { %v8902_v7 = vadd.f32 %v8901_v4, %v8900_v14  ;;  %11520 = vmatpush3.bf16.msra.mxu1 %v11519_v54  ;;  %11490 = vmatprep.subr.bf16.mxu0 %v11489_v0  ;;  %v11535_v54 = vpack.c.bf16 %v1768_v33, %v1767_v38  ;;  %v11567_v0 = vpack.c.bf16 %v1800_v58, %v1799_v55  ;;  %v1803_v4 = vld [vmem:[%s12714_s26 + $0x2d30] sm:$0xff]  ;;  %v1777_v55 = vld [vmem:[%s12714_s26 + $0x2c60] sm:$0xff] }
 0x33a   : > { %v5136_v27 = vadd.f32 %v8867_v17, %v14345_v48  ;;  %11522 = vmatprep.subr.bf16.mxu1 %v11521_v57  ;;  %v11495_v48 = vpack.c.bf16 %v1716_v24, %v1715_v23  ;;  %v1802_v57 = vld [vmem:[%s12714_s26 + $0x2d28] sm:$0xff]  ;;  %v1772_v17 = vld [vmem:[%s12714_s26 + $0x2c38] sm:$0xff]  ;;  %v11575_v21 = vpack.c.bf16 %v1804_v5, %v1803_v4  ;;  %v11583_v38 = vpack.c.bf16 %v1808_v32, %v1807_v41  ;;  %v1809_v58 = vld [vmem:[%s12714_s26 + $0x2d60] sm:$0xff] }
 0x33b   : > { %v11571_v14 = vpack.c.bf16 %v1802_v57, %v1801_v3  ;;  %v1822_v23 = vld [vmem:[%s12714_s26 + $0x2dc8] sm:$0xff]  ;;  %v11543_v24 = vpack.c.bf16 %v1772_v17, %v1771_v11  ;;  %v11553_v33 = vpack.c.bf16 %v1794_v36, %v1793_v34  ;;  %v11557_v12 = vpack.c.bf16 %v1796_v61, %v1795_v63  ;;  %v1812_v11 = vld [vmem:[%s12714_s26 + $0x2d78] sm:$0xff]  ;;  %v1845_v17 = vld [vmem:[%s12714_s26 + $0x2e80] sm:$0xff] }
 0x33c   : > { %v14424_v35 = vadd.f32 %v8902_v7, %v5136_v27  ;;  %11492 = vmatpush3.bf16.msra.mxu0 %v11491_v18  ;;  %v1789_v7 = vld [vmem:[%s12714_s26 + $0x2cc0] sm:$0xff]  ;;  %v1846_v4 = vld [vmem:[%s12714_s26 + $0x2e88] sm:$0xff]  ;;  %v11629_v41 = vpack.c.bf16 %v1880_v22, %v1879_v19  ;;  %v1852_v63 = vld [vmem:[%s12714_s26 + $0x2eb8] sm:$0xff] }
 0x33d   : > { %11524 = vmatpush3.bf16.msra.mxu1 %v11523_v20  ;;  %11494 = vmatprep.subr.bf16.mxu0 %v11493_v26  ;;  %v1790_v20 = vld [vmem:[%s12714_s26 + $0x2cc8] sm:$0xff]  ;;  %v1821_v26 = vld [vmem:[%s12714_s26 + $0x2dc0] sm:$0xff]  ;;  %v1884_v61 = vld [vmem:[%s12714_s26 + $0x2fb8] sm:$0xff] }
 0x33e   : > { %11526 = vmatprep.subr.bf16.mxu1 %v11525_v28  ;;  %v11545_v27 = vpack.c.bf16 %v1790_v20, %v1789_v7  ;;  %v1773_v28 = vld [vmem:[%s12714_s26 + $0x2c40] sm:$0xff]  ;;  %v11577_v15 = vpack.c.bf16 %v1822_v23, %v1821_v26  ;;  %v1878_v5 = vld [vmem:[%s12714_s26 + $0x2f88] sm:$0xff]  ;;  %v11593_v23 = vpack.c.bf16 %v1846_v4, %v1845_v17 }
 0x33f   : > { %v1849_v32 = vld [vmem:[%s12714_s26 + $0x2ea0] sm:$0xff]  ;;  %v1850_v34 = vld [vmem:[%s12714_s26 + $0x2ea8] sm:$0xff] }
 0x340   : > { %11496 = vmatpush3.bf16.msra.mxu0 %v11495_v48  ;;  %v1823_v48 = vld [vmem:[%s12714_s26 + $0x2dd0] sm:$0xff]  ;;  %v1869_v17 = vld [vmem:[%s12714_s26 + $0x2f40] sm:$0xff]  ;;  %v1858_v22 = vld [vmem:[%s12714_s26 + $0x2ee8] sm:$0xff] }
 0x341   : > { %11528 = vmatpush3.bf16.msra.mxu1 %v11527_v39  ;;  %11530 = vmatprep.subr.bf16.mxu0 %v11529_v37  ;;  %v1824_v39 = vld [vmem:[%s12714_s26 + $0x2dd8] sm:$0xff]  ;;  %v11547_v37 = vpack.c.bf16 %v1774_v29, %v1773_v28  ;;  %v1862_v29 = vld [vmem:[%s12714_s26 + $0x2f08] sm:$0xff]  ;;  %v1857_v19 = vld [vmem:[%s12714_s26 + $0x2ee0] sm:$0xff] }
 0x342   : > { %11562 = vmatprep.subr.bf16.mxu1 %v11561_v40  ;;  %v1776_v40 = vld [vmem:[%s12714_s26 + $0x2c58] sm:$0xff]  ;;  %v11581_v43 = vpack.c.bf16 %v1824_v39, %v1823_v48 }
 0x343   : > { %6114 = vmatmul.mubr.f32.vlgmr.msra.gmra.mrb[42].mxu0 %v14354_v59  ;;  %v1770_v59 = vld [vmem:[%s12714_s26 + $0x2c28] sm:$0xff] }
 0x344   : > { %11532 = vmatpush3.bf16.msra.mxu0 %v11531_v53  ;;  %6184 = vmatmul.mubr.f32.vlgmr.msra.gmra.mrb[42].mxu1 %v14359_v8  ;;  %v1819_v8 = vld [vmem:[%s12714_s26 + $0x2db0] sm:$0xff]  ;;  %v11539_v10 = vpack.c.bf16 %v1770_v59, %v1769_v2  ;;  %v1825_v53 = vld [vmem:[%s12714_s26 + $0x2de0] sm:$0xff] }
 0x345   : > { %11564 = vmatpush3.bf16.msra.mxu1 %v11563_v49  ;;  %11534 = vmatprep.subr.bf16.mxu0 %v11533_v50  ;;  %v11573_v18 = vpack.c.bf16 %v1820_v9, %v1819_v8  ;;  %v1826_v49 = vld [vmem:[%s12714_s26 + $0x2de8] sm:$0xff]  ;;  %v11551_v50 = vpack.c.bf16 %v1776_v40, %v1775_v52  ;;  %v1779_v8 = vld [vmem:[%s12714_s26 + $0x2c70] sm:$0xff]  ;;  %v1780_v9 = vld [vmem:[%s12714_s26 + $0x2c78] sm:$0xff] }
 0x346   : > { %11566 = vmatprep.subr.bf16.mxu1 %v11565_v56  ;;  %6253 = vmatprep.mubr.f32.mxu0 %v2826_v51  ;;  %v1778_v56 = vld [vmem:[%s12714_s26 + $0x2c68] sm:$0xff]  ;;  %v11585_v47 = vpack.c.bf16 %v1826_v49, %v1825_v53  ;;  %v1832_v52 = vld [vmem:[%s12714_s26 + $0x2e18] sm:$0xff]  ;;  %v1863_v40 = vld [vmem:[%s12714_s26 + $0x2f10] sm:$0xff] }
 0x347   : > { %6323 = vmatprep.mubr.f32.mxu1 %v2827_v62  ;;  %v1810_v51 = vld [vmem:[%s12714_s26 + $0x2d68] sm:$0xff]  ;;  %v11555_v3 = vpack.c.bf16 %v1778_v56, %v1777_v55  ;;  %v1881_v53 = vld [vmem:[%s12714_s26 + $0x2fa0] sm:$0xff]  ;;  %v11601_v55 = vpack.c.bf16 %v1850_v34, %v1849_v32 }
 0x348   : > { %11536 = vmatpush3.bf16.msra.mxu0 %v11535_v54  ;;  %v11587_v6 = vpack.c.bf16 %v1810_v51, %v1809_v58  ;;  %v1882_v49 = vld [vmem:[%s12714_s26 + $0x2fa8] sm:$0xff]  ;;  %v1833_v56 = vld [vmem:[%s12714_s26 + $0x2e20] sm:$0xff]  ;;  %v1851_v51 = vld [vmem:[%s12714_s26 + $0x2eb0] sm:$0xff] }
 0x349   : > { %11568 = vmatpush3.bf16.msra.mxu1 %v11567_v0  ;;  %11538 = vmatprep.subr.bf16.mxu0 %v11537_v1  ;;  %v1827_v0 = vld [vmem:[%s12714_s26 + $0x2df0] sm:$0xff]  ;;  %v1828_v1 = vld [vmem:[%s12714_s26 + $0x2df8] sm:$0xff]  ;;  %v1865_v58 = vld [vmem:[%s12714_s26 + $0x2f20] sm:$0xff] }
 0x34a   : > { %11570 = vmatprep.subr.bf16.mxu1 %v11569_v60  ;;  %v348_v60 = vld [vmem:[#allocation3 + $0xb8] sm:$0xff] }
 0x34b   : > { %v2828_v7 = vcombine.high %v348_v60, %v348_v60  ;;  %v14512_v31 = vrot.slane %v348_v60, %v12766_v13  ;;  %v1868_v60 = vld [vmem:[%s12714_s26 + $0x2f38] sm:$0xff] }
 0x34c   : > { %11540 = vmatpush3.bf16.msra.mxu0 %v11539_v10  ;;  %v1811_v10 = vld [vmem:[%s12714_s26 + $0x2d70] sm:$0xff] }
 0x34d   : > { %11572 = vmatpush3.bf16.msra.mxu1 %v11571_v14  ;;  %11542 = vmatprep.subr.bf16.mxu0 %v11541_v16  ;;  %v11589_v16 = vpack.c.bf16 %v1828_v1, %v1827_v0  ;;  %v11591_v26 = vpack.c.bf16 %v1812_v11, %v1811_v10  ;;  %v14517_v48 = vrot.slane %v2828_v7, %v12766_v13  ;;  %v1835_v1 = vld [vmem:[%s12714_s26 + $0x2e30] sm:$0xff]  ;;  %v1838_v11 = vld [vmem:[%s12714_s26 + $0x2e48] sm:$0xff]  ;;  %v1856_v7 = vld [vmem:[%s12714_s26 + $0x2ed8] sm:$0xff] }
 0x34e   : > { %11574 = vmatprep.subr.bf16.mxu1 %v11573_v18  ;;  %v1877_v18 = vld [vmem:[%s12714_s26 + $0x2f80] sm:$0xff]  ;;  %v2843_v36 = vcombine.high %v14512_v31, %v14512_v31  ;;  %v11605_v0 = vpack.c.bf16 %v1852_v63, %v1851_v51 }
 0x34f   : > { %v11625_v28 = vpack.c.bf16 %v1878_v5, %v1877_v18  ;;  %v1870_v18 = vld [vmem:[%s12714_s26 + $0x2f48] sm:$0xff]  ;;  %v1855_v5 = vld [vmem:[%s12714_s26 + $0x2ed0] sm:$0xff] }
 0x350   : > { %11544 = vmatpush3.bf16.msra.mxu0 %v11543_v24  ;;  %v1829_v24 = vld [vmem:[%s12714_s26 + $0x2e00] sm:$0xff] }
 0x351   : > { %11576 = vmatpush3.bf16.msra.mxu1 %v11575_v21  ;;  %11546 = vmatprep.subr.bf16.mxu0 %v11545_v27  ;;  %v1830_v21 = vld [vmem:[%s12714_s26 + $0x2e08] sm:$0xff]  ;;  %v1861_v27 = vld [vmem:[%s12714_s26 + $0x2f00] sm:$0xff] }
 0x352   : > { %11578 = vmatprep.subr.bf16.mxu1 %v11577_v15  ;;  %v1848_v15 = vld [vmem:[%s12714_s26 + $0x2e98] sm:$0xff]  ;;  %v11595_v39 = vpack.c.bf16 %v1830_v21, %v1829_v24  ;;  %v11643_v24 = vpack.c.bf16 %v1870_v18, %v1869_v17  ;;  %v11613_v21 = vpack.c.bf16 %v1856_v7, %v1855_v5  ;;  %v1911_v17 = vld [vmem:[%s12714_s26 + $0x3090] sm:$0xff] }
 0x353   : > { %v1943_v5 = vld [vmem:[%s12714_s26 + $0x3190] sm:$0xff]  ;;  %v1944_v7 = vld [vmem:[%s12714_s26 + $0x3198] sm:$0xff] }
 0x354   : > { %11548 = vmatpush3.bf16.msra.mxu0 %v11547_v37  ;;  %v11627_v37 = vpack.c.bf16 %v1862_v29, %v1861_v27  ;;  %v1839_v27 = vld [vmem:[%s12714_s26 + $0x2e50] sm:$0xff] }
 0x355   : > { %11580 = vmatpush3.bf16.msra.mxu1 %v11579_v42  ;;  %11550 = vmatprep.subr.bf16.mxu0 %v11549_v25  ;;  %v11597_v42 = vpack.c.bf16 %v1848_v15, %v1847_v30  ;;  %v1831_v25 = vld [vmem:[%s12714_s26 + $0x2e10] sm:$0xff]  ;;  %v1872_v15 = vld [vmem:[%s12714_s26 + $0x2f58] sm:$0xff] }
 0x356   : > { %v8935_v46 = vpop.f32.mrb[30].mxu0  ;;  %11582 = vmatprep.subr.bf16.mxu1 %v11581_v43  ;;  %v1864_v43 = vld [vmem:[%s12714_s26 + $0x2f18] sm:$0xff]  ;;  %v1871_v29 = vld [vmem:[%s12714_s26 + $0x2f50] sm:$0xff] }
 0x357   : > { %v8936_v62 = vpop.f32.mrb[31].mxu0  ;;  %v8970_v54 = vpop.f32.mrb[30].mxu1 }
 0x358   : > { %v8937_v2 = vadd.f32 %v8936_v62, %v8935_v46  ;;  %11552 = vmatpush3.bf16.msra.mxu0 %v11551_v50  ;;  %v8971_v59 = vpop.f32.mrb[31].mxu1  ;;  %v2844_v50 = vcombine.high %v14517_v48, %v14517_v48  ;;  %v11633_v46 = vpack.c.bf16 %v1882_v49, %v1881_v53  ;;  %v1859_v53 = vld [vmem:[%s12714_s26 + $0x2ef0] sm:$0xff]  ;;  %v1860_v49 = vld [vmem:[%s12714_s26 + $0x2ef8] sm:$0xff] }
 0x359   : > { %v8972_v57 = vadd.f32 %v8971_v59, %v8970_v54  ;;  %11584 = vmatpush3.bf16.msra.mxu1 %v11583_v38  ;;  %11554 = vmatprep.subr.bf16.mxu0 %v11553_v33  ;;  %v11599_v38 = vpack.c.bf16 %v1832_v52, %v1831_v25  ;;  %v11631_v33 = vpack.c.bf16 %v1864_v43, %v1863_v40  ;;  %v1867_v59 = vld [vmem:[%s12714_s26 + $0x2f30] sm:$0xff]  ;;  %v1841_v40 = vld [vmem:[%s12714_s26 + $0x2e60] sm:$0xff] }
 0x35a   : > { %v5276_v14 = vadd.f32 %v8937_v2, %v14424_v35  ;;  %11586 = vmatprep.subr.bf16.mxu1 %v11585_v47  ;;  %v11559_v35 = vpack.c.bf16 %v1780_v9, %v1779_v8  ;;  %v1866_v47 = vld [vmem:[%s12714_s26 + $0x2f28] sm:$0xff]  ;;  %v1836_v2 = vld [vmem:[%s12714_s26 + $0x2e38] sm:$0xff]  ;;  %v11639_v10 = vpack.c.bf16 %v1868_v60, %v1867_v59  ;;  %v11647_v25 = vpack.c.bf16 %v1872_v15, %v1871_v29  ;;  %v1873_v43 = vld [vmem:[%s12714_s26 + $0x2f60] sm:$0xff] }
 0x35b   : > { %v11635_v54 = vpack.c.bf16 %v1866_v47, %v1865_v58  ;;  %v1886_v8 = vld [vmem:[%s12714_s26 + $0x2fc8] sm:$0xff]  ;;  %v11607_v9 = vpack.c.bf16 %v1836_v2, %v1835_v1  ;;  %v11617_v52 = vpack.c.bf16 %v1858_v22, %v1857_v19  ;;  %v11621_v63 = vpack.c.bf16 %v1860_v49, %v1859_v53  ;;  %v1876_v1 = vld [vmem:[%s12714_s26 + $0x2f78] sm:$0xff]  ;;  %v1909_v2 = vld [vmem:[%s12714_s26 + $0x3080] sm:$0xff] }
 0x35c   : > { %v14503_v20 = vadd.f32 %v8972_v57, %v5276_v14  ;;  %11556 = vmatpush3.bf16.msra.mxu0 %v11555_v3  ;;  %v1853_v57 = vld [vmem:[%s12714_s26 + $0x2ec0] sm:$0xff]  ;;  %v1910_v59 = vld [vmem:[%s12714_s26 + $0x3088] sm:$0xff]  ;;  %v11693_v29 = vpack.c.bf16 %v1944_v7, %v1943_v5  ;;  %v1916_v53 = vld [vmem:[%s12714_s26 + $0x30b8] sm:$0xff] }
 0x35d   : > { %11588 = vmatpush3.bf16.msra.mxu1 %v11587_v6  ;;  %11558 = vmatprep.subr.bf16.mxu0 %v11557_v12  ;;  %v1854_v6 = vld [vmem:[%s12714_s26 + $0x2ec8] sm:$0xff]  ;;  %v1885_v12 = vld [vmem:[%s12714_s26 + $0x2fc0] sm:$0xff]  ;;  %v1948_v49 = vld [vmem:[%s12714_s26 + $0x31b8] sm:$0xff] }
 0x35e   : > { %11590 = vmatprep.subr.bf16.mxu1 %v11589_v16  ;;  %v11609_v14 = vpack.c.bf16 %v1854_v6, %v1853_v57  ;;  %v1837_v16 = vld [vmem:[%s12714_s26 + $0x2e40] sm:$0xff]  ;;  %v11641_v4 = vpack.c.bf16 %v1886_v8, %v1885_v12  ;;  %v1942_v60 = vld [vmem:[%s12714_s26 + $0x3188] sm:$0xff]  ;;  %v11657_v8 = vpack.c.bf16 %v1910_v59, %v1909_v2 }
 0x35f   : > { %v1913_v15 = vld [vmem:[%s12714_s26 + $0x30a0] sm:$0xff]  ;;  %v1914_v19 = vld [vmem:[%s12714_s26 + $0x30a8] sm:$0xff] }
 0x360   : > { %11560 = vmatpush3.bf16.msra.mxu0 %v11559_v35  ;;  %v1887_v35 = vld [vmem:[%s12714_s26 + $0x2fd0] sm:$0xff]  ;;  %v1933_v2 = vld [vmem:[%s12714_s26 + $0x3140] sm:$0xff]  ;;  %v1922_v7 = vld [vmem:[%s12714_s26 + $0x30e8] sm:$0xff] }
 0x361   : > { %11592 = vmatpush3.bf16.msra.mxu1 %v11591_v26  ;;  %11594 = vmatprep.subr.bf16.mxu0 %v11593_v23  ;;  %v1888_v26 = vld [vmem:[%s12714_s26 + $0x2fd8] sm:$0xff]  ;;  %v11611_v23 = vpack.c.bf16 %v1838_v11, %v1837_v16  ;;  %v1926_v11 = vld [vmem:[%s12714_s26 + $0x3108] sm:$0xff]  ;;  %v1921_v5 = vld [vmem:[%s12714_s26 + $0x30e0] sm:$0xff] }
 0x362   : > { %11626 = vmatprep.subr.bf16.mxu1 %v11625_v28  ;;  %v1840_v28 = vld [vmem:[%s12714_s26 + $0x2e58] sm:$0xff]  ;;  %v11645_v30 = vpack.c.bf16 %v1888_v26, %v1887_v35 }
 0x363   : > { %6254 = vmatmul.mubr.f32.vlgmr.msra.gmra.mrb[44].mxu0 %v14433_v44  ;;  %v1834_v44 = vld [vmem:[%s12714_s26 + $0x2e28] sm:$0xff] }
 0x364   : > { %11596 = vmatpush3.bf16.msra.mxu0 %v11595_v39  ;;  %6324 = vmatmul.mubr.f32.vlgmr.msra.gmra.mrb[44].mxu1 %v14438_v45  ;;  %v1883_v45 = vld [vmem:[%s12714_s26 + $0x2fb0] sm:$0xff]  ;;  %v11603_v62 = vpack.c.bf16 %v1834_v44, %v1833_v56  ;;  %v1889_v39 = vld [vmem:[%s12714_s26 + $0x2fe0] sm:$0xff] }
 0x365   : > { %11628 = vmatpush3.bf16.msra.mxu1 %v11627_v37  ;;  %11598 = vmatprep.subr.bf16.mxu0 %v11597_v42  ;;  %v11637_v3 = vpack.c.bf16 %v1884_v61, %v1883_v45  ;;  %v1890_v37 = vld [vmem:[%s12714_s26 + $0x2fe8] sm:$0xff]  ;;  %v11615_v42 = vpack.c.bf16 %v1840_v28, %v1839_v27  ;;  %v1843_v45 = vld [vmem:[%s12714_s26 + $0x2e70] sm:$0xff]  ;;  %v1844_v61 = vld [vmem:[%s12714_s26 + $0x2e78] sm:$0xff] }
 0x366   : > { %11630 = vmatprep.subr.bf16.mxu1 %v11629_v41  ;;  %6393 = vmatprep.mubr.f32.mxu0 %v2843_v36  ;;  %v1842_v41 = vld [vmem:[%s12714_s26 + $0x2e68] sm:$0xff]  ;;  %v11649_v34 = vpack.c.bf16 %v1890_v37, %v1889_v39  ;;  %v1896_v27 = vld [vmem:[%s12714_s26 + $0x3018] sm:$0xff]  ;;  %v1927_v28 = vld [vmem:[%s12714_s26 + $0x3110] sm:$0xff] }
 0x367   : > { %6463 = vmatprep.mubr.f32.mxu1 %v2844_v50  ;;  %v1874_v36 = vld [vmem:[%s12714_s26 + $0x2f68] sm:$0xff]  ;;  %v11619_v58 = vpack.c.bf16 %v1842_v41, %v1841_v40  ;;  %v1945_v39 = vld [vmem:[%s12714_s26 + $0x31a0] sm:$0xff]  ;;  %v11665_v40 = vpack.c.bf16 %v1914_v19, %v1913_v15 }
 0x368   : > { %11600 = vmatpush3.bf16.msra.mxu0 %v11599_v38  ;;  %v11651_v51 = vpack.c.bf16 %v1874_v36, %v1873_v43  ;;  %v1946_v37 = vld [vmem:[%s12714_s26 + $0x31a8] sm:$0xff]  ;;  %v1897_v41 = vld [vmem:[%s12714_s26 + $0x3020] sm:$0xff]  ;;  %v1915_v36 = vld [vmem:[%s12714_s26 + $0x30b0] sm:$0xff] }
 0x369   : > { %11632 = vmatpush3.bf16.msra.mxu1 %v11631_v33  ;;  %11602 = vmatprep.subr.bf16.mxu0 %v11601_v55  ;;  %v1891_v33 = vld [vmem:[%s12714_s26 + $0x2ff0] sm:$0xff]  ;;  %v1892_v55 = vld [vmem:[%s12714_s26 + $0x2ff8] sm:$0xff]  ;;  %v1929_v43 = vld [vmem:[%s12714_s26 + $0x3120] sm:$0xff] }
 0x36a   : > { %11634 = vmatprep.subr.bf16.mxu1 %v11633_v46  ;;  %v349_v46 = vld [vmem:[#allocation3 + $0xc0] sm:$0xff] }
 0x36b   : > { %v2845_v57 = vcombine.high %v349_v46, %v349_v46  ;;  %v14591_v18 = vrot.slane %v349_v46, %v12766_v13  ;;  %v1932_v46 = vld [vmem:[%s12714_s26 + $0x3138] sm:$0xff] }
 0x36c   : > { %11604 = vmatpush3.bf16.msra.mxu0 %v11603_v62  ;;  %v1875_v62 = vld [vmem:[%s12714_s26 + $0x2f70] sm:$0xff] }
 0x36d   : > { %11636 = vmatpush3.bf16.msra.mxu1 %v11635_v54  ;;  %11606 = vmatprep.subr.bf16.mxu0 %v11605_v0  ;;  %v11653_v0 = vpack.c.bf16 %v1892_v55, %v1891_v33  ;;  %v11655_v12 = vpack.c.bf16 %v1876_v1, %v1875_v62  ;;  %v14596_v35 = vrot.slane %v2845_v57, %v12766_v13  ;;  %v1899_v55 = vld [vmem:[%s12714_s26 + $0x3030] sm:$0xff]  ;;  %v1902_v1 = vld [vmem:[%s12714_s26 + $0x3048] sm:$0xff]  ;;  %v1920_v57 = vld [vmem:[%s12714_s26 + $0x30d8] sm:$0xff] }
 0x36e   : > { %11638 = vmatprep.subr.bf16.mxu1 %v11637_v3  ;;  %v1941_v3 = vld [vmem:[%s12714_s26 + $0x3180] sm:$0xff]  ;;  %v2860_v22 = vcombine.high %v14591_v18, %v14591_v18  ;;  %v11669_v33 = vpack.c.bf16 %v1916_v53, %v1915_v36 }
 0x36f   : > { %v11689_v16 = vpack.c.bf16 %v1942_v60, %v1941_v3  ;;  %v1934_v3 = vld [vmem:[%s12714_s26 + $0x3148] sm:$0xff]  ;;  %v1919_v60 = vld [vmem:[%s12714_s26 + $0x30d0] sm:$0xff] }
 0x370   : > { %11608 = vmatpush3.bf16.msra.mxu0 %v11607_v9  ;;  %v1893_v9 = vld [vmem:[%s12714_s26 + $0x3000] sm:$0xff] }
 0x371   : > { %11640 = vmatpush3.bf16.msra.mxu1 %v11639_v10  ;;  %11610 = vmatprep.subr.bf16.mxu0 %v11609_v14  ;;  %v1894_v10 = vld [vmem:[%s12714_s26 + $0x3008] sm:$0xff]  ;;  %v1925_v14 = vld [vmem:[%s12714_s26 + $0x3100] sm:$0xff] }
 0x372   : > { %11642 = vmatprep.subr.bf16.mxu1 %v11641_v4  ;;  %v1912_v4 = vld [vmem:[%s12714_s26 + $0x3098] sm:$0xff]  ;;  %v11659_v26 = vpack.c.bf16 %v1894_v10, %v1893_v9  ;;  %v11707_v9 = vpack.c.bf16 %v1934_v3, %v1933_v2  ;;  %v11677_v10 = vpack.c.bf16 %v1920_v57, %v1919_v60  ;;  %v1975_v2 = vld [vmem:[%s12714_s26 + $0x3290] sm:$0xff] }
 0x373   : > { %v2007_v60 = vld [vmem:[%s12714_s26 + $0x3390] sm:$0xff]  ;;  %v2008_v57 = vld [vmem:[%s12714_s26 + $0x3398] sm:$0xff] }
 0x374   : > { %11612 = vmatpush3.bf16.msra.mxu0 %v11611_v23  ;;  %v11691_v23 = vpack.c.bf16 %v1926_v11, %v1925_v14  ;;  %v1903_v14 = vld [vmem:[%s12714_s26 + $0x3050] sm:$0xff] }
 0x375   : > { %11644 = vmatpush3.bf16.msra.mxu1 %v11643_v24  ;;  %11614 = vmatprep.subr.bf16.mxu0 %v11613_v21  ;;  %v11661_v24 = vpack.c.bf16 %v1912_v4, %v1911_v17  ;;  %v1895_v21 = vld [vmem:[%s12714_s26 + $0x3010] sm:$0xff]  ;;  %v1936_v4 = vld [vmem:[%s12714_s26 + $0x3158] sm:$0xff] }
 0x376   : > { %v9005_v32 = vpop.f32.mrb[32].mxu0  ;;  %11646 = vmatprep.subr.bf16.mxu1 %v11645_v30  ;;  %v1928_v30 = vld [vmem:[%s12714_s26 + $0x3118] sm:$0xff]  ;;  %v1935_v11 = vld [vmem:[%s12714_s26 + $0x3150] sm:$0xff] }
 0x377   : > { %v9006_v50 = vpop.f32.mrb[33].mxu0  ;;  %v9040_v38 = vpop.f32.mrb[32].mxu1 }
 0x378   : > { %v9007_v56 = vadd.f32 %v9006_v50, %v9005_v32  ;;  %11616 = vmatpush3.bf16.msra.mxu0 %v11615_v42  ;;  %v9041_v44 = vpop.f32.mrb[33].mxu1  ;;  %v2861_v42 = vcombine.high %v14596_v35, %v14596_v35  ;;  %v11697_v32 = vpack.c.bf16 %v1946_v37, %v1945_v39  ;;  %v1923_v39 = vld [vmem:[%s12714_s26 + $0x30f0] sm:$0xff]  ;;  %v1924_v37 = vld [vmem:[%s12714_s26 + $0x30f8] sm:$0xff] }
 0x379   : > { %v9042_v47 = vadd.f32 %v9041_v44, %v9040_v38  ;;  %11648 = vmatpush3.bf16.msra.mxu1 %v11647_v25  ;;  %11618 = vmatprep.subr.bf16.mxu0 %v11617_v52  ;;  %v11663_v25 = vpack.c.bf16 %v1896_v27, %v1895_v21  ;;  %v11695_v52 = vpack.c.bf16 %v1928_v30, %v1927_v28  ;;  %v1931_v44 = vld [vmem:[%s12714_s26 + $0x3130] sm:$0xff]  ;;  %v1905_v28 = vld [vmem:[%s12714_s26 + $0x3060] sm:$0xff] }
 0x37a   : > { %v5416_v54 = vadd.f32 %v9007_v56, %v14503_v20  ;;  %11650 = vmatprep.subr.bf16.mxu1 %v11649_v34  ;;  %v11623_v20 = vpack.c.bf16 %v1844_v61, %v1843_v45  ;;  %v1930_v34 = vld [vmem:[%s12714_s26 + $0x3128] sm:$0xff]  ;;  %v1900_v56 = vld [vmem:[%s12714_s26 + $0x3038] sm:$0xff]  ;;  %v11703_v62 = vpack.c.bf16 %v1932_v46, %v1931_v44  ;;  %v11711_v21 = vpack.c.bf16 %v1936_v4, %v1935_v11  ;;  %v1937_v30 = vld [vmem:[%s12714_s26 + $0x3160] sm:$0xff] }
 0x37b   : > { %v11699_v38 = vpack.c.bf16 %v1930_v34, %v1929_v43  ;;  %v1950_v45 = vld [vmem:[%s12714_s26 + $0x31c8] sm:$0xff]  ;;  %v11671_v61 = vpack.c.bf16 %v1900_v56, %v1899_v55  ;;  %v11681_v27 = vpack.c.bf16 %v1922_v7, %v1921_v5  ;;  %v11685_v53 = vpack.c.bf16 %v1924_v37, %v1923_v39  ;;  %v1940_v55 = vld [vmem:[%s12714_s26 + $0x3178] sm:$0xff]  ;;  %v1973_v56 = vld [vmem:[%s12714_s26 + $0x3280] sm:$0xff] }
 0x37c   : > { %v14582_v6 = vadd.f32 %v9042_v47, %v5416_v54  ;;  %11620 = vmatpush3.bf16.msra.mxu0 %v11619_v58  ;;  %v1917_v47 = vld [vmem:[%s12714_s26 + $0x30c0] sm:$0xff]  ;;  %v1974_v44 = vld [vmem:[%s12714_s26 + $0x3288] sm:$0xff]  ;;  %v11757_v11 = vpack.c.bf16 %v2008_v57, %v2007_v60  ;;  %v1980_v39 = vld [vmem:[%s12714_s26 + $0x32b8] sm:$0xff] }
 0x37d   : > { %11652 = vmatpush3.bf16.msra.mxu1 %v11651_v51  ;;  %11622 = vmatprep.subr.bf16.mxu0 %v11621_v63  ;;  %v1918_v51 = vld [vmem:[%s12714_s26 + $0x30c8] sm:$0xff]  ;;  %v1949_v63 = vld [vmem:[%s12714_s26 + $0x31c0] sm:$0xff]  ;;  %v2012_v37 = vld [vmem:[%s12714_s26 + $0x33b8] sm:$0xff] }
 0x37e   : > { %11654 = vmatprep.subr.bf16.mxu1 %v11653_v0  ;;  %v11673_v54 = vpack.c.bf16 %v1918_v51, %v1917_v47  ;;  %v1901_v0 = vld [vmem:[%s12714_s26 + $0x3040] sm:$0xff]  ;;  %v11705_v59 = vpack.c.bf16 %v1950_v45, %v1949_v63  ;;  %v2006_v46 = vld [vmem:[%s12714_s26 + $0x3388] sm:$0xff]  ;;  %v11721_v45 = vpack.c.bf16 %v1974_v44, %v1973_v56 }
 0x37f   : > { %v1977_v4 = vld [vmem:[%s12714_s26 + $0x32a0] sm:$0xff]  ;;  %v1978_v5 = vld [vmem:[%s12714_s26 + $0x32a8] sm:$0xff] }
 0x380   : > { %11624 = vmatpush3.bf16.msra.mxu0 %v11623_v20  ;;  %v1951_v20 = vld [vmem:[%s12714_s26 + $0x31d0] sm:$0xff]  ;;  %v1997_v56 = vld [vmem:[%s12714_s26 + $0x3340] sm:$0xff]  ;;  %v1986_v57 = vld [vmem:[%s12714_s26 + $0x32e8] sm:$0xff] }
 0x381   : > { %11656 = vmatpush3.bf16.msra.mxu1 %v11655_v12  ;;  %11658 = vmatprep.subr.bf16.mxu0 %v11657_v8  ;;  %v1952_v12 = vld [vmem:[%s12714_s26 + $0x31d8] sm:$0xff]  ;;  %v11675_v8 = vpack.c.bf16 %v1902_v1, %v1901_v0  ;;  %v1990_v1 = vld [vmem:[%s12714_s26 + $0x3308] sm:$0xff]  ;;  %v1985_v60 = vld [vmem:[%s12714_s26 + $0x32e0] sm:$0xff] }
 0x382   : > { %11690 = vmatprep.subr.bf16.mxu1 %v11689_v16  ;;  %v1904_v16 = vld [vmem:[%s12714_s26 + $0x3058] sm:$0xff]  ;;  %v11709_v17 = vpack.c.bf16 %v1952_v12, %v1951_v20 }
 0x383   : > { %6394 = vmatmul.mubr.f32.vlgmr.msra.gmra.mrb[46].mxu0 %v14512_v31  ;;  %v1898_v31 = vld [vmem:[%s12714_s26 + $0x3028] sm:$0xff] }
 0x384   : > { %11660 = vmatpush3.bf16.msra.mxu0 %v11659_v26  ;;  %6464 = vmatmul.mubr.f32.vlgmr.msra.gmra.mrb[46].mxu1 %v14517_v48  ;;  %v1947_v48 = vld [vmem:[%s12714_s26 + $0x31b0] sm:$0xff]  ;;  %v11667_v50 = vpack.c.bf16 %v1898_v31, %v1897_v41  ;;  %v1953_v26 = vld [vmem:[%s12714_s26 + $0x31e0] sm:$0xff] }
 0x385   : > { %11692 = vmatpush3.bf16.msra.mxu1 %v11691_v23  ;;  %11662 = vmatprep.subr.bf16.mxu0 %v11661_v24  ;;  %v11701_v58 = vpack.c.bf16 %v1948_v49, %v1947_v48  ;;  %v1954_v23 = vld [vmem:[%s12714_s26 + $0x31e8] sm:$0xff]  ;;  %v11679_v24 = vpack.c.bf16 %v1904_v16, %v1903_v14  ;;  %v1907_v48 = vld [vmem:[%s12714_s26 + $0x3070] sm:$0xff]  ;;  %v1908_v49 = vld [vmem:[%s12714_s26 + $0x3078] sm:$0xff] }
 0x386   : > { %11694 = vmatprep.subr.bf16.mxu1 %v11693_v29  ;;  %6533 = vmatprep.mubr.f32.mxu0 %v2860_v22  ;;  %v1906_v29 = vld [vmem:[%s12714_s26 + $0x3068] sm:$0xff]  ;;  %v11713_v19 = vpack.c.bf16 %v1954_v23, %v1953_v26  ;;  %v1960_v14 = vld [vmem:[%s12714_s26 + $0x3218] sm:$0xff]  ;;  %v1991_v16 = vld [vmem:[%s12714_s26 + $0x3310] sm:$0xff] }
 0x387   : > { %6603 = vmatprep.mubr.f32.mxu1 %v2861_v42  ;;  %v1938_v22 = vld [vmem:[%s12714_s26 + $0x3168] sm:$0xff]  ;;  %v11683_v43 = vpack.c.bf16 %v1906_v29, %v1905_v28  ;;  %v2009_v26 = vld [vmem:[%s12714_s26 + $0x33a0] sm:$0xff]  ;;  %v11729_v28 = vpack.c.bf16 %v1978_v5, %v1977_v4 }
 0x388   : > { %11664 = vmatpush3.bf16.msra.mxu0 %v11663_v25  ;;  %v11715_v36 = vpack.c.bf16 %v1938_v22, %v1937_v30  ;;  %v2010_v23 = vld [vmem:[%s12714_s26 + $0x33a8] sm:$0xff]  ;;  %v1961_v29 = vld [vmem:[%s12714_s26 + $0x3220] sm:$0xff]  ;;  %v1979_v22 = vld [vmem:[%s12714_s26 + $0x32b0] sm:$0xff] }
 0x389   : > { %11696 = vmatpush3.bf16.msra.mxu1 %v11695_v52  ;;  %11666 = vmatprep.subr.bf16.mxu0 %v11665_v40  ;;  %v1955_v52 = vld [vmem:[%s12714_s26 + $0x31f0] sm:$0xff]  ;;  %v1956_v40 = vld [vmem:[%s12714_s26 + $0x31f8] sm:$0xff]  ;;  %v1993_v30 = vld [vmem:[%s12714_s26 + $0x3320] sm:$0xff] }
 0x38a   : > { %11698 = vmatprep.subr.bf16.mxu1 %v11697_v32  ;;  %v350_v32 = vld [vmem:[#allocation3 + $0xc8] sm:$0xff] }
 0x38b   : > { %v2862_v47 = vcombine.high %v350_v32, %v350_v32  ;;  %v14670_v3 = vrot.slane %v350_v32, %v12766_v13  ;;  %v1996_v32 = vld [vmem:[%s12714_s26 + $0x3338] sm:$0xff] }
 0x38c   : > { %11668 = vmatpush3.bf16.msra.mxu0 %v11667_v50  ;;  %v1939_v50 = vld [vmem:[%s12714_s26 + $0x3170] sm:$0xff] }
 0x38d   : > { %11700 = vmatpush3.bf16.msra.mxu1 %v11699_v38  ;;  %11670 = vmatprep.subr.bf16.mxu0 %v11669_v33  ;;  %v11717_v33 = vpack.c.bf16 %v1956_v40, %v1955_v52  ;;  %v11719_v63 = vpack.c.bf16 %v1940_v55, %v1939_v50  ;;  %v14675_v20 = vrot.slane %v2862_v47, %v12766_v13  ;;  %v1963_v40 = vld [vmem:[%s12714_s26 + $0x3230] sm:$0xff]  ;;  %v1966_v55 = vld [vmem:[%s12714_s26 + $0x3248] sm:$0xff]  ;;  %v1984_v47 = vld [vmem:[%s12714_s26 + $0x32d8] sm:$0xff] }
 0x38e   : > { %11702 = vmatprep.subr.bf16.mxu1 %v11701_v58  ;;  %v2005_v58 = vld [vmem:[%s12714_s26 + $0x3380] sm:$0xff]  ;;  %v2877_v7 = vcombine.high %v14670_v3, %v14670_v3  ;;  %v11733_v52 = vpack.c.bf16 %v1980_v39, %v1979_v22 }
 0x38f   : > { %v11753_v0 = vpack.c.bf16 %v2006_v46, %v2005_v58  ;;  %v1998_v58 = vld [vmem:[%s12714_s26 + $0x3348] sm:$0xff]  ;;  %v1983_v46 = vld [vmem:[%s12714_s26 + $0x32d0] sm:$0xff] }
 0x390   : > { %11672 = vmatpush3.bf16.msra.mxu0 %v11671_v61  ;;  %v1957_v61 = vld [vmem:[%s12714_s26 + $0x3200] sm:$0xff] }
 0x391   : > { %11704 = vmatpush3.bf16.msra.mxu1 %v11703_v62  ;;  %11674 = vmatprep.subr.bf16.mxu0 %v11673_v54  ;;  %v1958_v62 = vld [vmem:[%s12714_s26 + $0x3208] sm:$0xff]  ;;  %v1989_v54 = vld [vmem:[%s12714_s26 + $0x3300] sm:$0xff] }
 0x392   : > { %11706 = vmatprep.subr.bf16.mxu1 %v11705_v59  ;;  %v1976_v59 = vld [vmem:[%s12714_s26 + $0x3298] sm:$0xff]  ;;  %v11723_v12 = vpack.c.bf16 %v1958_v62, %v1957_v61  ;;  %v11771_v61 = vpack.c.bf16 %v1998_v58, %v1997_v56  ;;  %v11741_v62 = vpack.c.bf16 %v1984_v47, %v1983_v46  ;;  %v2039_v56 = vld [vmem:[%s12714_s26 + $0x3490] sm:$0xff] }
 0x393   : > { %v2071_v46 = vld [vmem:[%s12714_s26 + $0x3590] sm:$0xff]  ;;  %v2072_v47 = vld [vmem:[%s12714_s26 + $0x3598] sm:$0xff] }
 0x394   : > { %11676 = vmatpush3.bf16.msra.mxu0 %v11675_v8  ;;  %v11755_v8 = vpack.c.bf16 %v1990_v1, %v1989_v54  ;;  %v1967_v54 = vld [vmem:[%s12714_s26 + $0x3250] sm:$0xff] }
 0x395   : > { %11708 = vmatpush3.bf16.msra.mxu1 %v11707_v9  ;;  %11678 = vmatprep.subr.bf16.mxu0 %v11677_v10  ;;  %v11725_v9 = vpack.c.bf16 %v1976_v59, %v1975_v2  ;;  %v1959_v10 = vld [vmem:[%s12714_s26 + $0x3210] sm:$0xff]  ;;  %v2000_v59 = vld [vmem:[%s12714_s26 + $0x3358] sm:$0xff] }
 0x396   : > { %v9075_v15 = vpop.f32.mrb[34].mxu0  ;;  %11710 = vmatprep.subr.bf16.mxu1 %v11709_v17  ;;  %v1992_v17 = vld [vmem:[%s12714_s26 + $0x3318] sm:$0xff]  ;;  %v1999_v1 = vld [vmem:[%s12714_s26 + $0x3350] sm:$0xff] }
 0x397   : > { %v9076_v42 = vpop.f32.mrb[35].mxu0  ;;  %v9110_v25 = vpop.f32.mrb[34].mxu1 }
 0x398   : > { %v9077_v41 = vadd.f32 %v9076_v42, %v9075_v15  ;;  %11680 = vmatpush3.bf16.msra.mxu0 %v11679_v24  ;;  %v9111_v31 = vpop.f32.mrb[35].mxu1  ;;  %v2878_v24 = vcombine.high %v14675_v20, %v14675_v20  ;;  %v11761_v15 = vpack.c.bf16 %v2010_v23, %v2009_v26  ;;  %v1987_v26 = vld [vmem:[%s12714_s26 + $0x32f0] sm:$0xff]  ;;  %v1988_v23 = vld [vmem:[%s12714_s26 + $0x32f8] sm:$0xff] }
 0x399   : > { %v9112_v34 = vadd.f32 %v9111_v31, %v9110_v25  ;;  %11712 = vmatpush3.bf16.msra.mxu1 %v11711_v21  ;;  %11682 = vmatprep.subr.bf16.mxu0 %v11681_v27  ;;  %v11727_v21 = vpack.c.bf16 %v1960_v14, %v1959_v10  ;;  %v11759_v27 = vpack.c.bf16 %v1992_v17, %v1991_v16  ;;  %v1995_v31 = vld [vmem:[%s12714_s26 + $0x3330] sm:$0xff]  ;;  %v1969_v16 = vld [vmem:[%s12714_s26 + $0x3260] sm:$0xff] }
 0x39a   : > { %v5556_v38 = vadd.f32 %v9077_v41, %v14582_v6  ;;  %11714 = vmatprep.subr.bf16.mxu1 %v11713_v19  ;;  %v11687_v6 = vpack.c.bf16 %v1908_v49, %v1907_v48  ;;  %v1994_v19 = vld [vmem:[%s12714_s26 + $0x3328] sm:$0xff]  ;;  %v1964_v41 = vld [vmem:[%s12714_s26 + $0x3238] sm:$0xff]  ;;  %v11767_v50 = vpack.c.bf16 %v1996_v32, %v1995_v31  ;;  %v11775_v10 = vpack.c.bf16 %v2000_v59, %v1999_v1  ;;  %v2001_v17 = vld [vmem:[%s12714_s26 + $0x3360] sm:$0xff] }
 0x39b   : > { %v11763_v25 = vpack.c.bf16 %v1994_v19, %v1993_v30  ;;  %v2014_v48 = vld [vmem:[%s12714_s26 + $0x33c8] sm:$0xff]  ;;  %v11735_v49 = vpack.c.bf16 %v1964_v41, %v1963_v40  ;;  %v11745_v14 = vpack.c.bf16 %v1986_v57, %v1985_v60  ;;  %v11749_v39 = vpack.c.bf16 %v1988_v23, %v1987_v26  ;;  %v2004_v40 = vld [vmem:[%s12714_s26 + $0x3378] sm:$0xff]  ;;  %v2037_v41 = vld [vmem:[%s12714_s26 + $0x3480] sm:$0xff] }
 0x39c   : > { %v14661_v51 = vadd.f32 %v9112_v34, %v5556_v38  ;;  %11684 = vmatpush3.bf16.msra.mxu0 %v11683_v43  ;;  %v1981_v34 = vld [vmem:[%s12714_s26 + $0x32c0] sm:$0xff]  ;;  %v2038_v31 = vld [vmem:[%s12714_s26 + $0x3488] sm:$0xff]  ;;  %v11821_v1 = vpack.c.bf16 %v2072_v47, %v2071_v46  ;;  %v2044_v26 = vld [vmem:[%s12714_s26 + $0x34b8] sm:$0xff] }
 0x39d   : > { %11716 = vmatpush3.bf16.msra.mxu1 %v11715_v36  ;;  %11686 = vmatprep.subr.bf16.mxu0 %v11685_v53  ;;  %v1982_v36 = vld [vmem:[%s12714_s26 + $0x32c8] sm:$0xff]  ;;  %v2013_v53 = vld [vmem:[%s12714_s26 + $0x33c0] sm:$0xff]  ;;  %v2076_v23 = vld [vmem:[%s12714_s26 + $0x35b8] sm:$0xff] }
 0x39e   : > { %11718 = vmatprep.subr.bf16.mxu1 %v11717_v33  ;;  %v11737_v38 = vpack.c.bf16 %v1982_v36, %v1981_v34  ;;  %v1965_v33 = vld [vmem:[%s12714_s26 + $0x3240] sm:$0xff]  ;;  %v11769_v44 = vpack.c.bf16 %v2014_v48, %v2013_v53  ;;  %v2070_v32 = vld [vmem:[%s12714_s26 + $0x3588] sm:$0xff]  ;;  %v11785_v48 = vpack.c.bf16 %v2038_v31, %v2037_v41 }
 0x39f   : > { %v2041_v59 = vld [vmem:[%s12714_s26 + $0x34a0] sm:$0xff]  ;;  %v2042_v60 = vld [vmem:[%s12714_s26 + $0x34a8] sm:$0xff] }
 0x3a0   : > { %11688 = vmatpush3.bf16.msra.mxu0 %v11687_v6  ;;  %v2015_v6 = vld [vmem:[%s12714_s26 + $0x33d0] sm:$0xff]  ;;  %v2061_v41 = vld [vmem:[%s12714_s26 + $0x3540] sm:$0xff]  ;;  %v2050_v47 = vld [vmem:[%s12714_s26 + $0x34e8] sm:$0xff] }
 0x3a1   : > { %11720 = vmatpush3.bf16.msra.mxu1 %v11719_v63  ;;  %11722 = vmatprep.subr.bf16.mxu0 %v11721_v45  ;;  %v2016_v63 = vld [vmem:[%s12714_s26 + $0x33d8] sm:$0xff]  ;;  %v11739_v45 = vpack.c.bf16 %v1966_v55, %v1965_v33  ;;  %v2054_v55 = vld [vmem:[%s12714_s26 + $0x3508] sm:$0xff]  ;;  %v2049_v46 = vld [vmem:[%s12714_s26 + $0x34e0] sm:$0xff] }
 0x3a2   : > { %11754 = vmatprep.subr.bf16.mxu1 %v11753_v0  ;;  %v1968_v0 = vld [vmem:[%s12714_s26 + $0x3258] sm:$0xff]  ;;  %v11773_v2 = vpack.c.bf16 %v2016_v63, %v2015_v6 }
 0x3a3   : > { %6534 = vmatmul.mubr.f32.vlgmr.msra.gmra.mrb[48].mxu0 %v14591_v18  ;;  %v1962_v18 = vld [vmem:[%s12714_s26 + $0x3228] sm:$0xff] }
 0x3a4   : > { %11724 = vmatpush3.bf16.msra.mxu0 %v11723_v12  ;;  %6604 = vmatmul.mubr.f32.vlgmr.msra.gmra.mrb[48].mxu1 %v14596_v35  ;;  %v2011_v35 = vld [vmem:[%s12714_s26 + $0x33b0] sm:$0xff]  ;;  %v11731_v42 = vpack.c.bf16 %v1962_v18, %v1961_v29  ;;  %v2017_v12 = vld [vmem:[%s12714_s26 + $0x33e0] sm:$0xff] }
 0x3a5   : > { %11756 = vmatpush3.bf16.msra.mxu1 %v11755_v8  ;;  %11726 = vmatprep.subr.bf16.mxu0 %v11725_v9  ;;  %v11765_v43 = vpack.c.bf16 %v2012_v37, %v2011_v35  ;;  %v2018_v8 = vld [vmem:[%s12714_s26 + $0x33e8] sm:$0xff]  ;;  %v11743_v9 = vpack.c.bf16 %v1968_v0, %v1967_v54  ;;  %v1971_v35 = vld [vmem:[%s12714_s26 + $0x3270] sm:$0xff]  ;;  %v1972_v37 = vld [vmem:[%s12714_s26 + $0x3278] sm:$0xff] }
 0x3a6   : > { %11758 = vmatprep.subr.bf16.mxu1 %v11757_v11  ;;  %6673 = vmatprep.mubr.f32.mxu0 %v2877_v7  ;;  %v1970_v11 = vld [vmem:[%s12714_s26 + $0x3268] sm:$0xff]  ;;  %v11777_v5 = vpack.c.bf16 %v2018_v8, %v2017_v12  ;;  %v2024_v54 = vld [vmem:[%s12714_s26 + $0x3418] sm:$0xff]  ;;  %v2055_v0 = vld [vmem:[%s12714_s26 + $0x3510] sm:$0xff] }
 0x3a7   : > { %6743 = vmatprep.mubr.f32.mxu1 %v2878_v24  ;;  %v2002_v7 = vld [vmem:[%s12714_s26 + $0x3368] sm:$0xff]  ;;  %v11747_v30 = vpack.c.bf16 %v1970_v11, %v1969_v16  ;;  %v2073_v12 = vld [vmem:[%s12714_s26 + $0x35a0] sm:$0xff]  ;;  %v11793_v16 = vpack.c.bf16 %v2042_v60, %v2041_v59 }
 0x3a8   : > { %11728 = vmatpush3.bf16.msra.mxu0 %v11727_v21  ;;  %v11779_v22 = vpack.c.bf16 %v2002_v7, %v2001_v17  ;;  %v2074_v8 = vld [vmem:[%s12714_s26 + $0x35a8] sm:$0xff]  ;;  %v2025_v11 = vld [vmem:[%s12714_s26 + $0x3420] sm:$0xff]  ;;  %v2043_v7 = vld [vmem:[%s12714_s26 + $0x34b0] sm:$0xff] }
 0x3a9   : > { %11760 = vmatpush3.bf16.msra.mxu1 %v11759_v27  ;;  %11730 = vmatprep.subr.bf16.mxu0 %v11729_v28  ;;  %v2019_v27 = vld [vmem:[%s12714_s26 + $0x33f0] sm:$0xff]  ;;  %v2020_v28 = vld [vmem:[%s12714_s26 + $0x33f8] sm:$0xff]  ;;  %v2057_v17 = vld [vmem:[%s12714_s26 + $0x3520] sm:$0xff] }
 0x3aa   : > { %11762 = vmatprep.subr.bf16.mxu1 %v11761_v15  ;;  %v351_v15 = vld [vmem:[#allocation3 + $0xd0] sm:$0xff] }
 0x3ab   : > { %v2879_v34 = vcombine.high %v351_v15, %v351_v15  ;;  %v14749_v58 = vrot.slane %v351_v15, %v12766_v13  ;;  %v2060_v15 = vld [vmem:[%s12714_s26 + $0x3538] sm:$0xff] }
 0x3ac   : > { %11732 = vmatpush3.bf16.msra.mxu0 %v11731_v42  ;;  %v2003_v42 = vld [vmem:[%s12714_s26 + $0x3370] sm:$0xff] }
 0x3ad   : > { %11764 = vmatpush3.bf16.msra.mxu1 %v11763_v25  ;;  %11734 = vmatprep.subr.bf16.mxu0 %v11733_v52  ;;  %v11781_v52 = vpack.c.bf16 %v2020_v28, %v2019_v27  ;;  %v11783_v53 = vpack.c.bf16 %v2004_v40, %v2003_v42  ;;  %v14754_v6 = vrot.slane %v2879_v34, %v12766_v13  ;;  %v2027_v28 = vld [vmem:[%s12714_s26 + $0x3430] sm:$0xff]  ;;  %v2030_v40 = vld [vmem:[%s12714_s26 + $0x3448] sm:$0xff]  ;;  %v2048_v34 = vld [vmem:[%s12714_s26 + $0x34d8] sm:$0xff] }
 0x3ae   : > { %11766 = vmatprep.subr.bf16.mxu1 %v11765_v43  ;;  %v2069_v43 = vld [vmem:[%s12714_s26 + $0x3580] sm:$0xff]  ;;  %v2894_v57 = vcombine.high %v14749_v58, %v14749_v58  ;;  %v11797_v27 = vpack.c.bf16 %v2044_v26, %v2043_v7 }
 0x3af   : > { %v11817_v33 = vpack.c.bf16 %v2070_v32, %v2069_v43  ;;  %v2062_v43 = vld [vmem:[%s12714_s26 + $0x3548] sm:$0xff]  ;;  %v2047_v32 = vld [vmem:[%s12714_s26 + $0x34d0] sm:$0xff] }
 0x3b0   : > { %11736 = vmatpush3.bf16.msra.mxu0 %v11735_v49  ;;  %v2021_v49 = vld [vmem:[%s12714_s26 + $0x3400] sm:$0xff] }
 0x3b1   : > { %11768 = vmatpush3.bf16.msra.mxu1 %v11767_v50  ;;  %11738 = vmatprep.subr.bf16.mxu0 %v11737_v38  ;;  %v2022_v50 = vld [vmem:[%s12714_s26 + $0x3408] sm:$0xff]  ;;  %v2053_v38 = vld [vmem:[%s12714_s26 + $0x3500] sm:$0xff] }
 0x3b2   : > { %11770 = vmatprep.subr.bf16.mxu1 %v11769_v44  ;;  %v2040_v44 = vld [vmem:[%s12714_s26 + $0x3498] sm:$0xff]  ;;  %v11787_v63 = vpack.c.bf16 %v2022_v50, %v2021_v49  ;;  %v11835_v49 = vpack.c.bf16 %v2062_v43, %v2061_v41  ;;  %v11805_v50 = vpack.c.bf16 %v2048_v34, %v2047_v32  ;;  %v2103_v41 = vld [vmem:[%s12714_s26 + $0x3690] sm:$0xff] }
 0x3b3   : > { %v2135_v32 = vld [vmem:[%s12714_s26 + $0x3790] sm:$0xff]  ;;  %v2136_v34 = vld [vmem:[%s12714_s26 + $0x3798] sm:$0xff] }
 0x3b4   : > { %11740 = vmatpush3.bf16.msra.mxu0 %v11739_v45  ;;  %v11819_v45 = vpack.c.bf16 %v2054_v55, %v2053_v38  ;;  %v2031_v38 = vld [vmem:[%s12714_s26 + $0x3450] sm:$0xff] }
 0x3b5   : > { %11772 = vmatpush3.bf16.msra.mxu1 %v11771_v61  ;;  %11742 = vmatprep.subr.bf16.mxu0 %v11741_v62  ;;  %v11789_v61 = vpack.c.bf16 %v2040_v44, %v2039_v56  ;;  %v2023_v62 = vld [vmem:[%s12714_s26 + $0x3410] sm:$0xff]  ;;  %v2064_v44 = vld [vmem:[%s12714_s26 + $0x3558] sm:$0xff] }
 0x3b6   : > { %v9145_v4 = vpop.f32.mrb[36].mxu0  ;;  %11774 = vmatprep.subr.bf16.mxu1 %v11773_v2  ;;  %v2056_v2 = vld [vmem:[%s12714_s26 + $0x3518] sm:$0xff]  ;;  %v2063_v55 = vld [vmem:[%s12714_s26 + $0x3550] sm:$0xff] }
 0x3b7   : > { %v9146_v24 = vpop.f32.mrb[37].mxu0  ;;  %v9180_v21 = vpop.f32.mrb[36].mxu1 }
 0x3b8   : > { %v9147_v29 = vadd.f32 %v9146_v24, %v9145_v4  ;;  %11744 = vmatpush3.bf16.msra.mxu0 %v11743_v9  ;;  %v9181_v18 = vpop.f32.mrb[37].mxu1  ;;  %v2895_v9 = vcombine.high %v14754_v6, %v14754_v6  ;;  %v11825_v4 = vpack.c.bf16 %v2074_v8, %v2073_v12  ;;  %v2051_v12 = vld [vmem:[%s12714_s26 + $0x34f0] sm:$0xff]  ;;  %v2052_v8 = vld [vmem:[%s12714_s26 + $0x34f8] sm:$0xff] }
 0x3b9   : > { %v9182_v19 = vadd.f32 %v9181_v18, %v9180_v21  ;;  %11776 = vmatpush3.bf16.msra.mxu1 %v11775_v10  ;;  %11746 = vmatprep.subr.bf16.mxu0 %v11745_v14  ;;  %v11791_v10 = vpack.c.bf16 %v2024_v54, %v2023_v62  ;;  %v11823_v14 = vpack.c.bf16 %v2056_v2, %v2055_v0  ;;  %v2059_v18 = vld [vmem:[%s12714_s26 + $0x3530] sm:$0xff]  ;;  %v2033_v0 = vld [vmem:[%s12714_s26 + $0x3460] sm:$0xff] }
 0x3ba   : > { %v5696_v25 = vadd.f32 %v9147_v29, %v14661_v51  ;;  %11778 = vmatprep.subr.bf16.mxu1 %v11777_v5  ;;  %v11751_v51 = vpack.c.bf16 %v1972_v37, %v1971_v35  ;;  %v2058_v5 = vld [vmem:[%s12714_s26 + $0x3528] sm:$0xff]  ;;  %v2028_v29 = vld [vmem:[%s12714_s26 + $0x3438] sm:$0xff]  ;;  %v11831_v42 = vpack.c.bf16 %v2060_v15, %v2059_v18  ;;  %v11839_v62 = vpack.c.bf16 %v2064_v44, %v2063_v55  ;;  %v2065_v2 = vld [vmem:[%s12714_s26 + $0x3560] sm:$0xff] }
 0x3bb   : > { %v11827_v21 = vpack.c.bf16 %v2058_v5, %v2057_v17  ;;  %v2078_v35 = vld [vmem:[%s12714_s26 + $0x35c8] sm:$0xff]  ;;  %v11799_v37 = vpack.c.bf16 %v2028_v29, %v2027_v28  ;;  %v11809_v54 = vpack.c.bf16 %v2050_v47, %v2049_v46  ;;  %v11813_v26 = vpack.c.bf16 %v2052_v8, %v2051_v12  ;;  %v2068_v28 = vld [vmem:[%s12714_s26 + $0x3578] sm:$0xff]  ;;  %v2101_v29 = vld [vmem:[%s12714_s26 + $0x3680] sm:$0xff] }
 0x3bc   : > { %v14740_v36 = vadd.f32 %v9182_v19, %v5696_v25  ;;  %11748 = vmatpush3.bf16.msra.mxu0 %v11747_v30  ;;  %v2045_v19 = vld [vmem:[%s12714_s26 + $0x34c0] sm:$0xff]  ;;  %v2102_v18 = vld [vmem:[%s12714_s26 + $0x3688] sm:$0xff]  ;;  %v11885_v55 = vpack.c.bf16 %v2136_v34, %v2135_v32  ;;  %v2108_v12 = vld [vmem:[%s12714_s26 + $0x36b8] sm:$0xff] }
 0x3bd   : > { %11780 = vmatpush3.bf16.msra.mxu1 %v11779_v22  ;;  %11750 = vmatprep.subr.bf16.mxu0 %v11749_v39  ;;  %v2046_v22 = vld [vmem:[%s12714_s26 + $0x34c8] sm:$0xff]  ;;  %v2077_v39 = vld [vmem:[%s12714_s26 + $0x35c0] sm:$0xff]  ;;  %v2140_v8 = vld [vmem:[%s12714_s26 + $0x37b8] sm:$0xff] }
 0x3be   : > { %11782 = vmatprep.subr.bf16.mxu1 %v11781_v52  ;;  %v11801_v25 = vpack.c.bf16 %v2046_v22, %v2045_v19  ;;  %v2029_v52 = vld [vmem:[%s12714_s26 + $0x3440] sm:$0xff]  ;;  %v11833_v31 = vpack.c.bf16 %v2078_v35, %v2077_v39  ;;  %v2134_v15 = vld [vmem:[%s12714_s26 + $0x3788] sm:$0xff]  ;;  %v11849_v35 = vpack.c.bf16 %v2102_v18, %v2101_v29 }
 0x3bf   : > { %v2105_v44 = vld [vmem:[%s12714_s26 + $0x36a0] sm:$0xff]  ;;  %v2106_v46 = vld [vmem:[%s12714_s26 + $0x36a8] sm:$0xff] }
 0x3c0   : > { %11752 = vmatpush3.bf16.msra.mxu0 %v11751_v51  ;;  %v2079_v51 = vld [vmem:[%s12714_s26 + $0x35d0] sm:$0xff]  ;;  %v2125_v29 = vld [vmem:[%s12714_s26 + $0x3740] sm:$0xff]  ;;  %v2114_v34 = vld [vmem:[%s12714_s26 + $0x36e8] sm:$0xff] }
 0x3c1   : > { %11784 = vmatpush3.bf16.msra.mxu1 %v11783_v53  ;;  %11786 = vmatprep.subr.bf16.mxu0 %v11785_v48  ;;  %v2080_v53 = vld [vmem:[%s12714_s26 + $0x35d8] sm:$0xff]  ;;  %v11803_v48 = vpack.c.bf16 %v2030_v40, %v2029_v52  ;;  %v2118_v40 = vld [vmem:[%s12714_s26 + $0x3708] sm:$0xff]  ;;  %v2113_v32 = vld [vmem:[%s12714_s26 + $0x36e0] sm:$0xff] }
 0x3c2   : > { %11818 = vmatprep.subr.bf16.mxu1 %v11817_v33  ;;  %v2032_v33 = vld [vmem:[%s12714_s26 + $0x3458] sm:$0xff]  ;;  %v11837_v56 = vpack.c.bf16 %v2080_v53, %v2079_v51 }
 0x3c3   : > { %6674 = vmatmul.mubr.f32.vlgmr.msra.gmra.mrb[50].mxu0 %v14670_v3  ;;  %v2026_v3 = vld [vmem:[%s12714_s26 + $0x3428] sm:$0xff] }
 0x3c4   : > { %11788 = vmatpush3.bf16.msra.mxu0 %v11787_v63  ;;  %6744 = vmatmul.mubr.f32.vlgmr.msra.gmra.mrb[50].mxu1 %v14675_v20  ;;  %v2075_v20 = vld [vmem:[%s12714_s26 + $0x35b0] sm:$0xff]  ;;  %v11795_v24 = vpack.c.bf16 %v2026_v3, %v2025_v11  ;;  %v2081_v63 = vld [vmem:[%s12714_s26 + $0x35e0] sm:$0xff] }
 0x3c5   : > { %11820 = vmatpush3.bf16.msra.mxu1 %v11819_v45  ;;  %11790 = vmatprep.subr.bf16.mxu0 %v11789_v61  ;;  %v11829_v30 = vpack.c.bf16 %v2076_v23, %v2075_v20  ;;  %v2082_v45 = vld [vmem:[%s12714_s26 + $0x35e8] sm:$0xff]  ;;  %v11807_v61 = vpack.c.bf16 %v2032_v33, %v2031_v38  ;;  %v2035_v20 = vld [vmem:[%s12714_s26 + $0x3470] sm:$0xff]  ;;  %v2036_v23 = vld [vmem:[%s12714_s26 + $0x3478] sm:$0xff] }
 0x3c6   : > { %11822 = vmatprep.subr.bf16.mxu1 %v11821_v1  ;;  %6813 = vmatprep.mubr.f32.mxu0 %v2894_v57  ;;  %v2034_v1 = vld [vmem:[%s12714_s26 + $0x3468] sm:$0xff]  ;;  %v11841_v60 = vpack.c.bf16 %v2082_v45, %v2081_v63  ;;  %v2088_v38 = vld [vmem:[%s12714_s26 + $0x3618] sm:$0xff]  ;;  %v2119_v33 = vld [vmem:[%s12714_s26 + $0x3710] sm:$0xff] }
 0x3c7   : > { %6883 = vmatprep.mubr.f32.mxu1 %v2895_v9  ;;  %v2066_v57 = vld [vmem:[%s12714_s26 + $0x3568] sm:$0xff]  ;;  %v11811_v17 = vpack.c.bf16 %v2034_v1, %v2033_v0  ;;  %v2137_v63 = vld [vmem:[%s12714_s26 + $0x37a0] sm:$0xff]  ;;  %v11857_v0 = vpack.c.bf16 %v2106_v46, %v2105_v44 }
 0x3c8   : > { %11792 = vmatpush3.bf16.msra.mxu0 %v11791_v10  ;;  %v11843_v7 = vpack.c.bf16 %v2066_v57, %v2065_v2  ;;  %v2138_v45 = vld [vmem:[%s12714_s26 + $0x37a8] sm:$0xff]  ;;  %v2089_v1 = vld [vmem:[%s12714_s26 + $0x3620] sm:$0xff]  ;;  %v2107_v57 = vld [vmem:[%s12714_s26 + $0x36b0] sm:$0xff] }
 0x3c9   : > { %11824 = vmatpush3.bf16.msra.mxu1 %v11823_v14  ;;  %11794 = vmatprep.subr.bf16.mxu0 %v11793_v16  ;;  %v2083_v14 = vld [vmem:[%s12714_s26 + $0x35f0] sm:$0xff]  ;;  %v2084_v16 = vld [vmem:[%s12714_s26 + $0x35f8] sm:$0xff]  ;;  %v2121_v2 = vld [vmem:[%s12714_s26 + $0x3720] sm:$0xff] }
 0x3ca   : > { %11826 = vmatprep.subr.bf16.mxu1 %v11825_v4  ;;  %v352_v4 = vld [vmem:[#allocation3 + $0xd8] sm:$0xff] }
 0x3cb   : > { %v2896_v19 = vcombine.high %v352_v4, %v352_v4  ;;  %v14828_v43 = vrot.slane %v352_v4, %v12766_v13  ;;  %v2124_v4 = vld [vmem:[%s12714_s26 + $0x3738] sm:$0xff] }
 0x3cc   : > { %11796 = vmatpush3.bf16.msra.mxu0 %v11795_v24  ;;  %v2067_v24 = vld [vmem:[%s12714_s26 + $0x3570] sm:$0xff] }
 0x3cd   : > { %11828 = vmatpush3.bf16.msra.mxu1 %v11827_v21  ;;  %11798 = vmatprep.subr.bf16.mxu0 %v11797_v27  ;;  %v11845_v27 = vpack.c.bf16 %v2084_v16, %v2083_v14  ;;  %v11847_v39 = vpack.c.bf16 %v2068_v28, %v2067_v24  ;;  %v14833_v51 = vrot.slane %v2896_v19, %v12766_v13  ;;  %v2091_v16 = vld [vmem:[%s12714_s26 + $0x3630] sm:$0xff]  ;;  %v2094_v28 = vld [vmem:[%s12714_s26 + $0x3648] sm:$0xff]  ;;  %v2112_v19 = vld [vmem:[%s12714_s26 + $0x36d8] sm:$0xff] }
 0x3ce   : > { %11830 = vmatprep.subr.bf16.mxu1 %v11829_v30  ;;  %v2133_v30 = vld [vmem:[%s12714_s26 + $0x3780] sm:$0xff]  ;;  %v2911_v47 = vcombine.high %v14828_v43, %v14828_v43  ;;  %v11861_v14 = vpack.c.bf16 %v2108_v12, %v2107_v57 }
 0x3cf   : > { %v11881_v52 = vpack.c.bf16 %v2134_v15, %v2133_v30  ;;  %v2126_v30 = vld [vmem:[%s12714_s26 + $0x3748] sm:$0xff]  ;;  %v2111_v15 = vld [vmem:[%s12714_s26 + $0x36d0] sm:$0xff] }
 0x3d0   : > { %11800 = vmatpush3.bf16.msra.mxu0 %v11799_v37  ;;  %v2085_v37 = vld [vmem:[%s12714_s26 + $0x3600] sm:$0xff] }
 0x3d1   : > { %11832 = vmatpush3.bf16.msra.mxu1 %v11831_v42  ;;  %11802 = vmatprep.subr.bf16.mxu0 %v11801_v25  ;;  %v2086_v42 = vld [vmem:[%s12714_s26 + $0x3608] sm:$0xff]  ;;  %v2117_v25 = vld [vmem:[%s12714_s26 + $0x3700] sm:$0xff] }
 0x3d2   : > { %11834 = vmatprep.subr.bf16.mxu1 %v11833_v31  ;;  %v2104_v31 = vld [vmem:[%s12714_s26 + $0x3698] sm:$0xff]  ;;  %v11851_v53 = vpack.c.bf16 %v2086_v42, %v2085_v37  ;;  %v11899_v37 = vpack.c.bf16 %v2126_v30, %v2125_v29  ;;  %v11869_v42 = vpack.c.bf16 %v2112_v19, %v2111_v15  ;;  %v2167_v29 = vld [vmem:[%s12714_s26 + $0x3890] sm:$0xff] }
 0x3d3   : > { %v2199_v15 = vld [vmem:[%s12714_s26 + $0x3990] sm:$0xff]  ;;  %v2200_v19 = vld [vmem:[%s12714_s26 + $0x3998] sm:$0xff] }
 0x3d4   : > { %11804 = vmatpush3.bf16.msra.mxu0 %v11803_v48  ;;  %v11883_v48 = vpack.c.bf16 %v2118_v40, %v2117_v25  ;;  %v2095_v25 = vld [vmem:[%s12714_s26 + $0x3650] sm:$0xff] }
 0x3d5   : > { %11836 = vmatpush3.bf16.msra.mxu1 %v11835_v49  ;;  %11806 = vmatprep.subr.bf16.mxu0 %v11805_v50  ;;  %v11853_v49 = vpack.c.bf16 %v2104_v31, %v2103_v41  ;;  %v2087_v50 = vld [vmem:[%s12714_s26 + $0x3610] sm:$0xff]  ;;  %v2128_v31 = vld [vmem:[%s12714_s26 + $0x3758] sm:$0xff] }
 0x3d6   : > { %v9215_v59 = vpop.f32.mrb[38].mxu0  ;;  %11838 = vmatprep.subr.bf16.mxu1 %v11837_v56  ;;  %v2120_v56 = vld [vmem:[%s12714_s26 + $0x3718] sm:$0xff]  ;;  %v2127_v40 = vld [vmem:[%s12714_s26 + $0x3750] sm:$0xff] }
 0x3d7   : > { %v9216_v9 = vpop.f32.mrb[39].mxu0  ;;  %v9250_v10 = vpop.f32.mrb[38].mxu1 }
 0x3d8   : > { %v9217_v11 = vadd.f32 %v9216_v9, %v9215_v59  ;;  %11808 = vmatpush3.bf16.msra.mxu0 %v11807_v61  ;;  %v9251_v3 = vpop.f32.mrb[39].mxu1  ;;  %v2912_v61 = vcombine.high %v14833_v51, %v14833_v51  ;;  %v11889_v59 = vpack.c.bf16 %v2138_v45, %v2137_v63  ;;  %v2115_v63 = vld [vmem:[%s12714_s26 + $0x36f0] sm:$0xff]  ;;  %v2116_v45 = vld [vmem:[%s12714_s26 + $0x36f8] sm:$0xff] }
 0x3d9   : > { %v9252_v5 = vadd.f32 %v9251_v3, %v9250_v10  ;;  %11840 = vmatpush3.bf16.msra.mxu1 %v11839_v62  ;;  %11810 = vmatprep.subr.bf16.mxu0 %v11809_v54  ;;  %v11855_v62 = vpack.c.bf16 %v2088_v38, %v2087_v50  ;;  %v11887_v54 = vpack.c.bf16 %v2120_v56, %v2119_v33  ;;  %v2123_v3 = vld [vmem:[%s12714_s26 + $0x3730] sm:$0xff]  ;;  %v2097_v33 = vld [vmem:[%s12714_s26 + $0x3660] sm:$0xff] }
 0x3da   : > { %v5836_v21 = vadd.f32 %v9217_v11, %v14740_v36  ;;  %11842 = vmatprep.subr.bf16.mxu1 %v11841_v60  ;;  %v11815_v36 = vpack.c.bf16 %v2036_v23, %v2035_v20  ;;  %v2122_v60 = vld [vmem:[%s12714_s26 + $0x3728] sm:$0xff]  ;;  %v2092_v11 = vld [vmem:[%s12714_s26 + $0x3638] sm:$0xff]  ;;  %v11895_v24 = vpack.c.bf16 %v2124_v4, %v2123_v3  ;;  %v11903_v50 = vpack.c.bf16 %v2128_v31, %v2127_v40  ;;  %v2129_v56 = vld [vmem:[%s12714_s26 + $0x3760] sm:$0xff] }
 0x3db   : > { %v11891_v10 = vpack.c.bf16 %v2122_v60, %v2121_v2  ;;  %v2142_v20 = vld [vmem:[%s12714_s26 + $0x37c8] sm:$0xff]  ;;  %v11863_v23 = vpack.c.bf16 %v2092_v11, %v2091_v16  ;;  %v11873_v38 = vpack.c.bf16 %v2114_v34, %v2113_v32  ;;  %v11877_v12 = vpack.c.bf16 %v2116_v45, %v2115_v63  ;;  %v2132_v16 = vld [vmem:[%s12714_s26 + $0x3778] sm:$0xff]  ;;  %v2165_v11 = vld [vmem:[%s12714_s26 + $0x3880] sm:$0xff] }
 0x3dc   : > { %v14819_v22 = vadd.f32 %v9252_v5, %v5836_v21  ;;  %11812 = vmatpush3.bf16.msra.mxu0 %v11811_v17  ;;  %v2109_v5 = vld [vmem:[%s12714_s26 + $0x36c0] sm:$0xff]  ;;  %v2166_v3 = vld [vmem:[%s12714_s26 + $0x3888] sm:$0xff]  ;;  %v11949_v40 = vpack.c.bf16 %v2200_v19, %v2199_v15  ;;  %v2172_v63 = vld [vmem:[%s12714_s26 + $0x38b8] sm:$0xff] }
 0x3dd   : > { %11844 = vmatpush3.bf16.msra.mxu1 %v11843_v7  ;;  %11814 = vmatprep.subr.bf16.mxu0 %v11813_v26  ;;  %v2110_v7 = vld [vmem:[%s12714_s26 + $0x36c8] sm:$0xff]  ;;  %v2141_v26 = vld [vmem:[%s12714_s26 + $0x37c0] sm:$0xff]  ;;  %v2204_v45 = vld [vmem:[%s12714_s26 + $0x39b8] sm:$0xff] }
 0x3de   : > { %11846 = vmatprep.subr.bf16.mxu1 %v11845_v27  ;;  %v11865_v21 = vpack.c.bf16 %v2110_v7, %v2109_v5  ;;  %v2093_v27 = vld [vmem:[%s12714_s26 + $0x3640] sm:$0xff]  ;;  %v11897_v18 = vpack.c.bf16 %v2142_v20, %v2141_v26  ;;  %v2198_v4 = vld [vmem:[%s12714_s26 + $0x3988] sm:$0xff]  ;;  %v11913_v20 = vpack.c.bf16 %v2166_v3, %v2165_v11 }
 0x3df   : > { %v2169_v31 = vld [vmem:[%s12714_s26 + $0x38a0] sm:$0xff]  ;;  %v2170_v32 = vld [vmem:[%s12714_s26 + $0x38a8] sm:$0xff] }
 0x3e0   : > { %11816 = vmatpush3.bf16.msra.mxu0 %v11815_v36  ;;  %v2143_v36 = vld [vmem:[%s12714_s26 + $0x37d0] sm:$0xff]  ;;  %v2189_v11 = vld [vmem:[%s12714_s26 + $0x3940] sm:$0xff]  ;;  %v2178_v19 = vld [vmem:[%s12714_s26 + $0x38e8] sm:$0xff] }
 0x3e1   : > { %11848 = vmatpush3.bf16.msra.mxu1 %v11847_v39  ;;  %11850 = vmatprep.subr.bf16.mxu0 %v11849_v35  ;;  %v2144_v39 = vld [vmem:[%s12714_s26 + $0x37d8] sm:$0xff]  ;;  %v11867_v35 = vpack.c.bf16 %v2094_v28, %v2093_v27  ;;  %v2182_v28 = vld [vmem:[%s12714_s26 + $0x3908] sm:$0xff]  ;;  %v2177_v15 = vld [vmem:[%s12714_s26 + $0x38e0] sm:$0xff] }
 0x3e2   : > { %11882 = vmatprep.subr.bf16.mxu1 %v11881_v52  ;;  %v2096_v52 = vld [vmem:[%s12714_s26 + $0x3658] sm:$0xff]  ;;  %v11901_v41 = vpack.c.bf16 %v2144_v39, %v2143_v36 }
 0x3e3   : > { %6814 = vmatmul.mubr.f32.vlgmr.msra.gmra.mrb[52].mxu0 %v14749_v58  ;;  %v2090_v58 = vld [vmem:[%s12714_s26 + $0x3628] sm:$0xff] }
 0x3e4   : > { %11852 = vmatpush3.bf16.msra.mxu0 %v11851_v53  ;;  %6884 = vmatmul.mubr.f32.vlgmr.msra.gmra.mrb[52].mxu1 %v14754_v6  ;;  %v2139_v6 = vld [vmem:[%s12714_s26 + $0x37b0] sm:$0xff]  ;;  %v11859_v9 = vpack.c.bf16 %v2090_v58, %v2089_v1  ;;  %v2145_v53 = vld [vmem:[%s12714_s26 + $0x37e0] sm:$0xff] }
 0x3e5   : > { %11884 = vmatpush3.bf16.msra.mxu1 %v11883_v48  ;;  %11854 = vmatprep.subr.bf16.mxu0 %v11853_v49  ;;  %v11893_v17 = vpack.c.bf16 %v2140_v8, %v2139_v6  ;;  %v2146_v48 = vld [vmem:[%s12714_s26 + $0x37e8] sm:$0xff]  ;;  %v11871_v49 = vpack.c.bf16 %v2096_v52, %v2095_v25  ;;  %v2099_v6 = vld [vmem:[%s12714_s26 + $0x3670] sm:$0xff]  ;;  %v2100_v8 = vld [vmem:[%s12714_s26 + $0x3678] sm:$0xff] }
 0x3e6   : > { %11886 = vmatprep.subr.bf16.mxu1 %v11885_v55  ;;  %6953 = vmatprep.mubr.f32.mxu0 %v2911_v47  ;;  %v2098_v55 = vld [vmem:[%s12714_s26 + $0x3668] sm:$0xff]  ;;  %v11905_v46 = vpack.c.bf16 %v2146_v48, %v2145_v53  ;;  %v2152_v25 = vld [vmem:[%s12714_s26 + $0x3818] sm:$0xff]  ;;  %v2183_v52 = vld [vmem:[%s12714_s26 + $0x3910] sm:$0xff] }
 0x3e7   : > { %7023 = vmatprep.mubr.f32.mxu1 %v2912_v61  ;;  %v2130_v47 = vld [vmem:[%s12714_s26 + $0x3768] sm:$0xff]  ;;  %v11875_v2 = vpack.c.bf16 %v2098_v55, %v2097_v33  ;;  %v2201_v53 = vld [vmem:[%s12714_s26 + $0x39a0] sm:$0xff]  ;;  %v11921_v33 = vpack.c.bf16 %v2170_v32, %v2169_v31 }
 0x3e8   : > { %11856 = vmatpush3.bf16.msra.mxu0 %v11855_v62  ;;  %v11907_v57 = vpack.c.bf16 %v2130_v47, %v2129_v56  ;;  %v2202_v48 = vld [vmem:[%s12714_s26 + $0x39a8] sm:$0xff]  ;;  %v2153_v55 = vld [vmem:[%s12714_s26 + $0x3820] sm:$0xff]  ;;  %v2171_v47 = vld [vmem:[%s12714_s26 + $0x38b0] sm:$0xff] }
 0x3e9   : > { %11888 = vmatpush3.bf16.msra.mxu1 %v11887_v54  ;;  %11858 = vmatprep.subr.bf16.mxu0 %v11857_v0  ;;  %v2147_v54 = vld [vmem:[%s12714_s26 + $0x37f0] sm:$0xff]  ;;  %v2148_v0 = vld [vmem:[%s12714_s26 + $0x37f8] sm:$0xff]  ;;  %v2185_v56 = vld [vmem:[%s12714_s26 + $0x3920] sm:$0xff] }
 0x3ea   : > { %11890 = vmatprep.subr.bf16.mxu1 %v11889_v59  ;;  %v353_v59 = vld [vmem:[#allocation3 + $0xe0] sm:$0xff] }
 0x3eb   : > { %v2913_v5 = vcombine.high %v353_v59, %v353_v59  ;;  %v14907_v30 = vrot.slane %v353_v59, %v12766_v13  ;;  %v2188_v59 = vld [vmem:[%s12714_s26 + $0x3938] sm:$0xff] }
 0x3ec   : > { %11860 = vmatpush3.bf16.msra.mxu0 %v11859_v9  ;;  %v2131_v9 = vld [vmem:[%s12714_s26 + $0x3770] sm:$0xff] }
 0x3ed   : > { %11892 = vmatpush3.bf16.msra.mxu1 %v11891_v10  ;;  %11862 = vmatprep.subr.bf16.mxu0 %v11861_v14  ;;  %v11909_v14 = vpack.c.bf16 %v2148_v0, %v2147_v54  ;;  %v11911_v26 = vpack.c.bf16 %v2132_v16, %v2131_v9  ;;  %v14912_v36 = vrot.slane %v2913_v5, %v12766_v13  ;;  %v2155_v0 = vld [vmem:[%s12714_s26 + $0x3830] sm:$0xff]  ;;  %v2158_v16 = vld [vmem:[%s12714_s26 + $0x3848] sm:$0xff]  ;;  %v2176_v5 = vld [vmem:[%s12714_s26 + $0x38d8] sm:$0xff] }
 0x3ee   : > { %11894 = vmatprep.subr.bf16.mxu1 %v11893_v17  ;;  %v2197_v17 = vld [vmem:[%s12714_s26 + $0x3980] sm:$0xff]  ;;  %v2928_v34 = vcombine.high %v14907_v30, %v14907_v30  ;;  %v11925_v54 = vpack.c.bf16 %v2172_v63, %v2171_v47 }
 0x3ef   : > { %v11945_v27 = vpack.c.bf16 %v2198_v4, %v2197_v17  ;;  %v2190_v17 = vld [vmem:[%s12714_s26 + $0x3948] sm:$0xff]  ;;  %v2175_v4 = vld [vmem:[%s12714_s26 + $0x38d0] sm:$0xff] }
 0x3f0   : > { %11864 = vmatpush3.bf16.msra.mxu0 %v11863_v23  ;;  %v2149_v23 = vld [vmem:[%s12714_s26 + $0x3800] sm:$0xff] }
 0x3f1   : > { %11896 = vmatpush3.bf16.msra.mxu1 %v11895_v24  ;;  %11866 = vmatprep.subr.bf16.mxu0 %v11865_v21  ;;  %v2150_v24 = vld [vmem:[%s12714_s26 + $0x3808] sm:$0xff]  ;;  %v2181_v21 = vld [vmem:[%s12714_s26 + $0x3900] sm:$0xff] }
 0x3f2   : > { %11898 = vmatprep.subr.bf16.mxu1 %v11897_v18  ;;  %v2168_v18 = vld [vmem:[%s12714_s26 + $0x3898] sm:$0xff]  ;;  %v11915_v39 = vpack.c.bf16 %v2150_v24, %v2149_v23  ;;  %v11963_v23 = vpack.c.bf16 %v2190_v17, %v2189_v11  ;;  %v11933_v24 = vpack.c.bf16 %v2176_v5, %v2175_v4  ;;  %v2231_v11 = vld [vmem:[%s12714_s26 + $0x3a90] sm:$0xff] }
 0x3f3   : > { %v2263_v4 = vld [vmem:[%s12714_s26 + $0x3b90] sm:$0xff]  ;;  %v2264_v5 = vld [vmem:[%s12714_s26 + $0x3b98] sm:$0xff] }
 0x3f4   : > { %11868 = vmatpush3.bf16.msra.mxu0 %v11867_v35  ;;  %v11947_v35 = vpack.c.bf16 %v2182_v28, %v2181_v21  ;;  %v2159_v21 = vld [vmem:[%s12714_s26 + $0x3850] sm:$0xff] }
 0x3f5   : > { %11900 = vmatpush3.bf16.msra.mxu1 %v11899_v37  ;;  %11870 = vmatprep.subr.bf16.mxu0 %v11869_v42  ;;  %v11917_v37 = vpack.c.bf16 %v2168_v18, %v2167_v29  ;;  %v2151_v42 = vld [vmem:[%s12714_s26 + $0x3810] sm:$0xff]  ;;  %v2192_v18 = vld [vmem:[%s12714_s26 + $0x3958] sm:$0xff] }
 0x3f6   : > { %v9285_v44 = vpop.f32.mrb[40].mxu0  ;;  %11902 = vmatprep.subr.bf16.mxu1 %v11901_v41  ;;  %v2184_v41 = vld [vmem:[%s12714_s26 + $0x3918] sm:$0xff]  ;;  %v2191_v28 = vld [vmem:[%s12714_s26 + $0x3950] sm:$0xff] }
 0x3f7   : > { %v9286_v61 = vpop.f32.mrb[41].mxu0  ;;  %v9320_v62 = vpop.f32.mrb[40].mxu1 }
 0x3f8   : > { %v9287_v1 = vadd.f32 %v9286_v61, %v9285_v44  ;;  %11872 = vmatpush3.bf16.msra.mxu0 %v11871_v49  ;;  %v9321_v58 = vpop.f32.mrb[41].mxu1  ;;  %v2929_v49 = vcombine.high %v14912_v36, %v14912_v36  ;;  %v11953_v44 = vpack.c.bf16 %v2202_v48, %v2201_v53  ;;  %v2179_v53 = vld [vmem:[%s12714_s26 + $0x38f0] sm:$0xff]  ;;  %v2180_v48 = vld [vmem:[%s12714_s26 + $0x38f8] sm:$0xff] }
 0x3f9   : > { %v9322_v60 = vadd.f32 %v9321_v58, %v9320_v62  ;;  %11904 = vmatpush3.bf16.msra.mxu1 %v11903_v50  ;;  %11874 = vmatprep.subr.bf16.mxu0 %v11873_v38  ;;  %v11919_v50 = vpack.c.bf16 %v2152_v25, %v2151_v42  ;;  %v11951_v38 = vpack.c.bf16 %v2184_v41, %v2183_v52  ;;  %v2187_v58 = vld [vmem:[%s12714_s26 + $0x3930] sm:$0xff]  ;;  %v2161_v52 = vld [vmem:[%s12714_s26 + $0x3860] sm:$0xff] }
 0x3fa   : > { %v5976_v10 = vadd.f32 %v9287_v1, %v14819_v22  ;;  %11906 = vmatprep.subr.bf16.mxu1 %v11905_v46  ;;  %v11879_v22 = vpack.c.bf16 %v2100_v8, %v2099_v6  ;;  %v2186_v46 = vld [vmem:[%s12714_s26 + $0x3928] sm:$0xff]  ;;  %v2156_v1 = vld [vmem:[%s12714_s26 + $0x3838] sm:$0xff]  ;;  %v11959_v9 = vpack.c.bf16 %v2188_v59, %v2187_v58  ;;  %v11967_v42 = vpack.c.bf16 %v2192_v18, %v2191_v28  ;;  %v2193_v41 = vld [vmem:[%s12714_s26 + $0x3960] sm:$0xff] }
 0x3fb   : > { %v11955_v62 = vpack.c.bf16 %v2186_v46, %v2185_v56  ;;  %v2206_v6 = vld [vmem:[%s12714_s26 + $0x39c8] sm:$0xff]  ;;  %v11927_v8 = vpack.c.bf16 %v2156_v1, %v2155_v0  ;;  %v11937_v25 = vpack.c.bf16 %v2178_v19, %v2177_v15  ;;  %v11941_v63 = vpack.c.bf16 %v2180_v48, %v2179_v53  ;;  %v2196_v0 = vld [vmem:[%s12714_s26 + $0x3978] sm:$0xff]  ;;  %v2229_v1 = vld [vmem:[%s12714_s26 + $0x3a80] sm:$0xff] }
 0x3fc   : > { %v14898_v7 = vadd.f32 %v9322_v60, %v5976_v10  ;;  %11876 = vmatpush3.bf16.msra.mxu0 %v11875_v2  ;;  %v2173_v60 = vld [vmem:[%s12714_s26 + $0x38c0] sm:$0xff]  ;;  %v2230_v58 = vld [vmem:[%s12714_s26 + $0x3a88] sm:$0xff]  ;;  %v12013_v28 = vpack.c.bf16 %v2264_v5, %v2263_v4  ;;  %v2236_v53 = vld [vmem:[%s12714_s26 + $0x3ab8] sm:$0xff] }
 0x3fd   : > { %11908 = vmatpush3.bf16.msra.mxu1 %v11907_v57  ;;  %11878 = vmatprep.subr.bf16.mxu0 %v11877_v12  ;;  %v2174_v57 = vld [vmem:[%s12714_s26 + $0x38c8] sm:$0xff]  ;;  %v2205_v12 = vld [vmem:[%s12714_s26 + $0x39c0] sm:$0xff]  ;;  %v2268_v48 = vld [vmem:[%s12714_s26 + $0x3bb8] sm:$0xff] }
 0x3fe   : > { %11910 = vmatprep.subr.bf16.mxu1 %v11909_v14  ;;  %v11929_v10 = vpack.c.bf16 %v2174_v57, %v2173_v60  ;;  %v2157_v14 = vld [vmem:[%s12714_s26 + $0x3840] sm:$0xff]  ;;  %v11961_v3 = vpack.c.bf16 %v2206_v6, %v2205_v12  ;;  %v2262_v59 = vld [vmem:[%s12714_s26 + $0x3b88] sm:$0xff]  ;;  %v11977_v6 = vpack.c.bf16 %v2230_v58, %v2229_v1 }
 0x3ff   : > { %v2233_v18 = vld [vmem:[%s12714_s26 + $0x3aa0] sm:$0xff]  ;;  %v2234_v15 = vld [vmem:[%s12714_s26 + $0x3aa8] sm:$0xff] }
 0x400   : > { %11880 = vmatpush3.bf16.msra.mxu0 %v11879_v22  ;;  %v2207_v22 = vld [vmem:[%s12714_s26 + $0x39d0] sm:$0xff]  ;;  %v2253_v1 = vld [vmem:[%s12714_s26 + $0x3b40] sm:$0xff]  ;;  %v2242_v5 = vld [vmem:[%s12714_s26 + $0x3ae8] sm:$0xff] }
 0x401   : > { %11912 = vmatpush3.bf16.msra.mxu1 %v11911_v26  ;;  %11914 = vmatprep.subr.bf16.mxu0 %v11913_v20  ;;  %v2208_v26 = vld [vmem:[%s12714_s26 + $0x39d8] sm:$0xff]  ;;  %v11931_v20 = vpack.c.bf16 %v2158_v16, %v2157_v14  ;;  %v2246_v16 = vld [vmem:[%s12714_s26 + $0x3b08] sm:$0xff]  ;;  %v2241_v4 = vld [vmem:[%s12714_s26 + $0x3ae0] sm:$0xff] }
 0x402   : > { %11946 = vmatprep.subr.bf16.mxu1 %v11945_v27  ;;  %v2160_v27 = vld [vmem:[%s12714_s26 + $0x3858] sm:$0xff]  ;;  %v11965_v29 = vpack.c.bf16 %v2208_v26, %v2207_v22 }
 0x403   : > { %6954 = vmatmul.mubr.f32.vlgmr.msra.gmra.mrb[54].mxu0 %v14828_v43  ;;  %v2154_v43 = vld [vmem:[%s12714_s26 + $0x3828] sm:$0xff] }
 0x404   : > { %11916 = vmatpush3.bf16.msra.mxu0 %v11915_v39  ;;  %7024 = vmatmul.mubr.f32.vlgmr.msra.gmra.mrb[54].mxu1 %v14833_v51  ;;  %v2203_v51 = vld [vmem:[%s12714_s26 + $0x39b0] sm:$0xff]  ;;  %v11923_v61 = vpack.c.bf16 %v2154_v43, %v2153_v55  ;;  %v2209_v39 = vld [vmem:[%s12714_s26 + $0x39e0] sm:$0xff] }
 0x405   : > { %11948 = vmatpush3.bf16.msra.mxu1 %v11947_v35  ;;  %11918 = vmatprep.subr.bf16.mxu0 %v11917_v37  ;;  %v11957_v2 = vpack.c.bf16 %v2204_v45, %v2203_v51  ;;  %v2210_v35 = vld [vmem:[%s12714_s26 + $0x39e8] sm:$0xff]  ;;  %v11935_v37 = vpack.c.bf16 %v2160_v27, %v2159_v21  ;;  %v2163_v51 = vld [vmem:[%s12714_s26 + $0x3870] sm:$0xff]  ;;  %v2164_v45 = vld [vmem:[%s12714_s26 + $0x3878] sm:$0xff] }
 0x406   : > { %11950 = vmatprep.subr.bf16.mxu1 %v11949_v40  ;;  %7093 = vmatprep.mubr.f32.mxu0 %v2928_v34  ;;  %v2162_v40 = vld [vmem:[%s12714_s26 + $0x3868] sm:$0xff]  ;;  %v11969_v32 = vpack.c.bf16 %v2210_v35, %v2209_v39  ;;  %v2216_v21 = vld [vmem:[%s12714_s26 + $0x3a18] sm:$0xff]  ;;  %v2247_v27 = vld [vmem:[%s12714_s26 + $0x3b10] sm:$0xff] }
 0x407   : > { %7163 = vmatprep.mubr.f32.mxu1 %v2929_v49  ;;  %v2194_v34 = vld [vmem:[%s12714_s26 + $0x3968] sm:$0xff]  ;;  %v11939_v56 = vpack.c.bf16 %v2162_v40, %v2161_v52  ;;  %v2265_v39 = vld [vmem:[%s12714_s26 + $0x3ba0] sm:$0xff]  ;;  %v11985_v52 = vpack.c.bf16 %v2234_v15, %v2233_v18 }
 0x408   : > { %11920 = vmatpush3.bf16.msra.mxu0 %v11919_v50  ;;  %v11971_v47 = vpack.c.bf16 %v2194_v34, %v2193_v41  ;;  %v2266_v35 = vld [vmem:[%s12714_s26 + $0x3ba8] sm:$0xff]  ;;  %v2217_v40 = vld [vmem:[%s12714_s26 + $0x3a20] sm:$0xff]  ;;  %v2235_v34 = vld [vmem:[%s12714_s26 + $0x3ab0] sm:$0xff] }
 0x409   : > { %11952 = vmatpush3.bf16.msra.mxu1 %v11951_v38  ;;  %11922 = vmatprep.subr.bf16.mxu0 %v11921_v33  ;;  %v2211_v38 = vld [vmem:[%s12714_s26 + $0x39f0] sm:$0xff]  ;;  %v2212_v33 = vld [vmem:[%s12714_s26 + $0x39f8] sm:$0xff]  ;;  %v2249_v41 = vld [vmem:[%s12714_s26 + $0x3b20] sm:$0xff] }
 0x40a   : > { %11954 = vmatprep.subr.bf16.mxu1 %v11953_v44  ;;  %v354_v44 = vld [vmem:[#allocation3 + $0xe8] sm:$0xff] }
 0x40b   : > { %v2930_v60 = vcombine.high %v354_v44, %v354_v44  ;;  %v14986_v17 = vrot.slane %v354_v44, %v12766_v13  ;;  %v2252_v44 = vld [vmem:[%s12714_s26 + $0x3b38] sm:$0xff] }
 0x40c   : > { %11924 = vmatpush3.bf16.msra.mxu0 %v11923_v61  ;;  %v2195_v61 = vld [vmem:[%s12714_s26 + $0x3970] sm:$0xff] }
 0x40d   : > { %11956 = vmatpush3.bf16.msra.mxu1 %v11955_v62  ;;  %11926 = vmatprep.subr.bf16.mxu0 %v11925_v54  ;;  %v11973_v54 = vpack.c.bf16 %v2212_v33, %v2211_v38  ;;  %v11975_v12 = vpack.c.bf16 %v2196_v0, %v2195_v61  ;;  %v14991_v22 = vrot.slane %v2930_v60, %v12766_v13  ;;  %v2219_v33 = vld [vmem:[%s12714_s26 + $0x3a30] sm:$0xff]  ;;  %v2222_v0 = vld [vmem:[%s12714_s26 + $0x3a48] sm:$0xff]  ;;  %v2240_v60 = vld [vmem:[%s12714_s26 + $0x3ad8] sm:$0xff] }
 0x40e   : > { %11958 = vmatprep.subr.bf16.mxu1 %v11957_v2  ;;  %v2261_v2 = vld [vmem:[%s12714_s26 + $0x3b80] sm:$0xff]  ;;  %v2945_v19 = vcombine.high %v14986_v17, %v14986_v17  ;;  %v11989_v38 = vpack.c.bf16 %v2236_v53, %v2235_v34 }
 0x40f   : > { %v12009_v14 = vpack.c.bf16 %v2262_v59, %v2261_v2  ;;  %v2254_v2 = vld [vmem:[%s12714_s26 + $0x3b48] sm:$0xff]  ;;  %v2239_v59 = vld [vmem:[%s12714_s26 + $0x3ad0] sm:$0xff] }
 0x410   : > { %11928 = vmatpush3.bf16.msra.mxu0 %v11927_v8  ;;  %v2213_v8 = vld [vmem:[%s12714_s26 + $0x3a00] sm:$0xff] }
 0x411   : > { %11960 = vmatpush3.bf16.msra.mxu1 %v11959_v9  ;;  %11930 = vmatprep.subr.bf16.mxu0 %v11929_v10  ;;  %v2214_v9 = vld [vmem:[%s12714_s26 + $0x3a08] sm:$0xff]  ;;  %v2245_v10 = vld [vmem:[%s12714_s26 + $0x3b00] sm:$0xff] }
 0x412   : > { %11962 = vmatprep.subr.bf16.mxu1 %v11961_v3  ;;  %v2232_v3 = vld [vmem:[%s12714_s26 + $0x3a98] sm:$0xff]  ;;  %v11979_v26 = vpack.c.bf16 %v2214_v9, %v2213_v8  ;;  %v12027_v8 = vpack.c.bf16 %v2254_v2, %v2253_v1  ;;  %v11997_v9 = vpack.c.bf16 %v2240_v60, %v2239_v59  ;;  %v2295_v1 = vld [vmem:[%s12714_s26 + $0x3c90] sm:$0xff] }
 0x413   : > { %v2327_v59 = vld [vmem:[%s12714_s26 + $0x3d90] sm:$0xff]  ;;  %v2328_v60 = vld [vmem:[%s12714_s26 + $0x3d98] sm:$0xff] }
 0x414   : > { %11932 = vmatpush3.bf16.msra.mxu0 %v11931_v20  ;;  %v12011_v20 = vpack.c.bf16 %v2246_v16, %v2245_v10  ;;  %v2223_v10 = vld [vmem:[%s12714_s26 + $0x3a50] sm:$0xff] }
 0x415   : > { %11964 = vmatpush3.bf16.msra.mxu1 %v11963_v23  ;;  %11934 = vmatprep.subr.bf16.mxu0 %v11933_v24  ;;  %v11981_v23 = vpack.c.bf16 %v2232_v3, %v2231_v11  ;;  %v2215_v24 = vld [vmem:[%s12714_s26 + $0x3a10] sm:$0xff]  ;;  %v2256_v3 = vld [vmem:[%s12714_s26 + $0x3b58] sm:$0xff] }
 0x416   : > { %v9355_v31 = vpop.f32.mrb[42].mxu0  ;;  %11966 = vmatprep.subr.bf16.mxu1 %v11965_v29  ;;  %v2248_v29 = vld [vmem:[%s12714_s26 + $0x3b18] sm:$0xff]  ;;  %v2255_v16 = vld [vmem:[%s12714_s26 + $0x3b50] sm:$0xff] }
 0x417   : > { %v9356_v49 = vpop.f32.mrb[43].mxu0  ;;  %v9390_v50 = vpop.f32.mrb[42].mxu1 }
 0x418   : > { %v9357_v55 = vadd.f32 %v9356_v49, %v9355_v31  ;;  %11936 = vmatpush3.bf16.msra.mxu0 %v11935_v37  ;;  %v9391_v43 = vpop.f32.mrb[43].mxu1  ;;  %v2946_v37 = vcombine.high %v14991_v22, %v14991_v22  ;;  %v12017_v31 = vpack.c.bf16 %v2266_v35, %v2265_v39  ;;  %v2243_v39 = vld [vmem:[%s12714_s26 + $0x3af0] sm:$0xff]  ;;  %v2244_v35 = vld [vmem:[%s12714_s26 + $0x3af8] sm:$0xff] }
 0x419   : > { %v9392_v46 = vadd.f32 %v9391_v43, %v9390_v50  ;;  %11968 = vmatpush3.bf16.msra.mxu1 %v11967_v42  ;;  %11938 = vmatprep.subr.bf16.mxu0 %v11937_v25  ;;  %v11983_v42 = vpack.c.bf16 %v2216_v21, %v2215_v24  ;;  %v12015_v25 = vpack.c.bf16 %v2248_v29, %v2247_v27  ;;  %v2251_v43 = vld [vmem:[%s12714_s26 + $0x3b30] sm:$0xff]  ;;  %v2225_v27 = vld [vmem:[%s12714_s26 + $0x3a60] sm:$0xff] }
 0x41a   : > { %v6116_v62 = vadd.f32 %v9357_v55, %v14898_v7  ;;  %11970 = vmatprep.subr.bf16.mxu1 %v11969_v32  ;;  %v11943_v7 = vpack.c.bf16 %v2164_v45, %v2163_v51  ;;  %v2250_v32 = vld [vmem:[%s12714_s26 + $0x3b28] sm:$0xff]  ;;  %v2220_v55 = vld [vmem:[%s12714_s26 + $0x3a38] sm:$0xff]  ;;  %v12023_v61 = vpack.c.bf16 %v2252_v44, %v2251_v43  ;;  %v12031_v24 = vpack.c.bf16 %v2256_v3, %v2255_v16  ;;  %v2257_v29 = vld [vmem:[%s12714_s26 + $0x3b60] sm:$0xff] }
 0x41b   : > { %v12019_v50 = vpack.c.bf16 %v2250_v32, %v2249_v41  ;;  %v2270_v51 = vld [vmem:[%s12714_s26 + $0x3bc8] sm:$0xff]  ;;  %v11991_v45 = vpack.c.bf16 %v2220_v55, %v2219_v33  ;;  %v12001_v21 = vpack.c.bf16 %v2242_v5, %v2241_v4  ;;  %v12005_v53 = vpack.c.bf16 %v2244_v35, %v2243_v39  ;;  %v2260_v33 = vld [vmem:[%s12714_s26 + $0x3b78] sm:$0xff]  ;;  %v2293_v55 = vld [vmem:[%s12714_s26 + $0x3c80] sm:$0xff] }
 0x41c   : > { %v14977_v57 = vadd.f32 %v9392_v46, %v6116_v62  ;;  %11940 = vmatpush3.bf16.msra.mxu0 %v11939_v56  ;;  %v2237_v46 = vld [vmem:[%s12714_s26 + $0x3ac0] sm:$0xff]  ;;  %v2294_v43 = vld [vmem:[%s12714_s26 + $0x3c88] sm:$0xff]  ;;  %v12077_v16 = vpack.c.bf16 %v2328_v60, %v2327_v59  ;;  %v2300_v39 = vld [vmem:[%s12714_s26 + $0x3cb8] sm:$0xff] }
 0x41d   : > { %11972 = vmatpush3.bf16.msra.mxu1 %v11971_v47  ;;  %11942 = vmatprep.subr.bf16.mxu0 %v11941_v63  ;;  %v2238_v47 = vld [vmem:[%s12714_s26 + $0x3ac8] sm:$0xff]  ;;  %v2269_v63 = vld [vmem:[%s12714_s26 + $0x3bc0] sm:$0xff]  ;;  %v2332_v35 = vld [vmem:[%s12714_s26 + $0x3db8] sm:$0xff] }
 0x41e   : > { %11974 = vmatprep.subr.bf16.mxu1 %v11973_v54  ;;  %v11993_v62 = vpack.c.bf16 %v2238_v47, %v2237_v46  ;;  %v2221_v54 = vld [vmem:[%s12714_s26 + $0x3a40] sm:$0xff]  ;;  %v12025_v58 = vpack.c.bf16 %v2270_v51, %v2269_v63  ;;  %v2326_v44 = vld [vmem:[%s12714_s26 + $0x3d88] sm:$0xff]  ;;  %v12041_v51 = vpack.c.bf16 %v2294_v43, %v2293_v55 }
 0x41f   : > { %v2297_v3 = vld [vmem:[%s12714_s26 + $0x3ca0] sm:$0xff]  ;;  %v2298_v4 = vld [vmem:[%s12714_s26 + $0x3ca8] sm:$0xff] }
 0x420   : > { %11944 = vmatpush3.bf16.msra.mxu0 %v11943_v7  ;;  %v2271_v7 = vld [vmem:[%s12714_s26 + $0x3bd0] sm:$0xff]  ;;  %v2317_v55 = vld [vmem:[%s12714_s26 + $0x3d40] sm:$0xff]  ;;  %v2306_v60 = vld [vmem:[%s12714_s26 + $0x3ce8] sm:$0xff] }
 0x421   : > { %11976 = vmatpush3.bf16.msra.mxu1 %v11975_v12  ;;  %11978 = vmatprep.subr.bf16.mxu0 %v11977_v6  ;;  %v2272_v12 = vld [vmem:[%s12714_s26 + $0x3bd8] sm:$0xff]  ;;  %v11995_v6 = vpack.c.bf16 %v2222_v0, %v2221_v54  ;;  %v2310_v0 = vld [vmem:[%s12714_s26 + $0x3d08] sm:$0xff]  ;;  %v2305_v59 = vld [vmem:[%s12714_s26 + $0x3ce0] sm:$0xff] }
 0x422   : > { %12010 = vmatprep.subr.bf16.mxu1 %v12009_v14  ;;  %v2224_v14 = vld [vmem:[%s12714_s26 + $0x3a58] sm:$0xff]  ;;  %v12029_v11 = vpack.c.bf16 %v2272_v12, %v2271_v7 }
 0x423   : > { %7094 = vmatmul.mubr.f32.vlgmr.msra.gmra.mrb[56].mxu0 %v14907_v30  ;;  %v2218_v30 = vld [vmem:[%s12714_s26 + $0x3a28] sm:$0xff] }
 0x424   : > { %11980 = vmatpush3.bf16.msra.mxu0 %v11979_v26  ;;  %7164 = vmatmul.mubr.f32.vlgmr.msra.gmra.mrb[56].mxu1 %v14912_v36  ;;  %v2267_v36 = vld [vmem:[%s12714_s26 + $0x3bb0] sm:$0xff]  ;;  %v11987_v49 = vpack.c.bf16 %v2218_v30, %v2217_v40  ;;  %v2273_v26 = vld [vmem:[%s12714_s26 + $0x3be0] sm:$0xff] }
 0x425   : > { %12012 = vmatpush3.bf16.msra.mxu1 %v12011_v20  ;;  %11982 = vmatprep.subr.bf16.mxu0 %v11981_v23  ;;  %v12021_v56 = vpack.c.bf16 %v2268_v48, %v2267_v36  ;;  %v2274_v20 = vld [vmem:[%s12714_s26 + $0x3be8] sm:$0xff]  ;;  %v11999_v23 = vpack.c.bf16 %v2224_v14, %v2223_v10  ;;  %v2227_v36 = vld [vmem:[%s12714_s26 + $0x3a70] sm:$0xff]  ;;  %v2228_v48 = vld [vmem:[%s12714_s26 + $0x3a78] sm:$0xff] }
 0x426   : > { %12014 = vmatprep.subr.bf16.mxu1 %v12013_v28  ;;  %7233 = vmatprep.mubr.f32.mxu0 %v2945_v19  ;;  %v2226_v28 = vld [vmem:[%s12714_s26 + $0x3a68] sm:$0xff]  ;;  %v12033_v15 = vpack.c.bf16 %v2274_v20, %v2273_v26  ;;  %v2280_v10 = vld [vmem:[%s12714_s26 + $0x3c18] sm:$0xff]  ;;  %v2311_v14 = vld [vmem:[%s12714_s26 + $0x3d10] sm:$0xff] }
 0x427   : > { %7303 = vmatprep.mubr.f32.mxu1 %v2946_v37  ;;  %v2258_v19 = vld [vmem:[%s12714_s26 + $0x3b68] sm:$0xff]  ;;  %v12003_v41 = vpack.c.bf16 %v2226_v28, %v2225_v27  ;;  %v2329_v26 = vld [vmem:[%s12714_s26 + $0x3da0] sm:$0xff]  ;;  %v12049_v27 = vpack.c.bf16 %v2298_v4, %v2297_v3 }
 0x428   : > { %11984 = vmatpush3.bf16.msra.mxu0 %v11983_v42  ;;  %v12035_v34 = vpack.c.bf16 %v2258_v19, %v2257_v29  ;;  %v2330_v20 = vld [vmem:[%s12714_s26 + $0x3da8] sm:$0xff]  ;;  %v2281_v28 = vld [vmem:[%s12714_s26 + $0x3c20] sm:$0xff]  ;;  %v2299_v19 = vld [vmem:[%s12714_s26 + $0x3cb0] sm:$0xff] }
 0x429   : > { %12016 = vmatpush3.bf16.msra.mxu1 %v12015_v25  ;;  %11986 = vmatprep.subr.bf16.mxu0 %v11985_v52  ;;  %v2275_v25 = vld [vmem:[%s12714_s26 + $0x3bf0] sm:$0xff]  ;;  %v2276_v52 = vld [vmem:[%s12714_s26 + $0x3bf8] sm:$0xff]  ;;  %v2313_v29 = vld [vmem:[%s12714_s26 + $0x3d20] sm:$0xff] }
 0x42a   : > { %12018 = vmatprep.subr.bf16.mxu1 %v12017_v31  ;;  %v355_v31 = vld [vmem:[#allocation3 + $0xf0] sm:$0xff] }
 0x42b   : > { %v2947_v46 = vcombine.high %v355_v31, %v355_v31  ;;  %v15065_v2 = vrot.slane %v355_v31, %v12766_v13  ;;  %v2316_v31 = vld [vmem:[%s12714_s26 + $0x3d38] sm:$0xff] }
 0x42c   : > { %11988 = vmatpush3.bf16.msra.mxu0 %v11987_v49  ;;  %v2259_v49 = vld [vmem:[%s12714_s26 + $0x3b70] sm:$0xff] }
 0x42d   : > { %12020 = vmatpush3.bf16.msra.mxu1 %v12019_v50  ;;  %11990 = vmatprep.subr.bf16.mxu0 %v11989_v38  ;;  %v12037_v38 = vpack.c.bf16 %v2276_v52, %v2275_v25  ;;  %v12039_v63 = vpack.c.bf16 %v2260_v33, %v2259_v49  ;;  %v15070_v7 = vrot.slane %v2947_v46, %v12766_v13  ;;  %v2283_v52 = vld [vmem:[%s12714_s26 + $0x3c30] sm:$0xff]  ;;  %v2286_v33 = vld [vmem:[%s12714_s26 + $0x3c48] sm:$0xff]  ;;  %v2304_v46 = vld [vmem:[%s12714_s26 + $0x3cd8] sm:$0xff] }
 0x42e   : > { %12022 = vmatprep.subr.bf16.mxu1 %v12021_v56  ;;  %v2325_v56 = vld [vmem:[%s12714_s26 + $0x3d80] sm:$0xff]  ;;  %v2962_v5 = vcombine.high %v15065_v2, %v15065_v2  ;;  %v12053_v25 = vpack.c.bf16 %v2300_v39, %v2299_v19 }
 0x42f   : > { %v12073_v54 = vpack.c.bf16 %v2326_v44, %v2325_v56  ;;  %v2318_v56 = vld [vmem:[%s12714_s26 + $0x3d48] sm:$0xff]  ;;  %v2303_v44 = vld [vmem:[%s12714_s26 + $0x3cd0] sm:$0xff] }
 0x430   : > { %11992 = vmatpush3.bf16.msra.mxu0 %v11991_v45  ;;  %v2277_v45 = vld [vmem:[%s12714_s26 + $0x3c00] sm:$0xff] }
 0x431   : > { %12024 = vmatpush3.bf16.msra.mxu1 %v12023_v61  ;;  %11994 = vmatprep.subr.bf16.mxu0 %v11993_v62  ;;  %v2278_v61 = vld [vmem:[%s12714_s26 + $0x3c08] sm:$0xff]  ;;  %v2309_v62 = vld [vmem:[%s12714_s26 + $0x3d00] sm:$0xff] }
 0x432   : > { %12026 = vmatprep.subr.bf16.mxu1 %v12025_v58  ;;  %v2296_v58 = vld [vmem:[%s12714_s26 + $0x3c98] sm:$0xff]  ;;  %v12043_v12 = vpack.c.bf16 %v2278_v61, %v2277_v45  ;;  %v12091_v45 = vpack.c.bf16 %v2318_v56, %v2317_v55  ;;  %v12061_v61 = vpack.c.bf16 %v2304_v46, %v2303_v44  ;;  %v2359_v55 = vld [vmem:[%s12714_s26 + $0x3e90] sm:$0xff] }
 0x433   : > { %v2391_v44 = vld [vmem:[%s12714_s26 + $0x3f90] sm:$0xff]  ;;  %v2392_v46 = vld [vmem:[%s12714_s26 + $0x3f98] sm:$0xff] }
 0x434   : > { %11996 = vmatpush3.bf16.msra.mxu0 %v11995_v6  ;;  %v12075_v6 = vpack.c.bf16 %v2310_v0, %v2309_v62  ;;  %v2287_v62 = vld [vmem:[%s12714_s26 + $0x3c50] sm:$0xff] }
 0x435   : > { %12028 = vmatpush3.bf16.msra.mxu1 %v12027_v8  ;;  %11998 = vmatprep.subr.bf16.mxu0 %v11997_v9  ;;  %v12045_v8 = vpack.c.bf16 %v2296_v58, %v2295_v1  ;;  %v2279_v9 = vld [vmem:[%s12714_s26 + $0x3c10] sm:$0xff]  ;;  %v2320_v58 = vld [vmem:[%s12714_s26 + $0x3d58] sm:$0xff] }
 0x436   : > { %v9425_v18 = vpop.f32.mrb[44].mxu0  ;;  %12030 = vmatprep.subr.bf16.mxu1 %v12029_v11  ;;  %v2312_v11 = vld [vmem:[%s12714_s26 + $0x3d18] sm:$0xff]  ;;  %v2319_v0 = vld [vmem:[%s12714_s26 + $0x3d50] sm:$0xff] }
 0x437   : > { %v9426_v37 = vpop.f32.mrb[45].mxu0  ;;  %v9460_v42 = vpop.f32.mrb[44].mxu1 }
 0x438   : > { %v9427_v40 = vadd.f32 %v9426_v37, %v9425_v18  ;;  %12000 = vmatpush3.bf16.msra.mxu0 %v11999_v23  ;;  %v9461_v30 = vpop.f32.mrb[45].mxu1  ;;  %v2963_v23 = vcombine.high %v15070_v7, %v15070_v7  ;;  %v12081_v18 = vpack.c.bf16 %v2330_v20, %v2329_v26  ;;  %v2307_v26 = vld [vmem:[%s12714_s26 + $0x3cf0] sm:$0xff]  ;;  %v2308_v20 = vld [vmem:[%s12714_s26 + $0x3cf8] sm:$0xff] }
 0x439   : > { %v9462_v32 = vadd.f32 %v9461_v30, %v9460_v42  ;;  %12032 = vmatpush3.bf16.msra.mxu1 %v12031_v24  ;;  %12002 = vmatprep.subr.bf16.mxu0 %v12001_v21  ;;  %v12047_v24 = vpack.c.bf16 %v2280_v10, %v2279_v9  ;;  %v12079_v21 = vpack.c.bf16 %v2312_v11, %v2311_v14  ;;  %v2315_v30 = vld [vmem:[%s12714_s26 + $0x3d30] sm:$0xff]  ;;  %v2289_v14 = vld [vmem:[%s12714_s26 + $0x3c60] sm:$0xff] }
 0x43a   : > { %v6256_v50 = vadd.f32 %v9427_v40, %v14977_v57  ;;  %12034 = vmatprep.subr.bf16.mxu1 %v12033_v15  ;;  %v12007_v57 = vpack.c.bf16 %v2228_v48, %v2227_v36  ;;  %v2314_v15 = vld [vmem:[%s12714_s26 + $0x3d28] sm:$0xff]  ;;  %v2284_v40 = vld [vmem:[%s12714_s26 + $0x3c38] sm:$0xff]  ;;  %v12087_v49 = vpack.c.bf16 %v2316_v31, %v2315_v30  ;;  %v12095_v9 = vpack.c.bf16 %v2320_v58, %v2319_v0  ;;  %v2321_v11 = vld [vmem:[%s12714_s26 + $0x3d60] sm:$0xff] }
 0x43b   : > { %v12083_v42 = vpack.c.bf16 %v2314_v15, %v2313_v29  ;;  %v2334_v36 = vld [vmem:[%s12714_s26 + $0x3dc8] sm:$0xff]  ;;  %v12055_v48 = vpack.c.bf16 %v2284_v40, %v2283_v52  ;;  %v12065_v10 = vpack.c.bf16 %v2306_v60, %v2305_v59  ;;  %v12069_v39 = vpack.c.bf16 %v2308_v20, %v2307_v26  ;;  %v2324_v52 = vld [vmem:[%s12714_s26 + $0x3d78] sm:$0xff]  ;;  %v2357_v40 = vld [vmem:[%s12714_s26 + $0x3e80] sm:$0xff] }
 0x43c   : > { %v15056_v47 = vadd.f32 %v9462_v32, %v6256_v50  ;;  %12004 = vmatpush3.bf16.msra.mxu0 %v12003_v41  ;;  %v2301_v32 = vld [vmem:[%s12714_s26 + $0x3cc0] sm:$0xff]  ;;  %v2358_v30 = vld [vmem:[%s12714_s26 + $0x3e88] sm:$0xff]  ;;  %v12141_v0 = vpack.c.bf16 %v2392_v46, %v2391_v44  ;;  %v2396_v26 = vld [vmem:[%s12714_s26 + $0x3fb8] sm:$0xff] }
 0x43d   : > { %12036 = vmatpush3.bf16.msra.mxu1 %v12035_v34  ;;  %12006 = vmatprep.subr.bf16.mxu0 %v12005_v53  ;;  %v2302_v34 = vld [vmem:[%s12714_s26 + $0x3cc8] sm:$0xff]  ;;  %v2333_v53 = vld [vmem:[%s12714_s26 + $0x3dc0] sm:$0xff] }
 0x43e   : > { %12038 = vmatprep.subr.bf16.mxu1 %v12037_v38  ;;  %v12057_v50 = vpack.c.bf16 %v2302_v34, %v2301_v32  ;;  %v2285_v38 = vld [vmem:[%s12714_s26 + $0x3c40] sm:$0xff]  ;;  %v12089_v43 = vpack.c.bf16 %v2334_v36, %v2333_v53  ;;  %v2390_v31 = vld [vmem:[%s12714_s26 + $0x3f88] sm:$0xff]  ;;  %v12105_v36 = vpack.c.bf16 %v2358_v30, %v2357_v40 }
 0x43f   : > { %v2361_v58 = vld [vmem:[%s12714_s26 + $0x3ea0] sm:$0xff]  ;;  %v2382_v30 = vld [vmem:[%s12714_s26 + $0x3f48] sm:$0xff] }
 0x440   : > { %12008 = vmatpush3.bf16.msra.mxu0 %v12007_v57  ;;  %v2335_v57 = vld [vmem:[%s12714_s26 + $0x3dd0] sm:$0xff]  ;;  %v2393_v60 = vld [vmem:[%s12714_s26 + $0x3fa0] sm:$0xff]  ;;  %v2370_v44 = vld [vmem:[%s12714_s26 + $0x3ee8] sm:$0xff] }
 0x441   : > { %12040 = vmatpush3.bf16.msra.mxu1 %v12039_v63  ;;  %12042 = vmatprep.subr.bf16.mxu0 %v12041_v51  ;;  %v2336_v63 = vld [vmem:[%s12714_s26 + $0x3dd8] sm:$0xff]  ;;  %v12059_v51 = vpack.c.bf16 %v2286_v33, %v2285_v38  ;;  %v2374_v33 = vld [vmem:[%s12714_s26 + $0x3f08] sm:$0xff]  ;;  %v2401_v46 = vld [vmem:[%s12714_s26 + $0x3fe0] sm:$0xff] }
 0x442   : > { %12074 = vmatprep.subr.bf16.mxu1 %v12073_v54  ;;  %v2288_v54 = vld [vmem:[%s12714_s26 + $0x3c58] sm:$0xff]  ;;  %v12093_v1 = vpack.c.bf16 %v2336_v63, %v2335_v57 }
 0x443   : > { %7234 = vmatmul.mubr.f32.vlgmr.msra.gmra.mrb[58].mxu0 %v14986_v17  ;;  %v2282_v17 = vld [vmem:[%s12714_s26 + $0x3c28] sm:$0xff] }
 0x444   : > { %12044 = vmatpush3.bf16.msra.mxu0 %v12043_v12  ;;  %7304 = vmatmul.mubr.f32.vlgmr.msra.gmra.mrb[58].mxu1 %v14991_v22  ;;  %v2331_v22 = vld [vmem:[%s12714_s26 + $0x3db0] sm:$0xff]  ;;  %v12051_v37 = vpack.c.bf16 %v2282_v17, %v2281_v28  ;;  %v2337_v12 = vld [vmem:[%s12714_s26 + $0x3de0] sm:$0xff] }
 0x445   : > { %12076 = vmatpush3.bf16.msra.mxu1 %v12075_v6  ;;  %12046 = vmatprep.subr.bf16.mxu0 %v12045_v8  ;;  %v12085_v41 = vpack.c.bf16 %v2332_v35, %v2331_v22  ;;  %v2338_v6 = vld [vmem:[%s12714_s26 + $0x3de8] sm:$0xff]  ;;  %v12063_v8 = vpack.c.bf16 %v2288_v54, %v2287_v62  ;;  %v2291_v22 = vld [vmem:[%s12714_s26 + $0x3c70] sm:$0xff]  ;;  %v2292_v35 = vld [vmem:[%s12714_s26 + $0x3c78] sm:$0xff] }
 0x446   : > { %12078 = vmatprep.subr.bf16.mxu1 %v12077_v16  ;;  %7373 = vmatprep.mubr.f32.mxu0 %v2962_v5  ;;  %v2290_v16 = vld [vmem:[%s12714_s26 + $0x3c68] sm:$0xff]  ;;  %v12097_v4 = vpack.c.bf16 %v2338_v6, %v2337_v12  ;;  %v2344_v62 = vld [vmem:[%s12714_s26 + $0x3e18] sm:$0xff]  ;;  %v2375_v54 = vld [vmem:[%s12714_s26 + $0x3f10] sm:$0xff] }
 0x447   : > { %7443 = vmatprep.mubr.f32.mxu1 %v2963_v23  ;;  %v2322_v5 = vld [vmem:[%s12714_s26 + $0x3d68] sm:$0xff]  ;;  %v12067_v29 = vpack.c.bf16 %v2290_v16, %v2289_v14  ;;  %v2345_v14 = vld [vmem:[%s12714_s26 + $0x3e20] sm:$0xff] }
 0x448   : > { %12048 = vmatpush3.bf16.msra.mxu0 %v12047_v24  ;;  %v12099_v19 = vpack.c.bf16 %v2322_v5, %v2321_v11  ;;  %v2394_v12 = vld [vmem:[%s12714_s26 + $0x3fa8] sm:$0xff]  ;;  %v2377_v16 = vld [vmem:[%s12714_s26 + $0x3f20] sm:$0xff]  ;;  %v2364_v5 = vld [vmem:[%s12714_s26 + $0x3eb8] sm:$0xff] }
 0x449   : > { %12080 = vmatpush3.bf16.msra.mxu1 %v12079_v21  ;;  %12050 = vmatprep.subr.bf16.mxu0 %v12049_v27  ;;  %v2339_v21 = vld [vmem:[%s12714_s26 + $0x3df0] sm:$0xff]  ;;  %v2340_v27 = vld [vmem:[%s12714_s26 + $0x3df8] sm:$0xff]  ;;  %v12145_v11 = vpack.c.bf16 %v2394_v12, %v2393_v60 }
 0x44a   : > { %12082 = vmatprep.subr.bf16.mxu1 %v12081_v18  ;;  %v356_v18 = vld [vmem:[#allocation3 + $0xf8] sm:$0xff] }
 0x44b   : > { %v2964_v32 = vcombine.high %v356_v18, %v356_v18  ;;  %v15144_v56 = vrot.slane %v356_v18, %v12766_v13  ;;  %v2365_v18 = vld [vmem:[%s12714_s26 + $0x3ec0] sm:$0xff]  ;;  %v2372_v60 = vld [vmem:[%s12714_s26 + $0x3ef8] sm:$0xff] }
 0x44c   : > { %12052 = vmatpush3.bf16.msra.mxu0 %v12051_v37  ;;  %v2323_v37 = vld [vmem:[%s12714_s26 + $0x3d70] sm:$0xff] }
 0x44d   : > { %12084 = vmatpush3.bf16.msra.mxu1 %v12083_v42  ;;  %12054 = vmatprep.subr.bf16.mxu0 %v12053_v25  ;;  %v12101_v25 = vpack.c.bf16 %v2340_v27, %v2339_v21  ;;  %v12103_v53 = vpack.c.bf16 %v2324_v52, %v2323_v37  ;;  %v15149_v57 = vrot.slane %v2964_v32, %v12766_v13  ;;  %v2362_v13 = vld [vmem:[%s12714_s26 + $0x3ea8] sm:$0xff]  ;;  %v2347_v21 = vld [vmem:[%s12714_s26 + $0x3e30] sm:$0xff]  ;;  %v2348_v27 = vld [vmem:[%s12714_s26 + $0x3e38] sm:$0xff] }
 0x44e   : > { %12086 = vmatprep.subr.bf16.mxu1 %v12085_v41  ;;  %v2389_v41 = vld [vmem:[%s12714_s26 + $0x3f80] sm:$0xff]  ;;  %v2979_v59 = vcombine.high %v15144_v56, %v15144_v56  ;;  %v2399_v32 = vld [vmem:[%s12714_s26 + $0x3fd0] sm:$0xff] }
 0x44f   : > { %v12137_v38 = vpack.c.bf16 %v2390_v31, %v2389_v41  ;;  %v2980_v6 = vcombine.high %v15149_v57, %v15149_v57  ;;  %v2381_v52 = vld [vmem:[%s12714_s26 + $0x3f40] sm:$0xff]  ;;  %v2367_v41 = vld [vmem:[%s12714_s26 + $0x3ed0] sm:$0xff]  ;;  %v2368_v31 = vld [vmem:[%s12714_s26 + $0x3ed8] sm:$0xff] }
 0x450   : > { %12056 = vmatpush3.bf16.msra.mxu0 %v12055_v48  ;;  %v2341_v48 = vld [vmem:[%s12714_s26 + $0x3e00] sm:$0xff] }
 0x451   : > { %12088 = vmatpush3.bf16.msra.mxu1 %v12087_v49  ;;  %12058 = vmatprep.subr.bf16.mxu0 %v12057_v50  ;;  %v2342_v49 = vld [vmem:[%s12714_s26 + $0x3e08] sm:$0xff]  ;;  %v2373_v50 = vld [vmem:[%s12714_s26 + $0x3f00] sm:$0xff] }
 0x452   : > { %12090 = vmatprep.subr.bf16.mxu1 %v12089_v43  ;;  %v2360_v43 = vld [vmem:[%s12714_s26 + $0x3e98] sm:$0xff]  ;;  %v12107_v63 = vpack.c.bf16 %v2342_v49, %v2341_v48  ;;  %v12125_v48 = vpack.c.bf16 %v2368_v31, %v2367_v41  ;;  %v2351_v49 = vld [vmem:[%s12714_s26 + $0x3e50] sm:$0xff]  ;;  %v12479_v31 = vmov 0.0  }
 0x453   : > { %323 = vst.msk [vmem:[#allocation2] sm:$0x3] %vm322_vm0, %v12479_v31 }
 0x454   : > { %12060 = vmatpush3.bf16.msra.mxu0 %v12059_v51  ;;  %v12139_v51 = vpack.c.bf16 %v2374_v33, %v2373_v50  ;;  %v2352_v50 = vld [vmem:[%s12714_s26 + $0x3e58] sm:$0xff] }
 0x455   : > { %12092 = vmatpush3.bf16.msra.mxu1 %v12091_v45  ;;  %12062 = vmatprep.subr.bf16.mxu0 %v12061_v61  ;;  %v12109_v45 = vpack.c.bf16 %v2360_v43, %v2359_v55  ;;  %v2343_v61 = vld [vmem:[%s12714_s26 + $0x3e10] sm:$0xff]  ;;  %v2384_v55 = vld [vmem:[%s12714_s26 + $0x3f58] sm:$0xff]  ;;  %v2369_v43 = vld [vmem:[%s12714_s26 + $0x3ee0] sm:$0xff] }
 0x456   : > { %v9495_v3 = vpop.f32.mrb[46].mxu0  ;;  %12094 = vmatprep.subr.bf16.mxu1 %v12093_v1  ;;  %v2376_v1 = vld [vmem:[%s12714_s26 + $0x3f18] sm:$0xff] }
 0x457   : > { %v9496_v23 = vpop.f32.mrb[47].mxu0  ;;  %v9530_v24 = vpop.f32.mrb[46].mxu1 }
 0x458   : > { %v9497_v28 = vadd.f32 %v9496_v23, %v9495_v3  ;;  %12064 = vmatpush3.bf16.msra.mxu0 %v12063_v8  ;;  %v9531_v17 = vpop.f32.mrb[47].mxu1  ;;  %v12111_v8 = vpack.c.bf16 %v2344_v62, %v2343_v61  ;;  %v2378_v3 = vld [vmem:[%s12714_s26 + $0x3f28] sm:$0xff]  ;;  %v12129_v61 = vpack.c.bf16 %v2370_v44, %v2369_v43  ;;  %v2353_v62 = vld [vmem:[%s12714_s26 + $0x3e60] sm:$0xff]  ;;  %v12480_v43 = vmov 0.0|0.0  }
 0x459   : > { %v9532_v15 = vadd.f32 %v9531_v17, %v9530_v24  ;;  %12096 = vmatpush3.bf16.msra.mxu1 %v12095_v9  ;;  %12066 = vmatprep.subr.bf16.mxu0 %v12065_v10  ;;  %v12143_v9 = vpack.c.bf16 %v2376_v1, %v2375_v54  ;;  %v12113_v10 = vpack.c.bf16 %v2362_v13, %v2361_v58  ;;  %v2354_v54 = vld [vmem:[%s12714_s26 + $0x3e68] sm:$0xff] }
 0x45a   : > { %v6396_v42 = vadd.f32 %v9497_v28, %v15056_v47  ;;  %12098 = vmatprep.subr.bf16.mxu1 %v12097_v4  ;;  %v12071_v47 = vpack.c.bf16 %v2292_v35, %v2291_v22  ;;  %v2363_v4 = vld [vmem:[%s12714_s26 + $0x3eb0] sm:$0xff]  ;;  %v12147_v23 = vpack.c.bf16 %v2378_v3, %v2377_v16  ;;  %v12119_v22 = vpack.c.bf16 %v2348_v27, %v2347_v21  ;;  %v2386_v13 = vld [vmem:[%s12714_s26 + $0x3f68] sm:$0xff] }
 0x45b   : > { %v12117_v24 = vpack.c.bf16 %v2364_v5, %v2363_v4  ;;  %v2379_v28 = vld [vmem:[%s12714_s26 + $0x3f30] sm:$0xff]  ;;  %v2356_v5 = vld [vmem:[%s12714_s26 + $0x3e78] sm:$0xff] }
 0x45c   : > { %v15135_v34 = vadd.f32 %v9532_v15, %v6396_v42  ;;  %12068 = vmatpush3.bf16.msra.mxu0 %v12067_v29  ;;  %v2380_v29 = vld [vmem:[%s12714_s26 + $0x3f38] sm:$0xff]  ;;  %v2366_v15 = vld [vmem:[%s12714_s26 + $0x3ec8] sm:$0xff]  ;;  %v2349_v42 = vld [vmem:[%s12714_s26 + $0x3e40] sm:$0xff] }
 0x45d   : > { %12100 = vmatpush3.bf16.msra.mxu1 %v12099_v19  ;;  %12070 = vmatprep.subr.bf16.mxu0 %v12069_v39  ;;  %v2397_v19 = vld [vmem:[%s12714_s26 + $0x3fc0] sm:$0xff]  ;;  %v2398_v39 = vld [vmem:[%s12714_s26 + $0x3fc8] sm:$0xff]  ;;  %v12151_v35 = vpack.c.bf16 %v2380_v29, %v2379_v28  ;;  %v12121_v37 = vpack.c.bf16 %v2366_v15, %v2365_v18  ;;  %v2355_v4 = vld [vmem:[%s12714_s26 + $0x3e70] sm:$0xff] }
 0x45e   : > { %12102 = vmatprep.subr.bf16.mxu1 %v12101_v25  ;;  %v2350_v25 = vld [vmem:[%s12714_s26 + $0x3e48] sm:$0xff]  ;;  %v12153_v40 = vpack.c.bf16 %v2398_v39, %v2397_v19  ;;  %v12135_v21 = vpack.c.bf16 %v2356_v5, %v2355_v4 }
 0x460   : > { %12072 = vmatpush3.bf16.msra.mxu0 %v12071_v47  ;;  %v2400_v47 = vld [vmem:[%s12714_s26 + $0x3fd8] sm:$0xff] }
 0x461   : > { %12104 = vmatpush3.bf16.msra.mxu1 %v12103_v53  ;;  %12106 = vmatprep.subr.bf16.mxu0 %v12105_v36  ;;  %v12123_v53 = vpack.c.bf16 %v2350_v25, %v2349_v42  ;;  %v12155_v36 = vpack.c.bf16 %v2382_v30, %v2381_v52  ;;  %v12157_v33 = vpack.c.bf16 %v2400_v47, %v2399_v32 }
 0x462   : > { %12138 = vmatprep.subr.bf16.mxu1 %v12137_v38  ;;  %v2383_v38 = vld [vmem:[%s12714_s26 + $0x3f50] sm:$0xff] }
 0x463   : > { %7374 = vmatmul.mubr.f32.vlgmr.msra.gmra.mrb[60].mxu0 %v15065_v2  ;;  %v2346_v2 = vld [vmem:[%s12714_s26 + $0x3e28] sm:$0xff] }
 0x464   : > { %12108 = vmatpush3.bf16.msra.mxu0 %v12107_v63  ;;  %7444 = vmatmul.mubr.f32.vlgmr.msra.gmra.mrb[60].mxu1 %v15070_v7  ;;  %v2395_v7 = vld [vmem:[%s12714_s26 + $0x3fb0] sm:$0xff]  ;;  %v12115_v20 = vpack.c.bf16 %v2346_v2, %v2345_v14  ;;  %v2402_v63 = vld [vmem:[%s12714_s26 + $0x3fe8] sm:$0xff]  ;;  %v12131_v2 = vpack.c.bf16 %v2354_v54, %v2353_v62 }
 0x465   : > { %12140 = vmatpush3.bf16.msra.mxu1 %v12139_v51  ;;  %12110 = vmatprep.subr.bf16.mxu0 %v12109_v45  ;;  %v12149_v17 = vpack.c.bf16 %v2396_v26, %v2395_v7  ;;  %v12127_v51 = vpack.c.bf16 %v2352_v50, %v2351_v49  ;;  %v12159_v45 = vpack.c.bf16 %v2384_v55, %v2383_v38  ;;  %v7606_v49 = vld [vmem:[%s268_s12 + $0x8] sm:$0xff]  ;;  %v7608_v55 = vld [vmem:[%s268_s12 + $0x18] sm:$0xff] }
 0x466   : > { %12142 = vmatprep.subr.bf16.mxu1 %v12141_v0  ;;  %7513 = vmatprep.mubr.f32.mxu0 %v2979_v59  ;;  %v2385_v0 = vld [vmem:[%s12714_s26 + $0x3f60] sm:$0xff]  ;;  %v12161_v58 = vpack.c.bf16 %v2402_v63, %v2401_v46  ;;  %v2371_v59 = vld [vmem:[%s12714_s26 + $0x3ef0] sm:$0xff] }
 0x467   : > { %7583 = vmatprep.mubr.f32.mxu1 %v2980_v6  ;;  %v12133_v3 = vpack.c.bf16 %v2372_v60, %v2371_v59  ;;  %v7609_v46 = vld [vmem:[%s268_s12 + $0x20] sm:$0xff]  ;;  %v7610_v63 = vld [vmem:[%s268_s12 + $0x28] sm:$0xff] }
 0x468   : > { %12112 = vmatpush3.bf16.msra.mxu0 %v12111_v8  ;;  %v2403_v8 = vld [vmem:[%s12714_s26 + $0x3ff0] sm:$0xff] }
 0x469   : > { %12144 = vmatpush3.bf16.msra.mxu1 %v12143_v9  ;;  %12114 = vmatprep.subr.bf16.mxu0 %v12113_v10  ;;  %v2404_v9 = vld [vmem:[%s12714_s26 + $0x3ff8] sm:$0xff] }
 0x46a   : > { %12146 = vmatprep.subr.bf16.mxu1 %v12145_v11  ;;  %v12163_v11 = vpack.c.bf16 %v2386_v13, %v2385_v0  ;;  %v12165_v26 = vpack.c.bf16 %v2404_v9, %v2403_v8 }
 0x46c   : > { %12116 = vmatpush3.bf16.msra.mxu0 %v12115_v20  ;;  %v2387_v20 = vld [vmem:[%s12714_s26 + $0x3f70] sm:$0xff] }
 0x46d   : > { %12148 = vmatpush3.bf16.msra.mxu1 %v12147_v23  ;;  %12118 = vmatprep.subr.bf16.mxu0 %v12117_v24  ;;  %v2388_v23 = vld [vmem:[%s12714_s26 + $0x3f78] sm:$0xff] }
 0x46e   : > { %12150 = vmatprep.subr.bf16.mxu1 %v12149_v17  ;;  %v12167_v27 = vpack.c.bf16 %v2388_v23, %v2387_v20 }
 0x470   : > { %12120 = vmatpush3.bf16.msra.mxu0 %v12119_v22 }
 0x471   : > { %12152 = vmatpush3.bf16.msra.mxu1 %v12151_v35  ;;  %12122 = vmatprep.subr.bf16.mxu0 %v12121_v37 }
 0x472   : > { %12154 = vmatprep.subr.bf16.mxu1 %v12153_v40 }
 0x474   : > { %12124 = vmatpush3.bf16.msra.mxu0 %v12123_v53 }
 0x475   : > { %12156 = vmatpush3.bf16.msra.mxu1 %v12155_v36  ;;  %12126 = vmatprep.subr.bf16.mxu0 %v12125_v48  ;;  %v7605_v48 = vld [vmem:[%s268_s12] sm:$0xff] }
 0x476   : > { %v9565_v1 = vpop.f32.mrb[48].mxu0  ;;  %12158 = vmatprep.subr.bf16.mxu1 %v12157_v33  ;;  %v12170_v38 = vpack.c.bf16 %v7606_v49, %v7605_v48  ;;  %v7607_v33 = vld [vmem:[%s268_s12 + $0x10] sm:$0xff] }
 0x477   : > { %v9566_v12 = vpop.f32.mrb[49].mxu0  ;;  %v9600_v6 = vpop.f32.mrb[48].mxu1  ;;  %v12173_v44 = vpack.c.bf16 %v7608_v55, %v7607_v33 }
 0x478   : > { %v9567_v10 = vadd.f32 %v9566_v12, %v9565_v1  ;;  %12128 = vmatpush3.bf16.msra.mxu0 %v12127_v51  ;;  %v9601_v14 = vpop.f32.mrb[49].mxu1  ;;  %v12176_v51 = vpack.c.bf16 %v7610_v63, %v7609_v46 }
 0x479   : > { %v9602_v16 = vadd.f32 %v9601_v14, %v9600_v6  ;;  %12160 = vmatpush3.bf16.msra.mxu1 %v12159_v45  ;;  %12130 = vmatprep.subr.bf16.mxu0 %v12129_v61  ;;  %v7611_v45 = vld [vmem:[%s268_s12 + $0x30] sm:$0xff]  ;;  %v7612_v61 = vld [vmem:[%s268_s12 + $0x38] sm:$0xff] }
 0x47a   : > { %v6536_v7 = vadd.f32 %v9567_v10, %v15135_v34  ;;  %12162 = vmatprep.subr.bf16.mxu1 %v12161_v58  ;;  %v12179_v62 = vpack.c.bf16 %v7612_v61, %v7611_v45 }
 0x47c   : > { %v6606_v24 = vadd.f32 %v9602_v16, %v6536_v7  ;;  %12132 = vmatpush3.bf16.msra.mxu0 %v12131_v2 }
 0x47d   : > { %12164 = vmatpush3.bf16.msra.mxu1 %v12163_v11  ;;  %12134 = vmatprep.subr.bf16.mxu0 %v12133_v3 }
 0x47e   : > { %12166 = vmatprep.subr.bf16.mxu1 %v12165_v26 }
 0x480   : > { %12136 = vmatpush3.bf16.msra.mxu0 %v12135_v21 }
 0x481   : > { %12168 = vmatpush3.bf16.msra.mxu1 %v12167_v27  ;;  %12169 = vmatprep.subr.bf16.mxu0 %v12480_v43 }
 0x483   : > { %7514 = vmatmul.mubr.f32.vlgmr.msra.gmra.mrb[62].mxu0 %v15144_v56 }
 0x484   : > { %7584 = vmatmul.mubr.f32.vlgmr.msra.gmra.mrb[62].mxu1 %v15149_v57  ;;  %12171 = vmatpush3.bf16.msra.mxu0 %v12170_v38 }
 0x485   : > { %12172 = vmatprep.subr.bf16.mxu0 %v12480_v43  ;;  %10118 = vmatprep.mubr.msk.f32.mxu0 %vm12481_vm1, %v12479_v31 }
 0x488   : > { %12174 = vmatpush3.bf16.msra.mxu0 %v12173_v44 }
 0x489   : > { %12175 = vmatprep.subr.bf16.mxu0 %v12480_v43 }
 0x48c   : > { %12177 = vmatpush3.bf16.msra.mxu0 %v12176_v51 }
 0x48d   : > { %12178 = vmatprep.subr.bf16.mxu0 %v12480_v43 }
 0x490   : > { %12180 = vmatpush3.bf16.msra.mxu0 %v12179_v62 }
 0x496   : > { %v9635_v28 = vpop.f32.mrb[50].mxu0 }
 0x497   : > { %v9636_v17 = vpop.f32.mrb[51].mxu0  ;;  %v9670_v34 = vpop.f32.mrb[50].mxu1 }
 0x498   : > { %v9637_v29 = vadd.f32 %v9636_v17, %v9635_v28  ;;  %v9671_v18 = vpop.f32.mrb[51].mxu1 }
 0x499   : > { %v9672_v15 = vadd.f32 %v9671_v18, %v9670_v34 }
 0x49a   : > { %v6676_v19 = vadd.f32 %v9637_v29, %v6606_v24 }
 0x49c   : > { %v6746_v39 = vadd.f32 %v9672_v15, %v6676_v19  ;;  %v324_v15 = vld [vmem:[#allocation2] sm:$0x3] }
 0x4b6   : > { %v9705_v22 = vpop.f32.mrb[52].mxu0 }
 0x4b7   : > { %v9706_v35 = vpop.f32.mrb[53].mxu0  ;;  %v9740_v37 = vpop.f32.mrb[52].mxu1 }
 0x4b8   : > { %v9707_v42 = vadd.f32 %v9706_v35, %v9705_v22  ;;  %v9741_v25 = vpop.f32.mrb[53].mxu1  ;;  %v7845_v22 = vld [vmem:[%s259_s24] ss:$0 sm:$0xff]  ;;  %s12391_s24 = scalar_lea.vmem %s12390_s5, 64 }
 0x4b9   : > { %v9742_v52 = vadd.f32 %v9741_v25, %v9740_v37  ;;  %p12393_p2 = scmp.lt.s32.totalorder %s12391_s24, %s12385_s21 }
 0x4ba   : > { %v6816_v40 = vadd.f32 %v9707_v42, %v6746_v39 }
 0x4bb   : > { %p12394_p5 = por %p12393_p2, %p12392_p3 }
 0x4bc   : > { %v6886_v30 = vadd.f32 %v9742_v52, %v6816_v40 }
 0x4bd   : > { %p12395_p12 = pnand %p12394_p5, %p12388_p1 }
 0x4d6   : > { %v9775_v56 = vpop.f32.mrb[54].mxu0 }
 0x4d7   : > { %v9776_v57 = vpop.f32.mrb[55].mxu0  ;;  %v9810_v41 = vpop.f32.mrb[54].mxu1 }
 0x4d8   : > { %v9777_v32 = vadd.f32 %v9776_v57, %v9775_v56  ;;  %v9811_v47 = vpop.f32.mrb[55].mxu1 }
 0x4d9   : > { %v9812_v53 = vadd.f32 %v9811_v47, %v9810_v41 }
 0x4da   : > { %v6956_v36 = vadd.f32 %v9777_v32, %v6886_v30 }
 0x4dc   : > { %v7026_v50 = vadd.f32 %v9812_v53, %v6956_v36 }
 0x4f6   : > { %v9845_v54 = vpop.f32.mrb[56].mxu0 }
 0x4f7   : > { %v9846_v0 = vpop.f32.mrb[57].mxu0  ;;  %v9880_v1 = vpop.f32.mrb[56].mxu1 }
 0x4f8   : > { %v9847_v58 = vadd.f32 %v9846_v0, %v9845_v54  ;;  %v9881_v13 = vpop.f32.mrb[57].mxu1 }
 0x4f9   : > { %v9882_v59 = vadd.f32 %v9881_v13, %v9880_v1 }
 0x4fa   : > { %v7096_v60 = vadd.f32 %v9847_v58, %v7026_v50 }
 0x4fc   : > { %v7166_v12 = vadd.f32 %v9882_v59, %v7096_v60 }
 0x516   : > { %v9915_v6 = vpop.f32.mrb[58].mxu0 }
 0x517   : > { %v9916_v8 = vpop.f32.mrb[59].mxu0  ;;  %v9950_v9 = vpop.f32.mrb[58].mxu1 }
 0x518   : > { %v9917_v10 = vadd.f32 %v9916_v8, %v9915_v6  ;;  %v9951_v14 = vpop.f32.mrb[59].mxu1 }
 0x519   : > { %v9952_v2 = vadd.f32 %v9951_v14, %v9950_v9 }
 0x51a   : > { %v7236_v16 = vadd.f32 %v9917_v10, %v7166_v12 }
 0x51c   : > { %v7306_v11 = vadd.f32 %v9952_v2, %v7236_v16 }
 0x536   : > { %v9985_v3 = vpop.f32.mrb[60].mxu0 }
 0x537   : > { %v9986_v4 = vpop.f32.mrb[61].mxu0  ;;  %v10020_v5 = vpop.f32.mrb[60].mxu1 }
 0x538   : > { %v9987_v7 = vadd.f32 %v9986_v4, %v9985_v3  ;;  %v10021_v26 = vpop.f32.mrb[61].mxu1 }
 0x539   : > { %v10022_v20 = vadd.f32 %v10021_v26, %v10020_v5 }
 0x53a   : > { %v7376_v23 = vadd.f32 %v9987_v7, %v7306_v11 }
 0x53c   : > { %v7446_v24 = vadd.f32 %v10022_v20, %v7376_v23 }
 0x556   : > { %v10055_v21 = vpop.f32.mrb[62].mxu0 }
 0x557   : > { %v10056_v27 = vpop.f32.mrb[63].mxu0  ;;  %v10090_v28 = vpop.f32.mrb[62].mxu1 }
 0x558   : > { %v10057_v17 = vadd.f32 %v10056_v27, %v10055_v21  ;;  %v10091_v34 = vpop.f32.mrb[63].mxu1 }
 0x559   : > { %v10092_v29 = vadd.f32 %v10091_v34, %v10090_v28 }
 0x55a   : > { %v7516_v18 = vadd.f32 %v10057_v17, %v7446_v24 }
 0x55c   : > { %v7586_v19 = vadd.f32 %v10092_v29, %v7516_v18 }
 0x55e   : > { %v7589_v39 = vadd.f32 %v7586_v19, %v324_v15 }
 0x560   : > { %7591 = vst.msk [vmem:[#allocation2] sm:$0x3] %vm322_vm0, %v7589_v39 }
 0x567   : > { %v7595_v35 = vld [vmem:[#allocation2] sm:$0x3] }
 0x568   : > { %v7603_v37 = vadd.f32 %v7845_v22, %v7595_v35 }
 0x56a   : > { %v7604_v42 = vmax.f32 %v7603_v37, 0.0 }
 0x56c   : > { %10119 = vmatmul.mubr.msk.f32.vlgmr.msra.gmra.mrb[64].mxu0 %vm7613_vm2, %v7604_v42 }
 0x63f   : > { %v7683_v25 = vpop.f32.mrb[64].mxu0 }
 0x640   : > { %7688 = vst.msk [vmem:[%s305_s28] sm:$0x3] %vm7687_vm3, %v7683_v25  ;;  %v10120_v52 = vpop.f32.mrb[65].mxu0 }
 0x641   : > { %12398 = shalt.err (!%p12395_p12)
}
 0x642   : > { %s12399_s9 = scalar_lea.hbm %s15222_s2, 32  ;;  %s12403_s25 = scalar_lea.hbm %s15275_s4, 64 }
 0x643   : > { %p12400_p10 = scmp.ne.s32.totalorder %s15222_s2, %s12399_s9  ;;  %p12404_p11 = scmp.lt.u32.totalorder %s15222_s2, %s15275_s4 }
 0x644   : > { %p12405_p8 = scmp.lt.u32.totalorder %s12403_s25, %s12399_s9  ;;  %p12407_p13 = scmp.lt.u32.totalorder %s12399_s9, %s15222_s2 }
 0x645   : > { %p12401_p9 = pnand %p12400_p10, %p15296_p4 }
 0x646   : > { %p12406_p0 = por %p12405_p8, %p12404_p11 }
 0x647   : > { %p12402_p6 = pneg %p12401_p9 }
 0x648   : > { %p12408_p7 = por %p12407_p13, %p12406_p0 }
 0x64a   : > { %p12409_p1 = pnand %p12408_p7, %p12402_p6 }
 0x64c   : > { %12412 = shalt.err (!%p12409_p1)
}
 0x64d   : > { %12189 = dma.vmem_to_hbm [thread:$0]  (%p15296_p4), %s15224_s23, 32, %s15222_s2, %s7690_s3  }
 0x64e PF: > { %s7715_s10 = sand.u32 1, %s12451_s15   ;;  %p15297_p3 = scmp.ne.s32.totalorder %s15288_s6, 0 }
 0x64f   : > { %p15298_p2 = scmp.ge.s32.totalorder %s12471_s20, 2  ;;  %s7716_s12 = scalar_lea.sflag [#allocation5], %s7715_s10 }
 0x651   : > { %p12203_p5 = pnand %p15298_p2, %p15297_p3 }
 0x653   : > { %12446 = dma.done.wait (!%p12203_p5), %s7716_s12, 32  }
 0x654   : > { %12448 = vsyncadd (!%p12203_p5), %s7716_s12, 4294967264  ;;  %s21_s20 = sadd.s32 1, %s12471_s20   ;;  %s15299_s30 = sld [smem:[#allocation13_spill]] }
 0x655   : > { %p18_p12 = scmp.ge.s32.totalorder %s21_s20, 4   ;;  %s15300_s15 = smov %s12455_s16 }
 0x656   : > { %s15301_s16 = smov %s12459_s17  ;;  %s15302_s17 = smov %s12556_s27 }
 0x657   : > { %s15303_s18 = smov %s12467_s19  ;;  %20 = sbr.rel (!%p18_p12) target bundleno = 10 (0xa), region = 109 }
 0x65a   : > { %s15304_s19 = smov %s15299_s30 }
 0x65e   :  { %7721 = vsyncpa [#allocation4], 1 }
 0x65f   :  { %7723 = vsyncpa [#allocation4 + $0x1], 1 }
 0x660   :  { %7724 = vsyncpa [#allocation7], 1 }
 0x661   :  { %7726 = vsyncpa [#allocation7 + $0x1], 1 }
 0x662   :  { %7727 = vsyncpa [#allocation5], 1 }
 0x663   :  { %7729 = vsyncpa [#allocation5 + $0x1], 1 }

</bundles_post_ra>
